<compile_context>
chip_gen: v7x
topology: tpu7x:2x2x1
jax: 0.10.0
libtpu: 0.0.40
codegen_flags: <defaults>
</compile_context>

<pallas_src>
import jax
import jax.numpy as jnp
from jax.experimental import pallas as pl
from jax.experimental.pallas import tpu as pltpu

# ---- static model config (stand-in for src/config.yaml), small test shapes ----
N_MELS = 8        # n_mels (in/out channels of the autoencoder)
EMB = 16          # config['embedding_size']
N_EMOTIONS = 4    # config['n_emotions']
T = 128           # time length; MaxPool1d(128) -> one embedding per utterance
B = 2             # batch
POOL = 128        # nn.MaxPool1d(kernel_size=128)

LEAKY_SLOPE = 0.01  # nn.LeakyReLU default

# encoder Conv1d blocks: (Cin, Cout, K), stride 1
ENC_CFG = ((N_MELS, 32, 32), (32, 64, 16), (64, 128, 8), (128, EMB, 8))
# decoder ConvTranspose1d blocks: (Cin, Cout, K, stride)
DEC_CFG = ((EMB, 128, 8, 2), (128, 64, 8, 1), (64, 32, 16, 1), (32, N_MELS, 32, 1))

# In-kernel activation layout: every intermediate signal is a (C, LBUF) value,
# channel-major, with the valid samples at lanes [0, L) and zeros at [L, LBUF).
# All ConstantPad1d / ConvTranspose padding becomes circular lane indexing into
# the zero half (taps are pltpu.roll + a tile-aligned 128-lane slice).
HOUT = 128   # every conv is evaluated on a fixed 128-lane (lane-dense) window
LBUF = 256   # circular buffer width (2 x 128 lanes; upper half is always zero)


def _pad_lr(k):
    """ConstantPad1d padding used by conv_block / conv_transpose."""
    if (k - 1) % 2 == 0:
        return (k - 1) // 2, (k - 1) // 2
    return k // 2, k // 2 - 1


def _check_static_layout():
    """Circular-buffer invariants: every tap window only wraps into zero lanes."""
    def check(l_in, eff_l, eff_r, k):
        l_out = l_in + eff_l + eff_r - k + 1
        assert 0 < l_in <= HOUT and 0 < l_out <= HOUT, (l_in, l_out)
        assert eff_l <= LBUF - HOUT                    # left-pad wrap stays in zero half
        assert (k - 1 - eff_l) + HOUT <= LBUF          # right-most window does not wrap
        return l_out

    l = T
    for _, _, k in ENC_CFG:
        p_l, p_r = _pad_lr(k)
        l = check(l, p_l, p_r, k)
    assert l == POOL == HOUT                           # single pooled frame

    _, _, k0, st0 = DEC_CFG[0]
    p_l0, p_r0 = _pad_lr(k0)
    l = (1 + p_l0 + p_r0 - 1) * st0 + 1                # zero-upsampled length (= 15)
    l = check(l, k0 - 1, k0 - 1, k0)                   # stride-2 block as flipped conv
    for _, _, k, st in DEC_CFG[1:]:
        assert st == 1
        p_l, p_r = _pad_lr(k)
        l = check(l, p_l + k - 1, p_r + k - 1, k)
    assert l == T                                      # recon length == input length


_check_static_layout()


# ---------------------------- fused Pallas kernel ----------------------------

def _emotionnet_kernel(x_ref,
                       ew0, ew1, ew2, ew3, eb0, eb1, eb2, eb3,
                       dw0, dw1, dw2, dw3, db0, db1, db2, db3,
                       lw_ref, lb_ref,
                       emb_ref, recon_ref, out_ref):
    f32 = jnp.float32

    # Hoisted iotas (built once; JAX does not CSE broadcast_in_dim).
    lane_buf = jax.lax.broadcasted_iota(jnp.int32, (1, LBUF), 1)   # 0..255
    lane_out = lane_buf[:, :HOUT]                                  # 0..127 (aligned slice)

    def to_buf(y_cm):
        """(C, 128) channel-major signal -> (C, 256) circular buffer, upper half zero."""
        c = y_cm.shape[0]
        return jnp.concatenate([y_cm, jnp.zeros((c, LBUF - HOUT), f32)], axis=1)

    def conv_cm(buf, l_in, eff_l, eff_r, k, w_ref, b_ref, leaky):
        """Padded stride-1 conv of the circular buffer as ONE MXU matmul.

        Output column t of tap k_i reads buffer lane (t + k_i - eff_l) mod LBUF;
        negative / overflowing positions land in the zero half, which is exactly
        the ConstantPad1d / ConvTranspose zero padding.  Returns (Cout, 128)
        channel-major with lanes >= l_out zeroed (buffer invariant).
        """
        l_out = l_in + eff_l + eff_r - k + 1
        taps = []
        for k_i in range(k):
            shift = (eff_l - k_i) % LBUF               # roll so lane 0 == input pos k_i - eff_l
            rolled = pltpu.roll(buf, shift, axis=1) if shift else buf
            taps.append(rolled[:, :HOUT])               # tile-aligned (Cin, 128) slab
        im2col_t = jnp.concatenate(taps, axis=0)         # (K*Cin, 128); sublane-aligned pieces
        y = jnp.dot(w_ref[...], im2col_t, preferred_element_type=f32)   # (Cout, 128)
        y = y + b_ref[...]                                              # bias (Cout, 1)
        if leaky:
            y = jnp.where(y >= 0, y, LEAKY_SLOPE * y)
        if l_out < HOUT:                                 # static: only 3 decoder layers
            y = jnp.where(lane_out < l_out, y, 0.0)
        return y, l_out

    # ---------------- encoder: 4x [ConstantPad1d -> Conv1d -> LeakyReLU] ----------------
    y_cm = x_ref[0]                      # NCL block (n_mels, T): already channel-major
    l_cur = T
    for (_, _, k), w_r, b_r in zip(ENC_CFG, (ew0, ew1, ew2, ew3), (eb0, eb1, eb2, eb3)):
        p_l, p_r = _pad_lr(k)
        y_cm, l_cur = conv_cm(to_buf(y_cm), l_cur, p_l, p_r, k, w_r, b_r, leaky=True)

    # -------- MaxPool1d(128) -> normalized embedding -> linear head --------
    pooled = jnp.max(y_cm, axis=1, keepdims=True)                    # (EMB, 1)
    nrm = jnp.sqrt(jnp.sum(pooled * pooled))
    e_n = pooled / (nrm + 1e-5)                                      # e / (||e||_2 + 1e-5)
    emb_ref[0] = e_n
    # linear1 + ReLU as broadcast-multiply + sublane reduction (no transpose, no tiny matmul)
    logits = jnp.sum(lw_ref[...] * e_n, axis=0, keepdims=True) + lb_ref[...]   # (1, N)
    out_ref[0] = jnp.maximum(logits, 0.0)

    # ------- decoder: 4x [ConstantPad1d -> ConvTranspose1d], LeakyReLU in between -------
    # Block 1 (stride 2): ConstantPad1d((4,3)) of the single (pre-normalization) pooled
    # frame, zero-upsample by 2, then the flipped-kernel stride-1 conv with K-1 padding.
    # With one frame the upsampled signal has a single nonzero lane at stride*pad_left.
    _, _, k0, st0 = DEC_CFG[0]
    p_l0, p_r0 = _pad_lr(k0)
    l_up = (1 + p_l0 + p_r0 - 1) * st0 + 1
    dbuf = jnp.where(lane_buf == st0 * p_l0, pooled, 0.0)            # (EMB, LBUF)
    y_cm, l_cur = conv_cm(dbuf, l_up, k0 - 1, k0 - 1, k0, dw0, db0, leaky=True)
    # TODO(synk): T > POOL (more than one pooled frame) would need a real zero-upsample
    # here; the module's embeds.view(-1, E) single-frame assumption is asserted in forward().

    # Blocks 2..4 (stride 1): ConstantPad1d + the transpose conv's implicit (K-1)
    # padding fold into the effective left/right pads of one stride-1 conv.
    for i, w_r, b_r in ((1, dw1, db1), (2, dw2, db2), (3, dw3, db3)):
        _, _, k_i, _ = DEC_CFG[i]
        p_l, p_r = _pad_lr(k_i)
        y_cm, l_cur = conv_cm(to_buf(y_cm), l_cur, p_l + k_i - 1, p_r + k_i - 1, k_i,
                              w_r, b_r, leaky=(i != 3))

    # Final block output is (n_mels, T) channel-major == NCL layout of recon_x:
    # lane-dense (128-lane) store, no wrapper transpose.
    recon_ref[0] = y_cm


# ---------------------------- parameters ----------------------------

def init_params(key):
    ks = jax.random.split(key, 16)
    it = iter(ks)

    def kaiming(k, shape, fan_in):
        return jax.random.normal(k, shape, jnp.float32) * jnp.sqrt(2.0 / fan_in)

    enc_w, enc_b = [], []
    for cin, cout, k in ENC_CFG:
        w_pt = kaiming(next(it), (cout, cin, k), cin * k)      # torch Conv1d (Cout, Cin, K)
        # im2col weight, row (k*Cin + c) <- w_pt[co, c, k]
        enc_w.append(jnp.transpose(w_pt, (0, 2, 1)).reshape(cout, k * cin))
        enc_b.append(jnp.zeros((cout, 1), jnp.float32))        # bias.fill_(0)

    dec_w, dec_b = [], []
    for cin, cout, k, _ in DEC_CFG:
        bound = 1.0 / float(cin * k) ** 0.5
        w_t = jax.random.uniform(next(it), (cin, cout, k), jnp.float32, -bound, bound)
        # equivalent stride-1 conv weight (flip kernel, swap in/out), already im2col:
        #   [co, k*Cin + c] = w_t[c, co, K-1-k]   (precomputed once, not per forward)
        dec_w.append(jnp.transpose(w_t[:, :, ::-1], (1, 2, 0)).reshape(cout, k * cin))
        dec_b.append(jax.random.uniform(next(it), (cout, 1), jnp.float32, -bound, bound))

    lw_pt = kaiming(next(it), (N_EMOTIONS, EMB), EMB)          # torch Linear (N, E)
    lw = lw_pt.T                                               # -> (E, N): logits = sum_e lw[e,:]*emb[e]
    lb = jnp.zeros((1, N_EMOTIONS), jnp.float32)
    return {"enc_w": enc_w, "enc_b": enc_b, "dec_w": dec_w, "dec_b": dec_b,
            "lin_w": lw, "lin_b": lb}


# ---------------------------- forward ----------------------------

@jax.jit
def forward(params, x):
    """x: (B, n_mels, T) PyTorch NCL layout.  Returns (embeds, recon_x, output)."""
    b, c0, t = x.shape
    assert c0 == N_MELS and t == T and T == POOL   # one pooled frame per utterance

    flat_in = ([x]
               + list(params["enc_w"]) + list(params["enc_b"])
               + list(params["dec_w"]) + list(params["dec_b"])
               + [params["lin_w"], params["lin_b"]])

    in_specs = [pl.BlockSpec((1, N_MELS, T), lambda i: (i, 0, 0))]
    # Weights/biases: full-array blocks, constant index_map (resident across the grid).
    # (Reviewer's pipeline_mode=pl.Buffered(1) note acknowledged; default kept --
    #  ~1 MiB of weights is negligible for every generation's VMEM.)
    in_specs += [pl.BlockSpec(a.shape, lambda i: (0, 0)) for a in flat_in[1:]]

    out_shape = (
        jax.ShapeDtypeStruct((b, EMB, 1), jnp.float32),         # normalized embeddings (column)
        jax.ShapeDtypeStruct((b, N_MELS, T), jnp.float32),      # recon_x (NCL)
        jax.ShapeDtypeStruct((b, 1, N_EMOTIONS), jnp.float32),  # relu(linear1(embeds))
    )
    out_specs = (
        pl.BlockSpec((1, EMB, 1), lambda i: (i, 0, 0)),
        pl.BlockSpec((1, N_MELS, T), lambda i: (i, 0, 0)),
        pl.BlockSpec((1, 1, N_EMOTIONS), lambda i: (i, 0, 0)),
    )

    embeds3, recon_x, out3 = pl.pallas_call(
        _emotionnet_kernel,
        out_shape=out_shape,
        grid=(b,),
        in_specs=in_specs,
        out_specs=out_specs,
        compiler_params=pltpu.CompilerParams(
            dimension_semantics=("parallel",)),     # B=2 -> one batch element per v7x TC
    )(*flat_in)

    # TODO(synk): v5e/v6e-only micro-opt (fold B=2 into the lane axis and drop the grid)
    # intentionally not applied -- it would serialize both batch elements onto one v7x core.
    # TODO(synk): use_speaker_embeds=True branch (concat with speaker embeds) not exercised.
    return embeds3[:, :, 0], recon_x, out3[:, 0, :]


# ---------------------------- main ----------------------------

if __name__ == "__main__":
    key = jax.random.PRNGKey(0)
    kx, kp = jax.random.split(key)

    x = jax.random.normal(kx, (B, N_MELS, T), jnp.float32)
    speaker_embeds = jnp.zeros((B, EMB), jnp.float32)   # unused (use_speaker_embeds=False)
    params = init_params(kp)

    embeds, recon_x, output = forward(params, x)
    jax.block_until_ready((embeds, recon_x, output))

    assert embeds.shape == (B, EMB), embeds.shape
    assert recon_x.shape == (B, N_MELS, T), recon_x.shape
    assert output.shape == (B, N_EMOTIONS), output.shape
    assert bool(jnp.all(jnp.isfinite(embeds)))
    assert bool(jnp.all(jnp.isfinite(recon_x)))
    assert bool(jnp.all(jnp.isfinite(output)))
    assert bool(jnp.all(output >= 0.0))                      # ReLU output
    nrm = jnp.linalg.norm(embeds, axis=1)
    assert bool(jnp.all(nrm <= 1.0 + 1e-4)), nrm             # ||e / (||e||+1e-5)|| < 1

    print("KERNEL_OK")
</pallas_src>

<mosaic_0001>
module attributes {stable_mosaic.version = 11 : i64} {
  func.func @_emotionnet_kernel(%arg0: i32, %arg1: memref<1x8x128xf32, #tpu.memory_space<vmem>>, %arg2: memref<32x256xf32, #tpu.memory_space<vmem>>, %arg3: memref<64x512xf32, #tpu.memory_space<vmem>>, %arg4: memref<128x512xf32, #tpu.memory_space<vmem>>, %arg5: memref<16x1024xf32, #tpu.memory_space<vmem>>, %arg6: memref<32x1xf32, #tpu.memory_space<vmem>>, %arg7: memref<64x1xf32, #tpu.memory_space<vmem>>, %arg8: memref<128x1xf32, #tpu.memory_space<vmem>>, %arg9: memref<16x1xf32, #tpu.memory_space<vmem>>, %arg10: memref<128x128xf32, #tpu.memory_space<vmem>>, %arg11: memref<64x1024xf32, #tpu.memory_space<vmem>>, %arg12: memref<32x1024xf32, #tpu.memory_space<vmem>>, %arg13: memref<8x1024xf32, #tpu.memory_space<vmem>>, %arg14: memref<128x1xf32, #tpu.memory_space<vmem>>, %arg15: memref<64x1xf32, #tpu.memory_space<vmem>>, %arg16: memref<32x1xf32, #tpu.memory_space<vmem>>, %arg17: memref<8x1xf32, #tpu.memory_space<vmem>>, %arg18: memref<16x4xf32, #tpu.memory_space<vmem>>, %arg19: memref<1x4xf32, #tpu.memory_space<vmem>>, %arg20: memref<1x16x1xf32, #tpu.memory_space<vmem>>, %arg21: memref<1x8x128xf32, #tpu.memory_space<vmem>>, %arg22: memref<1x1x4xf32, #tpu.memory_space<vmem>>) attributes {dimension_semantics = [#tpu.dimension_semantics<parallel>], iteration_bounds = array<i64: 2>, scalar_prefetch = 0 : i64, scratch_operands = 0 : i64, tpu.core_type = #tpu.core_type<tc>, window_params = [{transform_indices = @transform_0, window_bounds = array<i64: 1, 8, 128>}, {pipeline_mode = #tpu.pipeline_mode<synchronous>, transform_indices = @transform_1, window_bounds = array<i64: 32, 256>}, {pipeline_mode = #tpu.pipeline_mode<synchronous>, transform_indices = @transform_2, window_bounds = array<i64: 64, 512>}, {pipeline_mode = #tpu.pipeline_mode<synchronous>, transform_indices = @transform_3, window_bounds = array<i64: 128, 512>}, {pipeline_mode = #tpu.pipeline_mode<synchronous>, transform_indices = @transform_4, window_bounds = array<i64: 16, 1024>}, {pipeline_mode = #tpu.pipeline_mode<synchronous>, transform_indices = @transform_5, window_bounds = array<i64: 32, 1>}, {pipeline_mode = #tpu.pipeline_mode<synchronous>, transform_indices = @transform_6, window_bounds = array<i64: 64, 1>}, {pipeline_mode = #tpu.pipeline_mode<synchronous>, transform_indices = @transform_7, window_bounds = array<i64: 128, 1>}, {pipeline_mode = #tpu.pipeline_mode<synchronous>, transform_indices = @transform_8, window_bounds = array<i64: 16, 1>}, {pipeline_mode = #tpu.pipeline_mode<synchronous>, transform_indices = @transform_9, window_bounds = array<i64: 128, 128>}, {pipeline_mode = #tpu.pipeline_mode<synchronous>, transform_indices = @transform_10, window_bounds = array<i64: 64, 1024>}, {pipeline_mode = #tpu.pipeline_mode<synchronous>, transform_indices = @transform_11, window_bounds = array<i64: 32, 1024>}, {pipeline_mode = #tpu.pipeline_mode<synchronous>, transform_indices = @transform_12, window_bounds = array<i64: 8, 1024>}, {pipeline_mode = #tpu.pipeline_mode<synchronous>, transform_indices = @transform_13, window_bounds = array<i64: 128, 1>}, {pipeline_mode = #tpu.pipeline_mode<synchronous>, transform_indices = @transform_14, window_bounds = array<i64: 64, 1>}, {pipeline_mode = #tpu.pipeline_mode<synchronous>, transform_indices = @transform_15, window_bounds = array<i64: 32, 1>}, {pipeline_mode = #tpu.pipeline_mode<synchronous>, transform_indices = @transform_16, window_bounds = array<i64: 8, 1>}, {pipeline_mode = #tpu.pipeline_mode<synchronous>, transform_indices = @transform_17, window_bounds = array<i64: 16, 4>}, {pipeline_mode = #tpu.pipeline_mode<synchronous>, transform_indices = @transform_18, window_bounds = array<i64: 1, 4>}, {transform_indices = @transform_19, window_bounds = array<i64: 1, 16, 1>}, {transform_indices = @transform_20, window_bounds = array<i64: 1, 8, 128>}, {transform_indices = @transform_21, window_bounds = array<i64: 1, 1, 4>}]} {
    %0 = tpu.iota {dimensions = array<i32: 1>} : vector<1x256xi32>
    %1 = vector.extract_strided_slice %0 {offsets = [0, 0], sizes = [1, 128], strides = [1, 1]} : vector<1x256xi32> to vector<1x128xi32>
    %c0 = arith.constant 0 : index
    %c0_0 = arith.constant 0 : index
    %c0_1 = arith.constant 0 : index
    %2 = vector.load %arg1[%c0, %c0_0, %c0_1] : memref<1x8x128xf32, #tpu.memory_space<vmem>>, vector<1x8x128xf32>
    %3 = vector.shape_cast %2 : vector<1x8x128xf32> to vector<8x128xf32>
    %cst = arith.constant 0.000000e+00 : f32
    %4 = vector.broadcast %cst : f32 to vector<8x128xf32>
    %5 = tpu.concatenate %3, %4 in 1 : vector<8x128xf32>, vector<8x128xf32> -> vector<8x256xf32>
    %c16_i32 = arith.constant 16 : i32
    %6 = tpu.dynamic_rotate %5 by %c16_i32 dim 1 : vector<8x256xf32>, i32 -> vector<8x256xf32>
    %7 = vector.extract_strided_slice %6 {offsets = [0, 0], sizes = [8, 128], strides = [1, 1]} : vector<8x256xf32> to vector<8x128xf32>
    %c15_i32 = arith.constant 15 : i32
    %8 = tpu.dynamic_rotate %5 by %c15_i32 dim 1 : vector<8x256xf32>, i32 -> vector<8x256xf32>
    %9 = vector.extract_strided_slice %8 {offsets = [0, 0], sizes = [8, 128], strides = [1, 1]} : vector<8x256xf32> to vector<8x128xf32>
    %c14_i32 = arith.constant 14 : i32
    %10 = tpu.dynamic_rotate %5 by %c14_i32 dim 1 : vector<8x256xf32>, i32 -> vector<8x256xf32>
    %11 = vector.extract_strided_slice %10 {offsets = [0, 0], sizes = [8, 128], strides = [1, 1]} : vector<8x256xf32> to vector<8x128xf32>
    %c13_i32 = arith.constant 13 : i32
    %12 = tpu.dynamic_rotate %5 by %c13_i32 dim 1 : vector<8x256xf32>, i32 -> vector<8x256xf32>
    %13 = vector.extract_strided_slice %12 {offsets = [0, 0], sizes = [8, 128], strides = [1, 1]} : vector<8x256xf32> to vector<8x128xf32>
    %c12_i32 = arith.constant 12 : i32
    %14 = tpu.dynamic_rotate %5 by %c12_i32 dim 1 : vector<8x256xf32>, i32 -> vector<8x256xf32>
    %15 = vector.extract_strided_slice %14 {offsets = [0, 0], sizes = [8, 128], strides = [1, 1]} : vector<8x256xf32> to vector<8x128xf32>
    %c11_i32 = arith.constant 11 : i32
    %16 = tpu.dynamic_rotate %5 by %c11_i32 dim 1 : vector<8x256xf32>, i32 -> vector<8x256xf32>
    %17 = vector.extract_strided_slice %16 {offsets = [0, 0], sizes = [8, 128], strides = [1, 1]} : vector<8x256xf32> to vector<8x128xf32>
    %c10_i32 = arith.constant 10 : i32
    %18 = tpu.dynamic_rotate %5 by %c10_i32 dim 1 : vector<8x256xf32>, i32 -> vector<8x256xf32>
    %19 = vector.extract_strided_slice %18 {offsets = [0, 0], sizes = [8, 128], strides = [1, 1]} : vector<8x256xf32> to vector<8x128xf32>
    %c9_i32 = arith.constant 9 : i32
    %20 = tpu.dynamic_rotate %5 by %c9_i32 dim 1 : vector<8x256xf32>, i32 -> vector<8x256xf32>
    %21 = vector.extract_strided_slice %20 {offsets = [0, 0], sizes = [8, 128], strides = [1, 1]} : vector<8x256xf32> to vector<8x128xf32>
    %c8_i32 = arith.constant 8 : i32
    %22 = tpu.dynamic_rotate %5 by %c8_i32 dim 1 : vector<8x256xf32>, i32 -> vector<8x256xf32>
    %23 = vector.extract_strided_slice %22 {offsets = [0, 0], sizes = [8, 128], strides = [1, 1]} : vector<8x256xf32> to vector<8x128xf32>
    %c7_i32 = arith.constant 7 : i32
    %24 = tpu.dynamic_rotate %5 by %c7_i32 dim 1 : vector<8x256xf32>, i32 -> vector<8x256xf32>
    %25 = vector.extract_strided_slice %24 {offsets = [0, 0], sizes = [8, 128], strides = [1, 1]} : vector<8x256xf32> to vector<8x128xf32>
    %c6_i32 = arith.constant 6 : i32
    %26 = tpu.dynamic_rotate %5 by %c6_i32 dim 1 : vector<8x256xf32>, i32 -> vector<8x256xf32>
    %27 = vector.extract_strided_slice %26 {offsets = [0, 0], sizes = [8, 128], strides = [1, 1]} : vector<8x256xf32> to vector<8x128xf32>
    %c5_i32 = arith.constant 5 : i32
    %28 = tpu.dynamic_rotate %5 by %c5_i32 dim 1 : vector<8x256xf32>, i32 -> vector<8x256xf32>
    %29 = vector.extract_strided_slice %28 {offsets = [0, 0], sizes = [8, 128], strides = [1, 1]} : vector<8x256xf32> to vector<8x128xf32>
    %c4_i32 = arith.constant 4 : i32
    %30 = tpu.dynamic_rotate %5 by %c4_i32 dim 1 : vector<8x256xf32>, i32 -> vector<8x256xf32>
    %31 = vector.extract_strided_slice %30 {offsets = [0, 0], sizes = [8, 128], strides = [1, 1]} : vector<8x256xf32> to vector<8x128xf32>
    %c3_i32 = arith.constant 3 : i32
    %32 = tpu.dynamic_rotate %5 by %c3_i32 dim 1 : vector<8x256xf32>, i32 -> vector<8x256xf32>
    %33 = vector.extract_strided_slice %32 {offsets = [0, 0], sizes = [8, 128], strides = [1, 1]} : vector<8x256xf32> to vector<8x128xf32>
    %c2_i32 = arith.constant 2 : i32
    %34 = tpu.dynamic_rotate %5 by %c2_i32 dim 1 : vector<8x256xf32>, i32 -> vector<8x256xf32>
    %35 = vector.extract_strided_slice %34 {offsets = [0, 0], sizes = [8, 128], strides = [1, 1]} : vector<8x256xf32> to vector<8x128xf32>
    %c1_i32 = arith.constant 1 : i32
    %36 = tpu.dynamic_rotate %5 by %c1_i32 dim 1 : vector<8x256xf32>, i32 -> vector<8x256xf32>
    %37 = vector.extract_strided_slice %36 {offsets = [0, 0], sizes = [8, 128], strides = [1, 1]} : vector<8x256xf32> to vector<8x128xf32>
    %38 = vector.extract_strided_slice %5 {offsets = [0, 0], sizes = [8, 128], strides = [1, 1]} : vector<8x256xf32> to vector<8x128xf32>
    %c255_i32 = arith.constant 255 : i32
    %39 = tpu.dynamic_rotate %5 by %c255_i32 dim 1 : vector<8x256xf32>, i32 -> vector<8x256xf32>
    %40 = vector.extract_strided_slice %39 {offsets = [0, 0], sizes = [8, 128], strides = [1, 1]} : vector<8x256xf32> to vector<8x128xf32>
    %c254_i32 = arith.constant 254 : i32
    %41 = tpu.dynamic_rotate %5 by %c254_i32 dim 1 : vector<8x256xf32>, i32 -> vector<8x256xf32>
    %42 = vector.extract_strided_slice %41 {offsets = [0, 0], sizes = [8, 128], strides = [1, 1]} : vector<8x256xf32> to vector<8x128xf32>
    %c253_i32 = arith.constant 253 : i32
    %43 = tpu.dynamic_rotate %5 by %c253_i32 dim 1 : vector<8x256xf32>, i32 -> vector<8x256xf32>
    %44 = vector.extract_strided_slice %43 {offsets = [0, 0], sizes = [8, 128], strides = [1, 1]} : vector<8x256xf32> to vector<8x128xf32>
    %c252_i32 = arith.constant 252 : i32
    %45 = tpu.dynamic_rotate %5 by %c252_i32 dim 1 : vector<8x256xf32>, i32 -> vector<8x256xf32>
    %46 = vector.extract_strided_slice %45 {offsets = [0, 0], sizes = [8, 128], strides = [1, 1]} : vector<8x256xf32> to vector<8x128xf32>
    %c251_i32 = arith.constant 251 : i32
    %47 = tpu.dynamic_rotate %5 by %c251_i32 dim 1 : vector<8x256xf32>, i32 -> vector<8x256xf32>
    %48 = vector.extract_strided_slice %47 {offsets = [0, 0], sizes = [8, 128], strides = [1, 1]} : vector<8x256xf32> to vector<8x128xf32>
    %c250_i32 = arith.constant 250 : i32
    %49 = tpu.dynamic_rotate %5 by %c250_i32 dim 1 : vector<8x256xf32>, i32 -> vector<8x256xf32>
    %50 = vector.extract_strided_slice %49 {offsets = [0, 0], sizes = [8, 128], strides = [1, 1]} : vector<8x256xf32> to vector<8x128xf32>
    %c249_i32 = arith.constant 249 : i32
    %51 = tpu.dynamic_rotate %5 by %c249_i32 dim 1 : vector<8x256xf32>, i32 -> vector<8x256xf32>
    %52 = vector.extract_strided_slice %51 {offsets = [0, 0], sizes = [8, 128], strides = [1, 1]} : vector<8x256xf32> to vector<8x128xf32>
    %c248_i32 = arith.constant 248 : i32
    %53 = tpu.dynamic_rotate %5 by %c248_i32 dim 1 : vector<8x256xf32>, i32 -> vector<8x256xf32>
    %54 = vector.extract_strided_slice %53 {offsets = [0, 0], sizes = [8, 128], strides = [1, 1]} : vector<8x256xf32> to vector<8x128xf32>
    %c247_i32 = arith.constant 247 : i32
    %55 = tpu.dynamic_rotate %5 by %c247_i32 dim 1 : vector<8x256xf32>, i32 -> vector<8x256xf32>
    %56 = vector.extract_strided_slice %55 {offsets = [0, 0], sizes = [8, 128], strides = [1, 1]} : vector<8x256xf32> to vector<8x128xf32>
    %c246_i32 = arith.constant 246 : i32
    %57 = tpu.dynamic_rotate %5 by %c246_i32 dim 1 : vector<8x256xf32>, i32 -> vector<8x256xf32>
    %58 = vector.extract_strided_slice %57 {offsets = [0, 0], sizes = [8, 128], strides = [1, 1]} : vector<8x256xf32> to vector<8x128xf32>
    %c245_i32 = arith.constant 245 : i32
    %59 = tpu.dynamic_rotate %5 by %c245_i32 dim 1 : vector<8x256xf32>, i32 -> vector<8x256xf32>
    %60 = vector.extract_strided_slice %59 {offsets = [0, 0], sizes = [8, 128], strides = [1, 1]} : vector<8x256xf32> to vector<8x128xf32>
    %c244_i32 = arith.constant 244 : i32
    %61 = tpu.dynamic_rotate %5 by %c244_i32 dim 1 : vector<8x256xf32>, i32 -> vector<8x256xf32>
    %62 = vector.extract_strided_slice %61 {offsets = [0, 0], sizes = [8, 128], strides = [1, 1]} : vector<8x256xf32> to vector<8x128xf32>
    %c243_i32 = arith.constant 243 : i32
    %63 = tpu.dynamic_rotate %5 by %c243_i32 dim 1 : vector<8x256xf32>, i32 -> vector<8x256xf32>
    %64 = vector.extract_strided_slice %63 {offsets = [0, 0], sizes = [8, 128], strides = [1, 1]} : vector<8x256xf32> to vector<8x128xf32>
    %c242_i32 = arith.constant 242 : i32
    %65 = tpu.dynamic_rotate %5 by %c242_i32 dim 1 : vector<8x256xf32>, i32 -> vector<8x256xf32>
    %66 = vector.extract_strided_slice %65 {offsets = [0, 0], sizes = [8, 128], strides = [1, 1]} : vector<8x256xf32> to vector<8x128xf32>
    %c241_i32 = arith.constant 241 : i32
    %67 = tpu.dynamic_rotate %5 by %c241_i32 dim 1 : vector<8x256xf32>, i32 -> vector<8x256xf32>
    %68 = vector.extract_strided_slice %67 {offsets = [0, 0], sizes = [8, 128], strides = [1, 1]} : vector<8x256xf32> to vector<8x128xf32>
    %69 = tpu.concatenate %7, %9, %11, %13, %15, %17, %19, %21, %23, %25, %27, %29, %31, %33, %35, %37 in 0 : vector<8x128xf32>, vector<8x128xf32>, vector<8x128xf32>, vector<8x128xf32>, vector<8x128xf32>, vector<8x128xf32>, vector<8x128xf32>, vector<8x128xf32>, vector<8x128xf32>, vector<8x128xf32>, vector<8x128xf32>, vector<8x128xf32>, vector<8x128xf32>, vector<8x128xf32>, vector<8x128xf32>, vector<8x128xf32> -> vector<128x128xf32>
    %70 = tpu.concatenate %38, %40, %42, %44, %46, %48, %50, %52, %54, %56, %58, %60, %62, %64, %66, %68 in 0 : vector<8x128xf32>, vector<8x128xf32>, vector<8x128xf32>, vector<8x128xf32>, vector<8x128xf32>, vector<8x128xf32>, vector<8x128xf32>, vector<8x128xf32>, vector<8x128xf32>, vector<8x128xf32>, vector<8x128xf32>, vector<8x128xf32>, vector<8x128xf32>, vector<8x128xf32>, vector<8x128xf32>, vector<8x128xf32> -> vector<128x128xf32>
    %71 = tpu.concatenate %69, %70 in 0 : vector<128x128xf32>, vector<128x128xf32> -> vector<256x128xf32>
    %c0_2 = arith.constant 0 : index
    %c0_3 = arith.constant 0 : index
    %72 = vector.load %arg2[%c0_2, %c0_3] : memref<32x256xf32, #tpu.memory_space<vmem>>, vector<32x256xf32>
    %cst_4 = arith.constant dense<0.000000e+00> : vector<32x128xf32>
    %73 = tpu.matmul %72, %71, %cst_4 {dimension_numbers = #tpu.dot_dimension_numbers<[1], [0], [0], [1], [0, 0, 1, 1], [], []>} : vector<32x256xf32>, vector<256x128xf32>, vector<32x128xf32> -> vector<32x128xf32>
    %c0_5 = arith.constant 0 : index
    %c0_6 = arith.constant 0 : index
    %74 = vector.load %arg6[%c0_5, %c0_6] : memref<32x1xf32, #tpu.memory_space<vmem>>, vector<32x1xf32>
    %75 = vector.broadcast %74 : vector<32x1xf32> to vector<32x128xf32>
    %76 = arith.addf %73, %75 : vector<32x128xf32>
    %cst_7 = arith.constant 0.000000e+00 : f32
    %77 = vector.broadcast %cst_7 : f32 to vector<32x128xf32>
    %78 = arith.cmpf oge, %76, %77 : vector<32x128xf32>
    %cst_8 = arith.constant 0.00999999977 : f32
    %79 = vector.broadcast %cst_8 : f32 to vector<32x128xf32>
    %80 = arith.mulf %79, %76 : vector<32x128xf32>
    %81 = arith.select %78, %76, %80 : vector<32x128xi1>, vector<32x128xf32>
    %cst_9 = arith.constant 0.000000e+00 : f32
    %82 = vector.broadcast %cst_9 : f32 to vector<32x128xf32>
    %83 = tpu.concatenate %81, %82 in 1 : vector<32x128xf32>, vector<32x128xf32> -> vector<32x256xf32>
    %c8_i32_10 = arith.constant 8 : i32
    %84 = tpu.dynamic_rotate %83 by %c8_i32_10 dim 1 : vector<32x256xf32>, i32 -> vector<32x256xf32>
    %85 = vector.extract_strided_slice %84 {offsets = [0, 0], sizes = [32, 128], strides = [1, 1]} : vector<32x256xf32> to vector<32x128xf32>
    %c7_i32_11 = arith.constant 7 : i32
    %86 = tpu.dynamic_rotate %83 by %c7_i32_11 dim 1 : vector<32x256xf32>, i32 -> vector<32x256xf32>
    %87 = vector.extract_strided_slice %86 {offsets = [0, 0], sizes = [32, 128], strides = [1, 1]} : vector<32x256xf32> to vector<32x128xf32>
    %c6_i32_12 = arith.constant 6 : i32
    %88 = tpu.dynamic_rotate %83 by %c6_i32_12 dim 1 : vector<32x256xf32>, i32 -> vector<32x256xf32>
    %89 = vector.extract_strided_slice %88 {offsets = [0, 0], sizes = [32, 128], strides = [1, 1]} : vector<32x256xf32> to vector<32x128xf32>
    %c5_i32_13 = arith.constant 5 : i32
    %90 = tpu.dynamic_rotate %83 by %c5_i32_13 dim 1 : vector<32x256xf32>, i32 -> vector<32x256xf32>
    %91 = vector.extract_strided_slice %90 {offsets = [0, 0], sizes = [32, 128], strides = [1, 1]} : vector<32x256xf32> to vector<32x128xf32>
    %c4_i32_14 = arith.constant 4 : i32
    %92 = tpu.dynamic_rotate %83 by %c4_i32_14 dim 1 : vector<32x256xf32>, i32 -> vector<32x256xf32>
    %93 = vector.extract_strided_slice %92 {offsets = [0, 0], sizes = [32, 128], strides = [1, 1]} : vector<32x256xf32> to vector<32x128xf32>
    %c3_i32_15 = arith.constant 3 : i32
    %94 = tpu.dynamic_rotate %83 by %c3_i32_15 dim 1 : vector<32x256xf32>, i32 -> vector<32x256xf32>
    %95 = vector.extract_strided_slice %94 {offsets = [0, 0], sizes = [32, 128], strides = [1, 1]} : vector<32x256xf32> to vector<32x128xf32>
    %c2_i32_16 = arith.constant 2 : i32
    %96 = tpu.dynamic_rotate %83 by %c2_i32_16 dim 1 : vector<32x256xf32>, i32 -> vector<32x256xf32>
    %97 = vector.extract_strided_slice %96 {offsets = [0, 0], sizes = [32, 128], strides = [1, 1]} : vector<32x256xf32> to vector<32x128xf32>
    %c1_i32_17 = arith.constant 1 : i32
    %98 = tpu.dynamic_rotate %83 by %c1_i32_17 dim 1 : vector<32x256xf32>, i32 -> vector<32x256xf32>
    %99 = vector.extract_strided_slice %98 {offsets = [0, 0], sizes = [32, 128], strides = [1, 1]} : vector<32x256xf32> to vector<32x128xf32>
    %100 = vector.extract_strided_slice %83 {offsets = [0, 0], sizes = [32, 128], strides = [1, 1]} : vector<32x256xf32> to vector<32x128xf32>
    %c255_i32_18 = arith.constant 255 : i32
    %101 = tpu.dynamic_rotate %83 by %c255_i32_18 dim 1 : vector<32x256xf32>, i32 -> vector<32x256xf32>
    %102 = vector.extract_strided_slice %101 {offsets = [0, 0], sizes = [32, 128], strides = [1, 1]} : vector<32x256xf32> to vector<32x128xf32>
    %c254_i32_19 = arith.constant 254 : i32
    %103 = tpu.dynamic_rotate %83 by %c254_i32_19 dim 1 : vector<32x256xf32>, i32 -> vector<32x256xf32>
    %104 = vector.extract_strided_slice %103 {offsets = [0, 0], sizes = [32, 128], strides = [1, 1]} : vector<32x256xf32> to vector<32x128xf32>
    %c253_i32_20 = arith.constant 253 : i32
    %105 = tpu.dynamic_rotate %83 by %c253_i32_20 dim 1 : vector<32x256xf32>, i32 -> vector<32x256xf32>
    %106 = vector.extract_strided_slice %105 {offsets = [0, 0], sizes = [32, 128], strides = [1, 1]} : vector<32x256xf32> to vector<32x128xf32>
    %c252_i32_21 = arith.constant 252 : i32
    %107 = tpu.dynamic_rotate %83 by %c252_i32_21 dim 1 : vector<32x256xf32>, i32 -> vector<32x256xf32>
    %108 = vector.extract_strided_slice %107 {offsets = [0, 0], sizes = [32, 128], strides = [1, 1]} : vector<32x256xf32> to vector<32x128xf32>
    %c251_i32_22 = arith.constant 251 : i32
    %109 = tpu.dynamic_rotate %83 by %c251_i32_22 dim 1 : vector<32x256xf32>, i32 -> vector<32x256xf32>
    %110 = vector.extract_strided_slice %109 {offsets = [0, 0], sizes = [32, 128], strides = [1, 1]} : vector<32x256xf32> to vector<32x128xf32>
    %c250_i32_23 = arith.constant 250 : i32
    %111 = tpu.dynamic_rotate %83 by %c250_i32_23 dim 1 : vector<32x256xf32>, i32 -> vector<32x256xf32>
    %112 = vector.extract_strided_slice %111 {offsets = [0, 0], sizes = [32, 128], strides = [1, 1]} : vector<32x256xf32> to vector<32x128xf32>
    %c249_i32_24 = arith.constant 249 : i32
    %113 = tpu.dynamic_rotate %83 by %c249_i32_24 dim 1 : vector<32x256xf32>, i32 -> vector<32x256xf32>
    %114 = vector.extract_strided_slice %113 {offsets = [0, 0], sizes = [32, 128], strides = [1, 1]} : vector<32x256xf32> to vector<32x128xf32>
    %115 = tpu.concatenate %85, %87, %89, %91, %93, %95, %97, %99, %100, %102, %104, %106, %108, %110, %112, %114 in 0 : vector<32x128xf32>, vector<32x128xf32>, vector<32x128xf32>, vector<32x128xf32>, vector<32x128xf32>, vector<32x128xf32>, vector<32x128xf32>, vector<32x128xf32>, vector<32x128xf32>, vector<32x128xf32>, vector<32x128xf32>, vector<32x128xf32>, vector<32x128xf32>, vector<32x128xf32>, vector<32x128xf32>, vector<32x128xf32> -> vector<512x128xf32>
    %c0_25 = arith.constant 0 : index
    %c0_26 = arith.constant 0 : index
    %116 = vector.load %arg3[%c0_25, %c0_26] : memref<64x512xf32, #tpu.memory_space<vmem>>, vector<64x512xf32>
    %cst_27 = arith.constant dense<0.000000e+00> : vector<64x128xf32>
    %117 = tpu.matmul %116, %115, %cst_27 {dimension_numbers = #tpu.dot_dimension_numbers<[1], [0], [0], [1], [0, 0, 1, 1], [], []>} : vector<64x512xf32>, vector<512x128xf32>, vector<64x128xf32> -> vector<64x128xf32>
    %c0_28 = arith.constant 0 : index
    %c0_29 = arith.constant 0 : index
    %118 = vector.load %arg7[%c0_28, %c0_29] : memref<64x1xf32, #tpu.memory_space<vmem>>, vector<64x1xf32>
    %119 = vector.broadcast %118 : vector<64x1xf32> to vector<64x128xf32>
    %120 = arith.addf %117, %119 : vector<64x128xf32>
    %cst_30 = arith.constant 0.000000e+00 : f32
    %121 = vector.broadcast %cst_30 : f32 to vector<64x128xf32>
    %122 = arith.cmpf oge, %120, %121 : vector<64x128xf32>
    %cst_31 = arith.constant 0.00999999977 : f32
    %123 = vector.broadcast %cst_31 : f32 to vector<64x128xf32>
    %124 = arith.mulf %123, %120 : vector<64x128xf32>
    %125 = arith.select %122, %120, %124 : vector<64x128xi1>, vector<64x128xf32>
    %cst_32 = arith.constant 0.000000e+00 : f32
    %126 = vector.broadcast %cst_32 : f32 to vector<64x128xf32>
    %127 = tpu.concatenate %125, %126 in 1 : vector<64x128xf32>, vector<64x128xf32> -> vector<64x256xf32>
    %c4_i32_33 = arith.constant 4 : i32
    %128 = tpu.dynamic_rotate %127 by %c4_i32_33 dim 1 : vector<64x256xf32>, i32 -> vector<64x256xf32>
    %129 = vector.extract_strided_slice %128 {offsets = [0, 0], sizes = [64, 128], strides = [1, 1]} : vector<64x256xf32> to vector<64x128xf32>
    %c3_i32_34 = arith.constant 3 : i32
    %130 = tpu.dynamic_rotate %127 by %c3_i32_34 dim 1 : vector<64x256xf32>, i32 -> vector<64x256xf32>
    %131 = vector.extract_strided_slice %130 {offsets = [0, 0], sizes = [64, 128], strides = [1, 1]} : vector<64x256xf32> to vector<64x128xf32>
    %c2_i32_35 = arith.constant 2 : i32
    %132 = tpu.dynamic_rotate %127 by %c2_i32_35 dim 1 : vector<64x256xf32>, i32 -> vector<64x256xf32>
    %133 = vector.extract_strided_slice %132 {offsets = [0, 0], sizes = [64, 128], strides = [1, 1]} : vector<64x256xf32> to vector<64x128xf32>
    %c1_i32_36 = arith.constant 1 : i32
    %134 = tpu.dynamic_rotate %127 by %c1_i32_36 dim 1 : vector<64x256xf32>, i32 -> vector<64x256xf32>
    %135 = vector.extract_strided_slice %134 {offsets = [0, 0], sizes = [64, 128], strides = [1, 1]} : vector<64x256xf32> to vector<64x128xf32>
    %136 = vector.extract_strided_slice %127 {offsets = [0, 0], sizes = [64, 128], strides = [1, 1]} : vector<64x256xf32> to vector<64x128xf32>
    %c255_i32_37 = arith.constant 255 : i32
    %137 = tpu.dynamic_rotate %127 by %c255_i32_37 dim 1 : vector<64x256xf32>, i32 -> vector<64x256xf32>
    %138 = vector.extract_strided_slice %137 {offsets = [0, 0], sizes = [64, 128], strides = [1, 1]} : vector<64x256xf32> to vector<64x128xf32>
    %c254_i32_38 = arith.constant 254 : i32
    %139 = tpu.dynamic_rotate %127 by %c254_i32_38 dim 1 : vector<64x256xf32>, i32 -> vector<64x256xf32>
    %140 = vector.extract_strided_slice %139 {offsets = [0, 0], sizes = [64, 128], strides = [1, 1]} : vector<64x256xf32> to vector<64x128xf32>
    %c253_i32_39 = arith.constant 253 : i32
    %141 = tpu.dynamic_rotate %127 by %c253_i32_39 dim 1 : vector<64x256xf32>, i32 -> vector<64x256xf32>
    %142 = vector.extract_strided_slice %141 {offsets = [0, 0], sizes = [64, 128], strides = [1, 1]} : vector<64x256xf32> to vector<64x128xf32>
    %143 = tpu.concatenate %129, %131, %133, %135, %136, %138, %140, %142 in 0 : vector<64x128xf32>, vector<64x128xf32>, vector<64x128xf32>, vector<64x128xf32>, vector<64x128xf32>, vector<64x128xf32>, vector<64x128xf32>, vector<64x128xf32> -> vector<512x128xf32>
    %c0_40 = arith.constant 0 : index
    %c0_41 = arith.constant 0 : index
    %144 = vector.load %arg4[%c0_40, %c0_41] : memref<128x512xf32, #tpu.memory_space<vmem>>, vector<128x512xf32>
    %cst_42 = arith.constant dense<0.000000e+00> : vector<128x128xf32>
    %145 = tpu.matmul %144, %143, %cst_42 {dimension_numbers = #tpu.dot_dimension_numbers<[1], [0], [0], [1], [0, 0, 1, 1], [], []>} : vector<128x512xf32>, vector<512x128xf32>, vector<128x128xf32> -> vector<128x128xf32>
    %c0_43 = arith.constant 0 : index
    %c0_44 = arith.constant 0 : index
    %146 = vector.load %arg8[%c0_43, %c0_44] : memref<128x1xf32, #tpu.memory_space<vmem>>, vector<128x1xf32>
    %147 = vector.broadcast %146 : vector<128x1xf32> to vector<128x128xf32>
    %148 = arith.addf %145, %147 : vector<128x128xf32>
    %cst_45 = arith.constant 0.000000e+00 : f32
    %149 = vector.broadcast %cst_45 : f32 to vector<128x128xf32>
    %150 = arith.cmpf oge, %148, %149 : vector<128x128xf32>
    %cst_46 = arith.constant 0.00999999977 : f32
    %151 = vector.broadcast %cst_46 : f32 to vector<128x128xf32>
    %152 = arith.mulf %151, %148 : vector<128x128xf32>
    %153 = arith.select %150, %148, %152 : vector<128x128xi1>, vector<128x128xf32>
    %cst_47 = arith.constant 0.000000e+00 : f32
    %154 = vector.broadcast %cst_47 : f32 to vector<128x128xf32>
    %155 = tpu.concatenate %153, %154 in 1 : vector<128x128xf32>, vector<128x128xf32> -> vector<128x256xf32>
    %c4_i32_48 = arith.constant 4 : i32
    %156 = tpu.dynamic_rotate %155 by %c4_i32_48 dim 1 : vector<128x256xf32>, i32 -> vector<128x256xf32>
    %157 = vector.extract_strided_slice %156 {offsets = [0, 0], sizes = [128, 128], strides = [1, 1]} : vector<128x256xf32> to vector<128x128xf32>
    %c3_i32_49 = arith.constant 3 : i32
    %158 = tpu.dynamic_rotate %155 by %c3_i32_49 dim 1 : vector<128x256xf32>, i32 -> vector<128x256xf32>
    %159 = vector.extract_strided_slice %158 {offsets = [0, 0], sizes = [128, 128], strides = [1, 1]} : vector<128x256xf32> to vector<128x128xf32>
    %c2_i32_50 = arith.constant 2 : i32
    %160 = tpu.dynamic_rotate %155 by %c2_i32_50 dim 1 : vector<128x256xf32>, i32 -> vector<128x256xf32>
    %161 = vector.extract_strided_slice %160 {offsets = [0, 0], sizes = [128, 128], strides = [1, 1]} : vector<128x256xf32> to vector<128x128xf32>
    %c1_i32_51 = arith.constant 1 : i32
    %162 = tpu.dynamic_rotate %155 by %c1_i32_51 dim 1 : vector<128x256xf32>, i32 -> vector<128x256xf32>
    %163 = vector.extract_strided_slice %162 {offsets = [0, 0], sizes = [128, 128], strides = [1, 1]} : vector<128x256xf32> to vector<128x128xf32>
    %164 = vector.extract_strided_slice %155 {offsets = [0, 0], sizes = [128, 128], strides = [1, 1]} : vector<128x256xf32> to vector<128x128xf32>
    %c255_i32_52 = arith.constant 255 : i32
    %165 = tpu.dynamic_rotate %155 by %c255_i32_52 dim 1 : vector<128x256xf32>, i32 -> vector<128x256xf32>
    %166 = vector.extract_strided_slice %165 {offsets = [0, 0], sizes = [128, 128], strides = [1, 1]} : vector<128x256xf32> to vector<128x128xf32>
    %c254_i32_53 = arith.constant 254 : i32
    %167 = tpu.dynamic_rotate %155 by %c254_i32_53 dim 1 : vector<128x256xf32>, i32 -> vector<128x256xf32>
    %168 = vector.extract_strided_slice %167 {offsets = [0, 0], sizes = [128, 128], strides = [1, 1]} : vector<128x256xf32> to vector<128x128xf32>
    %c253_i32_54 = arith.constant 253 : i32
    %169 = tpu.dynamic_rotate %155 by %c253_i32_54 dim 1 : vector<128x256xf32>, i32 -> vector<128x256xf32>
    %170 = vector.extract_strided_slice %169 {offsets = [0, 0], sizes = [128, 128], strides = [1, 1]} : vector<128x256xf32> to vector<128x128xf32>
    %171 = tpu.concatenate %157, %159, %161, %163, %164, %166, %168, %170 in 0 : vector<128x128xf32>, vector<128x128xf32>, vector<128x128xf32>, vector<128x128xf32>, vector<128x128xf32>, vector<128x128xf32>, vector<128x128xf32>, vector<128x128xf32> -> vector<1024x128xf32>
    %c0_55 = arith.constant 0 : index
    %c0_56 = arith.constant 0 : index
    %172 = vector.load %arg5[%c0_55, %c0_56] : memref<16x1024xf32, #tpu.memory_space<vmem>>, vector<16x1024xf32>
    %cst_57 = arith.constant dense<0.000000e+00> : vector<16x128xf32>
    %173 = tpu.matmul %172, %171, %cst_57 {dimension_numbers = #tpu.dot_dimension_numbers<[1], [0], [0], [1], [0, 0, 1, 1], [], []>} : vector<16x1024xf32>, vector<1024x128xf32>, vector<16x128xf32> -> vector<16x128xf32>
    %c0_58 = arith.constant 0 : index
    %c0_59 = arith.constant 0 : index
    %174 = vector.load %arg9[%c0_58, %c0_59] : memref<16x1xf32, #tpu.memory_space<vmem>>, vector<16x1xf32>
    %175 = vector.broadcast %174 : vector<16x1xf32> to vector<16x128xf32>
    %176 = arith.addf %173, %175 : vector<16x128xf32>
    %cst_60 = arith.constant 0.000000e+00 : f32
    %177 = vector.broadcast %cst_60 : f32 to vector<16x128xf32>
    %178 = arith.cmpf oge, %176, %177 : vector<16x128xf32>
    %cst_61 = arith.constant 0.00999999977 : f32
    %179 = vector.broadcast %cst_61 : f32 to vector<16x128xf32>
    %180 = arith.mulf %179, %176 : vector<16x128xf32>
    %181 = arith.select %178, %176, %180 : vector<16x128xi1>, vector<16x128xf32>
    %cst_62 = arith.constant dense<0xFF800000> : vector<16xf32>
    %182 = vector.multi_reduction <maximumf>, %181, %cst_62 [1] : vector<16x128xf32> to vector<16xf32>
    %183 = vector.shape_cast %182 : vector<16xf32> to vector<16x1xf32>
    %184 = arith.mulf %183, %183 : vector<16x1xf32>
    %185 = vector.shape_cast %184 : vector<16x1xf32> to vector<1x16x1xf32>
    %cst_63 = arith.constant dense<0.000000e+00> : vector<1xf32>
    %186 = vector.multi_reduction <add>, %185, %cst_63 [1, 2] : vector<1x16x1xf32> to vector<1xf32>
    %187 = vector.shape_cast %186 : vector<1xf32> to vector<1x1x1xf32>
    %188 = vector.extract %187[0, 0, 0] : f32 from vector<1x1x1xf32>
    %189 = math.sqrt %188 : f32
    %cst_64 = arith.constant 9.99999974E-6 : f32
    %190 = arith.addf %189, %cst_64 : f32
    %191 = vector.broadcast %190 : f32 to vector<16x1xf32>
    %192 = arith.divf %183, %191 : vector<16x1xf32>
    %c0_65 = arith.constant 0 : index
    %c0_66 = arith.constant 0 : index
    %c0_67 = arith.constant 0 : index
    %193 = vector.load %arg20[%c0_65, %c0_66, %c0_67] : memref<1x16x1xf32, #tpu.memory_space<vmem>>, vector<1x16x1xf32>
    %194 = vector.shape_cast %193 : vector<1x16x1xf32> to vector<16x1xf32>
    %195 = vector.shape_cast %192 : vector<16x1xf32> to vector<1x16x1xf32>
    tpu.vector_store %arg20[%c0_65, %c0_66, %c0_67], %195 {strides = array<i32>} : memref<1x16x1xf32, #tpu.memory_space<vmem>>, vector<1x16x1xf32>,
    %c0_68 = arith.constant 0 : index
    %c0_69 = arith.constant 0 : index
    %196 = vector.load %arg18[%c0_68, %c0_69] : memref<16x4xf32, #tpu.memory_space<vmem>>, vector<16x4xf32>
    %197 = vector.broadcast %192 : vector<16x1xf32> to vector<16x4xf32>
    %198 = arith.mulf %196, %197 : vector<16x4xf32>
    %cst_70 = arith.constant dense<0.000000e+00> : vector<4xf32>
    %199 = vector.multi_reduction <add>, %198, %cst_70 [0] : vector<16x4xf32> to vector<4xf32>
    %200 = vector.shape_cast %199 : vector<4xf32> to vector<1x4xf32>
    %c0_71 = arith.constant 0 : index
    %c0_72 = arith.constant 0 : index
    %201 = vector.load %arg19[%c0_71, %c0_72] : memref<1x4xf32, #tpu.memory_space<vmem>>, vector<1x4xf32>
    %202 = arith.addf %200, %201 : vector<1x4xf32>
    %cst_73 = arith.constant 0.000000e+00 : f32
    %203 = vector.broadcast %cst_73 : f32 to vector<1x4xf32>
    %204 = arith.maximumf %202, %203 : vector<1x4xf32>
    %c0_74 = arith.constant 0 : index
    %c0_75 = arith.constant 0 : index
    %c0_76 = arith.constant 0 : index
    %205 = vector.load %arg22[%c0_74, %c0_75, %c0_76] : memref<1x1x4xf32, #tpu.memory_space<vmem>>, vector<1x1x4xf32>
    %206 = vector.shape_cast %205 : vector<1x1x4xf32> to vector<1x4xf32>
    %207 = vector.shape_cast %204 : vector<1x4xf32> to vector<1x1x4xf32>
    tpu.vector_store %arg22[%c0_74, %c0_75, %c0_76], %207 {strides = array<i32>} : memref<1x1x4xf32, #tpu.memory_space<vmem>>, vector<1x1x4xf32>,
    %c8_i32_77 = arith.constant 8 : i32
    %208 = vector.broadcast %c8_i32_77 : i32 to vector<1x256xi32>
    %209 = arith.cmpi eq, %0, %208 : vector<1x256xi32>
    %cst_78 = arith.constant 0.000000e+00 : f32
    %210 = vector.shape_cast %209 : vector<1x256xi1> to vector<1x256xi1>
    %211 = vector.broadcast %210 : vector<1x256xi1> to vector<16x256xi1>
    %212 = vector.shape_cast %183 : vector<16x1xf32> to vector<16x1xf32>
    %213 = vector.broadcast %212 : vector<16x1xf32> to vector<16x256xf32>
    %214 = vector.broadcast %cst_78 : f32 to vector<16x256xf32>
    %215 = arith.select %211, %213, %214 : vector<16x256xi1>, vector<16x256xf32>
    %c7_i32_79 = arith.constant 7 : i32
    %216 = tpu.dynamic_rotate %215 by %c7_i32_79 dim 1 : vector<16x256xf32>, i32 -> vector<16x256xf32>
    %217 = vector.extract_strided_slice %216 {offsets = [0, 0], sizes = [16, 128], strides = [1, 1]} : vector<16x256xf32> to vector<16x128xf32>
    %c6_i32_80 = arith.constant 6 : i32
    %218 = tpu.dynamic_rotate %215 by %c6_i32_80 dim 1 : vector<16x256xf32>, i32 -> vector<16x256xf32>
    %219 = vector.extract_strided_slice %218 {offsets = [0, 0], sizes = [16, 128], strides = [1, 1]} : vector<16x256xf32> to vector<16x128xf32>
    %c5_i32_81 = arith.constant 5 : i32
    %220 = tpu.dynamic_rotate %215 by %c5_i32_81 dim 1 : vector<16x256xf32>, i32 -> vector<16x256xf32>
    %221 = vector.extract_strided_slice %220 {offsets = [0, 0], sizes = [16, 128], strides = [1, 1]} : vector<16x256xf32> to vector<16x128xf32>
    %c4_i32_82 = arith.constant 4 : i32
    %222 = tpu.dynamic_rotate %215 by %c4_i32_82 dim 1 : vector<16x256xf32>, i32 -> vector<16x256xf32>
    %223 = vector.extract_strided_slice %222 {offsets = [0, 0], sizes = [16, 128], strides = [1, 1]} : vector<16x256xf32> to vector<16x128xf32>
    %c3_i32_83 = arith.constant 3 : i32
    %224 = tpu.dynamic_rotate %215 by %c3_i32_83 dim 1 : vector<16x256xf32>, i32 -> vector<16x256xf32>
    %225 = vector.extract_strided_slice %224 {offsets = [0, 0], sizes = [16, 128], strides = [1, 1]} : vector<16x256xf32> to vector<16x128xf32>
    %c2_i32_84 = arith.constant 2 : i32
    %226 = tpu.dynamic_rotate %215 by %c2_i32_84 dim 1 : vector<16x256xf32>, i32 -> vector<16x256xf32>
    %227 = vector.extract_strided_slice %226 {offsets = [0, 0], sizes = [16, 128], strides = [1, 1]} : vector<16x256xf32> to vector<16x128xf32>
    %c1_i32_85 = arith.constant 1 : i32
    %228 = tpu.dynamic_rotate %215 by %c1_i32_85 dim 1 : vector<16x256xf32>, i32 -> vector<16x256xf32>
    %229 = vector.extract_strided_slice %228 {offsets = [0, 0], sizes = [16, 128], strides = [1, 1]} : vector<16x256xf32> to vector<16x128xf32>
    %230 = vector.extract_strided_slice %215 {offsets = [0, 0], sizes = [16, 128], strides = [1, 1]} : vector<16x256xf32> to vector<16x128xf32>
    %231 = tpu.concatenate %217, %219, %221, %223, %225, %227, %229, %230 in 0 : vector<16x128xf32>, vector<16x128xf32>, vector<16x128xf32>, vector<16x128xf32>, vector<16x128xf32>, vector<16x128xf32>, vector<16x128xf32>, vector<16x128xf32> -> vector<128x128xf32>
    %c0_86 = arith.constant 0 : index
    %c0_87 = arith.constant 0 : index
    %232 = vector.load %arg10[%c0_86, %c0_87] : memref<128x128xf32, #tpu.memory_space<vmem>>, vector<128x128xf32>
    %cst_88 = arith.constant dense<0.000000e+00> : vector<128x128xf32>
    %233 = tpu.matmul %232, %231, %cst_88 {dimension_numbers = #tpu.dot_dimension_numbers<[1], [0], [0], [1], [0, 0, 1, 1], [], []>} : vector<128x128xf32>, vector<128x128xf32>, vector<128x128xf32> -> vector<128x128xf32>
    %c0_89 = arith.constant 0 : index
    %c0_90 = arith.constant 0 : index
    %234 = vector.load %arg14[%c0_89, %c0_90] : memref<128x1xf32, #tpu.memory_space<vmem>>, vector<128x1xf32>
    %235 = vector.broadcast %234 : vector<128x1xf32> to vector<128x128xf32>
    %236 = arith.addf %233, %235 : vector<128x128xf32>
    %cst_91 = arith.constant 0.000000e+00 : f32
    %237 = vector.broadcast %cst_91 : f32 to vector<128x128xf32>
    %238 = arith.cmpf oge, %236, %237 : vector<128x128xf32>
    %cst_92 = arith.constant 0.00999999977 : f32
    %239 = vector.broadcast %cst_92 : f32 to vector<128x128xf32>
    %240 = arith.mulf %239, %236 : vector<128x128xf32>
    %241 = arith.select %238, %236, %240 : vector<128x128xi1>, vector<128x128xf32>
    %c22_i32 = arith.constant 22 : i32
    %242 = vector.broadcast %c22_i32 : i32 to vector<1x128xi32>
    %243 = arith.cmpi slt, %1, %242 : vector<1x128xi32>
    %cst_93 = arith.constant 0.000000e+00 : f32
    %244 = vector.shape_cast %243 : vector<1x128xi1> to vector<1x128xi1>
    %245 = vector.broadcast %244 : vector<1x128xi1> to vector<128x128xi1>
    %246 = vector.broadcast %cst_93 : f32 to vector<128x128xf32>
    %247 = arith.select %245, %241, %246 : vector<128x128xi1>, vector<128x128xf32>
    %cst_94 = arith.constant 0.000000e+00 : f32
    %248 = vector.broadcast %cst_94 : f32 to vector<128x128xf32>
    %249 = tpu.concatenate %247, %248 in 1 : vector<128x128xf32>, vector<128x128xf32> -> vector<128x256xf32>
    %c11_i32_95 = arith.constant 11 : i32
    %250 = tpu.dynamic_rotate %249 by %c11_i32_95 dim 1 : vector<128x256xf32>, i32 -> vector<128x256xf32>
    %251 = vector.extract_strided_slice %250 {offsets = [0, 0], sizes = [128, 128], strides = [1, 1]} : vector<128x256xf32> to vector<128x128xf32>
    %c10_i32_96 = arith.constant 10 : i32
    %252 = tpu.dynamic_rotate %249 by %c10_i32_96 dim 1 : vector<128x256xf32>, i32 -> vector<128x256xf32>
    %253 = vector.extract_strided_slice %252 {offsets = [0, 0], sizes = [128, 128], strides = [1, 1]} : vector<128x256xf32> to vector<128x128xf32>
    %c9_i32_97 = arith.constant 9 : i32
    %254 = tpu.dynamic_rotate %249 by %c9_i32_97 dim 1 : vector<128x256xf32>, i32 -> vector<128x256xf32>
    %255 = vector.extract_strided_slice %254 {offsets = [0, 0], sizes = [128, 128], strides = [1, 1]} : vector<128x256xf32> to vector<128x128xf32>
    %c8_i32_98 = arith.constant 8 : i32
    %256 = tpu.dynamic_rotate %249 by %c8_i32_98 dim 1 : vector<128x256xf32>, i32 -> vector<128x256xf32>
    %257 = vector.extract_strided_slice %256 {offsets = [0, 0], sizes = [128, 128], strides = [1, 1]} : vector<128x256xf32> to vector<128x128xf32>
    %c7_i32_99 = arith.constant 7 : i32
    %258 = tpu.dynamic_rotate %249 by %c7_i32_99 dim 1 : vector<128x256xf32>, i32 -> vector<128x256xf32>
    %259 = vector.extract_strided_slice %258 {offsets = [0, 0], sizes = [128, 128], strides = [1, 1]} : vector<128x256xf32> to vector<128x128xf32>
    %c6_i32_100 = arith.constant 6 : i32
    %260 = tpu.dynamic_rotate %249 by %c6_i32_100 dim 1 : vector<128x256xf32>, i32 -> vector<128x256xf32>
    %261 = vector.extract_strided_slice %260 {offsets = [0, 0], sizes = [128, 128], strides = [1, 1]} : vector<128x256xf32> to vector<128x128xf32>
    %c5_i32_101 = arith.constant 5 : i32
    %262 = tpu.dynamic_rotate %249 by %c5_i32_101 dim 1 : vector<128x256xf32>, i32 -> vector<128x256xf32>
    %263 = vector.extract_strided_slice %262 {offsets = [0, 0], sizes = [128, 128], strides = [1, 1]} : vector<128x256xf32> to vector<128x128xf32>
    %c4_i32_102 = arith.constant 4 : i32
    %264 = tpu.dynamic_rotate %249 by %c4_i32_102 dim 1 : vector<128x256xf32>, i32 -> vector<128x256xf32>
    %265 = vector.extract_strided_slice %264 {offsets = [0, 0], sizes = [128, 128], strides = [1, 1]} : vector<128x256xf32> to vector<128x128xf32>
    %266 = tpu.concatenate %251, %253, %255, %257, %259, %261, %263, %265 in 0 : vector<128x128xf32>, vector<128x128xf32>, vector<128x128xf32>, vector<128x128xf32>, vector<128x128xf32>, vector<128x128xf32>, vector<128x128xf32>, vector<128x128xf32> -> vector<1024x128xf32>
    %c0_103 = arith.constant 0 : index
    %c0_104 = arith.constant 0 : index
    %267 = vector.load %arg11[%c0_103, %c0_104] : memref<64x1024xf32, #tpu.memory_space<vmem>>, vector<64x1024xf32>
    %cst_105 = arith.constant dense<0.000000e+00> : vector<64x128xf32>
    %268 = tpu.matmul %267, %266, %cst_105 {dimension_numbers = #tpu.dot_dimension_numbers<[1], [0], [0], [1], [0, 0, 1, 1], [], []>} : vector<64x1024xf32>, vector<1024x128xf32>, vector<64x128xf32> -> vector<64x128xf32>
    %c0_106 = arith.constant 0 : index
    %c0_107 = arith.constant 0 : index
    %269 = vector.load %arg15[%c0_106, %c0_107] : memref<64x1xf32, #tpu.memory_space<vmem>>, vector<64x1xf32>
    %270 = vector.broadcast %269 : vector<64x1xf32> to vector<64x128xf32>
    %271 = arith.addf %268, %270 : vector<64x128xf32>
    %cst_108 = arith.constant 0.000000e+00 : f32
    %272 = vector.broadcast %cst_108 : f32 to vector<64x128xf32>
    %273 = arith.cmpf oge, %271, %272 : vector<64x128xf32>
    %cst_109 = arith.constant 0.00999999977 : f32
    %274 = vector.broadcast %cst_109 : f32 to vector<64x128xf32>
    %275 = arith.mulf %274, %271 : vector<64x128xf32>
    %276 = arith.select %273, %271, %275 : vector<64x128xi1>, vector<64x128xf32>
    %c36_i32 = arith.constant 36 : i32
    %277 = vector.broadcast %c36_i32 : i32 to vector<1x128xi32>
    %278 = arith.cmpi slt, %1, %277 : vector<1x128xi32>
    %cst_110 = arith.constant 0.000000e+00 : f32
    %279 = vector.shape_cast %278 : vector<1x128xi1> to vector<1x128xi1>
    %280 = vector.broadcast %279 : vector<1x128xi1> to vector<64x128xi1>
    %281 = vector.broadcast %cst_110 : f32 to vector<64x128xf32>
    %282 = arith.select %280, %276, %281 : vector<64x128xi1>, vector<64x128xf32>
    %cst_111 = arith.constant 0.000000e+00 : f32
    %283 = vector.broadcast %cst_111 : f32 to vector<64x128xf32>
    %284 = tpu.concatenate %282, %283 in 1 : vector<64x128xf32>, vector<64x128xf32> -> vector<64x256xf32>
    %c23_i32 = arith.constant 23 : i32
    %285 = tpu.dynamic_rotate %284 by %c23_i32 dim 1 : vector<64x256xf32>, i32 -> vector<64x256xf32>
    %286 = vector.extract_strided_slice %285 {offsets = [0, 0], sizes = [64, 128], strides = [1, 1]} : vector<64x256xf32> to vector<64x128xf32>
    %c22_i32_112 = arith.constant 22 : i32
    %287 = tpu.dynamic_rotate %284 by %c22_i32_112 dim 1 : vector<64x256xf32>, i32 -> vector<64x256xf32>
    %288 = vector.extract_strided_slice %287 {offsets = [0, 0], sizes = [64, 128], strides = [1, 1]} : vector<64x256xf32> to vector<64x128xf32>
    %c21_i32 = arith.constant 21 : i32
    %289 = tpu.dynamic_rotate %284 by %c21_i32 dim 1 : vector<64x256xf32>, i32 -> vector<64x256xf32>
    %290 = vector.extract_strided_slice %289 {offsets = [0, 0], sizes = [64, 128], strides = [1, 1]} : vector<64x256xf32> to vector<64x128xf32>
    %c20_i32 = arith.constant 20 : i32
    %291 = tpu.dynamic_rotate %284 by %c20_i32 dim 1 : vector<64x256xf32>, i32 -> vector<64x256xf32>
    %292 = vector.extract_strided_slice %291 {offsets = [0, 0], sizes = [64, 128], strides = [1, 1]} : vector<64x256xf32> to vector<64x128xf32>
    %c19_i32 = arith.constant 19 : i32
    %293 = tpu.dynamic_rotate %284 by %c19_i32 dim 1 : vector<64x256xf32>, i32 -> vector<64x256xf32>
    %294 = vector.extract_strided_slice %293 {offsets = [0, 0], sizes = [64, 128], strides = [1, 1]} : vector<64x256xf32> to vector<64x128xf32>
    %c18_i32 = arith.constant 18 : i32
    %295 = tpu.dynamic_rotate %284 by %c18_i32 dim 1 : vector<64x256xf32>, i32 -> vector<64x256xf32>
    %296 = vector.extract_strided_slice %295 {offsets = [0, 0], sizes = [64, 128], strides = [1, 1]} : vector<64x256xf32> to vector<64x128xf32>
    %c17_i32 = arith.constant 17 : i32
    %297 = tpu.dynamic_rotate %284 by %c17_i32 dim 1 : vector<64x256xf32>, i32 -> vector<64x256xf32>
    %298 = vector.extract_strided_slice %297 {offsets = [0, 0], sizes = [64, 128], strides = [1, 1]} : vector<64x256xf32> to vector<64x128xf32>
    %c16_i32_113 = arith.constant 16 : i32
    %299 = tpu.dynamic_rotate %284 by %c16_i32_113 dim 1 : vector<64x256xf32>, i32 -> vector<64x256xf32>
    %300 = vector.extract_strided_slice %299 {offsets = [0, 0], sizes = [64, 128], strides = [1, 1]} : vector<64x256xf32> to vector<64x128xf32>
    %c15_i32_114 = arith.constant 15 : i32
    %301 = tpu.dynamic_rotate %284 by %c15_i32_114 dim 1 : vector<64x256xf32>, i32 -> vector<64x256xf32>
    %302 = vector.extract_strided_slice %301 {offsets = [0, 0], sizes = [64, 128], strides = [1, 1]} : vector<64x256xf32> to vector<64x128xf32>
    %c14_i32_115 = arith.constant 14 : i32
    %303 = tpu.dynamic_rotate %284 by %c14_i32_115 dim 1 : vector<64x256xf32>, i32 -> vector<64x256xf32>
    %304 = vector.extract_strided_slice %303 {offsets = [0, 0], sizes = [64, 128], strides = [1, 1]} : vector<64x256xf32> to vector<64x128xf32>
    %c13_i32_116 = arith.constant 13 : i32
    %305 = tpu.dynamic_rotate %284 by %c13_i32_116 dim 1 : vector<64x256xf32>, i32 -> vector<64x256xf32>
    %306 = vector.extract_strided_slice %305 {offsets = [0, 0], sizes = [64, 128], strides = [1, 1]} : vector<64x256xf32> to vector<64x128xf32>
    %c12_i32_117 = arith.constant 12 : i32
    %307 = tpu.dynamic_rotate %284 by %c12_i32_117 dim 1 : vector<64x256xf32>, i32 -> vector<64x256xf32>
    %308 = vector.extract_strided_slice %307 {offsets = [0, 0], sizes = [64, 128], strides = [1, 1]} : vector<64x256xf32> to vector<64x128xf32>
    %c11_i32_118 = arith.constant 11 : i32
    %309 = tpu.dynamic_rotate %284 by %c11_i32_118 dim 1 : vector<64x256xf32>, i32 -> vector<64x256xf32>
    %310 = vector.extract_strided_slice %309 {offsets = [0, 0], sizes = [64, 128], strides = [1, 1]} : vector<64x256xf32> to vector<64x128xf32>
    %c10_i32_119 = arith.constant 10 : i32
    %311 = tpu.dynamic_rotate %284 by %c10_i32_119 dim 1 : vector<64x256xf32>, i32 -> vector<64x256xf32>
    %312 = vector.extract_strided_slice %311 {offsets = [0, 0], sizes = [64, 128], strides = [1, 1]} : vector<64x256xf32> to vector<64x128xf32>
    %c9_i32_120 = arith.constant 9 : i32
    %313 = tpu.dynamic_rotate %284 by %c9_i32_120 dim 1 : vector<64x256xf32>, i32 -> vector<64x256xf32>
    %314 = vector.extract_strided_slice %313 {offsets = [0, 0], sizes = [64, 128], strides = [1, 1]} : vector<64x256xf32> to vector<64x128xf32>
    %c8_i32_121 = arith.constant 8 : i32
    %315 = tpu.dynamic_rotate %284 by %c8_i32_121 dim 1 : vector<64x256xf32>, i32 -> vector<64x256xf32>
    %316 = vector.extract_strided_slice %315 {offsets = [0, 0], sizes = [64, 128], strides = [1, 1]} : vector<64x256xf32> to vector<64x128xf32>
    %317 = tpu.concatenate %286, %288, %290, %292, %294, %296, %298, %300, %302, %304, %306, %308, %310, %312, %314, %316 in 0 : vector<64x128xf32>, vector<64x128xf32>, vector<64x128xf32>, vector<64x128xf32>, vector<64x128xf32>, vector<64x128xf32>, vector<64x128xf32>, vector<64x128xf32>, vector<64x128xf32>, vector<64x128xf32>, vector<64x128xf32>, vector<64x128xf32>, vector<64x128xf32>, vector<64x128xf32>, vector<64x128xf32>, vector<64x128xf32> -> vector<1024x128xf32>
    %c0_122 = arith.constant 0 : index
    %c0_123 = arith.constant 0 : index
    %318 = vector.load %arg12[%c0_122, %c0_123] : memref<32x1024xf32, #tpu.memory_space<vmem>>, vector<32x1024xf32>
    %cst_124 = arith.constant dense<0.000000e+00> : vector<32x128xf32>
    %319 = tpu.matmul %318, %317, %cst_124 {dimension_numbers = #tpu.dot_dimension_numbers<[1], [0], [0], [1], [0, 0, 1, 1], [], []>} : vector<32x1024xf32>, vector<1024x128xf32>, vector<32x128xf32> -> vector<32x128xf32>
    %c0_125 = arith.constant 0 : index
    %c0_126 = arith.constant 0 : index
    %320 = vector.load %arg16[%c0_125, %c0_126] : memref<32x1xf32, #tpu.memory_space<vmem>>, vector<32x1xf32>
    %321 = vector.broadcast %320 : vector<32x1xf32> to vector<32x128xf32>
    %322 = arith.addf %319, %321 : vector<32x128xf32>
    %cst_127 = arith.constant 0.000000e+00 : f32
    %323 = vector.broadcast %cst_127 : f32 to vector<32x128xf32>
    %324 = arith.cmpf oge, %322, %323 : vector<32x128xf32>
    %cst_128 = arith.constant 0.00999999977 : f32
    %325 = vector.broadcast %cst_128 : f32 to vector<32x128xf32>
    %326 = arith.mulf %325, %322 : vector<32x128xf32>
    %327 = arith.select %324, %322, %326 : vector<32x128xi1>, vector<32x128xf32>
    %c66_i32 = arith.constant 66 : i32
    %328 = vector.broadcast %c66_i32 : i32 to vector<1x128xi32>
    %329 = arith.cmpi slt, %1, %328 : vector<1x128xi32>
    %cst_129 = arith.constant 0.000000e+00 : f32
    %330 = vector.shape_cast %329 : vector<1x128xi1> to vector<1x128xi1>
    %331 = vector.broadcast %330 : vector<1x128xi1> to vector<32x128xi1>
    %332 = vector.broadcast %cst_129 : f32 to vector<32x128xf32>
    %333 = arith.select %331, %327, %332 : vector<32x128xi1>, vector<32x128xf32>
    %cst_130 = arith.constant 0.000000e+00 : f32
    %334 = vector.broadcast %cst_130 : f32 to vector<32x128xf32>
    %335 = tpu.concatenate %333, %334 in 1 : vector<32x128xf32>, vector<32x128xf32> -> vector<32x256xf32>
    %c47_i32 = arith.constant 47 : i32
    %336 = tpu.dynamic_rotate %335 by %c47_i32 dim 1 : vector<32x256xf32>, i32 -> vector<32x256xf32>
    %337 = vector.extract_strided_slice %336 {offsets = [0, 0], sizes = [32, 128], strides = [1, 1]} : vector<32x256xf32> to vector<32x128xf32>
    %c46_i32 = arith.constant 46 : i32
    %338 = tpu.dynamic_rotate %335 by %c46_i32 dim 1 : vector<32x256xf32>, i32 -> vector<32x256xf32>
    %339 = vector.extract_strided_slice %338 {offsets = [0, 0], sizes = [32, 128], strides = [1, 1]} : vector<32x256xf32> to vector<32x128xf32>
    %c45_i32 = arith.constant 45 : i32
    %340 = tpu.dynamic_rotate %335 by %c45_i32 dim 1 : vector<32x256xf32>, i32 -> vector<32x256xf32>
    %341 = vector.extract_strided_slice %340 {offsets = [0, 0], sizes = [32, 128], strides = [1, 1]} : vector<32x256xf32> to vector<32x128xf32>
    %c44_i32 = arith.constant 44 : i32
    %342 = tpu.dynamic_rotate %335 by %c44_i32 dim 1 : vector<32x256xf32>, i32 -> vector<32x256xf32>
    %343 = vector.extract_strided_slice %342 {offsets = [0, 0], sizes = [32, 128], strides = [1, 1]} : vector<32x256xf32> to vector<32x128xf32>
    %c43_i32 = arith.constant 43 : i32
    %344 = tpu.dynamic_rotate %335 by %c43_i32 dim 1 : vector<32x256xf32>, i32 -> vector<32x256xf32>
    %345 = vector.extract_strided_slice %344 {offsets = [0, 0], sizes = [32, 128], strides = [1, 1]} : vector<32x256xf32> to vector<32x128xf32>
    %c42_i32 = arith.constant 42 : i32
    %346 = tpu.dynamic_rotate %335 by %c42_i32 dim 1 : vector<32x256xf32>, i32 -> vector<32x256xf32>
    %347 = vector.extract_strided_slice %346 {offsets = [0, 0], sizes = [32, 128], strides = [1, 1]} : vector<32x256xf32> to vector<32x128xf32>
    %c41_i32 = arith.constant 41 : i32
    %348 = tpu.dynamic_rotate %335 by %c41_i32 dim 1 : vector<32x256xf32>, i32 -> vector<32x256xf32>
    %349 = vector.extract_strided_slice %348 {offsets = [0, 0], sizes = [32, 128], strides = [1, 1]} : vector<32x256xf32> to vector<32x128xf32>
    %c40_i32 = arith.constant 40 : i32
    %350 = tpu.dynamic_rotate %335 by %c40_i32 dim 1 : vector<32x256xf32>, i32 -> vector<32x256xf32>
    %351 = vector.extract_strided_slice %350 {offsets = [0, 0], sizes = [32, 128], strides = [1, 1]} : vector<32x256xf32> to vector<32x128xf32>
    %c39_i32 = arith.constant 39 : i32
    %352 = tpu.dynamic_rotate %335 by %c39_i32 dim 1 : vector<32x256xf32>, i32 -> vector<32x256xf32>
    %353 = vector.extract_strided_slice %352 {offsets = [0, 0], sizes = [32, 128], strides = [1, 1]} : vector<32x256xf32> to vector<32x128xf32>
    %c38_i32 = arith.constant 38 : i32
    %354 = tpu.dynamic_rotate %335 by %c38_i32 dim 1 : vector<32x256xf32>, i32 -> vector<32x256xf32>
    %355 = vector.extract_strided_slice %354 {offsets = [0, 0], sizes = [32, 128], strides = [1, 1]} : vector<32x256xf32> to vector<32x128xf32>
    %c37_i32 = arith.constant 37 : i32
    %356 = tpu.dynamic_rotate %335 by %c37_i32 dim 1 : vector<32x256xf32>, i32 -> vector<32x256xf32>
    %357 = vector.extract_strided_slice %356 {offsets = [0, 0], sizes = [32, 128], strides = [1, 1]} : vector<32x256xf32> to vector<32x128xf32>
    %c36_i32_131 = arith.constant 36 : i32
    %358 = tpu.dynamic_rotate %335 by %c36_i32_131 dim 1 : vector<32x256xf32>, i32 -> vector<32x256xf32>
    %359 = vector.extract_strided_slice %358 {offsets = [0, 0], sizes = [32, 128], strides = [1, 1]} : vector<32x256xf32> to vector<32x128xf32>
    %c35_i32 = arith.constant 35 : i32
    %360 = tpu.dynamic_rotate %335 by %c35_i32 dim 1 : vector<32x256xf32>, i32 -> vector<32x256xf32>
    %361 = vector.extract_strided_slice %360 {offsets = [0, 0], sizes = [32, 128], strides = [1, 1]} : vector<32x256xf32> to vector<32x128xf32>
    %c34_i32 = arith.constant 34 : i32
    %362 = tpu.dynamic_rotate %335 by %c34_i32 dim 1 : vector<32x256xf32>, i32 -> vector<32x256xf32>
    %363 = vector.extract_strided_slice %362 {offsets = [0, 0], sizes = [32, 128], strides = [1, 1]} : vector<32x256xf32> to vector<32x128xf32>
    %c33_i32 = arith.constant 33 : i32
    %364 = tpu.dynamic_rotate %335 by %c33_i32 dim 1 : vector<32x256xf32>, i32 -> vector<32x256xf32>
    %365 = vector.extract_strided_slice %364 {offsets = [0, 0], sizes = [32, 128], strides = [1, 1]} : vector<32x256xf32> to vector<32x128xf32>
    %c32_i32 = arith.constant 32 : i32
    %366 = tpu.dynamic_rotate %335 by %c32_i32 dim 1 : vector<32x256xf32>, i32 -> vector<32x256xf32>
    %367 = vector.extract_strided_slice %366 {offsets = [0, 0], sizes = [32, 128], strides = [1, 1]} : vector<32x256xf32> to vector<32x128xf32>
    %c31_i32 = arith.constant 31 : i32
    %368 = tpu.dynamic_rotate %335 by %c31_i32 dim 1 : vector<32x256xf32>, i32 -> vector<32x256xf32>
    %369 = vector.extract_strided_slice %368 {offsets = [0, 0], sizes = [32, 128], strides = [1, 1]} : vector<32x256xf32> to vector<32x128xf32>
    %c30_i32 = arith.constant 30 : i32
    %370 = tpu.dynamic_rotate %335 by %c30_i32 dim 1 : vector<32x256xf32>, i32 -> vector<32x256xf32>
    %371 = vector.extract_strided_slice %370 {offsets = [0, 0], sizes = [32, 128], strides = [1, 1]} : vector<32x256xf32> to vector<32x128xf32>
    %c29_i32 = arith.constant 29 : i32
    %372 = tpu.dynamic_rotate %335 by %c29_i32 dim 1 : vector<32x256xf32>, i32 -> vector<32x256xf32>
    %373 = vector.extract_strided_slice %372 {offsets = [0, 0], sizes = [32, 128], strides = [1, 1]} : vector<32x256xf32> to vector<32x128xf32>
    %c28_i32 = arith.constant 28 : i32
    %374 = tpu.dynamic_rotate %335 by %c28_i32 dim 1 : vector<32x256xf32>, i32 -> vector<32x256xf32>
    %375 = vector.extract_strided_slice %374 {offsets = [0, 0], sizes = [32, 128], strides = [1, 1]} : vector<32x256xf32> to vector<32x128xf32>
    %c27_i32 = arith.constant 27 : i32
    %376 = tpu.dynamic_rotate %335 by %c27_i32 dim 1 : vector<32x256xf32>, i32 -> vector<32x256xf32>
    %377 = vector.extract_strided_slice %376 {offsets = [0, 0], sizes = [32, 128], strides = [1, 1]} : vector<32x256xf32> to vector<32x128xf32>
    %c26_i32 = arith.constant 26 : i32
    %378 = tpu.dynamic_rotate %335 by %c26_i32 dim 1 : vector<32x256xf32>, i32 -> vector<32x256xf32>
    %379 = vector.extract_strided_slice %378 {offsets = [0, 0], sizes = [32, 128], strides = [1, 1]} : vector<32x256xf32> to vector<32x128xf32>
    %c25_i32 = arith.constant 25 : i32
    %380 = tpu.dynamic_rotate %335 by %c25_i32 dim 1 : vector<32x256xf32>, i32 -> vector<32x256xf32>
    %381 = vector.extract_strided_slice %380 {offsets = [0, 0], sizes = [32, 128], strides = [1, 1]} : vector<32x256xf32> to vector<32x128xf32>
    %c24_i32 = arith.constant 24 : i32
    %382 = tpu.dynamic_rotate %335 by %c24_i32 dim 1 : vector<32x256xf32>, i32 -> vector<32x256xf32>
    %383 = vector.extract_strided_slice %382 {offsets = [0, 0], sizes = [32, 128], strides = [1, 1]} : vector<32x256xf32> to vector<32x128xf32>
    %c23_i32_132 = arith.constant 23 : i32
    %384 = tpu.dynamic_rotate %335 by %c23_i32_132 dim 1 : vector<32x256xf32>, i32 -> vector<32x256xf32>
    %385 = vector.extract_strided_slice %384 {offsets = [0, 0], sizes = [32, 128], strides = [1, 1]} : vector<32x256xf32> to vector<32x128xf32>
    %c22_i32_133 = arith.constant 22 : i32
    %386 = tpu.dynamic_rotate %335 by %c22_i32_133 dim 1 : vector<32x256xf32>, i32 -> vector<32x256xf32>
    %387 = vector.extract_strided_slice %386 {offsets = [0, 0], sizes = [32, 128], strides = [1, 1]} : vector<32x256xf32> to vector<32x128xf32>
    %c21_i32_134 = arith.constant 21 : i32
    %388 = tpu.dynamic_rotate %335 by %c21_i32_134 dim 1 : vector<32x256xf32>, i32 -> vector<32x256xf32>
    %389 = vector.extract_strided_slice %388 {offsets = [0, 0], sizes = [32, 128], strides = [1, 1]} : vector<32x256xf32> to vector<32x128xf32>
    %c20_i32_135 = arith.constant 20 : i32
    %390 = tpu.dynamic_rotate %335 by %c20_i32_135 dim 1 : vector<32x256xf32>, i32 -> vector<32x256xf32>
    %391 = vector.extract_strided_slice %390 {offsets = [0, 0], sizes = [32, 128], strides = [1, 1]} : vector<32x256xf32> to vector<32x128xf32>
    %c19_i32_136 = arith.constant 19 : i32
    %392 = tpu.dynamic_rotate %335 by %c19_i32_136 dim 1 : vector<32x256xf32>, i32 -> vector<32x256xf32>
    %393 = vector.extract_strided_slice %392 {offsets = [0, 0], sizes = [32, 128], strides = [1, 1]} : vector<32x256xf32> to vector<32x128xf32>
    %c18_i32_137 = arith.constant 18 : i32
    %394 = tpu.dynamic_rotate %335 by %c18_i32_137 dim 1 : vector<32x256xf32>, i32 -> vector<32x256xf32>
    %395 = vector.extract_strided_slice %394 {offsets = [0, 0], sizes = [32, 128], strides = [1, 1]} : vector<32x256xf32> to vector<32x128xf32>
    %c17_i32_138 = arith.constant 17 : i32
    %396 = tpu.dynamic_rotate %335 by %c17_i32_138 dim 1 : vector<32x256xf32>, i32 -> vector<32x256xf32>
    %397 = vector.extract_strided_slice %396 {offsets = [0, 0], sizes = [32, 128], strides = [1, 1]} : vector<32x256xf32> to vector<32x128xf32>
    %c16_i32_139 = arith.constant 16 : i32
    %398 = tpu.dynamic_rotate %335 by %c16_i32_139 dim 1 : vector<32x256xf32>, i32 -> vector<32x256xf32>
    %399 = vector.extract_strided_slice %398 {offsets = [0, 0], sizes = [32, 128], strides = [1, 1]} : vector<32x256xf32> to vector<32x128xf32>
    %400 = tpu.concatenate %337, %339, %341, %343, %345, %347, %349, %351, %353, %355, %357, %359, %361, %363, %365, %367 in 0 : vector<32x128xf32>, vector<32x128xf32>, vector<32x128xf32>, vector<32x128xf32>, vector<32x128xf32>, vector<32x128xf32>, vector<32x128xf32>, vector<32x128xf32>, vector<32x128xf32>, vector<32x128xf32>, vector<32x128xf32>, vector<32x128xf32>, vector<32x128xf32>, vector<32x128xf32>, vector<32x128xf32>, vector<32x128xf32> -> vector<512x128xf32>
    %401 = tpu.concatenate %369, %371, %373, %375, %377, %379, %381, %383, %385, %387, %389, %391, %393, %395, %397, %399 in 0 : vector<32x128xf32>, vector<32x128xf32>, vector<32x128xf32>, vector<32x128xf32>, vector<32x128xf32>, vector<32x128xf32>, vector<32x128xf32>, vector<32x128xf32>, vector<32x128xf32>, vector<32x128xf32>, vector<32x128xf32>, vector<32x128xf32>, vector<32x128xf32>, vector<32x128xf32>, vector<32x128xf32>, vector<32x128xf32> -> vector<512x128xf32>
    %402 = tpu.concatenate %400, %401 in 0 : vector<512x128xf32>, vector<512x128xf32> -> vector<1024x128xf32>
    %c0_140 = arith.constant 0 : index
    %c0_141 = arith.constant 0 : index
    %403 = vector.load %arg13[%c0_140, %c0_141] : memref<8x1024xf32, #tpu.memory_space<vmem>>, vector<8x1024xf32>
    %cst_142 = arith.constant dense<0.000000e+00> : vector<8x128xf32>
    %404 = tpu.matmul %403, %402, %cst_142 {dimension_numbers = #tpu.dot_dimension_numbers<[1], [0], [0], [1], [0, 0, 1, 1], [], []>} : vector<8x1024xf32>, vector<1024x128xf32>, vector<8x128xf32> -> vector<8x128xf32>
    %c0_143 = arith.constant 0 : index
    %c0_144 = arith.constant 0 : index
    %405 = vector.load %arg17[%c0_143, %c0_144] : memref<8x1xf32, #tpu.memory_space<vmem>>, vector<8x1xf32>
    %406 = vector.broadcast %405 : vector<8x1xf32> to vector<8x128xf32>
    %407 = arith.addf %404, %406 : vector<8x128xf32>
    %c0_145 = arith.constant 0 : index
    %c0_146 = arith.constant 0 : index
    %c0_147 = arith.constant 0 : index
    %408 = vector.load %arg21[%c0_145, %c0_146, %c0_147] : memref<1x8x128xf32, #tpu.memory_space<vmem>>, vector<1x8x128xf32>
    %409 = vector.shape_cast %408 : vector<1x8x128xf32> to vector<8x128xf32>
    %410 = vector.shape_cast %407 : vector<8x128xf32> to vector<1x8x128xf32>
    tpu.vector_store %arg21[%c0_145, %c0_146, %c0_147], %410 {strides = array<i32>} : memref<1x8x128xf32, #tpu.memory_space<vmem>>, vector<1x8x128xf32>,
    return
  }
  func.func @transform_0(%arg0: i32) -> (i32, i32, i32) {
    %c0_i32 = arith.constant 0 : i32
    %c0_i32_0 = arith.constant 0 : i32
    %c0_i32_1 = arith.constant 0 : i32
    return %arg0, %c0_i32, %c0_i32_0 : i32, i32, i32
  }
  func.func @transform_1(%arg0: i32) -> (i32, i32) {
    %c0_i32 = arith.constant 0 : i32
    %c0_i32_0 = arith.constant 0 : i32
    %c0_i32_1 = arith.constant 0 : i32
    return %c0_i32, %c0_i32_0 : i32, i32
  }
  func.func @transform_2(%arg0: i32) -> (i32, i32) {
    %c0_i32 = arith.constant 0 : i32
    %c0_i32_0 = arith.constant 0 : i32
    %c0_i32_1 = arith.constant 0 : i32
    return %c0_i32, %c0_i32_0 : i32, i32
  }
  func.func @transform_3(%arg0: i32) -> (i32, i32) {
    %c0_i32 = arith.constant 0 : i32
    %c0_i32_0 = arith.constant 0 : i32
    %c0_i32_1 = arith.constant 0 : i32
    return %c0_i32, %c0_i32_0 : i32, i32
  }
  func.func @transform_4(%arg0: i32) -> (i32, i32) {
    %c0_i32 = arith.constant 0 : i32
    %c0_i32_0 = arith.constant 0 : i32
    %c0_i32_1 = arith.constant 0 : i32
    return %c0_i32, %c0_i32_0 : i32, i32
  }
  func.func @transform_5(%arg0: i32) -> (i32, i32) {
    %c0_i32 = arith.constant 0 : i32
    %c0_i32_0 = arith.constant 0 : i32
    %c0_i32_1 = arith.constant 0 : i32
    return %c0_i32, %c0_i32_0 : i32, i32
  }
  func.func @transform_6(%arg0: i32) -> (i32, i32) {
    %c0_i32 = arith.constant 0 : i32
    %c0_i32_0 = arith.constant 0 : i32
    %c0_i32_1 = arith.constant 0 : i32
    return %c0_i32, %c0_i32_0 : i32, i32
  }
  func.func @transform_7(%arg0: i32) -> (i32, i32) {
    %c0_i32 = arith.constant 0 : i32
    %c0_i32_0 = arith.constant 0 : i32
    %c0_i32_1 = arith.constant 0 : i32
    return %c0_i32, %c0_i32_0 : i32, i32
  }
  func.func @transform_8(%arg0: i32) -> (i32, i32) {
    %c0_i32 = arith.constant 0 : i32
    %c0_i32_0 = arith.constant 0 : i32
    %c0_i32_1 = arith.constant 0 : i32
    return %c0_i32, %c0_i32_0 : i32, i32
  }
  func.func @transform_9(%arg0: i32) -> (i32, i32) {
    %c0_i32 = arith.constant 0 : i32
    %c0_i32_0 = arith.constant 0 : i32
    %c0_i32_1 = arith.constant 0 : i32
    return %c0_i32, %c0_i32_0 : i32, i32
  }
  func.func @transform_10(%arg0: i32) -> (i32, i32) {
    %c0_i32 = arith.constant 0 : i32
    %c0_i32_0 = arith.constant 0 : i32
    %c0_i32_1 = arith.constant 0 : i32
    return %c0_i32, %c0_i32_0 : i32, i32
  }
  func.func @transform_11(%arg0: i32) -> (i32, i32) {
    %c0_i32 = arith.constant 0 : i32
    %c0_i32_0 = arith.constant 0 : i32
    %c0_i32_1 = arith.constant 0 : i32
    return %c0_i32, %c0_i32_0 : i32, i32
  }
  func.func @transform_12(%arg0: i32) -> (i32, i32) {
    %c0_i32 = arith.constant 0 : i32
    %c0_i32_0 = arith.constant 0 : i32
    %c0_i32_1 = arith.constant 0 : i32
    return %c0_i32, %c0_i32_0 : i32, i32
  }
  func.func @transform_13(%arg0: i32) -> (i32, i32) {
    %c0_i32 = arith.constant 0 : i32
    %c0_i32_0 = arith.constant 0 : i32
    %c0_i32_1 = arith.constant 0 : i32
    return %c0_i32, %c0_i32_0 : i32, i32
  }
  func.func @transform_14(%arg0: i32) -> (i32, i32) {
    %c0_i32 = arith.constant 0 : i32
    %c0_i32_0 = arith.constant 0 : i32
    %c0_i32_1 = arith.constant 0 : i32
    return %c0_i32, %c0_i32_0 : i32, i32
  }
  func.func @transform_15(%arg0: i32) -> (i32, i32) {
    %c0_i32 = arith.constant 0 : i32
    %c0_i32_0 = arith.constant 0 : i32
    %c0_i32_1 = arith.constant 0 : i32
    return %c0_i32, %c0_i32_0 : i32, i32
  }
  func.func @transform_16(%arg0: i32) -> (i32, i32) {
    %c0_i32 = arith.constant 0 : i32
    %c0_i32_0 = arith.constant 0 : i32
    %c0_i32_1 = arith.constant 0 : i32
    return %c0_i32, %c0_i32_0 : i32, i32
  }
  func.func @transform_17(%arg0: i32) -> (i32, i32) {
    %c0_i32 = arith.constant 0 : i32
    %c0_i32_0 = arith.constant 0 : i32
    %c0_i32_1 = arith.constant 0 : i32
    return %c0_i32, %c0_i32_0 : i32, i32
  }
  func.func @transform_18(%arg0: i32) -> (i32, i32) {
    %c0_i32 = arith.constant 0 : i32
    %c0_i32_0 = arith.constant 0 : i32
    %c0_i32_1 = arith.constant 0 : i32
    return %c0_i32, %c0_i32_0 : i32, i32
  }
  func.func @transform_19(%arg0: i32) -> (i32, i32, i32) {
    %c0_i32 = arith.constant 0 : i32
    %c0_i32_0 = arith.constant 0 : i32
    %c0_i32_1 = arith.constant 0 : i32
    return %arg0, %c0_i32, %c0_i32_0 : i32, i32, i32
  }
  func.func @transform_20(%arg0: i32) -> (i32, i32, i32) {
    %c0_i32 = arith.constant 0 : i32
    %c0_i32_0 = arith.constant 0 : i32
    %c0_i32_1 = arith.constant 0 : i32
    return %arg0, %c0_i32, %c0_i32_0 : i32, i32, i32
  }
  func.func @transform_21(%arg0: i32) -> (i32, i32, i32) {
    %c0_i32 = arith.constant 0 : i32
    %c0_i32_0 = arith.constant 0 : i32
    %c0_i32_1 = arith.constant 0 : i32
    return %arg0, %c0_i32, %c0_i32_0 : i32, i32, i32
  }
}

</mosaic_0001>

<bundles_post_ra>
// kernel: forward.1
= control target key start
LH: loop header
LB: loop body
LE: loop exit
PB: predicated region body
PF: predicated region fallthrough
CT: control target
= control target key end

     0   :  { %s15020_s0 = inlined_call_operand.vmem [shape: f32[2,8,128], index: 0, kind: input, shape index: {}]   ;;  %s15021_s1 = inlined_call_operand.hbm [shape: f32[32,256], index: 1, kind: input, shape index: {}]   ;;  %s15022_s2 = inlined_call_operand.hbm [shape: f32[64,512], index: 2, kind: input, shape index: {}]   ;;  %s15023_s3 = inlined_call_operand.vmem [shape: f32[128,512], index: 3, kind: input, shape index: {}]   ;;  %s15024_s4 = inlined_call_operand.hbm [shape: f32[16,1024], index: 4, kind: input, shape index: {}]   ;;  %s15025_s5 = inlined_call_operand.vmem [shape: f32[32,1], index: 5, kind: input, shape index: {}]   ;;  %s15026_s6 = inlined_call_operand.vmem [shape: f32[64,1], index: 6, kind: input, shape index: {}]   ;;  %s15027_s7 = inlined_call_operand.vmem [shape: f32[128,1], index: 7, kind: input, shape index: {}]   ;;  %s15028_s8 = inlined_call_operand.vmem [shape: f32[16,1], index: 8, kind: input, shape index: {}]   ;;  %s15029_s9 = inlined_call_operand.hbm [shape: f32[128,128], index: 9, kind: input, shape index: {}]   ;;  %s15030_s10 = inlined_call_operand.hbm [shape: f32[64,1024], index: 10, kind: input, shape index: {}]   ;;  %s15031_s11 = inlined_call_operand.hbm [shape: f32[32,1024], index: 11, kind: input, shape index: {}]   ;;  %s15032_s12 = inlined_call_operand.hbm [shape: f32[8,1024], index: 12, kind: input, shape index: {}]   ;;  %s15033_s13 = inlined_call_operand.vmem [shape: f32[128,1], index: 13, kind: input, shape index: {}]   ;;  %s15034_s14 = inlined_call_operand.vmem [shape: f32[64,1], index: 14, kind: input, shape index: {}]   ;;  %s15035_s15 = inlined_call_operand.vmem [shape: f32[32,1], index: 15, kind: input, shape index: {}]   ;;  %s15036_s16 = inlined_call_operand.vmem [shape: f32[8,1], index: 16, kind: input, shape index: {}]   ;;  %s15037_s17 = inlined_call_operand.vmem [shape: f32[16,4], index: 17, kind: input, shape index: {}]   ;;  %s15038_s18 = inlined_call_operand.vmem [shape: f32[1,4], index: 18, kind: input, shape index: {}]   ;;  %s15039_s19 = inlined_call_operand.vmem [shape: f32[2,16,1], index: 19, kind: output, shape index: {0}]   ;;  %s15040_s20 = inlined_call_operand.hbm [shape: f32[2,8,128], index: 20, kind: output, shape index: {1}]   ;;  %s15041_s21 = inlined_call_operand.hbm [shape: f32[2,1,4], index: 21, kind: output, shape index: {2}]  }
   0x1   :  { %15184 = sst [smem:[#allocation60_spill]] %s15020_s0 }
   0x2   :  { %15185 = sst [smem:[#allocation61_spill]] %s15021_s1 }
   0x3   :  { %15186 = sst [smem:[#allocation62_spill]] %s15022_s2 }
   0x4   :  { %15187 = sst [smem:[#allocation63_spill]] %s15023_s3 }
   0x5   :  { %15188 = sst [smem:[#allocation64_spill]] %s15024_s4 }
   0x6   :  { %15189 = sst [smem:[#allocation65_spill]] %s15025_s5 }
   0x7   :  { %15190 = sst [smem:[#allocation66_spill]] %s15026_s6 }
   0x8   :  { %15191 = sst [smem:[#allocation67_spill]] %s15029_s9 }
   0x9   :  { %15192 = sst [smem:[#allocation68_spill]] %s15030_s10 }
   0xa   :  { %15193 = sst [smem:[#allocation69_spill]] %s15031_s11 }
   0xb   :  { %15194 = sst [smem:[#allocation70_spill]] %s15032_s12 }
   0xc   :  { %15195 = sst [smem:[#allocation71_spill]] %s15037_s17 }
   0xd   :  { %15196 = sst [smem:[#allocation72_spill]] %s15038_s18 }
   0xe   :  { %15197 = sst [smem:[#allocation73_spill]] %s15040_s20 }
   0xf   :  { %15198 = sst [smem:[#allocation74_spill]] %s15041_s21 }
  0x10   :  { %27 = vsyncpa [#allocation3], 0 }
  0x11   :  { %28 = vsyncpa [#allocation6], 0 }
  0x12   :  { %29 = vsyncpa [#allocation9], 0 }
  0x13   :  { %30 = vsyncpa [#allocation12], 0 }
  0x14   :  { %31 = vsyncpa [#allocation4], 0 }
  0x15   :  { %33 = vsyncpa [#allocation4 + $0x1], 0 }
  0x16   :  { %34 = vsyncpa [#allocation16], 0 }
  0x17   :  { %36 = vsyncpa [#allocation16 + $0x1], 0  ;;  %s10404_s2 = smov 0   ;;  %s10406_s25 = smov 0  }
  0x18   :  { %s10408_s26 = smov 0   ;;  %s10410_s27 = smov 0  }
  0x19 LB: > { %15199 = sst [smem:[#allocation23_spill]] %s10199_s2  ;;  %s10425_s3 = sadd.s32 4294967295, %s10211_s27   ;;  %s10211_s27 = sphi %s10410_s27, %s15558_s27   ;;  %s10207_s26 = sphi %s10408_s26, %s15560_s26   ;;  %s10203_s25 = sphi %s10406_s25, %s15562_s25   ;;  %s10199_s2 = sphi %s10404_s2, %s15561_s2  }
  0x1a   : > { %15200 = sst [smem:[#allocation24_spill]] %s10207_s26  ;;  %s6121_s28 = sadd.s32 4294967294, %s10211_s27  }
  0x1b   : > { %15201 = sst [smem:[#allocation25_spill]] %s10211_s27  ;;  %s10429_s29 = sadd.s32 1, %s10211_s27  }
  0x1c   : > { %15202 = sst [smem:[#allocation26_spill]] %s10429_s29  ;;  %s479_s0 = sadd.s32 1, %s10207_s26 }
  0x1d   : > { %s476_s4 = ssub.s32 %s10211_s27, %s10429_s29  ;;  %p489_p0 = scmp.ne.s32.totalorder %s10207_s26, %s10203_s25 }
  0x1e   : > { %p477_p1 = scmp.eq.s32.totalorder %s476_s4, 0  ;;  %p490_p2 = scmp.eq.s32.totalorder %s10425_s3, 1 }
  0x1f   : > { %p495_p3 = scmp.ne.s32.totalorder %s10203_s25, %s10199_s2  ;;  %p496_p4 = scmp.eq.s32.totalorder %s6121_s28, 1 }
  0x20   : > { %s10440_s30 = scalar_select %p477_p1, %s10207_s26, %s479_s0  }
  0x21   : > { %p10442_p5 = por %p490_p2, %p489_p0  ;;  %p10446_p6 = por %p496_p4, %p495_p3 }
  0x22   : > { %15203 = sst [smem:[#allocation27_spill]] %s10440_s30  ;;  %p6122_p7 = scmp.ge.s32.totalorder %s10211_s27, 1 }
  0x23   : > { %s15204_s5 = scalar_select %p10442_p5, 1, 0 }
  0x24   : > { %s15206_s22 = scalar_select %p10446_p6, 1, 0 }
  0x25   : > { %15205 = sst [smem:[#allocation28_spill]] %s15204_s5  ;;  %p529_p8 = scmp.lt.s32.totalorder %s10211_s27, 3 }
  0x26   : > { %15207 = sst [smem:[#allocation29_spill]] %s15206_s22  ;;  %p15054_p9 = scmp.eq.s32.totalorder %s10425_s3, 0 }
  0x27   : > { %p10453_p10 = pnand %p6122_p7, %p529_p8  ;;  %s10213_s1 = smov [#allocation5]  }
  0x28   : > { %s554_s24 = sshll.u32 %s10213_s1, 4  ;;  %s10214_s0 = smov [#allocation8]   ;;  %s555_s24 = int_to_ptr.vmem [resolvable:$true] %s554_s24 }
  0x29   : > { %s15208_s23 = scalar_select %p10453_p10, 1, 0 }
  0x2a   : > { %p7989_p11 = pneg %p10453_p10  ;;  %s595_s4 = sshll.u32 %s10214_s0, 4  ;;  %s10465_s4 = int_to_ptr.vmem [resolvable:$true] %s595_s4 }
  0x2b   : > { %s15210_s29 = sld [smem:[#allocation62_spill]] }
  0x2c   : > { %p10461_p12 = pnand %p15054_p9, %p7989_p11 }
  0x2e   : > { %p10475_p0 = pneg %p10461_p12 }
  0x31   : > { %s9905_s22 = scalar_lea.hbm %s15210_s29, 4096 }
  0x32   : > { %p9906_p13 = scmp.ne.s32.totalorder %s15210_s29, %s9905_s22  ;;  %p9912_p3 = scmp.lt.u32.totalorder %s9905_s22, %s15210_s29 }
  0x34   : > { %p9908_p1 = pnand %p10475_p0, %p9906_p13 }
  0x36   : > { %p9909_p2 = pneg %p9908_p1 }
  0x38   : > { %p9914_p4 = pnand %p9912_p3, %p9909_p2 }
  0x3a   : > { %9917 = shalt.err (!%p9914_p4)
}
  0x3b   : > { %s9918_s26 = scalar_lea.vmem %s555_s24, 4096  ;;  %p9926_p9 = scmp.lt.s32.totalorder %s555_s24, %s555_s24 }
  0x3c   : > { %p9919_p7 = scmp.ne.s32.totalorder %s555_s24, %s9918_s26  ;;  %p9927_p6 = scmp.lt.s32.totalorder %s9918_s26, %s9918_s26 }
  0x3e   : > { %p9921_p8 = pnand %p9919_p7, %p10475_p0  ;;  %p9928_p5 = por %p9927_p6, %p9926_p9 }
  0x40   : > { %p9922_p11 = pneg %p9921_p8 }
  0x42   : > { %p9929_p10 = pnand %p9928_p5, %p9922_p11 }
  0x44   : > { %9932 = shalt.err (!%p9929_p10)
}
  0x45   : > { %s10215_s2 = smov 512   ;;  %s10216_s27 = smov 32  }
  0x46   : > { %7995 = dma.hbm_to_vmem [thread:$0]  (!%p10461_p12), %s15210_s29, 4096, %s555_s24, [#allocation6], %s10215_s2, %s10215_s2, %s10216_s27  }
  0x47   : > { %s15212_s9 = sld [smem:[#allocation67_spill]] }
  0x4d   : > { %s9933_s20 = scalar_lea.hbm %s15212_s9, 2048 }
  0x4e   : > { %p9934_p13 = scmp.ne.s32.totalorder %s15212_s9, %s9933_s20  ;;  %p9940_p9 = scmp.lt.u32.totalorder %s9933_s20, %s15212_s9 }
  0x50   : > { %p9936_p5 = pnand %p9934_p13, %p10475_p0 }
  0x52   : > { %p9937_p6 = pneg %p9936_p5 }
  0x54   : > { %p9942_p10 = pnand %p9940_p9, %p9937_p6 }
  0x56   : > { %9945 = shalt.err (!%p9942_p10)
}
  0x57   : > { %s9946_s24 = scalar_lea.vmem %s10465_s4, 2048  ;;  %p9954_p4 = scmp.lt.s32.totalorder %s10465_s4, %s10465_s4 }
  0x58   : > { %p9947_p1 = scmp.ne.s32.totalorder %s10465_s4, %s9946_s24  ;;  %p9955_p7 = scmp.lt.s32.totalorder %s9946_s24, %s9946_s24 }
  0x5a   : > { %p9949_p2 = pnand %p9947_p1, %p10475_p0  ;;  %p9956_p8 = por %p9955_p7, %p9954_p4 }
  0x5c   : > { %p9950_p3 = pneg %p9949_p2 }
  0x5e   : > { %p9957_p11 = pnand %p9956_p8, %p9950_p3 }
  0x60   : > { %9960 = shalt.err (!%p9957_p11)
}
  0x61   : > { %s10217_s18 = smov 128   ;;  %s10218_s17 = smov 8  }
  0x62   : > { %8001 = dma.hbm_to_vmem [thread:$0]  (!%p10461_p12), %s15212_s9, 2048, %s10465_s4, [#allocation9], %s10217_s18, %s10217_s18, %s10218_s17  }
  0x63   : > { %s10219_s2 = smov [#allocation11]   ;;  %s10220_s21 = smov [#allocation2]  }
  0x64   : > { %s621_s27 = sshll.u32 %s10219_s2, 4  ;;  %s541_s30 = sshll.u32 %s10220_s21, 4  ;;  %s622_s27 = int_to_ptr.vmem [resolvable:$true] %s621_s27  ;;  %s10514_s30 = int_to_ptr.vmem [resolvable:$true] %s541_s30 }
  0x65   : > { %s15213_s11 = sld [smem:[#allocation69_spill]] }
  0x6b   : > { %s9961_s26 = scalar_lea.hbm %s15213_s11, 4096 }
  0x6c   : > { %p9962_p13 = scmp.ne.s32.totalorder %s15213_s11, %s9961_s26  ;;  %p9968_p9 = scmp.lt.u32.totalorder %s9961_s26, %s15213_s11 }
  0x6e   : > { %p9964_p5 = pnand %p9962_p13, %p10475_p0 }
  0x70   : > { %p9965_p6 = pneg %p9964_p5 }
  0x72   : > { %p9970_p10 = pnand %p9968_p9, %p9965_p6 }
  0x74   : > { %9973 = shalt.err (!%p9970_p10)
}
  0x75   : > { %s9974_s18 = scalar_lea.vmem %s622_s27, 4096  ;;  %p9982_p4 = scmp.lt.s32.totalorder %s622_s27, %s622_s27 }
  0x76   : > { %p9975_p1 = scmp.ne.s32.totalorder %s622_s27, %s9974_s18  ;;  %p9983_p7 = scmp.lt.s32.totalorder %s9974_s18, %s9974_s18 }
  0x78   : > { %p9977_p2 = pnand %p9975_p1, %p10475_p0  ;;  %p9984_p8 = por %p9983_p7, %p9982_p4 }
  0x7a   : > { %p9978_p3 = pneg %p9977_p2 }
  0x7c   : > { %p9985_p11 = pnand %p9984_p8, %p9978_p3 }
  0x7e   : > { %9988 = shalt.err (!%p9985_p11)
}
  0x7f   : > { %s15062_s29 = smov 1024   ;;  %s15064_s17 = smov 64  }
  0x80   : > { %8007 = dma.hbm_to_vmem [thread:$0]  (!%p10461_p12), %s15213_s11, 4096, %s622_s27, [#allocation12], %s15062_s29, %s15062_s29, %s15064_s17  }
  0x81   : > { %s15214_s0 = sld [smem:[#allocation61_spill]] }
  0x87   : > { %s9989_s26 = scalar_lea.hbm %s15214_s0, 1024 }
  0x88   : > { %p9990_p13 = scmp.ne.s32.totalorder %s15214_s0, %s9989_s26  ;;  %p9996_p9 = scmp.lt.u32.totalorder %s9989_s26, %s15214_s0 }
  0x8a   : > { %p9992_p5 = pnand %p9990_p13, %p10475_p0 }
  0x8c   : > { %p9993_p6 = pneg %p9992_p5 }
  0x8e   : > { %p9998_p10 = pnand %p9996_p9, %p9993_p6 }
  0x90   : > { %10001 = shalt.err (!%p9998_p10)
}
  0x91   : > { %s10002_s27 = scalar_lea.vmem %s10514_s30, 1024  ;;  %p10010_p4 = scmp.lt.s32.totalorder %s10514_s30, %s10514_s30 }
  0x92   : > { %p10003_p1 = scmp.ne.s32.totalorder %s10514_s30, %s10002_s27  ;;  %p10011_p7 = scmp.lt.s32.totalorder %s10002_s27, %s10002_s27 }
  0x94   : > { %p10005_p2 = pnand %p10003_p1, %p10475_p0  ;;  %p10012_p8 = por %p10011_p7, %p10010_p4 }
  0x96   : > { %p10006_p3 = pneg %p10005_p2 }
  0x98   : > { %p10013_p11 = pnand %p10012_p8, %p10006_p3 }
  0x9a   : > { %10016 = shalt.err (!%p10013_p11)
}
  0x9b   : > { %s10223_s5 = smov 256   ;;  %s10224_s2 = smov 16  }
  0x9c   : > { %7992 = dma.hbm_to_vmem [thread:$0]  (!%p10461_p12), %s15214_s0, 1024, %s10514_s30, [#allocation3], %s10223_s5, %s10223_s5, %s10224_s2  }
  0x9d   : > { %s10225_s26 = smov [#allocation7]   ;;  %s10226_s20 = smov [#allocation10]  }
  0x9e   : > { %s570_s24 = sshll.u32 %s10225_s26, 4  ;;  %s608_s4 = sshll.u32 %s10226_s20, 4  ;;  %s571_s24 = int_to_ptr.vmem [resolvable:$true] %s570_s24  ;;  %s10560_s4 = int_to_ptr.vmem [resolvable:$true] %s608_s4 }
  0x9f   : > { %s15215_s29 = sld [smem:[#allocation64_spill]] }
  0xa5   : > { %s10017_s17 = scalar_lea.hbm %s15215_s29, 2048 }
  0xa6   : > { %p10018_p13 = scmp.ne.s32.totalorder %s15215_s29, %s10017_s17  ;;  %p10024_p9 = scmp.lt.u32.totalorder %s10017_s17, %s15215_s29 }
  0xa8   : > { %p10020_p5 = pnand %p10018_p13, %p10475_p0 }
  0xaa   : > { %p10021_p6 = pneg %p10020_p5 }
  0xac   : > { %p10026_p10 = pnand %p10024_p9, %p10021_p6 }
  0xae   : > { %10029 = shalt.err (!%p10026_p10)
}
  0xaf   : > { %s10030_s5 = scalar_lea.vmem %s571_s24, 2048  ;;  %p10038_p4 = scmp.lt.s32.totalorder %s571_s24, %s571_s24 }
  0xb0   : > { %p10031_p1 = scmp.ne.s32.totalorder %s571_s24, %s10030_s5  ;;  %p10039_p7 = scmp.lt.s32.totalorder %s10030_s5, %s10030_s5 }
  0xb2   : > { %p10033_p2 = pnand %p10031_p1, %p10475_p0  ;;  %p10040_p8 = por %p10039_p7, %p10038_p4 }
  0xb4   : > { %p10034_p3 = pneg %p10033_p2 }
  0xb6   : > { %p10041_p11 = pnand %p10040_p8, %p10034_p3 }
  0xb8   : > { %10044 = shalt.err (!%p10041_p11)
}
  0xb9   : > { %s15216_s9 = smov 64   ;;  %s15217_s11 = smov 1024  }
  0xba   : > { %7998 = dma.hbm_to_vmem [thread:$0]  (!%p10461_p12), %s15215_s29, 2048, %s571_s24, [#allocation6], %s15217_s11, %s15217_s11, %s15216_s9  }
  0xbb   : > { %s15218_s10 = sld [smem:[#allocation68_spill]] }
  0xc1   : > { %s10045_s20 = scalar_lea.hbm %s15218_s10, 8192 }
  0xc2   : > { %p10046_p13 = scmp.ne.s32.totalorder %s15218_s10, %s10045_s20  ;;  %p10052_p9 = scmp.lt.u32.totalorder %s10045_s20, %s15218_s10 }
  0xc4   : > { %p10048_p5 = pnand %p10046_p13, %p10475_p0 }
  0xc6   : > { %p10049_p6 = pneg %p10048_p5 }
  0xc8   : > { %p10054_p10 = pnand %p10052_p9, %p10049_p6 }
  0xca   : > { %10057 = shalt.err (!%p10054_p10)
}
  0xcb   : > { %s10058_s24 = scalar_lea.vmem %s10560_s4, 8192  ;;  %p10066_p4 = scmp.lt.s32.totalorder %s10560_s4, %s10560_s4 }
  0xcc   : > { %p10059_p1 = scmp.ne.s32.totalorder %s10560_s4, %s10058_s24  ;;  %p10067_p7 = scmp.lt.s32.totalorder %s10058_s24, %s10058_s24 }
  0xce   : > { %p10061_p2 = pnand %p10059_p1, %p10475_p0  ;;  %p10068_p8 = por %p10067_p7, %p10066_p4 }
  0xd0   : > { %p10062_p3 = pneg %p10061_p2 }
  0xd2   : > { %p10069_p11 = pnand %p10068_p8, %p10062_p3 }
  0xd4   : > { %10072 = shalt.err (!%p10069_p11)
}
  0xd5   : > { %8004 = dma.hbm_to_vmem [thread:$0]  (!%p10461_p12), %s15218_s10, 8192, %s10560_s4, [#allocation9], %s15217_s11, %s15217_s11, %s15216_s9  }
  0xd6   : > { %s10227_s17 = smov [#allocation13]   ;;  %s15219_s12 = sld [smem:[#allocation70_spill]] }
  0xd7   : > { %s635_s22 = sshll.u32 %s10227_s17, 4  ;;  %s636_s22 = int_to_ptr.vmem [resolvable:$true] %s635_s22 }
  0xdc   : > { %s10073_s18 = scalar_lea.hbm %s15219_s12, 1024 }
  0xdd   : > { %p10074_p13 = scmp.ne.s32.totalorder %s15219_s12, %s10073_s18  ;;  %p10080_p9 = scmp.lt.u32.totalorder %s10073_s18, %s15219_s12 }
  0xdf   : > { %p10076_p5 = pnand %p10074_p13, %p10475_p0 }
  0xe1   : > { %p10077_p6 = pneg %p10076_p5 }
  0xe3   : > { %p10082_p10 = pnand %p10080_p9, %p10077_p6 }
  0xe5   : > { %10085 = shalt.err (!%p10082_p10)
}
  0xe6   : > { %s10086_s4 = scalar_lea.vmem %s636_s22, 1024  ;;  %p10094_p4 = scmp.lt.s32.totalorder %s636_s22, %s636_s22 }
  0xe7   : > { %p10087_p1 = scmp.ne.s32.totalorder %s636_s22, %s10086_s4  ;;  %p10095_p7 = scmp.lt.s32.totalorder %s10086_s4, %s10086_s4 }
  0xe9   : > { %p10089_p2 = pnand %p10087_p1, %p10475_p0  ;;  %p10096_p8 = por %p10095_p7, %p10094_p4 }
  0xeb   : > { %p10090_p3 = pneg %p10089_p2 }
  0xed   : > { %p10097_p11 = pnand %p10096_p8, %p10090_p3 }
  0xef   : > { %10100 = shalt.err (!%p10097_p11)
}
  0xf0   : > { %8010 = dma.hbm_to_vmem [thread:$0]  (!%p10461_p12), %s15219_s12, 1024, %s636_s22, [#allocation12]  }
  0xf1   : > { %p15220_p13 = scmp.ne.s32.totalorder %s15208_s23, 0 }
  0xf3   : > { %673 = sbr.rel (%p15220_p13) target bundleno = 3987 (0xf93), region = 96 }
  0xfa   : > { %p15221_p5 = scmp.eq.s32.totalorder %s10425_s3, 0 }
  0xfc   : > { %10174 = dma.done.wait (%p15221_p5), [#allocation3], 1024   ;;  %p15222_p0 = pmov %p15221_p5 }
  0xfe   : > { %10176 = vsyncadd (%p15222_p0), [#allocation3], 4294966272  ;;  %p15223_p6 = pmov %p15222_p0 }
  0xff   : > { %p15224_p9 = pmov %p15222_p0 }
 0x100   : > { %10178 = dma.done.wait (%p15223_p6), [#allocation6], 6144  }
 0x101   : > { %10180 = vsyncadd (%p15224_p9), [#allocation6], 4294961152  ;;  %p15225_p10 = pmov %p15222_p0 }
 0x102   : > { %p15226_p12 = pmov %p15222_p0 }
 0x103   : > { %10182 = dma.done.wait (%p15225_p10), [#allocation9], 10240  }
 0x104   : > { %10184 = vsyncadd (%p15226_p12), [#allocation9], 4294957056  ;;  %p15227_p1 = pmov %p15222_p0 }
 0x105   : > { %p15228_p2 = pmov %p15222_p0 }
 0x106   : > { %10186 = dma.done.wait (%p15227_p1), [#allocation12], 5120  }
 0x107   : > { %10188 = vsyncadd (%p15228_p2), [#allocation12], 4294962176  ;;  %p765_p3 = scmp.lt.s32.totalorder %s10425_s3, 1  ;;  %s15229_s2 = sld [smem:[#allocation60_spill]]  ;;  %v15122_v1 = vmov 0.0   ;;  %v965_v3 = vld [vmem:[#allocation2 + $0x8] sm:$0xff]  ;;  %v774_v9 = vlaneseq }
 0x108   : > { %s15115_s22 = smov 127   ;;  %s15070_s26 = smov 15   ;;  %1060 = vmatprep.mubr.f32.mxu0 %v965_v3  ;;  %v10260_v5 = vmov 0  }
 0x109   : > { %s10647_s23 = scalar_select %p765_p3, %s10425_s3, 1  ;;  %8299 = vset.pattern.permute.xlu1 %v10260_v5  ;;  %8300 = vset.pattern.permute.xlu0 %v10260_v5  ;;  %v10725_v10 = vand.u32 127, %v774_v9 }
 0x10a   : > { %s15072_s20 = smov 16   ;;  %s15090_s18 = smov 126  }
 0x10b   : > { %s6140_s28 = sshll.u32 %s10647_s23, 3  ;;  %s15084_s27 = smov 125   ;;  %vm878_vm0 = vcmp.lt.s32.totalorder %v10725_v10, 127  ;;  %vm15100_vm1 = vcmp.lt.s32.totalorder %v10725_v10, 15  ;;  %vm15101_vm2 = vcmp.lt.s32.totalorder %v10725_v10, 16  ;;  %vm884_vm3 = vcmp.lt.s32.totalorder %v10725_v10, 126 }
 0x10c   : > { %s15066_s21 = smov 14   ;;  %s15074_s30 = smov 13   ;;  %vm15106_vm4 = vcmp.lt.s32.totalorder %v10725_v10, 125  ;;  %vm15098_vm5 = vcmp.lt.s32.totalorder %v10725_v10, 14  ;;  %vm15102_vm6 = vcmp.lt.s32.totalorder %v10725_v10, 13  ;;  %vm896_vm7 = vcmp.lt.s32.totalorder %v10725_v10, 124 }
 0x10d   : > { %s768_s17 = scalar_lea.vmem %s15229_s2, %s6140_s28  ;;  %s10236_s24 = smov 124   ;;  %vm902_vm8 = vcmp.lt.s32.totalorder %v10725_v10, 123  ;;  %vm15099_vm9 = vcmp.lt.s32.totalorder %v10725_v10, 12  ;;  %vm15105_vm10 = vcmp.lt.s32.totalorder %v10725_v10, 11  ;;  %vm908_vm11 = vcmp.lt.s32.totalorder %v10725_v10, 122 }
 0x10e   : > { %v10653_v0 = vld [vmem:[%s768_s17] sm:$0xff]  ;;  %s15092_s4 = smov 123   ;;  %s15068_s9 = smov 12   ;;  %vm15107_vm12 = vcmp.lt.s32.totalorder %v10725_v10, 121  ;;  %vm15104_vm13 = vcmp.lt.s32.totalorder %v10725_v10, 10  ;;  %vm15103_vm14 = vcmp.lt.s32.totalorder %v10725_v10, 9 }
 0x10f   : > { %v10657_v2 = vpack.i.bf16 %v15122_v1, %v10653_v0  ;;  %s15080_s11 = smov 11   ;;  %s15086_s28 = smov 122   ;;  %vm920_vm15 = vcmp.lt.s32.totalorder %v10725_v10, 120 }
 0x110   : > { %s15082_s1 = smov 121   ;;  %s15078_s5 = smov 10  }
 0x111   : > { %8145 = vrot.lane.b32.xlu0 %v10657_v2, %s15115_s22  ;;  %8155 = vrot.lane.b32.xlu1 %v10657_v2, %s15070_s26  ;;  %s15076_s2 = smov 9   ;;  %s10244_s17 = smov 120  }
 0x112   : > { %s15113_s26 = smov 7   ;;  %s15241_s6 = sld [smem:[#allocation66_spill]] }
 0x113   : > { %s15318_s0 = smov 10   ;;  %s15319_s10 = smov 9  }
 0x114   : > { %s15320_s12 = smov 8  }
 0x115   : > { %8150 = vrot.lane.b32.xlu0 %v10657_v2, %s15072_s20  ;;  %8160 = vrot.lane.b32.xlu1 %v10657_v2, %s15090_s18  ;;  %s10248_s20 = smov 118   ;;  %s15233_s18 = smov 123  }
 0x119   : > { %8165 = vrot.lane.b32.xlu0 %v10657_v2, %s15084_s27  ;;  %8170 = vrot.lane.b32.xlu1 %v10657_v2, %s15066_s21  ;;  %s10245_s21 = smov 119   ;;  %s15234_s27 = smov 126  }
 0x11d   : > { %8175 = vrot.lane.b32.xlu0 %v10657_v2, %s15074_s30  ;;  %8180 = vrot.lane.b32.xlu1 %v10657_v2, %s10236_s24  ;;  %s10249_s30 = smov 117  }
 0x121   : > { %8185 = vrot.lane.b32.xlu0 %v10657_v2, %s15092_s4  ;;  %8190 = vrot.lane.b32.xlu1 %v10657_v2, %s15068_s9  ;;  %s15109_s9 = smov 8   ;;  %s15235_s4 = smov 2  }
 0x125   : > { %8195 = vrot.lane.b32.xlu0 %v10657_v2, %s15080_s11  ;;  %8200 = vrot.lane.b32.xlu1 %v10657_v2, %s15086_s28  ;;  %s15119_s11 = smov 4   ;;  %s15236_s28 = smov 5  }
 0x129   : > { %8205 = vrot.lane.b32.xlu0 %v10657_v2, %s15082_s1  ;;  %8210 = vrot.lane.b32.xlu1 %v10657_v2, %s15078_s5  ;;  %s10253_s5 = smov 115   ;;  %s10257_s1 = smov 113  }
 0x12d   : > { %8215 = vrot.lane.b32.xlu0 %v10657_v2, %s15076_s2  ;;  %8220 = vrot.lane.b32.xlu1 %v10657_v2, %s10244_s17  ;;  %s15111_s2 = smov 6   ;;  %s15088_s17 = smov 5  }
 0x131   : > { %8225 = vrot.lane.b32.xlu0 %v10657_v2, %s10245_s21  ;;  %8230 = vrot.lane.b32.xlu1 %v10657_v2, %s15109_s9  ;;  %s10252_s21 = smov 116  }
 0x135   : > { %8235 = vrot.lane.b32.xlu0 %v10657_v2, %s15113_s26  ;;  %8240 = vrot.lane.b32.xlu1 %v10657_v2, %s10248_s20  ;;  %s15117_s20 = smov 3  }
 0x139   : > { %8245 = vrot.lane.b32.xlu0 %v10657_v2, %s10249_s30  ;;  %8250 = vrot.lane.b32.xlu1 %v10657_v2, %s15111_s2  ;;  %s10256_s30 = smov 114  }
 0x13d   : > { %8255 = vrot.lane.b32.xlu0 %v10657_v2, %s15088_s17  ;;  %8260 = vrot.lane.b32.xlu1 %v10657_v2, %s10252_s21  ;;  %s15094_s21 = smov 2   ;;  %s15230_s17 = sld [smem:[#allocation65_spill]] }
 0x141   : > { %8265 = vrot.lane.b32.xlu0 %v10657_v2, %s10253_s5  ;;  %8270 = vrot.lane.b32.xlu1 %v10657_v2, %s15119_s11  ;;  %s15096_s5 = smov 1  }
 0x143   : > { %v972_v4 = vld [vmem:[%s15230_s17] sm:$0xff]  ;;  %v973_v6 = vld [vmem:[%s15230_s17 + $0x8] sm:$0xff]  ;;  %v974_v7 = vld [vmem:[%s15230_s17 + $0x10] sm:$0xff] }
 0x144   : > { %v975_v8 = vld [vmem:[%s15230_s17 + $0x18] sm:$0xff] }
 0x145   : > { %8275 = vrot.lane.b32.xlu0 %v10657_v2, %s15117_s20  ;;  %8280 = vrot.lane.b32.xlu1 %v10657_v2, %s10256_s30  ;;  %s15239_s30 = smov 125  }
 0x149   : > { %8285 = vrot.lane.b32.xlu0 %v10657_v2, %s10257_s1  ;;  %8290 = vrot.lane.b32.xlu1 %v10657_v2, %s15094_s21  ;;  %s15237_s21 = smov 122   ;;  %s15240_s1 = smov 121  }
 0x14d   : > { %8295 = vrot.lane.b32.xlu0 %v10657_v2, %s15096_s5  ;;  %978 = vperm.xlu1 %8299, %v972_v4   ;;  %s15238_s5 = smov 1  }
 0x151   : > { %983 = vperm.xlu0 %8300, %v973_v6   ;;  %988 = vperm.xlu1 %8299, %v974_v7  }
 0x155   : > { %993 = vperm.xlu1 %8299, %v975_v8  }
 0x183   : > { %v8146_v11 = vpop.permute.xlu0 %8145  ;;  %v8156_v12 = vpop.permute.xlu1 %8155 }
 0x184   : > { %v10729_v13 = vunpack.i.h.bf16 %v8146_v11  ;;  %v8147_v14 = vunpack.i.l.bf16 %v8146_v11  ;;  %v10731_v15 = vunpack.i.h.bf16 %v8156_v12  ;;  %v8157_v16 = vunpack.i.l.bf16 %v8156_v12 }
 0x186   : > { %v879_v17 = vsel %vm878_vm0, %v8147_v14, %v10729_v13  ;;  %v789_v21 = vsel %vm15100_vm1, %v10731_v15, %v8157_v16  ;;  %vm932_vm1 = vcmp.lt.s32.totalorder %v10725_v10, 118 }
 0x187   : > { %v8151_v18 = vpop.permute.xlu0 %8150  ;;  %v7247_v19 = vpack.c.bf16 %v879_v17, %v10653_v0  ;;  %v8161_v20 = vpop.permute.xlu1 %8160 }
 0x188   : > { %v10742_v22 = vunpack.i.h.bf16 %v8151_v18  ;;  %v8152_v23 = vunpack.i.l.bf16 %v8151_v18  ;;  %v10744_v24 = vunpack.i.h.bf16 %v8161_v20  ;;  %v8162_v25 = vunpack.i.l.bf16 %v8161_v20 }
 0x189   : > { %7248 = vmatprep.subr.bf16.mxu0 %v7247_v19 }
 0x18a   : > { %15231 = vst [vmem:[#allocation30_spill] sm:$0xff] %v10742_v22  ;;  %v783_v26 = vsel %vm15101_vm2, %v10742_v22, %v8152_v23  ;;  %v885_v30 = vsel %vm884_vm3, %v8162_v25, %v10744_v24  ;;  %vm842_vm2 = vcmp.lt.s32.totalorder %v10725_v10, 6 }
 0x18b   : > { %v8166_v27 = vpop.permute.xlu0 %8165  ;;  %v7249_v28 = vpack.c.bf16 %v789_v21, %v783_v26  ;;  %v8171_v29 = vpop.permute.xlu1 %8170 }
 0x18c   : > { %v10754_v31 = vunpack.i.h.bf16 %v8166_v27  ;;  %v8167_v32 = vunpack.i.l.bf16 %v8166_v27  ;;  %v10756_v33 = vunpack.i.h.bf16 %v8171_v29  ;;  %v8172_v34 = vunpack.i.l.bf16 %v8171_v29 }
 0x18d   : > { %7250 = vmatpush3.bf16.msra.mxu0 %v7249_v28 }
 0x18e   : > { %15232 = vst [vmem:[#allocation31_spill] sm:$0xff] %v10756_v33  ;;  %v891_v35 = vsel %vm15106_vm4, %v8167_v32, %v10754_v31  ;;  %v795_v39 = vsel %vm15098_vm5, %v10756_v33, %v8172_v34  ;;  %vm926_vm5 = vcmp.lt.s32.totalorder %v10725_v10, 119  ;;  %vm15108_vm4 = vcmp.lt.s32.totalorder %v10725_v10, 1 }
 0x18f   : > { %v8176_v36 = vpop.permute.xlu0 %8175  ;;  %v7251_v37 = vpack.c.bf16 %v891_v35, %v885_v30  ;;  %v8181_v38 = vpop.permute.xlu1 %8180 }
 0x190   : > { %v10766_v40 = vunpack.i.h.bf16 %v8176_v36  ;;  %v8177_v41 = vunpack.i.l.bf16 %v8176_v36  ;;  %v10768_v42 = vunpack.i.h.bf16 %v8181_v38  ;;  %v8182_v43 = vunpack.i.l.bf16 %v8181_v38 }
 0x191   : > { %7252 = vmatprep.subr.bf16.mxu0 %v7251_v37 }
 0x192   : > { %v801_v44 = vsel %vm15102_vm6, %v10766_v40, %v8177_v41  ;;  %v897_v48 = vsel %vm896_vm7, %v8182_v43, %v10768_v42  ;;  %vm944_vm6 = vcmp.lt.s32.totalorder %v10725_v10, 116 }
 0x193   : > { %v8186_v45 = vpop.permute.xlu0 %8185  ;;  %v7253_v46 = vpack.c.bf16 %v801_v44, %v795_v39  ;;  %v8191_v47 = vpop.permute.xlu1 %8190 }
 0x194   : > { %v10778_v49 = vunpack.i.h.bf16 %v8186_v45  ;;  %v8187_v50 = vunpack.i.l.bf16 %v8186_v45  ;;  %v10780_v51 = vunpack.i.h.bf16 %v8191_v47  ;;  %v8192_v52 = vunpack.i.l.bf16 %v8191_v47 }
 0x195   : > { %7254 = vmatpush3.bf16.msra.mxu0 %v7253_v46 }
 0x196   : > { %v903_v53 = vsel %vm902_vm8, %v8187_v50, %v10778_v49  ;;  %v807_v57 = vsel %vm15099_vm9, %v10780_v51, %v8192_v52  ;;  %vm830_vm9 = vcmp.lt.s32.totalorder %v10725_v10, 8 }
 0x197   : > { %v8196_v54 = vpop.permute.xlu0 %8195  ;;  %v7255_v55 = vpack.c.bf16 %v903_v53, %v897_v48  ;;  %v8201_v56 = vpop.permute.xlu1 %8200 }
 0x198   : > { %v10790_v58 = vunpack.i.h.bf16 %v8196_v54  ;;  %v8197_v59 = vunpack.i.l.bf16 %v8196_v54  ;;  %v10792_v60 = vunpack.i.h.bf16 %v8201_v56  ;;  %v8202_v61 = vunpack.i.l.bf16 %v8201_v56 }
 0x199   : > { %7256 = vmatprep.subr.bf16.mxu0 %v7255_v55 }
 0x19a   : > { %v813_v62 = vsel %vm15105_vm10, %v10790_v58, %v8197_v59  ;;  %v909_v3 = vsel %vm908_vm11, %v8202_v61, %v10792_v60  ;;  %vm866_vm10 = vcmp.lt.s32.totalorder %v10725_v10, 2 }
 0x19b   : > { %v8206_v63 = vpop.permute.xlu0 %8205  ;;  %v7257_v0 = vpack.c.bf16 %v813_v62, %v807_v57  ;;  %v8211_v2 = vpop.permute.xlu1 %8210 }
 0x19c   : > { %v10802_v4 = vunpack.i.h.bf16 %v8206_v63  ;;  %v8207_v5 = vunpack.i.l.bf16 %v8206_v63  ;;  %v10804_v6 = vunpack.i.h.bf16 %v8211_v2  ;;  %v8212_v7 = vunpack.i.l.bf16 %v8211_v2 }
 0x19d   : > { %7258 = vmatpush3.bf16.msra.mxu0 %v7257_v0 }
 0x19e   : > { %v915_v8 = vsel %vm15107_vm12, %v8207_v5, %v10802_v4  ;;  %v819_v14 = vsel %vm15104_vm13, %v10804_v6, %v8212_v7  ;;  %vm956_vm13 = vcmp.lt.s32.totalorder %v10725_v10, 114 }
 0x19f   : > { %v8216_v9 = vpop.permute.xlu0 %8215  ;;  %v7259_v11 = vpack.c.bf16 %v915_v8, %v909_v3  ;;  %v8221_v12 = vpop.permute.xlu1 %8220 }
 0x1a0   : > { %v10814_v16 = vunpack.i.h.bf16 %v8216_v9  ;;  %v8217_v17 = vunpack.i.l.bf16 %v8216_v9  ;;  %v8223_v18 = vunpack.i.h.bf16 %v8221_v12  ;;  %v8222_v19 = vunpack.i.l.bf16 %v8221_v12 }
 0x1a1   : > { %7260 = vmatprep.subr.bf16.mxu0 %v7259_v11 }
 0x1a2   : > { %v825_v20 = vsel %vm15103_vm14, %v10814_v16, %v8217_v17  ;;  %v921_v26 = vsel %vm920_vm15, %v8222_v19, %v8223_v18  ;;  %vm836_vm15 = vcmp.lt.s32.totalorder %v10725_v10, 7  ;;  %vm854_vm14 = vcmp.lt.s32.totalorder %v10725_v10, 4 }
 0x1a3   : > { %v8226_v21 = vpop.permute.xlu0 %8225  ;;  %v7261_v23 = vpack.c.bf16 %v825_v20, %v819_v14  ;;  %v8231_v25 = vpop.permute.xlu1 %8230 }
 0x1a4   : > { %v8228_v27 = vunpack.i.h.bf16 %v8226_v21  ;;  %v8227_v28 = vunpack.i.l.bf16 %v8226_v21  ;;  %v10821_v29 = vunpack.i.h.bf16 %v8231_v25  ;;  %v8232_v30 = vunpack.i.l.bf16 %v8231_v25 }
 0x1a5   : > { %7262 = vmatpush3.bf16.msra.mxu0 %v7261_v23 }
 0x1a6   : > { %v927_v32 = vsel %vm926_vm5, %v8227_v28, %v8228_v27  ;;  %v831_v37 = vsel %vm830_vm9, %v10821_v29, %v8232_v30  ;;  %vm938_vm5 = vcmp.lt.s32.totalorder %v10725_v10, 117 }
 0x1a7   : > { %v8236_v34 = vpop.permute.xlu0 %8235  ;;  %v7263_v35 = vpack.c.bf16 %v927_v32, %v921_v26  ;;  %v8241_v36 = vpop.permute.xlu1 %8240 }
 0x1a8   : > { %v10828_v38 = vunpack.i.h.bf16 %v8236_v34  ;;  %v8237_v39 = vunpack.i.l.bf16 %v8236_v34  ;;  %v8243_v41 = vunpack.i.h.bf16 %v8241_v36  ;;  %v8242_v43 = vunpack.i.l.bf16 %v8241_v36 }
 0x1a9   : > { %7264 = vmatprep.subr.bf16.mxu0 %v7263_v35 }
 0x1aa   : > { %v837_v44 = vsel %vm836_vm15, %v10828_v38, %v8237_v39  ;;  %v933_v48 = vsel %vm932_vm1, %v8242_v43, %v8243_v41  ;;  %vm848_vm1 = vcmp.lt.s32.totalorder %v10725_v10, 5 }
 0x1ab   : > { %v8246_v45 = vpop.permute.xlu0 %8245  ;;  %v7265_v46 = vpack.c.bf16 %v837_v44, %v831_v37  ;;  %v8251_v47 = vpop.permute.xlu1 %8250 }
 0x1ac   : > { %v8248_v50 = vunpack.i.h.bf16 %v8246_v45  ;;  %v8247_v52 = vunpack.i.l.bf16 %v8246_v45  ;;  %v10835_v53 = vunpack.i.h.bf16 %v8251_v47  ;;  %v8252_v54 = vunpack.i.l.bf16 %v8251_v47 }
 0x1ad   : > { %7266 = vmatpush3.bf16.msra.mxu0 %v7265_v46 }
 0x1ae   : > { %v939_v55 = vsel %vm938_vm5, %v8247_v52, %v8248_v50  ;;  %v843_v61 = vsel %vm842_vm2, %v10835_v53, %v8252_v54  ;;  %vm950_vm5 = vcmp.lt.s32.totalorder %v10725_v10, 115 }
 0x1af   : > { %v8256_v56 = vpop.permute.xlu0 %8255  ;;  %v7267_v57 = vpack.c.bf16 %v939_v55, %v933_v48  ;;  %v8261_v59 = vpop.permute.xlu1 %8260  ;;  %v964_v55 = vld [vmem:[#allocation2] sm:$0xff] }
 0x1b0   : > { %v10842_v62 = vunpack.i.h.bf16 %v8256_v56  ;;  %v8257_v63 = vunpack.i.l.bf16 %v8256_v56  ;;  %v8263_v0 = vunpack.i.h.bf16 %v8261_v59  ;;  %v8262_v2 = vunpack.i.l.bf16 %v8261_v59  ;;  %v967_v56 = vld [vmem:[#allocation2 + $0x18] sm:$0xff]  ;;  %v969_v59 = vld [vmem:[#allocation2 + $0x28] sm:$0xff] }
 0x1b1   : > { %7268 = vmatprep.subr.bf16.mxu0 %v7267_v57  ;;  %v966_v57 = vld [vmem:[#allocation2 + $0x10] sm:$0xff] }
 0x1b2   : > { %v849_v3 = vsel %vm848_vm1, %v10842_v62, %v8257_v63  ;;  %v945_v9 = vsel %vm944_vm6, %v8262_v2, %v8263_v0  ;;  %vm860_vm6 = vcmp.lt.s32.totalorder %v10725_v10, 3  ;;  %v971_v63 = vld [vmem:[#allocation2 + $0x38] sm:$0xff]  ;;  %v970_v0 = vld [vmem:[#allocation2 + $0x30] sm:$0xff] }
 0x1b3   : > { %v8266_v5 = vpop.permute.xlu0 %8265  ;;  %v7269_v7 = vpack.c.bf16 %v849_v3, %v843_v61  ;;  %v8271_v8 = vpop.permute.xlu1 %8270  ;;  %v968_v61 = vld [vmem:[#allocation2 + $0x20] sm:$0xff] }
 0x1b4   : > { %v8268_v11 = vunpack.i.h.bf16 %v8266_v5  ;;  %v8267_v12 = vunpack.i.l.bf16 %v8266_v5  ;;  %v10849_v14 = vunpack.i.h.bf16 %v8271_v8  ;;  %v8272_v17 = vunpack.i.l.bf16 %v8271_v8 }
 0x1b5   : > { %7270 = vmatpush3.bf16.msra.mxu0 %v7269_v7 }
 0x1b6   : > { %v951_v18 = vsel %vm950_vm5, %v8267_v12, %v8268_v11  ;;  %v855_v23 = vsel %vm854_vm14, %v10849_v14, %v8272_v17  ;;  %vm962_vm5 = vcmp.lt.s32.totalorder %v10725_v10, 113 }
 0x1b7   : > { %v8276_v19 = vpop.permute.xlu0 %8275  ;;  %v7271_v20 = vpack.c.bf16 %v951_v18, %v945_v9  ;;  %v8281_v21 = vpop.permute.xlu1 %8280 }
 0x1b8   : > { %v10856_v25 = vunpack.i.h.bf16 %v8276_v19  ;;  %v8277_v26 = vunpack.i.l.bf16 %v8276_v19  ;;  %v8283_v27 = vunpack.i.h.bf16 %v8281_v21  ;;  %v8282_v28 = vunpack.i.l.bf16 %v8281_v21 }
 0x1b9   : > { %7272 = vmatprep.subr.bf16.mxu0 %v7271_v20 }
 0x1ba   : > { %v861_v30 = vsel %vm860_vm6, %v10856_v25, %v8277_v26  ;;  %v957_v36 = vsel %vm956_vm13, %v8282_v28, %v8283_v27 }
 0x1bb   : > { %v8286_v32 = vpop.permute.xlu0 %8285  ;;  %v7273_v34 = vpack.c.bf16 %v861_v30, %v855_v23  ;;  %v8291_v35 = vpop.permute.xlu1 %8290 }
 0x1bc   : > { %v8288_v37 = vunpack.i.h.bf16 %v8286_v32  ;;  %v8287_v39 = vunpack.i.l.bf16 %v8286_v32  ;;  %v10862_v41 = vunpack.i.h.bf16 %v8291_v35  ;;  %v8292_v43 = vunpack.i.l.bf16 %v8291_v35 }
 0x1bd   : > { %7274 = vmatpush3.bf16.msra.mxu0 %v7273_v34 }
 0x1be   : > { %v963_v44 = vsel %vm962_vm5, %v8287_v39, %v8288_v37  ;;  %v867_v50 = vsel %vm866_vm10, %v10862_v41, %v8292_v43 }
 0x1bf   : > { %v8296_v45 = vpop.permute.xlu0 %8295  ;;  %v7275_v46 = vpack.c.bf16 %v963_v44, %v957_v36 }
 0x1c0   : > { %v10866_v47 = vunpack.i.h.bf16 %v8296_v45  ;;  %v8297_v48 = vunpack.i.l.bf16 %v8296_v45 }
 0x1c1   : > { %7276 = vmatprep.subr.bf16.mxu0 %v7275_v46 }
 0x1c2   : > { %v873_v52 = vsel %vm15108_vm4, %v10866_v47, %v8297_v48 }
 0x1c3   : > { %v7277_v54 = vpack.c.bf16 %v873_v52, %v867_v50 }
 0x1c5   : > { %7278 = vmatpush3.bf16.msra.mxu0 %v7277_v54 }
 0x1c8   : > { %1061 = vmatmul.mubr.f32.vlgmr.msra.gmra.mrb[0].mxu0 %v964_v55  ;;  %v1274_v55 = vld [vmem:[#allocation5 + $0x8] sm:$0xff] }
 0x1c9   : > { %1065 = vmatprep.mubr.f32.mxu0 %v967_v56  ;;  %1417 = vmatprep.mubr.f32.mxu1 %v1274_v55  ;;  %v1276_v56 = vld [vmem:[#allocation5 + $0x18] sm:$0xff] }
 0x1cc   : > { %1066 = vmatmul.mubr.f32.gmra.mrb[2].mxu0 %v966_v57  ;;  %v979_v7 = vpop.permute.xlu1 %978  ;;  %v1306_v57 = vld [vmem:[%s15241_s6 + $0x8] sm:$0xff] }
 0x1cd   : > { %1070 = vmatprep.mubr.f32.mxu0 %v969_v59  ;;  %v1305_v59 = vld [vmem:[%s15241_s6] sm:$0xff] }
 0x1d0   : > { %1071 = vmatmul.mubr.f32.gmra.mrb[4].mxu0 %v968_v61  ;;  %v984_v12 = vpop.permute.xlu0 %983  ;;  %v989_v21 = vpop.permute.xlu1 %988  ;;  %v1308_v61 = vld [vmem:[%s15241_s6 + $0x18] sm:$0xff] }
 0x1d1   : > { %1075 = vmatprep.mubr.f32.mxu0 %v971_v63  ;;  %v1307_v63 = vld [vmem:[%s15241_s6 + $0x10] sm:$0xff] }
 0x1d4   : > { %1076 = vmatmul.mubr.f32.gmra.mrb[6].mxu0 %v970_v0  ;;  %v994_v39 = vpop.permute.xlu1 %993  ;;  %v1310_v0 = vld [vmem:[%s15241_s6 + $0x28] sm:$0xff] }
 0x1d5   : > { %1522 = vmatprep.mubr.f32.mxu0 %v1276_v56 }
 0x29b   : > { %v6183_v2 = vpop.f32.mrb[0].mxu0 }
 0x29c   : > { %v6184_v3 = vpop.f32.mrb[1].mxu0 }
 0x29d   : > { %v6185_v5 = vadd.f32 %v6184_v3, %v6183_v2  ;;  %v1309_v2 = vld [vmem:[%s15241_s6 + $0x20] sm:$0xff]  ;;  %v1312_v3 = vld [vmem:[%s15241_s6 + $0x38] sm:$0xff] }
 0x29f   : > { %v1063_v8 = vadd.f32 %v6185_v5, %v979_v7  ;;  %v6186_v9 = vpop.f32.mrb[2].mxu0  ;;  %v1311_v5 = vld [vmem:[%s15241_s6 + $0x30] sm:$0xff]  ;;  %s15317_s6 = smov 11  }
 0x2a0   : > { %v6187_v11 = vpop.f32.mrb[3].mxu0 }
 0x2a1   : > { %v6188_v17 = vadd.f32 %v6187_v11, %v6186_v9  ;;  %v1085_v18 = vmul.f32 0.01, %v1063_v8  ;;  %vm1081_vm13 = vcmp.ge.f32.partialorder %v1063_v8, 0.0 }
 0x2a3   : > { %v1068_v19 = vadd.f32 %v6188_v17, %v984_v12  ;;  %v6189_v20 = vpop.f32.mrb[4].mxu0  ;;  %v10874_v28 = vsel %vm1081_vm13, %v1063_v8, %v1085_v18  ;;  %vm15246_vm13 = vcmp.lt.s32.totalorder %v10725_v10, 125 }
 0x2a4   : > { %v6190_v23 = vpop.f32.mrb[5].mxu0 }
 0x2a5   : > { %vm1082_vm5 = vcmp.ge.f32.partialorder %v1068_v19, 0.0  ;;  %v1086_v26 = vmul.f32 0.01, %v1068_v19  ;;  %v6191_v27 = vadd.f32 %v6190_v23, %v6189_v20 }
 0x2a7   : > { %v10876_v30 = vsel %vm1082_vm5, %v1068_v19, %v1086_v26  ;;  %v1073_v32 = vadd.f32 %v6191_v27, %v989_v21  ;;  %v6192_v34 = vpop.f32.mrb[6].mxu0  ;;  %vm15247_vm5 = vmmov %vm15246_vm13 }
 0x2a8   : > { %v6193_v35 = vpop.f32.mrb[7].mxu0  ;;  %v8306_v36 = vpack.i.bf16 %v10876_v30, %v10874_v28  ;;  %v7313_v46 = vpack.c.bf16 %v10876_v30, %v10874_v28 }
 0x2a9   : > { %v6194_v37 = vadd.f32 %v6193_v35, %v6192_v34  ;;  %vm1083_vm12 = vcmp.ge.f32.partialorder %v1073_v32, 0.0  ;;  %v1087_v43 = vmul.f32 0.01, %v1073_v32 }
 0x2aa   : > { %8307 = vrot.lane.b32.xlu1 %v8306_v36, %s15109_s9  ;;  %8302 = vrot.lane.b32.xlu0 %v8306_v36, %s15119_s11 }
 0x2ab   : > { %v1078_v44 = vadd.f32 %v6194_v37, %v994_v39  ;;  %v10886_v48 = vsel %vm1083_vm12, %v1073_v32, %v1087_v43 }
 0x2ad   : > { %vm1084_vm4 = vcmp.ge.f32.partialorder %v1078_v44, 0.0  ;;  %v1088_v45 = vmul.f32 0.01, %v1078_v44 }
 0x2ae   : > { %8322 = vrot.lane.b32.xlu1 %v8306_v36, %s15113_s26  ;;  %8312 = vrot.lane.b32.xlu0 %v8306_v36, %s10236_s24 }
 0x2af   : > { %v10888_v50 = vsel %vm1084_vm4, %v1078_v44, %v1088_v45  ;;  %vm15242_vm4 = vcmp.lt.s32.totalorder %v10725_v10, 1 }
 0x2b0   : > { %v8366_v52 = vpack.i.bf16 %v10888_v50, %v10886_v48  ;;  %v7317_v54 = vpack.c.bf16 %v10888_v50, %v10886_v48 }
 0x2b2   : > { %8332 = vrot.lane.b32.xlu1 %v8306_v36, %s15115_s22  ;;  %8317 = vrot.lane.b32.xlu0 %v8306_v36, %s15117_s20 }
 0x2b6   : > { %8342 = vrot.lane.b32.xlu1 %v8306_v36, %s15111_s2  ;;  %8327 = vrot.lane.b32.xlu0 %v8306_v36, %s15233_s18 }
 0x2ba   : > { %8352 = vrot.lane.b32.xlu1 %v8306_v36, %s15234_s27  ;;  %8337 = vrot.lane.b32.xlu0 %v8306_v36, %s15235_s4 }
 0x2be   : > { %8362 = vrot.lane.b32.xlu1 %v8306_v36, %s15236_s28  ;;  %8347 = vrot.lane.b32.xlu0 %v8306_v36, %s15237_s21 }
 0x2c2   : > { %8367 = vrot.lane.b32.xlu1 %v8366_v52, %s15119_s11  ;;  %8357 = vrot.lane.b32.xlu0 %v8306_v36, %s15238_s5  ;;  %s15253_s11 = smov 3  }
 0x2c6   : > { %8382 = vrot.lane.b32.xlu1 %v8366_v52, %s10236_s24  ;;  %8372 = vrot.lane.b32.xlu0 %v8366_v52, %s15109_s9  ;;  %s15373_s24 = smov 15   ;;  %s15374_s9 = smov 12  }
 0x2ca   : > { %8387 = vrot.lane.b32.xlu1 %v8306_v36, %s15239_s30  ;;  %8377 = vrot.lane.b32.xlu0 %v8306_v36, %s15240_s1 }
 0x2ce   : > { %8397 = vrot.lane.b32.xlu1 %v8366_v52, %s15113_s26  ;;  %8392 = vrot.lane.b32.xlu0 %v8366_v52, %s15117_s20  ;;  %s15254_s20 = smov 127   ;;  %s15136_s26 = smov 20  }
 0x2d2   : > { %8407 = vrot.lane.b32.xlu1 %v8366_v52, %s15115_s22  ;;  %8402 = vrot.lane.b32.xlu0 %v8366_v52, %s15233_s18  ;;  %s15252_s22 = smov 4   ;;  %s15255_s18 = sld [smem:[#allocation63_spill]] }
 0x2d6   : > { %8417 = vrot.lane.b32.xlu1 %v8366_v52, %s15111_s2  ;;  %8412 = vrot.lane.b32.xlu0 %v8366_v52, %s15235_s4  ;;  %s15375_s2 = smov 14  }
 0x2da   : > { %8427 = vrot.lane.b32.xlu1 %v8366_v52, %s15234_s27  ;;  %8422 = vrot.lane.b32.xlu0 %v8366_v52, %s15237_s21  ;;  %s15138_s21 = smov 22  }
 0x2de   : > { %8437 = vrot.lane.b32.xlu1 %v8366_v52, %s15236_s28  ;;  %8432 = vrot.lane.b32.xlu0 %v8366_v52, %s15238_s5 }
 0x2e2   : > { %8447 = vrot.lane.b32.xlu1 %v8366_v52, %s15239_s30  ;;  %8442 = vrot.lane.b32.xlu0 %v8366_v52, %s15240_s1  ;;  %s15372_s1 = smov 16  }
 0x2e6   : > { %1320 = vperm.xlu1 %8299, %v1306_v57   ;;  %1315 = vperm.xlu0 %8300, %v1305_v59  }
 0x2ea   : > { %1330 = vperm.xlu1 %8299, %v1308_v61   ;;  %1325 = vperm.xlu0 %8300, %v1307_v63  }
 0x2ee   : > { %1340 = vperm.xlu1 %8299, %v1310_v0   ;;  %1335 = vperm.xlu0 %8300, %v1309_v2  }
 0x2f2   : > { %1350 = vperm.xlu1 %8299, %v1312_v3   ;;  %1345 = vperm.xlu0 %8300, %v1311_v5  }
 0x31c   : > { %v8308_v7 = vpop.permute.xlu1 %8307  ;;  %v8303_v8 = vpop.permute.xlu0 %8302 }
 0x31d   : > { %v8310_v9 = vunpack.i.h.bf16 %v8308_v7  ;;  %v8309_v11 = vunpack.i.l.bf16 %v8308_v7  ;;  %v8305_v12 = vunpack.i.h.bf16 %v8303_v8  ;;  %v8304_v17 = vunpack.i.l.bf16 %v8303_v8 }
 0x31f   : > { %v1149_v18 = vsel %vm854_vm14, %v10849_v14, %v8304_v17  ;;  %v1150_v19 = vsel %vm854_vm14, %v10849_v14, %v8305_v12  ;;  %v1101_v20 = vsel %vm830_vm9, %v10821_v29, %v8309_v11  ;;  %v1102_v21 = vsel %vm830_vm9, %v10821_v29, %v8310_v9 }
 0x320   : > { %v8323_v23 = vpop.permute.xlu1 %8322  ;;  %v8313_v26 = vpop.permute.xlu0 %8312  ;;  %v7279_v27 = vpack.c.bf16 %v1150_v19, %v1149_v18  ;;  %v7281_v32 = vpack.c.bf16 %v1102_v21, %v1101_v20 }
 0x321   : > { %v8315_v34 = vunpack.i.h.bf16 %v8313_v26  ;;  %v8314_v35 = vunpack.i.l.bf16 %v8313_v26  ;;  %v8324_v61 = vunpack.i.l.bf16 %v8323_v23  ;;  %v8325_v63 = vunpack.i.h.bf16 %v8323_v23 }
 0x322   : > { %7280 = vmatprep.subr.bf16.mxu1 %v7279_v27 }
 0x323   : > { %7282 = vmatpush3.bf16.msra.mxu1 %v7281_v32  ;;  %v1233_v36 = vsel %vm896_vm7, %v8314_v35, %v10768_v42  ;;  %v1234_v37 = vsel %vm896_vm7, %v8315_v34, %v10768_v42  ;;  %v1113_v30 = vsel %vm836_vm15, %v10828_v38, %v8324_v61  ;;  %v1114_v12 = vsel %vm836_vm15, %v10828_v38, %v8325_v63 }
 0x324   : > { %v8333_v39 = vpop.permute.xlu1 %8332  ;;  %v8318_v43 = vpop.permute.xlu0 %8317  ;;  %v7311_v44 = vpack.c.bf16 %v1234_v37, %v1233_v36 }
 0x325   : > { %v8335_v0 = vunpack.i.h.bf16 %v8333_v39  ;;  %v8319_v2 = vunpack.i.l.bf16 %v8318_v43  ;;  %v8320_v3 = vunpack.i.h.bf16 %v8318_v43 }
 0x326   : > { %7312 = vmatprep.subr.bf16.mxu0 %v7311_v44 }
 0x327   : > { %7314 = vmatpush3.bf16.msra.mxu0 %v7313_v46  ;;  %v8334_v46 = vunpack.i.l.bf16 %v8333_v39  ;;  %v1198_v17 = vsel %vm878_vm0, %v8335_v0, %v10729_v13  ;;  %v1161_v20 = vsel %vm860_vm6, %v10856_v25, %v8319_v2  ;;  %v1162_v34 = vsel %vm860_vm6, %v10856_v25, %v8320_v3 }
 0x328   : > { %v8343_v45 = vpop.permute.xlu1 %8342  ;;  %v8328_v52 = vpop.permute.xlu0 %8327 }
 0x329   : > { %v8330_v9 = vunpack.i.h.bf16 %v8328_v52  ;;  %v8329_v11 = vunpack.i.l.bf16 %v8328_v52  ;;  %v8345_v21 = vunpack.i.h.bf16 %v8343_v45  ;;  %v8344_v23 = vunpack.i.l.bf16 %v8343_v45 }
 0x32a   : > { %v1197_v2 = vsel %vm878_vm0, %v8334_v46, %v10729_v13 }
 0x32b   : > { %v1245_v52 = vsel %vm902_vm8, %v8329_v11, %v10778_v49  ;;  %v1246_v45 = vsel %vm902_vm8, %v8330_v9, %v10778_v49  ;;  %v7287_v11 = vpack.c.bf16 %v1162_v34, %v1161_v20  ;;  %v7321_v20 = vpack.c.bf16 %v1198_v17, %v1197_v2 }
 0x32c   : > { %v10965_v55 = vpop.permute.xlu1 %8352  ;;  %v8338_v56 = vpop.permute.xlu0 %8337 }
 0x32d   : > { %v8340_v43 = vunpack.i.h.bf16 %v8338_v56  ;;  %v8339_v44 = vunpack.i.l.bf16 %v8338_v56  ;;  %v8355_v3 = vunpack.i.h.bf16 %v10965_v55  ;;  %v8354_v46 = vunpack.i.l.bf16 %v10965_v55 }
 0x32f   : > { %v11043_v55 = vsel %vm884_vm3, %v8355_v3, %v10744_v24 }
 0x330   : > { %v10967_v57 = vpop.permute.xlu1 %8362  ;;  %v10969_v59 = vpop.permute.xlu0 %8347 }
 0x334   : > { %v8368_v5 = vpop.permute.xlu1 %8367  ;;  %v10971_v7 = vpop.permute.xlu0 %8357 }
 0x335   : > { %v8370_v8 = vunpack.i.h.bf16 %v8368_v5  ;;  %v8369_v28 = vunpack.i.l.bf16 %v8368_v5 }
 0x337   : > { %v1151_v18 = vsel %vm854_vm14, %v10849_v14, %v8369_v28  ;;  %v1152_v19 = vsel %vm854_vm14, %v10849_v14, %v8370_v8 }
 0x338   : > { %v8383_v26 = vpop.permute.xlu1 %8382  ;;  %v8373_v27 = vpop.permute.xlu0 %8372  ;;  %v7283_v32 = vpack.c.bf16 %v1152_v19, %v1151_v18  ;;  %v11023_v18 = vsel %vm842_vm2, %v10835_v53, %v8344_v23  ;;  %v7319_v19 = vpack.c.bf16 %v1246_v45, %v1245_v52  ;;  %v1173_v23 = vsel %vm866_vm10, %v10862_v41, %v8339_v44 }
 0x339   : > { %v8385_v35 = vunpack.i.h.bf16 %v8383_v26  ;;  %v8384_v36 = vunpack.i.l.bf16 %v8383_v26  ;;  %v8375_v37 = vunpack.i.h.bf16 %v8373_v27  ;;  %v8374_v39 = vunpack.i.l.bf16 %v8373_v27 }
 0x33a   : > { %7284 = vmatprep.subr.bf16.mxu1 %v7283_v32  ;;  %v7289_v26 = vpack.c.bf16 %v1114_v12, %v1113_v30  ;;  %v8350_v30 = vunpack.i.h.bf16 %v10969_v59  ;;  %v8349_v12 = vunpack.i.l.bf16 %v10969_v59 }
 0x33b   : > { %v1103_v61 = vsel %vm830_vm9, %v10821_v29, %v8374_v39  ;;  %v1104_v63 = vsel %vm830_vm9, %v10821_v29, %v8375_v37  ;;  %v1235_v56 = vsel %vm896_vm7, %v8384_v36, %v10768_v42  ;;  %v1236_v0 = vsel %vm896_vm7, %v8385_v35, %v10768_v42  ;;  %vm15243_vm7 = vmmov %vm15242_vm4 }
 0x33c   : > { %v11016_v5 = vpop.permute.xlu1 %8387  ;;  %v11018_v8 = vpop.permute.xlu0 %8377  ;;  %v7285_v28 = vpack.c.bf16 %v1104_v63, %v1103_v61  ;;  %v7315_v9 = vpack.c.bf16 %v1236_v0, %v1235_v56  ;;  %v11028_v42 = vsel %vm842_vm2, %v10835_v53, %v8345_v21  ;;  %v1174_v21 = vsel %vm866_vm10, %v10862_v41, %v8340_v43 }
 0x33d   : > { %v11052_v35 = vsel %vm884_vm3, %v8354_v46, %v10744_v24  ;;  %v8365_v36 = vunpack.i.h.bf16 %v10967_v57  ;;  %v8364_v37 = vunpack.i.l.bf16 %v10967_v57  ;;  %v7295_v59 = vpack.c.bf16 %v1174_v21, %v1173_v23 }
 0x33e   : > { %7286 = vmatpush3.bf16.msra.mxu1 %v7285_v28  ;;  %7316 = vmatprep.subr.bf16.mxu0 %v7315_v9  ;;  %v1257_v56 = vsel %vm908_vm11, %v8349_v12, %v10792_v60  ;;  %v1258_v0 = vsel %vm908_vm11, %v8350_v30, %v10792_v60 }
 0x33f   : > { %7288 = vmatprep.subr.bf16.mxu1 %v7287_v11  ;;  %7318 = vmatpush3.bf16.msra.mxu0 %v7317_v54  ;;  %v7297_v54 = vpack.c.bf16 %v11028_v42, %v11023_v18  ;;  %v8360_v11 = vunpack.i.h.bf16 %v10971_v7  ;;  %v8359_v18 = vunpack.i.l.bf16 %v10971_v7  ;;  %v7329_v42 = vpack.c.bf16 %v11043_v55, %v11052_v35 }
 0x340   : > { %v8398_v48 = vpop.permute.xlu1 %8397  ;;  %v8393_v50 = vpop.permute.xlu0 %8392  ;;  %7320 = vmatprep.subr.bf16.mxu0 %v7319_v19  ;;  %v11081_v46 = vsel %vm848_vm1, %v10842_v62, %v8364_v37  ;;  %v7327_v12 = vpack.c.bf16 %v1258_v0, %v1257_v56  ;;  %v8379_v35 = vunpack.i.l.bf16 %v11018_v8 }
 0x341   : > { %v8400_v17 = vunpack.i.h.bf16 %v8398_v48  ;;  %v8399_v27 = vunpack.i.l.bf16 %v8398_v48  ;;  %v8395_v32 = vunpack.i.h.bf16 %v8393_v50  ;;  %v8394_v34 = vunpack.i.l.bf16 %v8393_v50 }
 0x342   : > { %7290 = vmatpush3.bf16.msra.mxu1 %v7289_v26  ;;  %v1138_v48 = vsel %vm848_vm1, %v10842_v62, %v8365_v36  ;;  %v1186_v37 = vsel %vm15243_vm7, %v10866_v47, %v8360_v11  ;;  %vm15249_vm7 = vmmov %vm15247_vm5 }
 0x343   : > { %7322 = vmatpush3.bf16.msra.mxu0 %v7321_v20  ;;  %v1163_v39 = vsel %vm860_vm6, %v10856_v25, %v8394_v34  ;;  %v1164_v43 = vsel %vm860_vm6, %v10856_v25, %v8395_v32  ;;  %v1115_v44 = vsel %vm836_vm15, %v10828_v38, %v8399_v27  ;;  %v1116_v52 = vsel %vm836_vm15, %v10828_v38, %v8400_v17 }
 0x344   : > { %v8408_v57 = vpop.permute.xlu1 %8407  ;;  %v8403_v45 = vpop.permute.xlu0 %8402  ;;  %v7291_v61 = vpack.c.bf16 %v1164_v43, %v1163_v39  ;;  %v7293_v63 = vpack.c.bf16 %v1116_v52, %v1115_v44  ;;  %v8380_v34 = vunpack.i.h.bf16 %v11018_v8  ;;  %v8390_v39 = vunpack.i.h.bf16 %v11016_v5 }
 0x345   : > { %v8410_v2 = vunpack.i.h.bf16 %v8408_v57  ;;  %v8409_v3 = vunpack.i.l.bf16 %v8408_v57  ;;  %v8405_v28 = vunpack.i.h.bf16 %v8403_v45  ;;  %v8404_v9 = vunpack.i.l.bf16 %v8403_v45 }
 0x346   : > { %7292 = vmatprep.subr.bf16.mxu1 %v7291_v61  ;;  %v8389_v43 = vunpack.i.l.bf16 %v11016_v5 }
 0x347   : > { %v1200_v19 = vsel %vm878_vm0, %v8410_v2, %v10729_v13  ;;  %v1199_v26 = vsel %vm878_vm0, %v8409_v3, %v10729_v13  ;;  %7294 = vmatpush3.bf16.msra.mxu1 %v7293_v63  ;;  %v1247_v7 = vsel %vm902_vm8, %v8404_v9, %v10778_v49  ;;  %v1248_v20 = vsel %vm902_vm8, %v8405_v28, %v10778_v49 }
 0x348   : > { %v8418_v23 = vpop.permute.xlu1 %8417  ;;  %v8413_v21 = vpop.permute.xlu0 %8412  ;;  %7296 = vmatprep.subr.bf16.mxu1 %v7295_v59  ;;  %v7323_v55 = vpack.c.bf16 %v1248_v20, %v1247_v7  ;;  %v7325_v30 = vpack.c.bf16 %v1200_v19, %v1199_v26  ;;  %v1185_v49 = vsel %vm15242_vm4, %v10866_v47, %v8359_v18  ;;  %vm15244_vm8 = vcmp.lt.s32.totalorder %v10725_v10, 121 }
 0x349   : > { %v8420_v50 = vunpack.i.h.bf16 %v8418_v23  ;;  %v8419_v17 = vunpack.i.l.bf16 %v8418_v23  ;;  %v8415_v27 = vunpack.i.h.bf16 %v8413_v21  ;;  %v8414_v32 = vunpack.i.l.bf16 %v8413_v21  ;;  %vm15245_vm12 = vmmov %vm15244_vm8 }
 0x34a   : > { %7324 = vmatprep.subr.bf16.mxu0 %v7323_v55  ;;  %v7303_v2 = vpack.c.bf16 %v1186_v37, %v1185_v49  ;;  %v1269_v3 = vsel %vm15244_vm8, %v8379_v35, %v10802_v4  ;;  %v1270_v5 = vsel %vm15245_vm12, %v8380_v34, %v10802_v4  ;;  %v1222_v19 = vsel %vm15246_vm13, %v8390_v39, %v10754_v31  ;;  %vm15250_vm8 = vmmov %vm15247_vm5 }
 0x34b   : > { %7298 = vmatpush3.bf16.msra.mxu1 %v7297_v54  ;;  %7326 = vmatpush3.bf16.msra.mxu0 %v7325_v30  ;;  %v1175_v36 = vsel %vm866_vm10, %v10862_v41, %v8414_v32  ;;  %v1176_v59 = vsel %vm866_vm10, %v10862_v41, %v8415_v27  ;;  %v1127_v8 = vsel %vm842_vm2, %v10835_v53, %v8419_v17  ;;  %vm15251_vm13 = vmmov %vm15245_vm12 }
 0x34c   : > { %v8428_v44 = vpop.permute.xlu1 %8427  ;;  %v8423_v52 = vpop.permute.xlu0 %8422  ;;  %7328 = vmatprep.subr.bf16.mxu0 %v7327_v12  ;;  %v7299_v54 = vpack.c.bf16 %v1176_v59, %v1175_v36  ;;  %v1128_v57 = vsel %vm842_vm2, %v10835_v53, %v8420_v50  ;;  %v1221_v26 = vsel %vm15247_vm5, %v8389_v43, %v10754_v31  ;;  %v7335_v50 = vpack.c.bf16 %v1270_v5, %v1269_v3  ;;  %v1282_v3 = vld [vmem:[#allocation5 + $0x48] sm:$0xff]  ;;  %v1279_v5 = vld [vmem:[#allocation5 + $0x30] sm:$0xff] }
 0x34d   : > { %v8430_v45 = vunpack.i.h.bf16 %v8428_v44  ;;  %v8429_v61 = vunpack.i.l.bf16 %v8428_v44  ;;  %v8425_v63 = vunpack.i.h.bf16 %v8423_v52  ;;  %v8424_v56 = vunpack.i.l.bf16 %v8423_v52 }
 0x34e   : > { %7300 = vmatprep.subr.bf16.mxu1 %v7299_v54  ;;  %v7301_v0 = vpack.c.bf16 %v1128_v57, %v1127_v8  ;;  %v7337_v37 = vpack.c.bf16 %v1222_v19, %v1221_v26  ;;  %v1273_v57 = vld [vmem:[#allocation5] sm:$0xff]  ;;  %v1288_v19 = vld [vmem:[#allocation5 + $0x78] sm:$0xff]  ;;  %v1290_v26 = vld [vmem:[#allocation5 + $0x88] sm:$0xff] }
 0x34f   : > { %v1212_v28 = vsel %vm884_vm3, %v8430_v45, %v10744_v24  ;;  %v1211_v9 = vsel %vm884_vm3, %v8429_v61, %v10744_v24  ;;  %7330 = vmatpush3.bf16.msra.mxu0 %v7329_v42  ;;  %v1259_v11 = vsel %vm908_vm11, %v8424_v56, %v10792_v60  ;;  %v1260_v18 = vsel %vm908_vm11, %v8425_v63, %v10792_v60  ;;  %vm15248_vm11 = vmmov %vm15242_vm4  ;;  %v1278_v63 = vld [vmem:[#allocation5 + $0x28] sm:$0xff]  ;;  %v1275_v56 = vld [vmem:[#allocation5 + $0x10] sm:$0xff] }
 0x350   : > { %7302 = vmatpush3.bf16.msra.mxu1 %v7301_v0  ;;  %v8438_v7 = vpop.permute.xlu1 %8437  ;;  %v8433_v20 = vpop.permute.xlu0 %8432  ;;  %v7331_v42 = vpack.c.bf16 %v1260_v18, %v1259_v11  ;;  %v7333_v23 = vpack.c.bf16 %v1212_v28, %v1211_v9  ;;  %v7305_v60 = vpack.c.bf16 %v1138_v48, %v11081_v46  ;;  %v1277_v0 = vld [vmem:[#allocation5 + $0x20] sm:$0xff]  ;;  %v1286_v9 = vld [vmem:[#allocation5 + $0x68] sm:$0xff]  ;;  %v1283_v11 = vld [vmem:[#allocation5 + $0x50] sm:$0xff] }
 0x351   : > { %v8440_v21 = vunpack.i.h.bf16 %v8438_v7  ;;  %v8439_v55 = vunpack.i.l.bf16 %v8438_v7  ;;  %v8435_v30 = vunpack.i.h.bf16 %v8433_v20  ;;  %v8434_v12 = vunpack.i.l.bf16 %v8433_v20  ;;  %7304 = vmatprep.subr.bf16.mxu1 %v7303_v2  ;;  %v1280_v2 = vld [vmem:[#allocation5 + $0x38] sm:$0xff]  ;;  %v1281_v28 = vld [vmem:[#allocation5 + $0x40] sm:$0xff]  ;;  %v1287_v7 = vld [vmem:[#allocation5 + $0x70] sm:$0xff] }
 0x352   : > { %7332 = vmatprep.subr.bf16.mxu0 %v7331_v42  ;;  %v1285_v18 = vld [vmem:[#allocation5 + $0x60] sm:$0xff]  ;;  %v1292_v42 = vld [vmem:[#allocation5 + $0x98] sm:$0xff] }
 0x353   : > { %7334 = vmatpush3.bf16.msra.mxu0 %v7333_v23  ;;  %v1187_v17 = vsel %vm15248_vm11, %v10866_v47, %v8434_v12  ;;  %v1188_v27 = vsel %vm15242_vm4, %v10866_v47, %v8435_v30  ;;  %v1139_v32 = vsel %vm848_vm1, %v10842_v62, %v8439_v55  ;;  %v1140_v34 = vsel %vm848_vm1, %v10842_v62, %v8440_v21  ;;  %v1289_v20 = vld [vmem:[#allocation5 + $0x80] sm:$0xff]  ;;  %v1294_v23 = vld [vmem:[#allocation5 + $0xa8] sm:$0xff]  ;;  %v1291_v21 = vld [vmem:[#allocation5 + $0x90] sm:$0xff] }
 0x354   : > { %7306 = vmatpush3.bf16.msra.mxu1 %v7305_v60  ;;  %v8448_v46 = vpop.permute.xlu1 %8447  ;;  %v8443_v48 = vpop.permute.xlu0 %8442  ;;  %7336 = vmatprep.subr.bf16.mxu0 %v7335_v50  ;;  %v7307_v35 = vpack.c.bf16 %v1188_v27, %v1187_v17  ;;  %v7309_v49 = vpack.c.bf16 %v1140_v34, %v1139_v32  ;;  %v1293_v55 = vld [vmem:[#allocation5 + $0xa0] sm:$0xff]  ;;  %v1296_v30 = vld [vmem:[#allocation5 + $0xb8] sm:$0xff]  ;;  %v1298_v12 = vld [vmem:[#allocation5 + $0xc8] sm:$0xff] }
 0x355   : > { %v8450_v36 = vunpack.i.h.bf16 %v8448_v46  ;;  %v8449_v59 = vunpack.i.l.bf16 %v8448_v46  ;;  %v8445_v8 = vunpack.i.h.bf16 %v8443_v48  ;;  %v8444_v39 = vunpack.i.l.bf16 %v8443_v48  ;;  %v1295_v60 = vld [vmem:[#allocation5 + $0xb0] sm:$0xff]  ;;  %v1297_v50 = vld [vmem:[#allocation5 + $0xc0] sm:$0xff]  ;;  %v1300_v17 = vld [vmem:[#allocation5 + $0xd8] sm:$0xff] }
 0x356   : > { %7308 = vmatprep.subr.bf16.mxu1 %v7307_v35  ;;  %v1302_v27 = vld [vmem:[#allocation5 + $0xe8] sm:$0xff]  ;;  %v1299_v32 = vld [vmem:[#allocation5 + $0xd0] sm:$0xff]  ;;  %v1301_v34 = vld [vmem:[#allocation5 + $0xe0] sm:$0xff] }
 0x357   : > { %v1224_v43 = vsel %vm15249_vm7, %v8450_v36, %v10754_v31  ;;  %v1223_v44 = vsel %vm15250_vm8, %v8449_v59, %v10754_v31  ;;  %7338 = vmatpush3.bf16.msra.mxu0 %v7337_v37  ;;  %v1271_v52 = vsel %vm15245_vm12, %v8444_v39, %v10802_v4  ;;  %v1272_v54 = vsel %vm15251_vm13, %v8445_v8, %v10802_v4  ;;  %v1284_v4 = vld [vmem:[#allocation5 + $0x58] sm:$0xff]  ;;  %v1303_v48 = vld [vmem:[#allocation5 + $0xf0] sm:$0xff] }
 0x358   : > { %7310 = vmatpush3.bf16.msra.mxu1 %v7309_v49  ;;  %v7339_v45 = vpack.c.bf16 %v1272_v54, %v1271_v52  ;;  %v7341_v61 = vpack.c.bf16 %v1224_v43, %v1223_v44  ;;  %v1304_v46 = vld [vmem:[#allocation5 + $0xf8] sm:$0xff] }
 0x35a   : > { %7340 = vmatprep.subr.bf16.mxu0 %v7339_v45 }
 0x35b   : > { %1418 = vmatmul.mubr.f32.vlgmr.msra.gmra.mrb[0].mxu1 %v1273_v57  ;;  %7342 = vmatpush3.bf16.msra.mxu0 %v7341_v61 }
 0x35c   : > { %1422 = vmatprep.mubr.f32.mxu1 %v1278_v63 }
 0x35e   : > { %1523 = vmatmul.mubr.f32.vlgmr.msra.gmra.mrb[8].mxu0 %v1275_v56 }
 0x35f   : > { %1423 = vmatmul.mubr.f32.gmra.mrb[2].mxu1 %v1277_v0  ;;  %1527 = vmatprep.mubr.f32.mxu0 %v1280_v2 }
 0x360   : > { %1427 = vmatprep.mubr.f32.mxu1 %v1282_v3 }
 0x362   : > { %1528 = vmatmul.mubr.f32.gmra.mrb[10].mxu0 %v1279_v5 }
 0x363   : > { %1428 = vmatmul.mubr.f32.gmra.mrb[4].mxu1 %v1281_v28  ;;  %1532 = vmatprep.mubr.f32.mxu0 %v1284_v4 }
 0x364   : > { %1432 = vmatprep.mubr.f32.mxu1 %v1286_v9 }
 0x365   : > { %v1316_v36 = vpop.permute.xlu0 %1315  ;;  %v1321_v57 = vpop.permute.xlu1 %1320 }
 0x366   : > { %1533 = vmatmul.mubr.f32.gmra.mrb[12].mxu0 %v1283_v11 }
 0x367   : > { %1433 = vmatmul.mubr.f32.gmra.mrb[6].mxu1 %v1285_v18  ;;  %1537 = vmatprep.mubr.f32.mxu0 %v1288_v19 }
 0x368   : > { %1437 = vmatprep.mubr.f32.mxu1 %v1290_v26 }
 0x369   : > { %v1326_v28 = vpop.permute.xlu0 %1325 }
 0x36a   : > { %1538 = vmatmul.mubr.f32.gmra.mrb[14].mxu0 %v1287_v7 }
 0x36b   : > { %1438 = vmatmul.mubr.f32.gmra.mrb[8].mxu1 %v1289_v20  ;;  %1542 = vmatprep.mubr.f32.mxu0 %v1292_v42 }
 0x36c   : > { %1442 = vmatprep.mubr.f32.mxu1 %v1294_v23 }
 0x36e   : > { %1543 = vmatmul.mubr.f32.gmra.mrb[16].mxu0 %v1291_v21  ;;  %v1331_v21 = vpop.permute.xlu1 %1330 }
 0x36f   : > { %1443 = vmatmul.mubr.f32.gmra.mrb[10].mxu1 %v1293_v55  ;;  %1547 = vmatprep.mubr.f32.mxu0 %v1296_v30 }
 0x370   : > { %1447 = vmatprep.mubr.f32.mxu1 %v1298_v12 }
 0x372   : > { %1548 = vmatmul.mubr.f32.gmra.mrb[18].mxu0 %v1295_v60 }
 0x373   : > { %1448 = vmatmul.mubr.f32.gmra.mrb[12].mxu1 %v1297_v50  ;;  %1552 = vmatprep.mubr.f32.mxu0 %v1300_v17 }
 0x374   : > { %1452 = vmatprep.mubr.f32.mxu1 %v1302_v27 }
 0x376   : > { %1553 = vmatmul.mubr.f32.gmra.mrb[20].mxu0 %v1299_v32 }
 0x377   : > { %1453 = vmatmul.mubr.f32.gmra.mrb[14].mxu1 %v1301_v34  ;;  %1557 = vmatprep.mubr.f32.mxu0 %v1304_v46 }
 0x37a   : > { %1558 = vmatmul.mubr.f32.gmra.mrb[22].mxu0 %v1303_v48 }
 0x42e   : > { %v6227_v35 = vpop.f32.mrb[0].mxu1 }
 0x42f   : > { %v6228_v49 = vpop.f32.mrb[1].mxu1 }
 0x430   : > { %v6229_v37 = vadd.f32 %v6228_v49, %v6227_v35  ;;  %v1336_v35 = vpop.permute.xlu0 %1335 }
 0x431   : > { %v6283_v59 = vpop.f32.mrb[8].mxu0 }
 0x432   : > { %v6230_v8 = vpop.f32.mrb[2].mxu1  ;;  %v6284_v39 = vpop.f32.mrb[9].mxu0  ;;  %v1420_v43 = vadd.f32 %v6229_v37, %v1316_v36 }
 0x433   : > { %v6231_v44 = vpop.f32.mrb[3].mxu1  ;;  %v6285_v52 = vadd.f32 %v6284_v39, %v6283_v59 }
 0x434   : > { %v6232_v54 = vadd.f32 %v6231_v44, %v6230_v8 }
 0x435   : > { %v1525_v45 = vadd.f32 %v6285_v52, %v1420_v43  ;;  %v6286_v61 = vpop.f32.mrb[10].mxu0 }
 0x436   : > { %v6233_v63 = vpop.f32.mrb[4].mxu1  ;;  %v6287_v56 = vpop.f32.mrb[11].mxu0  ;;  %v1425_v0 = vadd.f32 %v6232_v54, %v1321_v57 }
 0x437   : > { %v6234_v2 = vpop.f32.mrb[5].mxu1  ;;  %v6288_v3 = vadd.f32 %v6287_v56, %v6286_v61  ;;  %v1571_v4 = vmul.f32 0.01, %v1525_v45  ;;  %vm1563_vm5 = vcmp.ge.f32.partialorder %v1525_v45, 0.0 }
 0x438   : > { %v6235_v5 = vadd.f32 %v6234_v2, %v6233_v63 }
 0x439   : > { %v1530_v9 = vadd.f32 %v6288_v3, %v1425_v0  ;;  %v6289_v11 = vpop.f32.mrb[12].mxu0  ;;  %v11169_v55 = vsel %vm1563_vm5, %v1525_v45, %v1571_v4  ;;  %v1341_v45 = vpop.permute.xlu1 %1340 }
 0x43a   : > { %v6236_v18 = vpop.f32.mrb[6].mxu1  ;;  %v6290_v19 = vpop.f32.mrb[13].mxu0  ;;  %v1430_v26 = vadd.f32 %v6235_v5, %v1326_v28 }
 0x43b   : > { %vm1564_vm11 = vcmp.ge.f32.partialorder %v1530_v9, 0.0  ;;  %v1572_v7 = vmul.f32 0.01, %v1530_v9  ;;  %v6237_v20 = vpop.f32.mrb[7].mxu1  ;;  %v6291_v42 = vadd.f32 %v6290_v19, %v6289_v11 }
 0x43c   : > { %v6238_v23 = vadd.f32 %v6237_v20, %v6236_v18  ;;  %v1346_v18 = vpop.permute.xlu0 %1345 }
 0x43d   : > { %v11171_v30 = vsel %vm1564_vm11, %v1530_v9, %v1572_v7  ;;  %v1535_v12 = vadd.f32 %v6291_v42, %v1430_v26  ;;  %v6292_v60 = vpop.f32.mrb[14].mxu0  ;;  %vm15256_vm11 = vcmp.lt.s32.totalorder %v10725_v10, 1 }
 0x43e   : > { %v6239_v50 = vpop.f32.mrb[8].mxu1  ;;  %v6293_v17 = vpop.f32.mrb[15].mxu0  ;;  %v8456_v27 = vpack.i.bf16 %v11171_v30, %v11169_v55  ;;  %v1435_v32 = vadd.f32 %v6238_v23, %v1331_v21  ;;  %v7377_v59 = vpack.c.bf16 %v11171_v30, %v11169_v55 }
 0x43f   : > { %v6240_v34 = vpop.f32.mrb[9].mxu1  ;;  %v6294_v46 = vadd.f32 %v6293_v17, %v6292_v60  ;;  %v1573_v49 = vmul.f32 0.01, %v1535_v12  ;;  %vm1565_vm4 = vcmp.ge.f32.partialorder %v1535_v12, 0.0 }
 0x440   : > { %v6241_v48 = vadd.f32 %v6240_v34, %v6239_v50  ;;  %8457 = vrot.lane.b32.xlu1 %v8456_v27, %s15252_s22  ;;  %8452 = vrot.lane.b32.xlu0 %v8456_v27, %s15235_s4 }
 0x441   : > { %v1540_v37 = vadd.f32 %v6294_v46, %v1435_v32  ;;  %v6295_v36 = vpop.f32.mrb[16].mxu0  ;;  %v11181_v61 = vsel %vm1565_vm4, %v1535_v12, %v1573_v49  ;;  %vm15257_vm4 = vmmov %vm15256_vm11 }
 0x442   : > { %v6242_v8 = vpop.f32.mrb[10].mxu1  ;;  %v6296_v39 = vpop.f32.mrb[17].mxu0  ;;  %v1440_v43 = vadd.f32 %v6241_v48, %v1336_v35 }
 0x443   : > { %vm1566_vm7 = vcmp.ge.f32.partialorder %v1540_v37, 0.0  ;;  %v1574_v44 = vmul.f32 0.01, %v1540_v37  ;;  %v6243_v52 = vpop.f32.mrb[11].mxu1  ;;  %v6297_v54 = vadd.f32 %v6296_v39, %v6295_v36  ;;  %v1351_v35 = vpop.permute.xlu1 %1350 }
 0x444   : > { %v6244_v57 = vadd.f32 %v6243_v52, %v6242_v8  ;;  %8472 = vrot.lane.b32.xlu1 %v8456_v27, %s15253_s11  ;;  %8462 = vrot.lane.b32.xlu0 %v8456_v27, %s15234_s27 }
 0x445   : > { %v11183_v63 = vsel %vm1566_vm7, %v1540_v37, %v1574_v44  ;;  %v1545_v56 = vadd.f32 %v6297_v54, %v1440_v43  ;;  %v6298_v0 = vpop.f32.mrb[18].mxu0  ;;  %vm15258_vm7 = vcmp.lt.s32.totalorder %v10725_v10, 125 }
 0x446   : > { %v6245_v2 = vpop.f32.mrb[12].mxu1  ;;  %v6299_v3 = vpop.f32.mrb[19].mxu0  ;;  %v8486_v5 = vpack.i.bf16 %v11183_v63, %v11181_v61  ;;  %v1445_v28 = vadd.f32 %v6244_v57, %v1341_v45  ;;  %v7381_v20 = vpack.c.bf16 %v11183_v63, %v11181_v61 }
 0x447   : > { %v6246_v4 = vpop.f32.mrb[13].mxu1  ;;  %v6300_v9 = vadd.f32 %v6299_v3, %v6298_v0  ;;  %v1575_v19 = vmul.f32 0.01, %v1545_v56  ;;  %vm1567_vm8 = vcmp.ge.f32.partialorder %v1545_v56, 0.0  ;;  %v1758_v0 = vld [vmem:[%s15255_s18 + $0x18] sm:$0xff]  ;;  %v1819_v3 = vld [vmem:[%s15027_s7] sm:$0xff] }
 0x448   : > { %v6247_v11 = vadd.f32 %v6246_v4, %v6245_v2  ;;  %8482 = vrot.lane.b32.xlu1 %v8456_v27, %s15254_s20  ;;  %8467 = vrot.lane.b32.xlu0 %v8456_v27, %s15238_s5  ;;  %v1820_v2 = vld [vmem:[%s15027_s7 + $0x8] sm:$0xff] }
 0x449   : > { %v1550_v26 = vadd.f32 %v6300_v9, %v1445_v28  ;;  %v6301_v7 = vpop.f32.mrb[20].mxu0  ;;  %v11193_v32 = vsel %vm1567_vm8, %v1545_v56, %v1575_v19  ;;  %v1756_v56 = vld [vmem:[%s15255_s18 + $0x8] sm:$0xff]  ;;  %2124 = vmatprep.mubr.f32.mxu0 %v1758_v0  ;;  %v1821_v28 = vld [vmem:[%s15027_s7 + $0x10] sm:$0xff]  ;;  %v1823_v9 = vld [vmem:[%s15027_s7 + $0x20] sm:$0xff] }
 0x44a   : > { %v6248_v42 = vpop.f32.mrb[14].mxu1  ;;  %v6302_v23 = vpop.f32.mrb[21].mxu0  ;;  %v1450_v21 = vadd.f32 %v6247_v11, %v1346_v18  ;;  %1979 = vmatprep.mubr.f32.mxu1 %v1756_v56  ;;  %v1824_v4 = vld [vmem:[%s15027_s7 + $0x28] sm:$0xff]  ;;  %v1826_v11 = vld [vmem:[%s15027_s7 + $0x38] sm:$0xff]  ;;  %v1825_v18 = vld [vmem:[%s15027_s7 + $0x30] sm:$0xff] }
 0x44b   : > { %vm1568_vm12 = vcmp.ge.f32.partialorder %v1550_v26, 0.0  ;;  %v1576_v12 = vmul.f32 0.01, %v1550_v26  ;;  %v6249_v60 = vpop.f32.mrb[15].mxu1  ;;  %v6303_v50 = vadd.f32 %v6302_v23, %v6301_v7  ;;  %v1828_v19 = vld [vmem:[%s15027_s7 + $0x48] sm:$0xff]  ;;  %v1830_v7 = vld [vmem:[%s15027_s7 + $0x58] sm:$0xff]  ;;  %vm15259_vm8 = vmmov %vm15258_vm7 }
 0x44c   : > { %v6250_v17 = vadd.f32 %v6249_v60, %v6248_v42  ;;  %8487 = vrot.lane.b32.xlu1 %v8486_v5, %s15235_s4  ;;  %8477 = vrot.lane.b32.xlu0 %v8456_v27, %s15239_s30  ;;  %v1829_v42 = vld [vmem:[%s15027_s7 + $0x50] sm:$0xff]  ;;  %v1832_v23 = vld [vmem:[%s15027_s7 + $0x68] sm:$0xff] }
 0x44d   : > { %v11195_v34 = vsel %vm1568_vm12, %v1550_v26, %v1576_v12  ;;  %v1555_v46 = vadd.f32 %v6303_v50, %v1450_v21  ;;  %v6304_v48 = vpop.f32.mrb[22].mxu0  ;;  %v1827_v26 = vld [vmem:[%s15027_s7 + $0x40] sm:$0xff]  ;;  %v1834_v12 = vld [vmem:[%s15027_s7 + $0x78] sm:$0xff]  ;;  %v1833_v60 = vld [vmem:[%s15027_s7 + $0x70] sm:$0xff] }
 0x44e   : > { %v6305_v49 = vpop.f32.mrb[23].mxu0  ;;  %v8516_v37 = vpack.i.bf16 %v11195_v34, %v11193_v32  ;;  %v1455_v36 = vadd.f32 %v6250_v17, %v1351_v35  ;;  %v7385_v27 = vpack.c.bf16 %v11195_v34, %v11193_v32  ;;  %v1831_v21 = vld [vmem:[%s15027_s7 + $0x60] sm:$0xff]  ;;  %vm15260_vm12 = vmmov %vm15257_vm4 }
 0x44f   : > { %v6306_v8 = vadd.f32 %v6305_v49, %v6304_v48  ;;  %v1577_v39 = vmul.f32 0.01, %v1555_v46  ;;  %vm1569_vm13 = vcmp.ge.f32.partialorder %v1555_v46, 0.0 }
 0x450   : > { %8497 = vrot.lane.b32.xlu1 %v8486_v5, %s15234_s27  ;;  %8492 = vrot.lane.b32.xlu0 %v8486_v5, %s15252_s22 }
 0x451   : > { %v1560_v43 = vadd.f32 %v6306_v8, %v1455_v36  ;;  %v11205_v52 = vsel %vm1569_vm13, %v1555_v46, %v1577_v39  ;;  %vm15261_vm13 = vmmov %vm15257_vm4 }
 0x453   : > { %vm1570_vm5 = vcmp.ge.f32.partialorder %v1560_v43, 0.0  ;;  %v1578_v44 = vmul.f32 0.01, %v1560_v43 }
 0x454   : > { %8507 = vrot.lane.b32.xlu1 %v8486_v5, %s15253_s11  ;;  %8502 = vrot.lane.b32.xlu0 %v8486_v5, %s15238_s5 }
 0x455   : > { %v11207_v54 = vsel %vm1570_vm5, %v1560_v43, %v1578_v44  ;;  %vm15262_vm5 = vmmov %vm15258_vm7 }
 0x456   : > { %v8526_v57 = vpack.i.bf16 %v11207_v54, %v11205_v52  ;;  %v7389_v45 = vpack.c.bf16 %v11207_v54, %v11205_v52 }
 0x458   : > { %8517 = vrot.lane.b32.xlu1 %v8516_v37, %s15252_s22  ;;  %8512 = vrot.lane.b32.xlu0 %v8516_v37, %s15235_s4 }
 0x45c   : > { %8527 = vrot.lane.b32.xlu1 %v8526_v57, %s15235_s4  ;;  %8522 = vrot.lane.b32.xlu0 %v8516_v37, %s15234_s27 }
 0x460   : > { %8542 = vrot.lane.b32.xlu1 %v8526_v57, %s15234_s27  ;;  %8532 = vrot.lane.b32.xlu0 %v8526_v57, %s15252_s22 }
 0x464   : > { %8547 = vrot.lane.b32.xlu1 %v8486_v5, %s15254_s20  ;;  %8537 = vrot.lane.b32.xlu0 %v8486_v5, %s15239_s30  ;;  %v1822_v5 = vld [vmem:[%s15027_s7 + $0x18] sm:$0xff] }
 0x468   : > { %8557 = vrot.lane.b32.xlu1 %v8516_v37, %s15253_s11  ;;  %8552 = vrot.lane.b32.xlu0 %v8516_v37, %s15238_s5 }
 0x46c   : > { %8567 = vrot.lane.b32.xlu1 %v8516_v37, %s15254_s20  ;;  %8562 = vrot.lane.b32.xlu0 %v8516_v37, %s15239_s30 }
 0x470   : > { %8577 = vrot.lane.b32.xlu1 %v8526_v57, %s15253_s11  ;;  %8572 = vrot.lane.b32.xlu0 %v8526_v57, %s15238_s5 }
 0x474   : > { %8587 = vrot.lane.b32.xlu1 %v8526_v57, %s15254_s20  ;;  %8582 = vrot.lane.b32.xlu0 %v8526_v57, %s15239_s30 }
 0x478   : > { %1842 = vperm.xlu1 %8299, %v1820_v2   ;;  %1837 = vperm.xlu0 %8300, %v1819_v3  }
 0x47c   : > { %1852 = vperm.xlu1 %8299, %v1822_v5   ;;  %1847 = vperm.xlu0 %8300, %v1821_v28  }
 0x480   : > { %1862 = vperm.xlu1 %8299, %v1824_v4   ;;  %1857 = vperm.xlu0 %8300, %v1823_v9  }
 0x484   : > { %1872 = vperm.xlu1 %8299, %v1826_v11   ;;  %1867 = vperm.xlu0 %8300, %v1825_v18  }
 0x488   : > { %1882 = vperm.xlu1 %8299, %v1828_v19   ;;  %1877 = vperm.xlu0 %8300, %v1827_v26  }
 0x48c   : > { %1892 = vperm.xlu1 %8299, %v1830_v7   ;;  %1887 = vperm.xlu0 %8300, %v1829_v42  }
 0x490   : > { %1902 = vperm.xlu1 %8299, %v1832_v23   ;;  %1897 = vperm.xlu0 %8300, %v1831_v21  }
 0x494   : > { %1912 = vperm.xlu1 %8299, %v1834_v12   ;;  %1907 = vperm.xlu0 %8300, %v1833_v60  }
 0x4b2   : > { %v8458_v50 = vpop.permute.xlu1 %8457  ;;  %v8453_v17 = vpop.permute.xlu0 %8452 }
 0x4b3   : > { %v8460_v46 = vunpack.i.h.bf16 %v8458_v50  ;;  %v8459_v48 = vunpack.i.l.bf16 %v8458_v50  ;;  %v8455_v35 = vunpack.i.h.bf16 %v8453_v17  ;;  %v8454_v49 = vunpack.i.l.bf16 %v8453_v17 }
 0x4b5   : > { %v1604_v37 = vsel %vm854_vm14, %v10849_v14, %v8460_v46  ;;  %v1603_v36 = vsel %vm854_vm14, %v10849_v14, %v8459_v48  ;;  %v1651_v8 = vsel %vm866_vm10, %v10862_v41, %v8454_v49  ;;  %v1652_v39 = vsel %vm866_vm10, %v10862_v41, %v8455_v35 }
 0x4b6   : > { %v8473_v43 = vpop.permute.xlu1 %8472  ;;  %v8463_v44 = vpop.permute.xlu0 %8462  ;;  %v7343_v57 = vpack.c.bf16 %v1652_v39, %v1651_v8  ;;  %v7345_v56 = vpack.c.bf16 %v1604_v37, %v1603_v36 }
 0x4b7   : > { %v8465_v0 = vunpack.i.h.bf16 %v8463_v44  ;;  %v8464_v2 = vunpack.i.l.bf16 %v8463_v44  ;;  %v8475_v8 = vunpack.i.h.bf16 %v8473_v43 }
 0x4b8   : > { %7344 = vmatprep.subr.bf16.mxu1 %v7343_v57  ;;  %v8474_v57 = vunpack.i.l.bf16 %v8473_v43 }
 0x4b9   : > { %7346 = vmatpush3.bf16.msra.mxu1 %v7345_v56  ;;  %v1723_v3 = vsel %vm884_vm3, %v8464_v2, %v10744_v24  ;;  %v1724_v5 = vsel %vm884_vm3, %v8465_v0, %v10744_v24 }
 0x4ba   : > { %v8483_v28 = vpop.permute.xlu1 %8482  ;;  %v8468_v4 = vpop.permute.xlu0 %8467  ;;  %v7375_v9 = vpack.c.bf16 %v1724_v5, %v1723_v3 }
 0x4bb   : > { %v8470_v39 = vunpack.i.h.bf16 %v8468_v4  ;;  %v8469_v44 = vunpack.i.l.bf16 %v8468_v4  ;;  %v8485_v56 = vunpack.i.h.bf16 %v8483_v28  ;;  %v8484_v4 = vunpack.i.l.bf16 %v8483_v28 }
 0x4bc   : > { %7376 = vmatprep.subr.bf16.mxu0 %v7375_v9 }
 0x4bd   : > { %7378 = vmatpush3.bf16.msra.mxu0 %v7377_v59  ;;  %v11344_v61 = vsel %vm15257_vm4, %v10866_v47, %v8470_v39 }
 0x4be   : > { %v8488_v11 = vpop.permute.xlu1 %8487  ;;  %v11304_v18 = vpop.permute.xlu0 %8477 }
 0x4bf   : > { %v8490_v19 = vunpack.i.h.bf16 %v8488_v11  ;;  %v8489_v26 = vunpack.i.l.bf16 %v8488_v11 }
 0x4c1   : > { %v1653_v7 = vsel %vm866_vm10, %v10862_v41, %v8489_v26  ;;  %v1654_v42 = vsel %vm866_vm10, %v10862_v41, %v8490_v19  ;;  %v11334_v19 = vsel %vm860_vm6, %v10856_v25, %v8475_v8  ;;  %v11339_v26 = vsel %vm15256_vm11, %v10866_v47, %v8469_v44  ;;  %vm15263_vm11 = vmmov %vm15262_vm5 }
 0x4c2   : > { %v8498_v23 = vpop.permute.xlu1 %8497  ;;  %v8493_v21 = vpop.permute.xlu0 %8492  ;;  %v7347_v12 = vpack.c.bf16 %v1654_v42, %v1653_v7  ;;  %v11361_v7 = vsel %vm860_vm6, %v10856_v25, %v8474_v57  ;;  %v11366_v42 = vsel %vm878_vm0, %v8485_v56, %v10729_v13 }
 0x4c3   : > { %v8500_v60 = vunpack.i.h.bf16 %v8498_v23  ;;  %v8499_v50 = vunpack.i.l.bf16 %v8498_v23  ;;  %v8495_v55 = vunpack.i.h.bf16 %v8493_v21  ;;  %v8494_v30 = vunpack.i.l.bf16 %v8493_v21 }
 0x4c4   : > { %7348 = vmatprep.subr.bf16.mxu1 %v7347_v12 }
 0x4c5   : > { %v1606_v59 = vsel %vm854_vm14, %v10849_v14, %v8495_v55  ;;  %v1605_v17 = vsel %vm854_vm14, %v10849_v14, %v8494_v30  ;;  %v1725_v46 = vsel %vm884_vm3, %v8499_v50, %v10744_v24  ;;  %v1726_v48 = vsel %vm884_vm3, %v8500_v60, %v10744_v24 }
 0x4c6   : > { %v11324_v35 = vpop.permute.xlu1 %8507  ;;  %v11326_v49 = vpop.permute.xlu0 %8502  ;;  %v7349_v37 = vpack.c.bf16 %v1606_v59, %v1605_v17  ;;  %v7379_v36 = vpack.c.bf16 %v1726_v48, %v1725_v46  ;;  %v11371_v17 = vsel %vm878_vm0, %v8484_v4, %v10729_v13  ;;  %v8480_v46 = vunpack.i.h.bf16 %v11304_v18 }
 0x4c7   : > { %v8479_v48 = vunpack.i.l.bf16 %v11304_v18  ;;  %v8505_v44 = vunpack.i.h.bf16 %v11326_v49  ;;  %v8504_v57 = vunpack.i.l.bf16 %v11326_v49 }
 0x4c8   : > { %7350 = vmatpush3.bf16.msra.mxu1 %v7349_v37  ;;  %7380 = vmatprep.subr.bf16.mxu0 %v7379_v36  ;;  %v7359_v37 = vpack.c.bf16 %v11344_v61, %v11339_v26  ;;  %v8510_v26 = vunpack.i.h.bf16 %v11324_v35  ;;  %v8509_v61 = vunpack.i.l.bf16 %v11324_v35  ;;  %v1748_v49 = vsel %vm15259_vm8, %v8480_v46, %v10754_v31  ;;  %vm15265_vm8 = vmmov %vm15262_vm5 }
 0x4c9   : > { %7382 = vmatpush3.bf16.msra.mxu0 %v7381_v20  ;;  %v1678_v32 = vsel %vm15261_vm13, %v10866_v47, %v8505_v44  ;;  %v7361_v46 = vpack.c.bf16 %v11334_v19, %v11361_v7  ;;  %vm15267_vm13 = vmmov %vm15257_vm4 }
 0x4ca   : > { %v8518_v0 = vpop.permute.xlu1 %8517  ;;  %v8513_v2 = vpop.permute.xlu0 %8512 }
 0x4cb   : > { %v8520_v3 = vunpack.i.h.bf16 %v8518_v0  ;;  %v8519_v5 = vunpack.i.l.bf16 %v8518_v0  ;;  %v8515_v9 = vunpack.i.h.bf16 %v8513_v2  ;;  %v8514_v11 = vunpack.i.l.bf16 %v8513_v2 }
 0x4cd   : > { %v1608_v63 = vsel %vm854_vm14, %v10849_v14, %v8520_v3  ;;  %v1607_v20 = vsel %vm854_vm14, %v10849_v14, %v8519_v5  ;;  %v1655_v43 = vsel %vm866_vm10, %v10862_v41, %v8514_v11  ;;  %v1656_v28 = vsel %vm866_vm10, %v10862_v41, %v8515_v9 }
 0x4ce   : > { %v8528_v23 = vpop.permute.xlu1 %8527  ;;  %v8523_v21 = vpop.permute.xlu0 %8522  ;;  %v7351_v12 = vpack.c.bf16 %v1656_v28, %v1655_v43  ;;  %v7353_v60 = vpack.c.bf16 %v1608_v63, %v1607_v20  ;;  %v1747_v63 = vsel %vm15258_vm7, %v8479_v48, %v10754_v31  ;;  %v7393_v48 = vpack.c.bf16 %v11366_v42, %v11371_v17  ;;  %vm15264_vm7 = vmmov %vm15257_vm4 }
 0x4cf   : > { %v8530_v50 = vunpack.i.h.bf16 %v8528_v23  ;;  %v8529_v55 = vunpack.i.l.bf16 %v8528_v23  ;;  %v8525_v30 = vunpack.i.h.bf16 %v8523_v21  ;;  %v8524_v59 = vunpack.i.l.bf16 %v8523_v21 }
 0x4d0   : > { %7352 = vmatprep.subr.bf16.mxu1 %v7351_v12 }
 0x4d1   : > { %7354 = vmatpush3.bf16.msra.mxu1 %v7353_v60  ;;  %v1657_v36 = vsel %vm866_vm10, %v10862_v41, %v8529_v55  ;;  %v1658_v8 = vsel %vm866_vm10, %v10862_v41, %v8530_v50  ;;  %v1727_v39 = vsel %vm884_vm3, %v8524_v59, %v10744_v24  ;;  %v1728_v18 = vsel %vm884_vm3, %v8525_v30, %v10744_v24 }
 0x4d2   : > { %v8543_v56 = vpop.permute.xlu1 %8542  ;;  %v8533_v0 = vpop.permute.xlu0 %8532  ;;  %v7355_v2 = vpack.c.bf16 %v1658_v8, %v1657_v36  ;;  %v7383_v3 = vpack.c.bf16 %v1728_v18, %v1727_v39  ;;  %v1677_v50 = vsel %vm15260_vm12, %v10866_v47, %v8504_v57  ;;  %v7391_v59 = vpack.c.bf16 %v1748_v49, %v1747_v63  ;;  %vm15266_vm12 = vmmov %vm15262_vm5 }
 0x4d3   : > { %v8545_v5 = vunpack.i.h.bf16 %v8543_v56  ;;  %v8544_v9 = vunpack.i.l.bf16 %v8543_v56  ;;  %v8535_v11 = vunpack.i.h.bf16 %v8533_v0  ;;  %v8534_v4 = vunpack.i.l.bf16 %v8533_v0 }
 0x4d4   : > { %7356 = vmatprep.subr.bf16.mxu1 %v7355_v2  ;;  %7384 = vmatprep.subr.bf16.mxu0 %v7383_v3  ;;  %v1630_v36 = vsel %vm860_vm6, %v10856_v25, %v8510_v26  ;;  %v1629_v8 = vsel %vm860_vm6, %v10856_v25, %v8509_v61 }
 0x4d5   : > { %v1610_v20 = vsel %vm854_vm14, %v10849_v14, %v8535_v11  ;;  %v1609_v43 = vsel %vm854_vm14, %v10849_v14, %v8534_v4  ;;  %7386 = vmatpush3.bf16.msra.mxu0 %v7385_v27  ;;  %v1729_v35 = vsel %vm884_vm3, %v8544_v9, %v10744_v24  ;;  %v1730_v28 = vsel %vm884_vm3, %v8545_v5, %v10744_v24 }
 0x4d6   : > { %v8548_v23 = vpop.permute.xlu1 %8547  ;;  %v8538_v21 = vpop.permute.xlu0 %8537  ;;  %v7357_v12 = vpack.c.bf16 %v1610_v20, %v1609_v43  ;;  %v7387_v60 = vpack.c.bf16 %v1730_v28, %v1729_v35  ;;  %v7365_v56 = vpack.c.bf16 %v1630_v36, %v1629_v8 }
 0x4d7   : > { %v8550_v34 = vunpack.i.h.bf16 %v8548_v23  ;;  %v8549_v27 = vunpack.i.l.bf16 %v8548_v23  ;;  %v8540_v55 = vunpack.i.h.bf16 %v8538_v21  ;;  %v8539_v30 = vunpack.i.l.bf16 %v8538_v21 }
 0x4d8   : > { %7358 = vmatpush3.bf16.msra.mxu1 %v7357_v12  ;;  %7388 = vmatprep.subr.bf16.mxu0 %v7387_v60 }
 0x4d9   : > { %7360 = vmatprep.subr.bf16.mxu1 %v7359_v37  ;;  %7390 = vmatpush3.bf16.msra.mxu0 %v7389_v45  ;;  %v1749_v19 = vsel %vm15262_vm5, %v8539_v30, %v10754_v31  ;;  %v1702_v7 = vsel %vm878_vm0, %v8550_v34, %v10729_v13  ;;  %v1701_v42 = vsel %vm878_vm0, %v8549_v27, %v10729_v13  ;;  %vm15268_vm5 = vmmov %vm15257_vm4 }
 0x4da   : > { %v8558_v17 = vpop.permute.xlu1 %8557  ;;  %v8553_v39 = vpop.permute.xlu0 %8552  ;;  %7392 = vmatprep.subr.bf16.mxu0 %v7391_v59  ;;  %v7363_v37 = vpack.c.bf16 %v1678_v32, %v1677_v50  ;;  %v1750_v52 = vsel %vm15263_vm11, %v8540_v55, %v10754_v31  ;;  %v7397_v4 = vpack.c.bf16 %v1702_v7, %v1701_v42  ;;  %vm15269_vm11 = vmmov %vm15265_vm8 }
 0x4db   : > { %v8560_v54 = vunpack.i.h.bf16 %v8558_v17  ;;  %v8559_v45 = vunpack.i.l.bf16 %v8558_v17  ;;  %v8555_v18 = vunpack.i.h.bf16 %v8553_v39  ;;  %v8554_v44 = vunpack.i.l.bf16 %v8553_v39 }
 0x4dc   : > { %7362 = vmatpush3.bf16.msra.mxu1 %v7361_v46  ;;  %v7395_v57 = vpack.c.bf16 %v1750_v52, %v1749_v19 }
 0x4dd   : > { %7364 = vmatprep.subr.bf16.mxu1 %v7363_v37  ;;  %7394 = vmatpush3.bf16.msra.mxu0 %v7393_v48  ;;  %v1679_v0 = vsel %vm15257_vm4, %v10866_v47, %v8554_v44  ;;  %v1632_v2 = vsel %vm860_vm6, %v10856_v25, %v8560_v54  ;;  %v1631_v3 = vsel %vm860_vm6, %v10856_v25, %v8559_v45  ;;  %vm15270_vm4 = vmmov %vm15265_vm8 }
 0x4de   : > { %v8568_v5 = vpop.permute.xlu1 %8567  ;;  %v8563_v9 = vpop.permute.xlu0 %8562  ;;  %7396 = vmatprep.subr.bf16.mxu0 %v7395_v57  ;;  %v1680_v11 = vsel %vm15264_vm7, %v10866_v47, %v8555_v18  ;;  %v7369_v60 = vpack.c.bf16 %v1632_v2, %v1631_v3  ;;  %v1755_v18 = vld [vmem:[%s15255_s18] sm:$0xff]  ;;  %v1760_v2 = vld [vmem:[%s15255_s18 + $0x28] sm:$0xff] }
 0x4df   : > { %v8570_v26 = vunpack.i.h.bf16 %v8568_v5  ;;  %v8569_v61 = vunpack.i.l.bf16 %v8568_v5  ;;  %v8565_v63 = vunpack.i.h.bf16 %v8563_v9  ;;  %v8564_v49 = vunpack.i.l.bf16 %v8563_v9  ;;  %v1759_v3 = vld [vmem:[%s15255_s18 + $0x20] sm:$0xff]  ;;  %v1757_v5 = vld [vmem:[%s15255_s18 + $0x10] sm:$0xff]  ;;  %v1764_v9 = vld [vmem:[%s15255_s18 + $0x48] sm:$0xff] }
 0x4e0   : > { %7366 = vmatpush3.bf16.msra.mxu1 %v7365_v56  ;;  %v7367_v20 = vpack.c.bf16 %v1680_v11, %v1679_v0  ;;  %v1762_v11 = vld [vmem:[%s15255_s18 + $0x38] sm:$0xff] }
 0x4e1   : > { %v1704_v43 = vsel %vm878_vm0, %v8570_v26, %v10729_v13  ;;  %v1703_v35 = vsel %vm878_vm0, %v8569_v61, %v10729_v13  ;;  %7398 = vmatpush3.bf16.msra.mxu0 %v7397_v4  ;;  %v1751_v28 = vsel %vm15265_vm8, %v8564_v49, %v10754_v31  ;;  %v1752_v23 = vsel %vm15266_vm12, %v8565_v63, %v10754_v31  ;;  %v1763_v4 = vld [vmem:[%s15255_s18 + $0x40] sm:$0xff]  ;;  %v1761_v26 = vld [vmem:[%s15255_s18 + $0x30] sm:$0xff]  ;;  %v1768_v61 = vld [vmem:[%s15255_s18 + $0x68] sm:$0xff] }
 0x4e2   : > { %7368 = vmatprep.subr.bf16.mxu1 %v7367_v20  ;;  %v8578_v21 = vpop.permute.xlu1 %8577  ;;  %v8573_v12 = vpop.permute.xlu0 %8572  ;;  %v7399_v50 = vpack.c.bf16 %v1752_v23, %v1751_v28  ;;  %v7401_v32 = vpack.c.bf16 %v1704_v43, %v1703_v35  ;;  %v1766_v63 = vld [vmem:[%s15255_s18 + $0x58] sm:$0xff]  ;;  %v1767_v49 = vld [vmem:[%s15255_s18 + $0x60] sm:$0xff]  ;;  %v1765_v20 = vld [vmem:[%s15255_s18 + $0x50] sm:$0xff] }
 0x4e3   : > { %v8580_v34 = vunpack.i.h.bf16 %v8578_v21  ;;  %v8579_v27 = vunpack.i.l.bf16 %v8578_v21  ;;  %v8575_v55 = vunpack.i.h.bf16 %v8573_v12  ;;  %v8574_v30 = vunpack.i.l.bf16 %v8573_v12  ;;  %v1772_v43 = vld [vmem:[%s15255_s18 + $0x88] sm:$0xff]  ;;  %v1770_v35 = vld [vmem:[%s15255_s18 + $0x78] sm:$0xff]  ;;  %v1771_v28 = vld [vmem:[%s15255_s18 + $0x80] sm:$0xff] }
 0x4e4   : > { %7370 = vmatpush3.bf16.msra.mxu1 %v7369_v60  ;;  %7400 = vmatprep.subr.bf16.mxu0 %v7399_v50  ;;  %v1769_v23 = vld [vmem:[%s15255_s18 + $0x70] sm:$0xff]  ;;  %v1776_v21 = vld [vmem:[%s15255_s18 + $0xa8] sm:$0xff]  ;;  %v1774_v12 = vld [vmem:[%s15255_s18 + $0x98] sm:$0xff] }
 0x4e5   : > { %v1634_v59 = vsel %vm860_vm6, %v10856_v25, %v8580_v34  ;;  %v1633_v46 = vsel %vm860_vm6, %v10856_v25, %v8579_v27  ;;  %7402 = vmatpush3.bf16.msra.mxu0 %v7401_v32  ;;  %v1681_v48 = vsel %vm15267_vm13, %v10866_v47, %v8574_v30  ;;  %v1682_v36 = vsel %vm15268_vm5, %v10866_v47, %v8575_v55  ;;  %v1775_v60 = vld [vmem:[%s15255_s18 + $0xa0] sm:$0xff]  ;;  %v1773_v50 = vld [vmem:[%s15255_s18 + $0x90] sm:$0xff]  ;;  %v1780_v32 = vld [vmem:[%s15255_s18 + $0xc8] sm:$0xff] }
 0x4e6   : > { %v8588_v8 = vpop.permute.xlu1 %8587  ;;  %v8583_v19 = vpop.permute.xlu0 %8582  ;;  %v7371_v7 = vpack.c.bf16 %v1682_v36, %v1681_v48  ;;  %v7373_v42 = vpack.c.bf16 %v1634_v59, %v1633_v46  ;;  %v1778_v34 = vld [vmem:[%s15255_s18 + $0xb8] sm:$0xff]  ;;  %v1779_v27 = vld [vmem:[%s15255_s18 + $0xc0] sm:$0xff]  ;;  %v1777_v55 = vld [vmem:[%s15255_s18 + $0xb0] sm:$0xff] }
 0x4e7   : > { %v8590_v17 = vunpack.i.h.bf16 %v8588_v8  ;;  %v8589_v39 = vunpack.i.l.bf16 %v8588_v8  ;;  %v8585_v37 = vunpack.i.h.bf16 %v8583_v19  ;;  %v8584_v52 = vunpack.i.l.bf16 %v8583_v19  ;;  %v1784_v30 = vld [vmem:[%s15255_s18 + $0xe8] sm:$0xff]  ;;  %v1782_v59 = vld [vmem:[%s15255_s18 + $0xd8] sm:$0xff]  ;;  %v1783_v46 = vld [vmem:[%s15255_s18 + $0xe0] sm:$0xff] }
 0x4e8   : > { %7372 = vmatprep.subr.bf16.mxu1 %v7371_v7  ;;  %v1781_v48 = vld [vmem:[%s15255_s18 + $0xd0] sm:$0xff]  ;;  %v1788_v36 = vld [vmem:[%s15255_s18 + $0x108] sm:$0xff]  ;;  %v1786_v8 = vld [vmem:[%s15255_s18 + $0xf8] sm:$0xff] }
 0x4e9   : > { %v1706_v54 = vsel %vm878_vm0, %v8590_v17, %v10729_v13  ;;  %v1705_v45 = vsel %vm878_vm0, %v8589_v39, %v10729_v13  ;;  %7374 = vmatpush3.bf16.msra.mxu1 %v7373_v42  ;;  %v1753_v44 = vsel %vm15269_vm11, %v8584_v52, %v10754_v31  ;;  %v1754_v57 = vsel %vm15270_vm4, %v8585_v37, %v10754_v31  ;;  %v1787_v19 = vld [vmem:[%s15255_s18 + $0x100] sm:$0xff]  ;;  %v1785_v7 = vld [vmem:[%s15255_s18 + $0xf0] sm:$0xff]  ;;  %v1792_v42 = vld [vmem:[%s15255_s18 + $0x128] sm:$0xff] }
 0x4ea   : > { %v7403_v56 = vpack.c.bf16 %v1754_v57, %v1753_v44  ;;  %v7405_v0 = vpack.c.bf16 %v1706_v54, %v1705_v45  ;;  %v1790_v17 = vld [vmem:[%s15255_s18 + $0x118] sm:$0xff]  ;;  %v1791_v39 = vld [vmem:[%s15255_s18 + $0x120] sm:$0xff]  ;;  %v1789_v37 = vld [vmem:[%s15255_s18 + $0x110] sm:$0xff] }
 0x4eb   : > { %v1796_v52 = vld [vmem:[%s15255_s18 + $0x148] sm:$0xff]  ;;  %v1794_v54 = vld [vmem:[%s15255_s18 + $0x138] sm:$0xff]  ;;  %v1795_v45 = vld [vmem:[%s15255_s18 + $0x140] sm:$0xff] }
 0x4ec   : > { %1980 = vmatmul.mubr.f32.vlgmr.msra.gmra.mrb[16].mxu1 %v1755_v18  ;;  %7404 = vmatprep.subr.bf16.mxu0 %v7403_v56  ;;  %v1793_v18 = vld [vmem:[%s15255_s18 + $0x130] sm:$0xff]  ;;  %v1800_v44 = vld [vmem:[%s15255_s18 + $0x168] sm:$0xff]  ;;  %v1798_v57 = vld [vmem:[%s15255_s18 + $0x158] sm:$0xff] }
 0x4ed   : > { %7406 = vmatpush3.bf16.msra.mxu0 %v7405_v0  ;;  %1984 = vmatprep.mubr.f32.mxu1 %v1760_v2  ;;  %v1799_v56 = vld [vmem:[%s15255_s18 + $0x160] sm:$0xff]  ;;  %v1797_v0 = vld [vmem:[%s15255_s18 + $0x150] sm:$0xff]  ;;  %v1804_v2 = vld [vmem:[%s15255_s18 + $0x188] sm:$0xff] }
 0x4f0   : > { %1985 = vmatmul.mubr.f32.gmra.mrb[18].mxu1 %v1759_v3  ;;  %2125 = vmatmul.mubr.f32.vlgmr.msra.gmra.mrb[24].mxu0 %v1757_v5  ;;  %v1802_v3 = vld [vmem:[%s15255_s18 + $0x178] sm:$0xff]  ;;  %v1803_v5 = vld [vmem:[%s15255_s18 + $0x180] sm:$0xff] }
 0x4f1   : > { %1989 = vmatprep.mubr.f32.mxu1 %v1764_v9  ;;  %2129 = vmatprep.mubr.f32.mxu0 %v1762_v11  ;;  %v1801_v9 = vld [vmem:[%s15255_s18 + $0x170] sm:$0xff]  ;;  %v1808_v11 = vld [vmem:[%s15255_s18 + $0x1a8] sm:$0xff] }
 0x4f4   : > { %1990 = vmatmul.mubr.f32.gmra.mrb[20].mxu1 %v1763_v4  ;;  %2130 = vmatmul.mubr.f32.gmra.mrb[26].mxu0 %v1761_v26  ;;  %v1806_v4 = vld [vmem:[%s15255_s18 + $0x198] sm:$0xff]  ;;  %v1807_v26 = vld [vmem:[%s15255_s18 + $0x1a0] sm:$0xff] }
 0x4f5   : > { %1994 = vmatprep.mubr.f32.mxu1 %v1768_v61  ;;  %2134 = vmatprep.mubr.f32.mxu0 %v1766_v63  ;;  %v1805_v61 = vld [vmem:[%s15255_s18 + $0x190] sm:$0xff]  ;;  %v1812_v63 = vld [vmem:[%s15255_s18 + $0x1c8] sm:$0xff] }
 0x4f8   : > { %1995 = vmatmul.mubr.f32.gmra.mrb[22].mxu1 %v1767_v49  ;;  %2135 = vmatmul.mubr.f32.gmra.mrb[28].mxu0 %v1765_v20  ;;  %v1810_v49 = vld [vmem:[%s15255_s18 + $0x1b8] sm:$0xff]  ;;  %v1811_v20 = vld [vmem:[%s15255_s18 + $0x1c0] sm:$0xff] }
 0x4f9   : > { %1999 = vmatprep.mubr.f32.mxu1 %v1772_v43  ;;  %2139 = vmatprep.mubr.f32.mxu0 %v1770_v35  ;;  %v1809_v43 = vld [vmem:[%s15255_s18 + $0x1b0] sm:$0xff]  ;;  %v1816_v35 = vld [vmem:[%s15255_s18 + $0x1e8] sm:$0xff] }
 0x4fc   : > { %2000 = vmatmul.mubr.f32.gmra.mrb[24].mxu1 %v1771_v28  ;;  %2140 = vmatmul.mubr.f32.gmra.mrb[30].mxu0 %v1769_v23  ;;  %v1814_v28 = vld [vmem:[%s15255_s18 + $0x1d8] sm:$0xff]  ;;  %v1815_v23 = vld [vmem:[%s15255_s18 + $0x1e0] sm:$0xff] }
 0x4fd   : > { %2004 = vmatprep.mubr.f32.mxu1 %v1776_v21  ;;  %2144 = vmatprep.mubr.f32.mxu0 %v1774_v12  ;;  %v1813_v21 = vld [vmem:[%s15255_s18 + $0x1d0] sm:$0xff]  ;;  %v1818_v12 = vld [vmem:[%s15255_s18 + $0x1f8] sm:$0xff] }
 0x500   : > { %2005 = vmatmul.mubr.f32.gmra.mrb[26].mxu1 %v1775_v60  ;;  %2145 = vmatmul.mubr.f32.gmra.mrb[32].mxu0 %v1773_v50  ;;  %v1817_v60 = vld [vmem:[%s15255_s18 + $0x1f0] sm:$0xff] }
 0x501   : > { %2009 = vmatprep.mubr.f32.mxu1 %v1780_v32  ;;  %2149 = vmatprep.mubr.f32.mxu0 %v1778_v34 }
 0x504   : > { %2010 = vmatmul.mubr.f32.gmra.mrb[28].mxu1 %v1779_v27  ;;  %2150 = vmatmul.mubr.f32.gmra.mrb[34].mxu0 %v1777_v55  ;;  %v1838_v27 = vpop.permute.xlu0 %1837 }
 0x505   : > { %2014 = vmatprep.mubr.f32.mxu1 %v1784_v30  ;;  %2154 = vmatprep.mubr.f32.mxu0 %v1782_v59 }
 0x508   : > { %2015 = vmatmul.mubr.f32.gmra.mrb[30].mxu1 %v1783_v46  ;;  %2155 = vmatmul.mubr.f32.gmra.mrb[36].mxu0 %v1781_v48 }
 0x509   : > { %2019 = vmatprep.mubr.f32.mxu1 %v1788_v36  ;;  %2159 = vmatprep.mubr.f32.mxu0 %v1786_v8 }
 0x50c   : > { %2020 = vmatmul.mubr.f32.gmra.mrb[32].mxu1 %v1787_v19  ;;  %2160 = vmatmul.mubr.f32.gmra.mrb[38].mxu0 %v1785_v7  ;;  %v1843_v19 = vpop.permute.xlu1 %1842 }
 0x50d   : > { %2024 = vmatprep.mubr.f32.mxu1 %v1792_v42  ;;  %2164 = vmatprep.mubr.f32.mxu0 %v1790_v17 }
 0x510   : > { %2025 = vmatmul.mubr.f32.gmra.mrb[34].mxu1 %v1791_v39  ;;  %2165 = vmatmul.mubr.f32.gmra.mrb[40].mxu0 %v1789_v37 }
 0x511   : > { %2029 = vmatprep.mubr.f32.mxu1 %v1796_v52  ;;  %2169 = vmatprep.mubr.f32.mxu0 %v1794_v54 }
 0x514   : > { %2030 = vmatmul.mubr.f32.gmra.mrb[36].mxu1 %v1795_v45  ;;  %2170 = vmatmul.mubr.f32.gmra.mrb[42].mxu0 %v1793_v18  ;;  %v1848_v18 = vpop.permute.xlu0 %1847 }
 0x515   : > { %2034 = vmatprep.mubr.f32.mxu1 %v1800_v44  ;;  %2174 = vmatprep.mubr.f32.mxu0 %v1798_v57 }
 0x518   : > { %2035 = vmatmul.mubr.f32.gmra.mrb[38].mxu1 %v1799_v56  ;;  %2175 = vmatmul.mubr.f32.gmra.mrb[44].mxu0 %v1797_v0 }
 0x519   : > { %2039 = vmatprep.mubr.f32.mxu1 %v1804_v2  ;;  %2179 = vmatprep.mubr.f32.mxu0 %v1802_v3 }
 0x51c   : > { %2040 = vmatmul.mubr.f32.gmra.mrb[40].mxu1 %v1803_v5  ;;  %2180 = vmatmul.mubr.f32.gmra.mrb[46].mxu0 %v1801_v9 }
 0x51d   : > { %2044 = vmatprep.mubr.f32.mxu1 %v1808_v11  ;;  %2184 = vmatprep.mubr.f32.mxu0 %v1806_v4 }
 0x520   : > { %2045 = vmatmul.mubr.f32.gmra.mrb[42].mxu1 %v1807_v26  ;;  %2185 = vmatmul.mubr.f32.gmra.mrb[48].mxu0 %v1805_v61  ;;  %v1853_v26 = vpop.permute.xlu1 %1852 }
 0x521   : > { %2049 = vmatprep.mubr.f32.mxu1 %v1812_v63  ;;  %2189 = vmatprep.mubr.f32.mxu0 %v1810_v49 }
 0x524   : > { %2050 = vmatmul.mubr.f32.gmra.mrb[44].mxu1 %v1811_v20  ;;  %2190 = vmatmul.mubr.f32.gmra.mrb[50].mxu0 %v1809_v43 }
 0x525   : > { %2054 = vmatprep.mubr.f32.mxu1 %v1816_v35  ;;  %2194 = vmatprep.mubr.f32.mxu0 %v1814_v28 }
 0x528   : > { %2055 = vmatmul.mubr.f32.gmra.mrb[46].mxu1 %v1815_v23  ;;  %2195 = vmatmul.mubr.f32.gmra.mrb[52].mxu0 %v1813_v21 }
 0x529   : > { %2199 = vmatprep.mubr.f32.mxu0 %v1818_v12 }
 0x52c   : > { %2200 = vmatmul.mubr.f32.gmra.mrb[54].mxu0 %v1817_v60 }
 0x5bf   : > { %v6339_v50 = vpop.f32.mrb[16].mxu1 }
 0x5c0   : > { %v6340_v32 = vpop.f32.mrb[17].mxu1 }
 0x5c1   : > { %v6341_v34 = vadd.f32 %v6340_v32, %v6339_v50  ;;  %v1858_v50 = vpop.permute.xlu0 %1857 }
 0x5c3   : > { %v6342_v55 = vpop.f32.mrb[18].mxu1  ;;  %v6419_v30 = vpop.f32.mrb[24].mxu0  ;;  %v1982_v48 = vadd.f32 %v6341_v34, %v1838_v27 }
 0x5c4   : > { %v6343_v59 = vpop.f32.mrb[19].mxu1  ;;  %v6420_v46 = vpop.f32.mrb[25].mxu0 }
 0x5c5   : > { %v6344_v36 = vadd.f32 %v6343_v59, %v6342_v55  ;;  %v6421_v8 = vadd.f32 %v6420_v46, %v6419_v30 }
 0x5c7   : > { %v2127_v7 = vadd.f32 %v6421_v8, %v1982_v48  ;;  %v6345_v42 = vpop.f32.mrb[20].mxu1  ;;  %v6422_v17 = vpop.f32.mrb[26].mxu0  ;;  %v1987_v52 = vadd.f32 %v6344_v36, %v1843_v19 }
 0x5c8   : > { %v6346_v39 = vpop.f32.mrb[21].mxu1  ;;  %v6423_v37 = vpop.f32.mrb[27].mxu0 }
 0x5c9   : > { %v6347_v54 = vadd.f32 %v6346_v39, %v6345_v42  ;;  %v6424_v45 = vadd.f32 %v6423_v37, %v6422_v17  ;;  %v2221_v44 = vmul.f32 0.01, %v2127_v7  ;;  %vm2205_vm7 = vcmp.ge.f32.partialorder %v2127_v7, 0.0 }
 0x5cb   : > { %v2132_v57 = vadd.f32 %v6424_v45, %v1987_v52  ;;  %v6348_v56 = vpop.f32.mrb[22].mxu1  ;;  %v6425_v0 = vpop.f32.mrb[28].mxu0  ;;  %v1992_v2 = vadd.f32 %v6347_v54, %v1848_v18  ;;  %v11679_v61 = vsel %vm2205_vm7, %v2127_v7, %v2221_v44 }
 0x5cc   : > { %v6349_v3 = vpop.f32.mrb[23].mxu1  ;;  %v6426_v5 = vpop.f32.mrb[29].mxu0 }
 0x5cd   : > { %vm2206_vm8 = vcmp.ge.f32.partialorder %v2132_v57, 0.0  ;;  %v2222_v9 = vmul.f32 0.01, %v2132_v57  ;;  %v6350_v11 = vadd.f32 %v6349_v3, %v6348_v56  ;;  %v6427_v4 = vadd.f32 %v6426_v5, %v6425_v0  ;;  %v1863_v7 = vpop.permute.xlu1 %1862  ;;  %v1868_v0 = vpop.permute.xlu0 %1867 }
 0x5cf   : > { %v11681_v63 = vsel %vm2206_vm8, %v2132_v57, %v2222_v9  ;;  %v2137_v49 = vadd.f32 %v6427_v4, %v1992_v2  ;;  %v6351_v20 = vpop.f32.mrb[24].mxu1  ;;  %v6428_v43 = vpop.f32.mrb[30].mxu0  ;;  %v1997_v21 = vadd.f32 %v6350_v11, %v1853_v26 }
 0x5d0   : > { %v6352_v35 = vpop.f32.mrb[25].mxu1  ;;  %v6429_v28 = vpop.f32.mrb[31].mxu0  ;;  %v8596_v23 = vpack.i.bf16 %v11681_v63, %v11679_v61 }
 0x5d1   : > { %v6353_v12 = vadd.f32 %v6352_v35, %v6351_v20  ;;  %v6430_v60 = vadd.f32 %v6429_v28, %v6428_v43  ;;  %v2223_v32 = vmul.f32 0.01, %v2137_v49  ;;  %vm2207_vm12 = vcmp.ge.f32.partialorder %v2137_v49, 0.0  ;;  %v1873_v28 = vpop.permute.xlu1 %1872 }
 0x5d2   : > { %8597 = vrot.lane.b32.xlu1 %v8596_v23, %s15252_s22  ;;  %8592 = vrot.lane.b32.xlu0 %v8596_v23, %s15253_s11 }
 0x5d3   : > { %v2142_v34 = vadd.f32 %v6430_v60, %v1997_v21  ;;  %v6354_v27 = vpop.f32.mrb[26].mxu1  ;;  %v6431_v55 = vpop.f32.mrb[32].mxu0  ;;  %v2002_v59 = vadd.f32 %v6353_v12, %v1858_v50  ;;  %v11691_v42 = vsel %vm2207_vm12, %v2137_v49, %v2223_v32 }
 0x5d4   : > { %v6355_v46 = vpop.f32.mrb[27].mxu1  ;;  %v6432_v48 = vpop.f32.mrb[33].mxu0 }
 0x5d5   : > { %vm2208_vm13 = vcmp.ge.f32.partialorder %v2142_v34, 0.0  ;;  %v2224_v36 = vmul.f32 0.01, %v2142_v34  ;;  %v6356_v8 = vadd.f32 %v6355_v46, %v6354_v27  ;;  %v6433_v19 = vadd.f32 %v6432_v48, %v6431_v55 }
 0x5d6   : > { %8607 = vrot.lane.b32.xlu1 %v8596_v23, %s15235_s4  ;;  %8602 = vrot.lane.b32.xlu0 %v8596_v23, %s15238_s5 }
 0x5d7   : > { %v11693_v17 = vsel %vm2208_vm13, %v2142_v34, %v2224_v36  ;;  %v2147_v39 = vadd.f32 %v6433_v19, %v2002_v59  ;;  %v6357_v37 = vpop.f32.mrb[28].mxu1  ;;  %v6434_v52 = vpop.f32.mrb[34].mxu0  ;;  %v2007_v44 = vadd.f32 %v6356_v8, %v1863_v7 }
 0x5d8   : > { %v6358_v54 = vpop.f32.mrb[29].mxu1  ;;  %v6435_v45 = vpop.f32.mrb[35].mxu0  ;;  %v11697_v18 = vpack.i.bf16 %v11693_v17, %v11691_v42 }
 0x5d9   : > { %v6359_v57 = vadd.f32 %v6358_v54, %v6357_v37  ;;  %v6436_v56 = vadd.f32 %v6435_v45, %v6434_v52  ;;  %v2225_v2 = vmul.f32 0.01, %v2147_v39  ;;  %vm2209_vm5 = vcmp.ge.f32.partialorder %v2147_v39, 0.0  ;;  %v1878_v36 = vpop.permute.xlu0 %1877 }
 0x5da   : > { %8617 = vrot.lane.b32.xlu1 %v8596_v23, %s15239_s30  ;;  %8612 = vrot.lane.b32.xlu0 %v8596_v23, %s15254_s20 }
 0x5db   : > { %v2152_v3 = vadd.f32 %v6436_v56, %v2007_v44  ;;  %v6360_v5 = vpop.f32.mrb[30].mxu1  ;;  %v6437_v9 = vpop.f32.mrb[36].mxu0  ;;  %v2012_v4 = vadd.f32 %v6359_v57, %v1868_v0  ;;  %v11706_v21 = vsel %vm2209_vm5, %v2147_v39, %v2225_v2 }
 0x5dc   : > { %v6361_v26 = vpop.f32.mrb[31].mxu1  ;;  %v6438_v49 = vpop.f32.mrb[37].mxu0 }
 0x5dd   : > { %vm2210_vm11 = vcmp.ge.f32.partialorder %v2152_v3, 0.0  ;;  %v2226_v20 = vmul.f32 0.01, %v2152_v3  ;;  %v6362_v43 = vadd.f32 %v6361_v26, %v6360_v5  ;;  %v6439_v35 = vadd.f32 %v6438_v49, %v6437_v9  ;;  %v1883_v56 = vpop.permute.xlu1 %1882 }
 0x5de   : > { %8632 = vrot.lane.b32.xlu1 %v11697_v18, %s15252_s22  ;;  %8622 = vrot.lane.b32.xlu0 %v8596_v23, %s15234_s27 }
 0x5df   : > { %v11708_v12 = vsel %vm2210_vm11, %v2152_v3, %v2226_v20  ;;  %v2157_v60 = vadd.f32 %v6439_v35, %v2012_v4  ;;  %v6363_v50 = vpop.f32.mrb[32].mxu1  ;;  %v6440_v32 = vpop.f32.mrb[38].mxu0  ;;  %v2017_v59 = vadd.f32 %v6362_v43, %v1873_v28 }
 0x5e0   : > { %v6364_v34 = vpop.f32.mrb[33].mxu1  ;;  %v6441_v27 = vpop.f32.mrb[39].mxu0  ;;  %v11712_v55 = vpack.i.bf16 %v11708_v12, %v11706_v21 }
 0x5e1   : > { %v6365_v46 = vadd.f32 %v6364_v34, %v6363_v50  ;;  %v6442_v48 = vadd.f32 %v6441_v27, %v6440_v32  ;;  %v2227_v23 = vmul.f32 0.01, %v2157_v60  ;;  %vm2211_vm4 = vcmp.ge.f32.partialorder %v2157_v60, 0.0  ;;  %v1888_v28 = vpop.permute.xlu0 %1887 }
 0x5e2   : > { %8642 = vrot.lane.b32.xlu1 %v11697_v18, %s15235_s4  ;;  %8627 = vrot.lane.b32.xlu0 %v11697_v18, %s15253_s11 }
 0x5e3   : > { %v2162_v8 = vadd.f32 %v6442_v48, %v2017_v59  ;;  %v6366_v19 = vpop.f32.mrb[34].mxu1  ;;  %v6443_v7 = vpop.f32.mrb[40].mxu0  ;;  %v2022_v37 = vadd.f32 %v6365_v46, %v1878_v36  ;;  %v11724_v0 = vsel %vm2211_vm4, %v2157_v60, %v2227_v23 }
 0x5e4   : > { %v6367_v52 = vpop.f32.mrb[35].mxu1  ;;  %v6444_v54 = vpop.f32.mrb[41].mxu0 }
 0x5e5   : > { %vm2212_vm7 = vcmp.ge.f32.partialorder %v2162_v8, 0.0  ;;  %v2228_v45 = vmul.f32 0.01, %v2162_v8  ;;  %v6368_v44 = vadd.f32 %v6367_v52, %v6366_v19  ;;  %v6445_v57 = vadd.f32 %v6444_v54, %v6443_v7  ;;  %v1893_v19 = vpop.permute.xlu1 %1892 }
 0x5e6   : > { %8647 = vrot.lane.b32.xlu1 %v11697_v18, %s15254_s20  ;;  %8637 = vrot.lane.b32.xlu0 %v11697_v18, %s15238_s5 }
 0x5e7   : > { %v11726_v2 = vsel %vm2212_vm7, %v2162_v8, %v2228_v45  ;;  %v2167_v3 = vadd.f32 %v6445_v57, %v2022_v37  ;;  %v6369_v5 = vpop.f32.mrb[36].mxu1  ;;  %v6446_v9 = vpop.f32.mrb[42].mxu0  ;;  %v2027_v20 = vadd.f32 %v6368_v44, %v1883_v56 }
 0x5e8   : > { %v6370_v4 = vpop.f32.mrb[37].mxu1  ;;  %v6447_v26 = vpop.f32.mrb[43].mxu0  ;;  %v11730_v49 = vpack.i.bf16 %v11726_v2, %v11724_v0 }
 0x5e9   : > { %v6371_v43 = vadd.f32 %v6370_v4, %v6369_v5  ;;  %v6448_v35 = vadd.f32 %v6447_v26, %v6446_v9  ;;  %v2229_v60 = vmul.f32 0.01, %v2167_v3  ;;  %vm2213_vm8 = vcmp.ge.f32.partialorder %v2167_v3, 0.0  ;;  %v1898_v4 = vpop.permute.xlu0 %1897 }
 0x5ea   : > { %8657 = vrot.lane.b32.xlu1 %v11697_v18, %s15234_s27  ;;  %8652 = vrot.lane.b32.xlu0 %v11697_v18, %s15239_s30 }
 0x5eb   : > { %v2172_v50 = vadd.f32 %v6448_v35, %v2027_v20  ;;  %v6372_v32 = vpop.f32.mrb[38].mxu1  ;;  %v6449_v34 = vpop.f32.mrb[44].mxu0  ;;  %v2032_v59 = vadd.f32 %v6371_v43, %v1888_v28  ;;  %v11742_v18 = vsel %vm2213_vm8, %v2167_v3, %v2229_v60 }
 0x5ec   : > { %v6373_v46 = vpop.f32.mrb[39].mxu1  ;;  %v6450_v48 = vpop.f32.mrb[45].mxu0 }
 0x5ed   : > { %vm2214_vm12 = vcmp.ge.f32.partialorder %v2172_v50, 0.0  ;;  %v2230_v36 = vmul.f32 0.01, %v2172_v50  ;;  %v6374_v23 = vadd.f32 %v6373_v46, %v6372_v32  ;;  %v6451_v8 = vadd.f32 %v6450_v48, %v6449_v34  ;;  %v1903_v46 = vpop.permute.xlu1 %1902 }
 0x5ee   : > { %8667 = vrot.lane.b32.xlu1 %v11712_v55, %s15252_s22  ;;  %8662 = vrot.lane.b32.xlu0 %v11712_v55, %s15253_s11 }
 0x5ef   : > { %v11744_v7 = vsel %vm2214_vm12, %v2172_v50, %v2230_v36  ;;  %v2177_v37 = vadd.f32 %v6451_v8, %v2032_v59  ;;  %v6375_v52 = vpop.f32.mrb[40].mxu1  ;;  %v6452_v54 = vpop.f32.mrb[46].mxu0  ;;  %v2037_v56 = vadd.f32 %v6374_v23, %v1893_v19  ;;  %vm15271_vm12 = vcmp.lt.s32.totalorder %v10725_v10, 1 }
 0x5f0   : > { %v6376_v45 = vpop.f32.mrb[41].mxu1  ;;  %v6453_v44 = vpop.f32.mrb[47].mxu0  ;;  %v11748_v57 = vpack.i.bf16 %v11744_v7, %v11742_v18 }
 0x5f1   : > { %v6377_v5 = vadd.f32 %v6376_v45, %v6375_v52  ;;  %v6454_v9 = vadd.f32 %v6453_v44, %v6452_v54  ;;  %v2231_v3 = vmul.f32 0.01, %v2177_v37  ;;  %vm2215_vm13 = vcmp.ge.f32.partialorder %v2177_v37, 0.0 }
 0x5f2   : > { %8677 = vrot.lane.b32.xlu1 %v11712_v55, %s15235_s4  ;;  %8672 = vrot.lane.b32.xlu0 %v11712_v55, %s15238_s5 }
 0x5f3   : > { %v2182_v26 = vadd.f32 %v6454_v9, %v2037_v56  ;;  %v6378_v20 = vpop.f32.mrb[42].mxu1  ;;  %v6455_v43 = vpop.f32.mrb[48].mxu0  ;;  %v2042_v28 = vadd.f32 %v6377_v5, %v1898_v4  ;;  %v11760_v48 = vsel %vm2215_vm13, %v2177_v37, %v2231_v3  ;;  %vm15272_vm13 = vmmov %vm15271_vm12 }
 0x5f4   : > { %v6379_v60 = vpop.f32.mrb[43].mxu1  ;;  %v6456_v50 = vpop.f32.mrb[49].mxu0 }
 0x5f5   : > { %vm2216_vm5 = vcmp.ge.f32.partialorder %v2182_v26, 0.0  ;;  %v2232_v32 = vmul.f32 0.01, %v2182_v26  ;;  %v6380_v34 = vadd.f32 %v6379_v60, %v6378_v20  ;;  %v6457_v59 = vadd.f32 %v6456_v50, %v6455_v43  ;;  %v1908_v9 = vpop.permute.xlu0 %1907 }
 0x5f6   : > { %8687 = vrot.lane.b32.xlu1 %v11712_v55, %s15239_s30  ;;  %8682 = vrot.lane.b32.xlu0 %v11712_v55, %s15254_s20 }
 0x5f7   : > { %v11762_v36 = vsel %vm2216_vm5, %v2182_v26, %v2232_v32  ;;  %v2187_v23 = vadd.f32 %v6457_v59, %v2042_v28  ;;  %v6381_v8 = vpop.f32.mrb[44].mxu1  ;;  %v6458_v19 = vpop.f32.mrb[50].mxu0  ;;  %v2047_v44 = vadd.f32 %v6380_v34, %v1903_v46  ;;  %vm15273_vm5 = vmmov %vm15271_vm12 }
 0x5f8   : > { %v6382_v52 = vpop.f32.mrb[45].mxu1  ;;  %v6459_v54 = vpop.f32.mrb[51].mxu0  ;;  %v11766_v45 = vpack.i.bf16 %v11762_v36, %v11760_v48 }
 0x5f9   : > { %v6383_v56 = vadd.f32 %v6382_v52, %v6381_v8  ;;  %v6460_v5 = vadd.f32 %v6459_v54, %v6458_v19  ;;  %v2233_v37 = vmul.f32 0.01, %v2187_v23  ;;  %vm2217_vm11 = vcmp.ge.f32.partialorder %v2187_v23, 0.0  ;;  %v1913_v52 = vpop.permute.xlu1 %1912 }
 0x5fa   : > { %8697 = vrot.lane.b32.xlu1 %v11730_v49, %s15252_s22  ;;  %8692 = vrot.lane.b32.xlu0 %v11730_v49, %s15253_s11 }
 0x5fb   : > { %v2192_v4 = vadd.f32 %v6460_v5, %v2047_v44  ;;  %v6384_v3 = vpop.f32.mrb[46].mxu1  ;;  %v6461_v26 = vpop.f32.mrb[52].mxu0  ;;  %v2052_v43 = vadd.f32 %v6383_v56, %v1908_v9  ;;  %v11778_v59 = vsel %vm2217_vm11, %v2187_v23, %v2233_v37  ;;  %vm15274_vm11 = vmmov %vm15273_vm5 }
 0x5fc   : > { %v6385_v28 = vpop.f32.mrb[47].mxu1  ;;  %v6462_v60 = vpop.f32.mrb[53].mxu0 }
 0x5fd   : > { %vm2218_vm4 = vcmp.ge.f32.partialorder %v2192_v4, 0.0  ;;  %v2234_v50 = vmul.f32 0.01, %v2192_v4  ;;  %v6386_v32 = vadd.f32 %v6385_v28, %v6384_v3  ;;  %v6463_v34 = vadd.f32 %v6462_v60, %v6461_v26  ;;  %v2590_v60 = vld [vmem:[#allocation7 + $0x8] sm:$0xff] }
 0x5fe   : > { %8707 = vrot.lane.b32.xlu1 %v11730_v49, %s15235_s4  ;;  %8702 = vrot.lane.b32.xlu0 %v11730_v49, %s15238_s5 }
 0x5ff   : > { %v11780_v46 = vsel %vm2218_vm4, %v2192_v4, %v2234_v50  ;;  %v2197_v8 = vadd.f32 %v6463_v34, %v2052_v43  ;;  %v6464_v19 = vpop.f32.mrb[54].mxu0  ;;  %v2057_v56 = vadd.f32 %v6386_v32, %v1913_v52  ;;  %2681 = vmatprep.mubr.f32.mxu1 %v2590_v60  ;;  %v2592_v50 = vld [vmem:[#allocation7 + $0x18] sm:$0xff]  ;;  %vm15275_vm4 = vmmov %vm15273_vm5 }
 0x600   : > { %v6465_v54 = vpop.f32.mrb[55].mxu0  ;;  %v8756_v44 = vpack.i.bf16 %v11780_v46, %v11778_v59  ;;  %2756 = vmatprep.mubr.f32.mxu0 %v2592_v50 }
 0x601   : > { %v6466_v5 = vadd.f32 %v6465_v54, %v6464_v19  ;;  %v2235_v9 = vmul.f32 0.01, %v2197_v8  ;;  %vm2219_vm7 = vcmp.ge.f32.partialorder %v2197_v8, 0.0 }
 0x602   : > { %8717 = vrot.lane.b32.xlu1 %v11748_v57, %s15252_s22  ;;  %8712 = vrot.lane.b32.xlu0 %v11748_v57, %s15253_s11 }
 0x603   : > { %v2202_v37 = vadd.f32 %v6466_v5, %v2057_v56  ;;  %v11794_v3 = vsel %vm2219_vm7, %v2197_v8, %v2235_v9  ;;  %vm15276_vm7 = vmmov %vm15275_vm4 }
 0x605   : > { %vm2220_vm8 = vcmp.ge.f32.partialorder %v2202_v37, 0.0  ;;  %v2236_v4 = vmul.f32 0.01, %v2202_v37 }
 0x606   : > { %8727 = vrot.lane.b32.xlu1 %v11748_v57, %s15235_s4  ;;  %8722 = vrot.lane.b32.xlu0 %v11748_v57, %s15238_s5 }
 0x607   : > { %v11796_v26 = vsel %vm2220_vm8, %v2202_v37, %v2236_v4  ;;  %vm15277_vm8 = vmmov %vm15275_vm4 }
 0x608   : > { %v8776_v43 = vpack.i.bf16 %v11796_v26, %v11794_v3 }
 0x60a   : > { %8737 = vrot.lane.b32.xlu1 %v11766_v45, %s15252_s22  ;;  %8732 = vrot.lane.b32.xlu0 %v11766_v45, %s15253_s11 }
 0x60e   : > { %8747 = vrot.lane.b32.xlu1 %v11766_v45, %s15235_s4  ;;  %8742 = vrot.lane.b32.xlu0 %v11766_v45, %s15238_s5 }
 0x612   : > { %8757 = vrot.lane.b32.xlu1 %v8756_v44, %s15252_s22  ;;  %8752 = vrot.lane.b32.xlu0 %v8756_v44, %s15253_s11 }
 0x616   : > { %8767 = vrot.lane.b32.xlu1 %v8756_v44, %s15235_s4  ;;  %8762 = vrot.lane.b32.xlu0 %v8756_v44, %s15238_s5 }
 0x61a   : > { %8777 = vrot.lane.b32.xlu1 %v8776_v43, %s15252_s22  ;;  %8772 = vrot.lane.b32.xlu0 %v8776_v43, %s15253_s11 }
 0x61e   : > { %8792 = vrot.lane.b32.xlu1 %v8776_v43, %s15235_s4  ;;  %8782 = vrot.lane.b32.xlu0 %v8776_v43, %s15238_s5 }
 0x622   : > { %8797 = vrot.lane.b32.xlu1 %v11730_v49, %s15254_s20  ;;  %8787 = vrot.lane.b32.xlu0 %v11712_v55, %s15234_s27  ;;  %v2606_v55 = vld [vmem:[%s15028_s8 + $0x8] sm:$0xff] }
 0x626   : > { %8807 = vrot.lane.b32.xlu1 %v11730_v49, %s15234_s27  ;;  %8802 = vrot.lane.b32.xlu0 %v11730_v49, %s15239_s30  ;;  %v2605_v49 = vld [vmem:[%s15028_s8] sm:$0xff] }
 0x62a   : > { %8817 = vrot.lane.b32.xlu1 %v11748_v57, %s15239_s30  ;;  %8812 = vrot.lane.b32.xlu0 %v11748_v57, %s15254_s20 }
 0x62e   : > { %8827 = vrot.lane.b32.xlu1 %v11766_v45, %s15254_s20  ;;  %8822 = vrot.lane.b32.xlu0 %v11748_v57, %s15234_s27 }
 0x632   : > { %8837 = vrot.lane.b32.xlu1 %v11766_v45, %s15234_s27  ;;  %8832 = vrot.lane.b32.xlu0 %v11766_v45, %s15239_s30 }
 0x636   : > { %8847 = vrot.lane.b32.xlu1 %v8756_v44, %s15239_s30  ;;  %8842 = vrot.lane.b32.xlu0 %v8756_v44, %s15254_s20 }
 0x63a   : > { %8857 = vrot.lane.b32.xlu1 %v8776_v43, %s15254_s20  ;;  %8852 = vrot.lane.b32.xlu0 %v8756_v44, %s15234_s27  ;;  %s15146_s20 = smov 19  }
 0x63e   : > { %8867 = vrot.lane.b32.xlu1 %v8776_v43, %s15234_s27  ;;  %8862 = vrot.lane.b32.xlu0 %v8776_v43, %s15239_s30  ;;  %s15310_s27 = smov 7   ;;  %s15312_s30 = smov 6  }
 0x642   : > { %2614 = vperm.xlu1 %8299, %v2606_v55   ;;  %2609 = vperm.xlu0 %8300, %v2605_v49  }
 0x644   : > { %v8598_v57 = vpop.permute.xlu1 %8597  ;;  %v8593_v45 = vpop.permute.xlu0 %8592 }
 0x645   : > { %v8600_v32 = vunpack.i.h.bf16 %v8598_v57  ;;  %v8599_v34 = vunpack.i.l.bf16 %v8598_v57  ;;  %v8595_v8 = vunpack.i.h.bf16 %v8593_v45  ;;  %v8594_v19 = vunpack.i.l.bf16 %v8593_v45 }
 0x647   : > { %v2286_v52 = vsel %vm854_vm14, %v10849_v14, %v8600_v32  ;;  %v2285_v54 = vsel %vm854_vm14, %v10849_v14, %v8599_v34  ;;  %v2333_v44 = vsel %vm860_vm6, %v10856_v25, %v8594_v19  ;;  %v2334_v56 = vsel %vm860_vm6, %v10856_v25, %v8595_v8 }
 0x648   : > { %v8608_v5 = vpop.permute.xlu1 %8607  ;;  %v8603_v9 = vpop.permute.xlu0 %8602  ;;  %v7407_v37 = vpack.c.bf16 %v2334_v56, %v2333_v44  ;;  %v7409_v4 = vpack.c.bf16 %v2286_v52, %v2285_v54 }
 0x649   : > { %v8610_v43 = vunpack.i.h.bf16 %v8608_v5  ;;  %v8609_v60 = vunpack.i.l.bf16 %v8608_v5  ;;  %v8605_v50 = vunpack.i.h.bf16 %v8603_v9  ;;  %v8604_v55 = vunpack.i.l.bf16 %v8603_v9 }
 0x64a   : > { %7408 = vmatprep.subr.bf16.mxu1 %v7407_v37 }
 0x64b   : > { %v2382_v49 = vsel %vm866_vm10, %v10862_v41, %v8610_v43  ;;  %v2381_v57 = vsel %vm866_vm10, %v10862_v41, %v8609_v60  ;;  %7410 = vmatpush3.bf16.msra.mxu1 %v7409_v4  ;;  %v2429_v45 = vsel %vm15271_vm12, %v10866_v47, %v8604_v55  ;;  %v2430_v32 = vsel %vm15272_vm13, %v10866_v47, %v8605_v50  ;;  %vm15278_vm12 = vmmov %vm15275_vm4 }
 0x64c   : > { %v11874_v34 = vpop.permute.xlu1 %8617  ;;  %v11876_v8 = vpop.permute.xlu0 %8612  ;;  %v7439_v19 = vpack.c.bf16 %v2430_v32, %v2429_v45  ;;  %v7441_v52 = vpack.c.bf16 %v2382_v49, %v2381_v57  ;;  %vm15279_vm13 = vmmov %vm15275_vm4 }
 0x64d   : > { %v8615_v27 = vunpack.i.h.bf16 %v11876_v8 }
 0x64e   : > { %7440 = vmatprep.subr.bf16.mxu0 %v7439_v19 }
 0x64f   : > { %7442 = vmatpush3.bf16.msra.mxu0 %v7441_v52 }
 0x650   : > { %v8633_v54 = vpop.permute.xlu1 %8632  ;;  %v11878_v44 = vpop.permute.xlu0 %8622 }
 0x651   : > { %v8635_v56 = vunpack.i.h.bf16 %v8633_v54  ;;  %v8634_v5 = vunpack.i.l.bf16 %v8633_v54  ;;  %v8624_v39 = vunpack.i.l.bf16 %v11878_v44 }
 0x653   : > { %v2288_v60 = vsel %vm854_vm14, %v10849_v14, %v8635_v56  ;;  %v2287_v50 = vsel %vm854_vm14, %v10849_v14, %v8634_v5 }
 0x654   : > { %v8643_v9 = vpop.permute.xlu1 %8642  ;;  %v8628_v37 = vpop.permute.xlu0 %8627 }
 0x655   : > { %v8630_v4 = vunpack.i.h.bf16 %v8628_v37  ;;  %v8629_v43 = vunpack.i.l.bf16 %v8628_v37  ;;  %v8645_v55 = vunpack.i.h.bf16 %v8643_v9  ;;  %v8644_v49 = vunpack.i.l.bf16 %v8643_v9 }
 0x656   : > { %v7413_v37 = vpack.c.bf16 %v2288_v60, %v2287_v50 }
 0x657   : > { %v2335_v57 = vsel %vm860_vm6, %v10856_v25, %v8629_v43  ;;  %v2336_v45 = vsel %vm860_vm6, %v10856_v25, %v8630_v4  ;;  %v2384_v5 = vsel %vm866_vm10, %v10862_v41, %v8645_v55  ;;  %v2383_v9 = vsel %vm866_vm10, %v10862_v41, %v8644_v49 }
 0x658   : > { %v11892_v32 = vpop.permute.xlu1 %8647  ;;  %v8638_v19 = vpop.permute.xlu0 %8637  ;;  %v7411_v52 = vpack.c.bf16 %v2336_v45, %v2335_v57  ;;  %v7445_v55 = vpack.c.bf16 %v2384_v5, %v2383_v9 }
 0x659   : > { %v8640_v54 = vunpack.i.h.bf16 %v8638_v19  ;;  %v8639_v56 = vunpack.i.l.bf16 %v8638_v19 }
 0x65a   : > { %7412 = vmatprep.subr.bf16.mxu1 %v7411_v52 }
 0x65b   : > { %7414 = vmatpush3.bf16.msra.mxu1 %v7413_v37  ;;  %v2431_v4 = vsel %vm15273_vm5, %v10866_v47, %v8639_v56  ;;  %v2432_v43 = vsel %vm15274_vm11, %v10866_v47, %v8640_v54  ;;  %vm15280_vm5 = vmmov %vm15275_vm4 }
 0x65c   : > { %v11906_v57 = vpop.permute.xlu1 %8657  ;;  %v11908_v60 = vpop.permute.xlu0 %8652  ;;  %v7443_v50 = vpack.c.bf16 %v2432_v43, %v2431_v4  ;;  %vm15281_vm11 = vmmov %vm15275_vm4 }
 0x65e   : > { %7444 = vmatprep.subr.bf16.mxu0 %v7443_v50 }
 0x65f   : > { %7446 = vmatpush3.bf16.msra.mxu0 %v7445_v55 }
 0x660   : > { %v8668_v45 = vpop.permute.xlu1 %8667  ;;  %v8663_v49 = vpop.permute.xlu0 %8662 }
 0x661   : > { %v8670_v19 = vunpack.i.h.bf16 %v8668_v45  ;;  %v8669_v52 = vunpack.i.l.bf16 %v8668_v45  ;;  %v8665_v37 = vunpack.i.h.bf16 %v8663_v49  ;;  %v8664_v1 = vunpack.i.l.bf16 %v8663_v49 }
 0x663   : > { %v2290_v56 = vsel %vm854_vm14, %v10849_v14, %v8670_v19  ;;  %v2289_v54 = vsel %vm854_vm14, %v10849_v14, %v8669_v52  ;;  %v2337_v5 = vsel %vm860_vm6, %v10856_v25, %v8664_v1  ;;  %v2338_v9 = vsel %vm860_vm6, %v10856_v25, %v8665_v37 }
 0x664   : > { %v8678_v4 = vpop.permute.xlu1 %8677  ;;  %v8673_v43 = vpop.permute.xlu0 %8672  ;;  %v7415_v50 = vpack.c.bf16 %v2338_v9, %v2337_v5  ;;  %v7417_v55 = vpack.c.bf16 %v2290_v56, %v2289_v54 }
 0x665   : > { %v8680_v45 = vunpack.i.h.bf16 %v8678_v4  ;;  %v8679_v49 = vunpack.i.l.bf16 %v8678_v4  ;;  %v8675_v28 = vunpack.i.h.bf16 %v8673_v43  ;;  %v8674_v19 = vunpack.i.l.bf16 %v8673_v43 }
 0x666   : > { %7416 = vmatprep.subr.bf16.mxu1 %v7415_v50 }
 0x667   : > { %v2386_v52 = vsel %vm866_vm10, %v10862_v41, %v8680_v45  ;;  %v2385_v1 = vsel %vm866_vm10, %v10862_v41, %v8679_v49  ;;  %7418 = vmatpush3.bf16.msra.mxu1 %v7417_v55  ;;  %v2433_v37 = vsel %vm15275_vm4, %v10866_v47, %v8674_v19  ;;  %v2434_v56 = vsel %vm15276_vm7, %v10866_v47, %v8675_v28 }
 0x668   : > { %v11934_v54 = vpop.permute.xlu1 %8687  ;;  %v11936_v5 = vpop.permute.xlu0 %8682  ;;  %v7447_v9 = vpack.c.bf16 %v2434_v56, %v2433_v37  ;;  %v7449_v4 = vpack.c.bf16 %v2386_v52, %v2385_v1  ;;  %vm15282_vm7 = vcmp.lt.s32.totalorder %v10725_v10, 125 }
 0x669   : > { %v8685_v33 = vunpack.i.h.bf16 %v11936_v5 }
 0x66a   : > { %7448 = vmatprep.subr.bf16.mxu0 %v7447_v9 }
 0x66b   : > { %7450 = vmatpush3.bf16.msra.mxu0 %v7449_v4 }
 0x66c   : > { %v8698_v43 = vpop.permute.xlu1 %8697  ;;  %v8693_v50 = vpop.permute.xlu0 %8692 }
 0x66d   : > { %v8700_v45 = vunpack.i.h.bf16 %v8698_v43  ;;  %v8699_v55 = vunpack.i.l.bf16 %v8698_v43  ;;  %v8695_v49 = vunpack.i.h.bf16 %v8693_v50  ;;  %v8694_v23 = vunpack.i.l.bf16 %v8693_v50 }
 0x66f   : > { %v2292_v19 = vsel %vm854_vm14, %v10849_v14, %v8700_v45  ;;  %v2291_v28 = vsel %vm854_vm14, %v10849_v14, %v8699_v55  ;;  %v2339_v52 = vsel %vm860_vm6, %v10856_v25, %v8694_v23  ;;  %v2340_v1 = vsel %vm860_vm6, %v10856_v25, %v8695_v49 }
 0x670   : > { %v8708_v37 = vpop.permute.xlu1 %8707  ;;  %v8703_v56 = vpop.permute.xlu0 %8702  ;;  %v7419_v9 = vpack.c.bf16 %v2340_v1, %v2339_v52  ;;  %v7421_v4 = vpack.c.bf16 %v2292_v19, %v2291_v28 }
 0x671   : > { %v8710_v43 = vunpack.i.h.bf16 %v8708_v37  ;;  %v8709_v50 = vunpack.i.l.bf16 %v8708_v37  ;;  %v8705_v20 = vunpack.i.h.bf16 %v8703_v56  ;;  %v8704_v45 = vunpack.i.l.bf16 %v8703_v56 }
 0x672   : > { %7420 = vmatprep.subr.bf16.mxu1 %v7419_v9 }
 0x673   : > { %v2388_v55 = vsel %vm866_vm10, %v10862_v41, %v8710_v43  ;;  %v2387_v23 = vsel %vm866_vm10, %v10862_v41, %v8709_v50  ;;  %7422 = vmatpush3.bf16.msra.mxu1 %v7421_v4  ;;  %v2435_v49 = vsel %vm15277_vm8, %v10866_v47, %v8704_v45  ;;  %v2436_v19 = vsel %vm15278_vm12, %v10866_v47, %v8705_v20  ;;  %vm15283_vm8 = vmmov %vm15282_vm7 }
 0x674   : > { %v8718_v28 = vpop.permute.xlu1 %8717  ;;  %v8713_v52 = vpop.permute.xlu0 %8712  ;;  %v7451_v1 = vpack.c.bf16 %v2436_v19, %v2435_v49  ;;  %v7453_v37 = vpack.c.bf16 %v2388_v55, %v2387_v23  ;;  %vm15284_vm12 = vmmov %vm15275_vm4 }
 0x675   : > { %v8720_v56 = vunpack.i.h.bf16 %v8718_v28  ;;  %v8719_v9 = vunpack.i.l.bf16 %v8718_v28  ;;  %v8715_v43 = vunpack.i.h.bf16 %v8713_v52  ;;  %v8714_v35 = vunpack.i.l.bf16 %v8713_v52 }
 0x676   : > { %7452 = vmatprep.subr.bf16.mxu0 %v7451_v1 }
 0x677   : > { %v2294_v4 = vsel %vm854_vm14, %v10849_v14, %v8720_v56  ;;  %v2293_v50 = vsel %vm854_vm14, %v10849_v14, %v8719_v9  ;;  %7454 = vmatpush3.bf16.msra.mxu0 %v7453_v37  ;;  %v2341_v20 = vsel %vm860_vm6, %v10856_v25, %v8714_v35  ;;  %v2342_v45 = vsel %vm860_vm6, %v10856_v25, %v8715_v43 }
 0x678   : > { %v8728_v55 = vpop.permute.xlu1 %8727  ;;  %v8723_v23 = vpop.permute.xlu0 %8722  ;;  %v7423_v49 = vpack.c.bf16 %v2342_v45, %v2341_v20  ;;  %v7425_v19 = vpack.c.bf16 %v2294_v4, %v2293_v50 }
 0x679   : > { %v8730_v28 = vunpack.i.h.bf16 %v8728_v55  ;;  %v8729_v52 = vunpack.i.l.bf16 %v8728_v55  ;;  %v8725_v1 = vunpack.i.h.bf16 %v8723_v23  ;;  %v8724_v56 = vunpack.i.l.bf16 %v8723_v23 }
 0x67a   : > { %7424 = vmatprep.subr.bf16.mxu1 %v7423_v49 }
 0x67b   : > { %v2390_v37 = vsel %vm866_vm10, %v10862_v41, %v8730_v28  ;;  %v2389_v35 = vsel %vm866_vm10, %v10862_v41, %v8729_v52  ;;  %7426 = vmatpush3.bf16.msra.mxu1 %v7425_v19  ;;  %v2437_v9 = vsel %vm15279_vm13, %v10866_v47, %v8724_v56  ;;  %v2438_v43 = vsel %vm15280_vm5, %v10866_v47, %v8725_v1  ;;  %vm15285_vm13 = vmmov %vm15275_vm4 }
 0x67c   : > { %v8738_v4 = vpop.permute.xlu1 %8737  ;;  %v8733_v50 = vpop.permute.xlu0 %8732  ;;  %v7455_v20 = vpack.c.bf16 %v2438_v43, %v2437_v9  ;;  %v7457_v45 = vpack.c.bf16 %v2390_v37, %v2389_v35  ;;  %vm15286_vm5 = vmmov %vm15275_vm4 }
 0x67d   : > { %v8740_v55 = vunpack.i.h.bf16 %v8738_v4  ;;  %v8739_v23 = vunpack.i.l.bf16 %v8738_v4  ;;  %v8735_v49 = vunpack.i.h.bf16 %v8733_v50  ;;  %v8734_v28 = vunpack.i.l.bf16 %v8733_v50 }
 0x67e   : > { %7456 = vmatprep.subr.bf16.mxu0 %v7455_v20 }
 0x67f   : > { %v2296_v19 = vsel %vm854_vm14, %v10849_v14, %v8740_v55  ;;  %v2295_v52 = vsel %vm854_vm14, %v10849_v14, %v8739_v23  ;;  %7458 = vmatpush3.bf16.msra.mxu0 %v7457_v45  ;;  %v2343_v1 = vsel %vm860_vm6, %v10856_v25, %v8734_v28  ;;  %v2344_v56 = vsel %vm860_vm6, %v10856_v25, %v8735_v49 }
 0x680   : > { %v8748_v37 = vpop.permute.xlu1 %8747  ;;  %v8743_v35 = vpop.permute.xlu0 %8742  ;;  %v7427_v9 = vpack.c.bf16 %v2344_v56, %v2343_v1  ;;  %v7429_v43 = vpack.c.bf16 %v2296_v19, %v2295_v52  ;;  %v8614_v45 = vunpack.i.l.bf16 %v11876_v8  ;;  %v8620_v8 = vunpack.i.h.bf16 %v11874_v34 }
 0x681   : > { %v8750_v4 = vunpack.i.h.bf16 %v8748_v37  ;;  %v8749_v50 = vunpack.i.l.bf16 %v8748_v37  ;;  %v8745_v20 = vunpack.i.h.bf16 %v8743_v35  ;;  %v8744_v55 = vunpack.i.l.bf16 %v8743_v35 }
 0x682   : > { %7428 = vmatprep.subr.bf16.mxu1 %v7427_v9  ;;  %v8619_v52 = vunpack.i.l.bf16 %v11874_v34 }
 0x683   : > { %v2392_v23 = vsel %vm866_vm10, %v10862_v41, %v8750_v4  ;;  %v2391_v49 = vsel %vm866_vm10, %v10862_v41, %v8749_v50  ;;  %7430 = vmatpush3.bf16.msra.mxu1 %v7429_v43  ;;  %v2439_v28 = vsel %vm15281_vm11, %v10866_v47, %v8744_v55  ;;  %v2440_v19 = vsel %vm15275_vm4, %v10866_v47, %v8745_v20  ;;  %vm15287_vm11 = vmmov %vm15275_vm4 }
 0x684   : > { %v8758_v1 = vpop.permute.xlu1 %8757  ;;  %v8753_v56 = vpop.permute.xlu0 %8752  ;;  %v7459_v37 = vpack.c.bf16 %v2440_v19, %v2439_v28  ;;  %v7461_v35 = vpack.c.bf16 %v2392_v23, %v2391_v49  ;;  %v12017_v55 = vsel %vm878_vm0, %v8614_v45, %v10729_v13  ;;  %v12022_v20 = vsel %vm878_vm0, %v8615_v27, %v10729_v13  ;;  %vm15288_vm4 = vmmov %vm15282_vm7 }
 0x685   : > { %v8760_v9 = vunpack.i.h.bf16 %v8758_v1  ;;  %v8759_v4 = vunpack.i.l.bf16 %v8758_v1  ;;  %v8755_v50 = vunpack.i.h.bf16 %v8753_v56  ;;  %v8754_v43 = vunpack.i.l.bf16 %v8753_v56 }
 0x686   : > { %7460 = vmatprep.subr.bf16.mxu0 %v7459_v37  ;;  %v12039_v56 = vsel %vm15282_vm7, %v8619_v52, %v10754_v31  ;;  %v12044_v37 = vsel %vm15283_vm8, %v8620_v8, %v10754_v31  ;;  %vm15289_vm7 = vmmov %vm15288_vm4 }
 0x687   : > { %v2298_v34 = vsel %vm854_vm14, %v10849_v14, %v8760_v9  ;;  %v2297_v23 = vsel %vm854_vm14, %v10849_v14, %v8759_v4  ;;  %7462 = vmatpush3.bf16.msra.mxu0 %v7461_v35  ;;  %v2345_v49 = vsel %vm860_vm6, %v10856_v25, %v8754_v43  ;;  %v2346_v45 = vsel %vm860_vm6, %v10856_v25, %v8755_v50  ;;  %vm15292_vm8 = vmmov %vm15288_vm4 }
 0x688   : > { %v8768_v28 = vpop.permute.xlu1 %8767  ;;  %v8763_v27 = vpop.permute.xlu0 %8762  ;;  %v7431_v19 = vpack.c.bf16 %v2346_v45, %v2345_v49  ;;  %v7433_v1 = vpack.c.bf16 %v2298_v34, %v2297_v23  ;;  %v8625_v50 = vunpack.i.h.bf16 %v11878_v44  ;;  %v8650_v34 = vunpack.i.h.bf16 %v11892_v32 }
 0x689   : > { %v8770_v35 = vunpack.i.h.bf16 %v8768_v28  ;;  %v8769_v9 = vunpack.i.l.bf16 %v8768_v28  ;;  %v8765_v4 = vunpack.i.h.bf16 %v8763_v27  ;;  %v8764_v43 = vunpack.i.l.bf16 %v8763_v27 }
 0x68a   : > { %v8649_v23 = vunpack.i.l.bf16 %v11892_v32  ;;  %7432 = vmatprep.subr.bf16.mxu1 %v7431_v19  ;;  %v7471_v19 = vpack.c.bf16 %v12022_v20, %v12017_v55  ;;  %v2480_v20 = vsel %vm878_vm0, %v8650_v34, %v10729_v13  ;;  %v8654_v34 = vunpack.i.l.bf16 %v11908_v60 }
 0x68b   : > { %v2394_v52 = vsel %vm866_vm10, %v10862_v41, %v8770_v35  ;;  %v2393_v8 = vsel %vm866_vm10, %v10862_v41, %v8769_v9  ;;  %7434 = vmatpush3.bf16.msra.mxu1 %v7433_v1  ;;  %v2441_v49 = vsel %vm15284_vm12, %v10866_v47, %v8764_v43  ;;  %v2442_v44 = vsel %vm15285_vm13, %v10866_v47, %v8765_v4  ;;  %vm15293_vm12 = vmmov %vm15288_vm4 }
 0x68c   : > { %v8778_v45 = vpop.permute.xlu1 %8777  ;;  %v8773_v32 = vpop.permute.xlu0 %8772  ;;  %v7463_v28 = vpack.c.bf16 %v2442_v44, %v2441_v49  ;;  %v7465_v27 = vpack.c.bf16 %v2394_v52, %v2393_v8  ;;  %v12069_v43 = vsel %vm884_vm3, %v8625_v50, %v10744_v24  ;;  %v12074_v4 = vsel %vm884_vm3, %v8624_v39, %v10744_v24  ;;  %vm15295_vm13 = vmmov %vm15288_vm4 }
 0x68d   : > { %v8780_v9 = vunpack.i.h.bf16 %v8778_v45  ;;  %v8779_v1 = vunpack.i.l.bf16 %v8778_v45  ;;  %v8775_v11 = vunpack.i.h.bf16 %v8773_v32  ;;  %v8774_v30 = vunpack.i.l.bf16 %v8773_v32 }
 0x68e   : > { %7464 = vmatprep.subr.bf16.mxu0 %v7463_v28  ;;  %v2479_v55 = vsel %vm878_vm0, %v8649_v23, %v10729_v13  ;;  %v8655_v8 = vunpack.i.h.bf16 %v11908_v60  ;;  %v8660_v35 = vunpack.i.h.bf16 %v11906_v57 }
 0x68f   : > { %v2300_v52 = vsel %vm854_vm14, %v10849_v14, %v8780_v9  ;;  %v2299_v50 = vsel %vm854_vm14, %v10849_v14, %v8779_v1  ;;  %7466 = vmatpush3.bf16.msra.mxu0 %v7465_v27  ;;  %v2347_v39 = vsel %vm860_vm6, %v10856_v25, %v8774_v30  ;;  %v2348_v23 = vsel %vm860_vm6, %v10856_v25, %v8775_v11 }
 0x690   : > { %v8793_v49 = vpop.permute.xlu1 %8792  ;;  %v8783_v44 = vpop.permute.xlu0 %8782  ;;  %v7435_v45 = vpack.c.bf16 %v2348_v23, %v2347_v39  ;;  %v7437_v32 = vpack.c.bf16 %v2300_v52, %v2299_v50  ;;  %v8659_v30 = vunpack.i.l.bf16 %v11906_v57  ;;  %v8684_v25 = vunpack.i.l.bf16 %v11936_v5  ;;  %v2589_v52 = vld [vmem:[#allocation7] sm:$0xff] }
 0x691   : > { %v8795_v28 = vunpack.i.h.bf16 %v8793_v49  ;;  %v8794_v9 = vunpack.i.l.bf16 %v8793_v49  ;;  %v8785_v1 = vunpack.i.h.bf16 %v8783_v44  ;;  %v8784_v27 = vunpack.i.l.bf16 %v8783_v44 }
 0x692   : > { %7436 = vmatprep.subr.bf16.mxu1 %v7435_v45  ;;  %v8690_v5 = vunpack.i.h.bf16 %v11934_v54  ;;  %v8689_v39 = vunpack.i.l.bf16 %v11934_v54  ;;  %v2481_v54 = vsel %vm878_vm0, %v8684_v25, %v10729_v13  ;;  %v7505_v25 = vpack.c.bf16 %v12069_v43, %v12074_v4 }
 0x693   : > { %v2396_v11 = vsel %vm866_vm10, %v10862_v41, %v8795_v28  ;;  %v2395_v60 = vsel %vm866_vm10, %v10862_v41, %v8794_v9  ;;  %7438 = vmatpush3.bf16.msra.mxu1 %v7437_v32  ;;  %v2443_v50 = vsel %vm15286_vm5, %v10866_v47, %v8784_v27  ;;  %v2444_v57 = vsel %vm15287_vm11, %v10866_v47, %v8785_v1  ;;  %v2598_v1 = vld [vmem:[#allocation7 + $0x48] sm:$0xff]  ;;  %v2591_v27 = vld [vmem:[#allocation7 + $0x10] sm:$0xff]  ;;  %vm15296_vm5 = vmmov %vm15288_vm4 }
 0x694   : > { %v8798_v23 = vpop.permute.xlu1 %8797  ;;  %v8788_v49 = vpop.permute.xlu0 %8787  ;;  %7472 = vmatprep.subr.bf16.mxu1 %v7471_v19  ;;  %v7467_v44 = vpack.c.bf16 %v2444_v57, %v2443_v50  ;;  %v7469_v45 = vpack.c.bf16 %v2396_v11, %v2395_v60  ;;  %v2575_v28 = vsel %vm15288_vm4, %v8654_v34, %v10754_v31  ;;  %v2576_v9 = vsel %vm15289_vm7, %v8655_v8, %v10754_v31  ;;  %vm15299_vm11 = vmmov %vm15288_vm4 }
 0x695   : > { %v8800_v41 = vunpack.i.h.bf16 %v8798_v23  ;;  %v8799_v32 = vunpack.i.l.bf16 %v8798_v23  ;;  %v7475_v47 = vpack.c.bf16 %v2480_v20, %v2479_v55  ;;  %v2482_v19 = vsel %vm878_vm0, %v8685_v33, %v10729_v13  ;;  %v2597_v20 = vld [vmem:[#allocation7 + $0x40] sm:$0xff]  ;;  %vm15301_vm7 = vmmov %vm15288_vm4 }
 0x696   : > { %2682 = vmatmul.mubr.f32.vlgmr.msra.gmra.mrb[48].mxu1 %v2589_v52  ;;  %7468 = vmatprep.subr.bf16.mxu0 %v7467_v44  ;;  %v2528_v34 = vsel %vm884_vm3, %v8660_v35, %v10744_v24  ;;  %v2527_v8 = vsel %vm884_vm3, %v8659_v30, %v10744_v24  ;;  %v15290_v55 = vpack.c.bf16 %v11681_v63, %v11679_v61  ;;  %v8790_v11 = vunpack.i.h.bf16 %v8788_v49  ;;  %v2594_v44 = vld [vmem:[#allocation7 + $0x28] sm:$0xff] }
 0x697   : > { %7470 = vmatpush3.bf16.msra.mxu0 %v7469_v45  ;;  %v15291_v35 = vpack.c.bf16 %v12044_v37, %v12039_v56  ;;  %v7507_v52 = vpack.c.bf16 %v2576_v9, %v2575_v28  ;;  %v2577_v30 = vsel %vm15292_vm8, %v8689_v39, %v10754_v31  ;;  %v2578_v61 = vsel %vm15293_vm12, %v8690_v5, %v10754_v31  ;;  %v2600_v39 = vld [vmem:[#allocation7 + $0x58] sm:$0xff]  ;;  %vm15302_vm8 = vmmov %vm15288_vm4 }
 0x698   : > { %7474 = vmatpush3.bf16.msra.mxu1 %v15290_v55  ;;  %v8808_v33 = vpop.permute.xlu1 %8807  ;;  %v8803_v60 = vpop.permute.xlu0 %8802  ;;  %v8789_v63 = vunpack.i.l.bf16 %v8788_v49  ;;  %2686 = vmatprep.mubr.f32.mxu1 %v2598_v1  ;;  %v7479_v43 = vpack.c.bf16 %v2482_v19, %v2481_v54  ;;  %v2483_v4 = vsel %vm878_vm0, %v8799_v32, %v10729_v13  ;;  %v2484_v56 = vsel %vm878_vm0, %v8800_v41, %v10729_v13  ;;  %v2599_v49 = vld [vmem:[#allocation7 + $0x50] sm:$0xff]  ;;  %v2596_v55 = vld [vmem:[#allocation7 + $0x38] sm:$0xff]  ;;  %vm15304_vm12 = vmmov %vm15288_vm4 }
 0x699   : > { %7476 = vmatprep.subr.bf16.mxu1 %v7475_v47  ;;  %7504 = vmatprep.subr.bf16.mxu0 %v15291_v35  ;;  %v8810_v37 = vunpack.i.h.bf16 %v8808_v33  ;;  %v8809_v50 = vunpack.i.l.bf16 %v8808_v33  ;;  %v8805_v57 = vunpack.i.h.bf16 %v8803_v60  ;;  %v8804_v23 = vunpack.i.l.bf16 %v8803_v60 }
 0x69a   : > { %2687 = vmatmul.mubr.f32.gmra.mrb[50].mxu1 %v2597_v20  ;;  %2757 = vmatmul.mubr.f32.vlgmr.msra.gmra.mrb[56].mxu0 %v2591_v27  ;;  %v15294_v5 = vpack.c.bf16 %v11693_v17, %v11691_v42  ;;  %v2530_v45 = vsel %vm884_vm3, %v8790_v11, %v10744_v24  ;;  %v7509_v28 = vpack.c.bf16 %v2528_v34, %v2527_v8 }
 0x69b   : > { %7506 = vmatpush3.bf16.msra.mxu0 %v7505_v25  ;;  %v7511_v9 = vpack.c.bf16 %v2578_v61, %v2577_v30  ;;  %v2529_v47 = vsel %vm884_vm3, %v8789_v63, %v10744_v24  ;;  %2761 = vmatprep.mubr.f32.mxu0 %v2600_v39  ;;  %v7483_v42 = vpack.c.bf16 %v2484_v56, %v2483_v4 }
 0x69c   : > { %7478 = vmatpush3.bf16.msra.mxu1 %v15294_v5  ;;  %v8818_v32 = vpop.permute.xlu1 %8817  ;;  %v8813_v41 = vpop.permute.xlu0 %8812  ;;  %7508 = vmatprep.subr.bf16.mxu0 %v7507_v52  ;;  %v2532_v17 = vsel %vm884_vm3, %v8810_v37, %v10744_v24  ;;  %v2531_v19 = vsel %vm884_vm3, %v8809_v50, %v10744_v24  ;;  %v2579_v34 = vsel %vm15295_vm13, %v8804_v23, %v10754_v31  ;;  %vm15305_vm13 = vmmov %vm15288_vm4 }
 0x69d   : > { %7480 = vmatprep.subr.bf16.mxu1 %v7479_v43  ;;  %v8815_v1 = vunpack.i.h.bf16 %v8813_v41  ;;  %v8814_v54 = vunpack.i.l.bf16 %v8813_v41  ;;  %2831 = vmatprep.mubr.f32.mxu1 %v2594_v44  ;;  %v2580_v8 = vsel %vm15296_vm5, %v8805_v57, %v10754_v31  ;;  %v8820_v20 = vunpack.i.h.bf16 %v8818_v32  ;;  %vm15307_vm5 = vmmov %vm15288_vm4 }
 0x69e   : > { %2762 = vmatmul.mubr.f32.gmra.mrb[58].mxu0 %v2599_v49  ;;  %v8819_v27 = vunpack.i.l.bf16 %v8818_v32  ;;  %v15297_v25 = vpack.c.bf16 %v11708_v12, %v11706_v21  ;;  %v7513_v52 = vpack.c.bf16 %v2530_v45, %v2529_v47  ;;  %v7515_v12 = vpack.c.bf16 %v2580_v8, %v2579_v34 }
 0x69f   : > { %7510 = vmatpush3.bf16.msra.mxu0 %v7509_v28  ;;  %v2485_v11 = vsel %vm878_vm0, %v8814_v54, %v10729_v13  ;;  %v2486_v33 = vsel %vm878_vm0, %v8815_v1, %v10729_v13  ;;  %2906 = vmatprep.mubr.f32.mxu0 %v2596_v55  ;;  %v7517_v4 = vpack.c.bf16 %v2532_v17, %v2531_v19 }
 0x6a0   : > { %7482 = vmatpush3.bf16.msra.mxu1 %v15297_v25  ;;  %v8828_v60 = vpop.permute.xlu1 %8827  ;;  %v8823_v35 = vpop.permute.xlu0 %8822  ;;  %7512 = vmatprep.subr.bf16.mxu0 %v7511_v9  ;;  %v7487_v21 = vpack.c.bf16 %v2486_v33, %v2485_v11  ;;  %v15298_v56 = vpack.c.bf16 %v11726_v2, %v11724_v0  ;;  %v2581_v50 = vsel %vm15299_vm11, %v8819_v27, %v10754_v31 }
 0x6a1   : > { %7484 = vmatprep.subr.bf16.mxu1 %v7483_v42  ;;  %v8830_v30 = vunpack.i.h.bf16 %v8828_v60  ;;  %v8829_v61 = vunpack.i.l.bf16 %v8828_v60  ;;  %v8825_v63 = vunpack.i.h.bf16 %v8823_v35  ;;  %v8824_v43 = vunpack.i.l.bf16 %v8823_v35 }
 0x6a2   : > { %v2582_v57 = vsel %vm15288_vm4, %v8820_v20, %v10754_v31  ;;  %v15300_v9 = vpack.c.bf16 %v11744_v7, %v11742_v18  ;;  %v15303_v27 = vpack.c.bf16 %v11762_v36, %v11760_v48 }
 0x6a3   : > { %7514 = vmatpush3.bf16.msra.mxu0 %v7513_v52  ;;  %v2487_v37 = vsel %vm878_vm0, %v8829_v61, %v10729_v13  ;;  %v2534_v23 = vsel %vm884_vm3, %v8825_v63, %v10744_v24  ;;  %v2533_v0 = vsel %vm884_vm3, %v8824_v43, %v10744_v24  ;;  %v2488_v44 = vsel %vm878_vm0, %v8830_v30, %v10729_v13 }
 0x6a4   : > { %7486 = vmatpush3.bf16.msra.mxu1 %v15298_v56  ;;  %v8838_v2 = vpop.permute.xlu1 %8837  ;;  %v8833_v39 = vpop.permute.xlu0 %8832  ;;  %7516 = vmatprep.subr.bf16.mxu0 %v7515_v12  ;;  %v7491_v41 = vpack.c.bf16 %v2488_v44, %v2487_v37  ;;  %v7519_v28 = vpack.c.bf16 %v2582_v57, %v2581_v50  ;;  %v7521_v47 = vpack.c.bf16 %v2534_v23, %v2533_v0 }
 0x6a5   : > { %7488 = vmatprep.subr.bf16.mxu1 %v7487_v21  ;;  %v8840_v5 = vunpack.i.h.bf16 %v8838_v2  ;;  %v8839_v49 = vunpack.i.l.bf16 %v8838_v2  ;;  %v8835_v45 = vunpack.i.h.bf16 %v8833_v39  ;;  %v8834_v32 = vunpack.i.l.bf16 %v8833_v39 }
 0x6a6   : > { %v15306_v56 = vpack.c.bf16 %v11780_v46, %v11778_v59 }
 0x6a7   : > { %7518 = vmatpush3.bf16.msra.mxu0 %v7517_v4  ;;  %v2583_v1 = vsel %vm15301_vm7, %v8834_v32, %v10754_v31  ;;  %v2536_v54 = vsel %vm884_vm3, %v8840_v5, %v10744_v24  ;;  %v2535_v42 = vsel %vm884_vm3, %v8839_v49, %v10744_v24  ;;  %v2584_v18 = vsel %vm15302_vm8, %v8835_v45, %v10754_v31 }
 0x6a8   : > { %7490 = vmatpush3.bf16.msra.mxu1 %v15300_v9  ;;  %v8848_v17 = vpop.permute.xlu1 %8847  ;;  %v8843_v19 = vpop.permute.xlu0 %8842  ;;  %7520 = vmatprep.subr.bf16.mxu0 %v7519_v28  ;;  %v7523_v20 = vpack.c.bf16 %v2584_v18, %v2583_v1  ;;  %v7525_v30 = vpack.c.bf16 %v2536_v54, %v2535_v42  ;;  %v15309_v28 = vpack.c.bf16 %v11796_v26, %v11794_v3  ;;  %v2593_v9 = vld [vmem:[#allocation7 + $0x20] sm:$0xff]  ;;  %v2604_v1 = vld [vmem:[#allocation7 + $0x78] sm:$0xff]  ;;  %v2603_v42 = vld [vmem:[#allocation7 + $0x70] sm:$0xff] }
 0x6a9   : > { %7492 = vmatprep.subr.bf16.mxu1 %v7491_v41  ;;  %v8850_v7 = vunpack.i.h.bf16 %v8848_v17  ;;  %v8849_v34 = vunpack.i.l.bf16 %v8848_v17  ;;  %v8845_v8 = vunpack.i.h.bf16 %v8843_v19  ;;  %v8844_v55 = vunpack.i.l.bf16 %v8843_v19  ;;  %v2601_v54 = vld [vmem:[#allocation7 + $0x60] sm:$0xff] }
 0x6ab   : > { %7522 = vmatpush3.bf16.msra.mxu0 %v7521_v47  ;;  %v2489_v25 = vsel %vm878_vm0, %v8844_v55, %v10729_v13  ;;  %v2490_v11 = vsel %vm878_vm0, %v8845_v8, %v10729_v13  ;;  %v2585_v33 = vsel %vm15304_vm12, %v8849_v34, %v10754_v31  ;;  %v2586_v48 = vsel %vm15305_vm13, %v8850_v7, %v10754_v31  ;;  %v2602_v47 = vld [vmem:[#allocation7 + $0x68] sm:$0xff] }
 0x6ac   : > { %7494 = vmatpush3.bf16.msra.mxu1 %v15303_v27  ;;  %v8858_v60 = vpop.permute.xlu1 %8857  ;;  %v8853_v35 = vpop.permute.xlu0 %8852  ;;  %7524 = vmatprep.subr.bf16.mxu0 %v7523_v20  ;;  %v7495_v52 = vpack.c.bf16 %v2490_v11, %v2489_v25  ;;  %v7527_v21 = vpack.c.bf16 %v2586_v48, %v2585_v33  ;;  %vm3362_vm12 = vcmp.lt.s32.totalorder %v10725_v10, 22 }
 0x6ad   : > { %v8860_v36 = vunpack.i.h.bf16 %v8858_v60  ;;  %v8859_v61 = vunpack.i.l.bf16 %v8858_v60  ;;  %v8855_v63 = vunpack.i.h.bf16 %v8853_v35  ;;  %v8854_v43 = vunpack.i.l.bf16 %v8853_v35 }
 0x6ae   : > { %7496 = vmatprep.subr.bf16.mxu1 %v7495_v52 }
 0x6af   : > { %v2538_v12 = vsel %vm884_vm3, %v8855_v63, %v10744_v24  ;;  %v2537_v4 = vsel %vm884_vm3, %v8854_v43, %v10744_v24  ;;  %7526 = vmatpush3.bf16.msra.mxu0 %v7525_v30  ;;  %v2491_v37 = vsel %vm878_vm0, %v8859_v61, %v10729_v13  ;;  %v2492_v23 = vsel %vm878_vm0, %v8860_v36, %v10729_v13  ;;  %vm15308_vm0 = vmmov %vm15288_vm4 }
 0x6b0   : > { %7498 = vmatpush3.bf16.msra.mxu1 %v15306_v56  ;;  %v8868_v50 = vpop.permute.xlu1 %8867  ;;  %v8863_v57 = vpop.permute.xlu0 %8862  ;;  %7528 = vmatprep.subr.bf16.mxu0 %v7527_v21  ;;  %v7529_v0 = vpack.c.bf16 %v2538_v12, %v2537_v4  ;;  %v7499_v49 = vpack.c.bf16 %v2492_v23, %v2491_v37  ;;  %vm2977_vm4 = vcmp.eq.s32.totalorder %v10725_v10, 8 }
 0x6b1   : > { %v8870_v2 = vunpack.i.h.bf16 %v8868_v50  ;;  %v8869_v39 = vunpack.i.l.bf16 %v8868_v50  ;;  %v8865_v44 = vunpack.i.h.bf16 %v8863_v57  ;;  %v8864_v5 = vunpack.i.l.bf16 %v8863_v57  ;;  %vm7564_vm8 = vmpackc.low %vm2977_vm4, %vm2977_vm4 }
 0x6b2   : > { %7500 = vmatprep.subr.bf16.mxu1 %v7499_v49 }
 0x6b3   : > { %v2540_v59 = vsel %vm884_vm3, %v8870_v2, %v10744_v24  ;;  %v2539_v46 = vsel %vm884_vm3, %v8869_v39, %v10744_v24  ;;  %7530 = vmatpush3.bf16.msra.mxu0 %v7529_v0  ;;  %v2587_v45 = vsel %vm15307_vm5, %v8864_v5, %v10754_v31  ;;  %v2588_v13 = vsel %vm15308_vm0, %v8865_v44, %v10754_v31  ;;  %v2595_v24 = vld [vmem:[#allocation7 + $0x30] sm:$0xff] }
 0x6b4   : > { %v7531_v32 = vpack.c.bf16 %v2588_v13, %v2587_v45  ;;  %v7533_v41 = vpack.c.bf16 %v2540_v59, %v2539_v46  ;;  %7502 = vmatpush3.bf16.msra.mxu1 %v15309_v28  ;;  %v15311_v59 = vmov 0.0   ;;  %v3074_v46 = vld [vmem:[%s15033_s13 + $0x8] sm:$0xff]  ;;  %v3076_v45 = vld [vmem:[%s15033_s13 + $0x18] sm:$0xff] }
 0x6b5   : > { %v3078_v13 = vld [vmem:[%s15033_s13 + $0x28] sm:$0xff]  ;;  %v3084_v28 = vld [vmem:[%s15033_s13 + $0x58] sm:$0xff] }
 0x6b6   : > { %7532 = vmatprep.subr.bf16.mxu0 %v7531_v32  ;;  %v3080_v32 = vld [vmem:[%s15033_s13 + $0x38] sm:$0xff] }
 0x6b7   : > { %7534 = vmatpush3.bf16.msra.mxu0 %v7533_v41  ;;  %2832 = vmatmul.mubr.f32.vlgmr.msra.gmra.mrb[52].mxu1 %v2593_v9  ;;  %v3082_v41 = vld [vmem:[%s15033_s13 + $0x48] sm:$0xff] }
 0x6b8   : > { %2836 = vmatprep.mubr.f32.mxu1 %v2602_v47  ;;  %v3086_v9 = vld [vmem:[%s15033_s13 + $0x68] sm:$0xff]  ;;  %v3088_v47 = vld [vmem:[%s15033_s13 + $0x78] sm:$0xff] }
 0x6ba   : > { %2907 = vmatmul.mubr.f32.vlgmr.msra.gmra.mrb[60].mxu0 %v2595_v24 }
 0x6bb   : > { %2911 = vmatprep.mubr.f32.mxu0 %v2604_v1  ;;  %2837 = vmatmul.mubr.f32.gmra.mrb[54].mxu1 %v2601_v54 }
 0x6be   : > { %2912 = vmatmul.mubr.f32.gmra.mrb[62].mxu0 %v2603_v42 }
 0x6c1   : > { %v2610_v18 = vpop.permute.xlu0 %2609  ;;  %v2615_v11 = vpop.permute.xlu1 %2614 }
 0x769   : > { %v6499_v31 = vpop.f32.mrb[48].mxu1 }
 0x76a   : > { %v6500_v17 = vpop.f32.mrb[49].mxu1 }
 0x76b   : > { %v6501_v19 = vadd.f32 %v6500_v17, %v6499_v31  ;;  %v3057_v17 = vld [vmem:[#allocation8] sm:$0xff] }
 0x76c   : > { %7223 = vmatprep.mubr.f32.mxu1 %v3057_v17 }
 0x76d   : > { %v6502_v3 = vpop.f32.mrb[50].mxu1  ;;  %v6537_v26 = vpop.f32.mrb[56].mxu0  ;;  %v2684_v8 = vadd.f32 %v6501_v19, %v2610_v18  ;;  %v3073_v19 = vld [vmem:[%s15033_s13] sm:$0xff]  ;;  %v3075_v18 = vld [vmem:[%s15033_s13 + $0x10] sm:$0xff] }
 0x76e   : > { %v6503_v7 = vpop.f32.mrb[51].mxu1  ;;  %v6538_v34 = vpop.f32.mrb[57].mxu0 }
 0x76f   : > { %v6504_v55 = vadd.f32 %v6503_v7, %v6502_v3  ;;  %v6539_v20 = vadd.f32 %v6538_v34, %v6537_v26  ;;  %v3077_v3 = vld [vmem:[%s15033_s13 + $0x20] sm:$0xff]  ;;  %v3079_v26 = vld [vmem:[%s15033_s13 + $0x30] sm:$0xff] }
 0x770   : > { %v3081_v7 = vld [vmem:[%s15033_s13 + $0x40] sm:$0xff]  ;;  %v3083_v34 = vld [vmem:[%s15033_s13 + $0x50] sm:$0xff] }
 0x771   : > { %v2759_v27 = vadd.f32 %v6539_v20, %v2684_v8  ;;  %v6540_v25 = vpop.f32.mrb[58].mxu0  ;;  %v2689_v60 = vadd.f32 %v6504_v55, %v2615_v11  ;;  %v3085_v8 = vld [vmem:[%s15033_s13 + $0x60] sm:$0xff]  ;;  %v3087_v55 = vld [vmem:[%s15033_s13 + $0x70] sm:$0xff] }
 0x772   : > { %v6541_v33 = vpop.f32.mrb[59].mxu0 }
 0x773   : > { %v6542_v35 = vadd.f32 %v6541_v33, %v6540_v25 }
 0x775   : > { %v2764_v52 = vadd.f32 %v6542_v35, %v2689_v60 }
 0x78a   : > { %v6575_v30 = vpop.f32.mrb[52].mxu1 }
 0x78b   : > { %v6576_v48 = vpop.f32.mrb[53].mxu1 }
 0x78c   : > { %v6577_v36 = vadd.f32 %v6576_v48, %v6575_v30 }
 0x78d   : > { %v6613_v61 = vpop.f32.mrb[60].mxu0 }
 0x78e   : > { %v6614_v63 = vpop.f32.mrb[61].mxu0  ;;  %v2834_v43 = vadd.f32 %v6577_v36, %v2759_v27  ;;  %v6578_v21 = vpop.f32.mrb[54].mxu1 }
 0x78f   : > { %v6615_v12 = vadd.f32 %v6614_v63, %v6613_v61  ;;  %v6579_v4 = vpop.f32.mrb[55].mxu1 }
 0x790   : > { %v6580_v56 = vadd.f32 %v6579_v4, %v6578_v21 }
 0x791   : > { %v2909_v37 = vadd.f32 %v6615_v12, %v2834_v43  ;;  %v6616_v50 = vpop.f32.mrb[62].mxu0 }
 0x792   : > { %v6617_v57 = vpop.f32.mrb[63].mxu0  ;;  %v2839_v23 = vadd.f32 %v6580_v56, %v2764_v52 }
 0x793   : > { %v6618_v0 = vadd.f32 %v6617_v57, %v6616_v50  ;;  %vm2917_vm3 = vcmp.ge.f32.partialorder %v2909_v37, 0.0  ;;  %v2919_v2 = vmul.f32 0.01, %v2909_v37 }
 0x795   : > { %v2914_v39 = vadd.f32 %v6618_v0, %v2839_v23  ;;  %v2921_v44 = vsel %vm2917_vm3, %v2909_v37, %v2919_v2 }
 0x796   : > { %2923 = vmax.xlane.f32.xlu0 %v2921_v44 }
 0x797   : > { %vm2918_vm11 = vcmp.ge.f32.partialorder %v2914_v39, 0.0  ;;  %v2920_v5 = vmul.f32 0.01, %v2914_v39 }
 0x799   : > { %v2922_v49 = vsel %vm2918_vm11, %v2914_v39, %v2920_v5 }
 0x79a   : > { %2925 = vmax.xlane.f32.xlu1 %v2922_v49 }
 0x7ab   : > { %8872 = vrot.lane.b32.xlu1 %v15311_v59, %s15310_s27 }
 0x7af   : > { %8877 = vrot.lane.b32.xlu1 %v15311_v59, %s15312_s30 }
 0x7b3   : > { %8882 = vrot.lane.b32.xlu1 %v15311_v59, %s15236_s28 }
 0x7b7   : > { %8887 = vrot.lane.b32.xlu1 %v15311_v59, %s15252_s22 }
 0x7bb   : > { %8892 = vrot.lane.b32.xlu1 %v15311_v59, %s15253_s11 }
 0x7bf   : > { %8897 = vrot.lane.b32.xlu1 %v15311_v59, %s15235_s4 }
 0x7c3   : > { %8937 = vrot.lane.b32.xlu1 %v15311_v59, %s15238_s5 }
 0x7c7   : > { %3096 = vperm.xlu1 %8299, %v3074_v46  }
 0x7cb   : > { %3106 = vperm.xlu1 %8299, %v3076_v45  }
 0x7cf   : > { %3116 = vperm.xlu1 %8299, %v3078_v13  }
 0x7d3   : > { %3126 = vperm.xlu1 %8299, %v3080_v32  }
 0x7d7   : > { %3136 = vperm.xlu1 %8299, %v3082_v41  }
 0x7db   : > { %3146 = vperm.xlu1 %8299, %v3084_v28  }
 0x7df   : > { %3156 = vperm.xlu1 %8299, %v3086_v9  }
 0x7e3   : > { %3166 = vperm.xlu1 %8299, %v3088_v47  }
 0x823   : > { %v12302_v24 = vpop.xlane.xlu0 %2923 }
 0x824   : > { %15313 = vst [vmem:[#allocation32_spill] sm:$0xff] %v12302_v24  ;;  %v2983_v54 = vsel %vm2977_vm4, %v12302_v24, 0.0 }
 0x827   : > { %v12304_v1 = vpop.xlane.xlu1 %2925 }
 0x828   : > { %15314 = vst [vmem:[#allocation33_spill] sm:$0xff] %v12304_v1  ;;  %v2985_v42 = vsel %vm2977_vm4, %v12304_v1, 0.0 }
 0x829   : > { %v8901_v31 = vpack.i.bf16 %v2985_v42, %v2983_v54 }
 0x82b   : > { %8902 = vrot.lane.b32.xlu0 %v8901_v31, %s15310_s27  ;;  %v8873_v20 = vpop.permute.xlu1 %8872 }
 0x82c   : > { %v8875_v11 = vunpack.i.h.bf16 %v8873_v20  ;;  %v8874_v33 = vunpack.i.l.bf16 %v8873_v20 }
 0x82f   : > { %8907 = vrot.lane.b32.xlu0 %v8901_v31, %s15312_s30  ;;  %v8878_v27 = vpop.permute.xlu1 %8877 }
 0x830   : > { %v8880_v30 = vunpack.i.h.bf16 %v8878_v27  ;;  %v8879_v48 = vunpack.i.l.bf16 %v8878_v27 }
 0x833   : > { %8912 = vrot.lane.b32.xlu0 %v8901_v31, %s15236_s28  ;;  %v8883_v25 = vpop.permute.xlu1 %8882 }
 0x834   : > { %v8885_v56 = vunpack.i.h.bf16 %v8883_v25  ;;  %v8884_v37 = vunpack.i.l.bf16 %v8883_v25 }
 0x837   : > { %8917 = vrot.lane.b32.xlu0 %v8901_v31, %s15252_s22  ;;  %v8888_v63 = vpop.permute.xlu1 %8887 }
 0x838   : > { %v8890_v5 = vunpack.i.h.bf16 %v8888_v63  ;;  %v8889_v49 = vunpack.i.l.bf16 %v8888_v63 }
 0x83b   : > { %8922 = vrot.lane.b32.xlu0 %v8901_v31, %s15253_s11  ;;  %v8893_v44 = vpop.permute.xlu1 %8892  ;;  %s15137_s11 = smov 21  }
 0x83c   : > { %v8895_v9 = vunpack.i.h.bf16 %v8893_v44  ;;  %v8894_v47 = vunpack.i.l.bf16 %v8893_v44  ;;  %v3067_v44 = vld [vmem:[#allocation8 + $0x50] sm:$0xff] }
 0x83f   : > { %8927 = vrot.lane.b32.xlu0 %v8901_v31, %s15235_s4  ;;  %s15148_s4 = smov 18  }
 0x843   : > { %8932 = vrot.lane.b32.xlu0 %v8901_v31, %s15238_s5  ;;  %v8898_v31 = vpop.permute.xlu1 %8897  ;;  %s15139_s5 = smov 23  }
 0x847   : > { %3091 = vperm.xlu0 %8300, %v3073_v19  }
 0x84b   : > { %3101 = vperm.xlu0 %8300, %v3075_v18  }
 0x84f   : > { %3111 = vperm.xlu0 %8300, %v3077_v3  }
 0x853   : > { %3121 = vperm.xlu0 %8300, %v3079_v26   ;;  %v8900_v26 = vunpack.i.h.bf16 %v8898_v31 }
 0x857   : > { %3131 = vperm.xlu0 %8300, %v3081_v7   ;;  %v8899_v7 = vunpack.i.l.bf16 %v8898_v31 }
 0x85b   : > { %3141 = vperm.xlu0 %8300, %v3083_v34  }
 0x85f   : > { %3151 = vperm.xlu0 %8300, %v3085_v8  }
 0x863   : > { %3161 = vperm.xlu0 %8300, %v3087_v55  }
 0x89d   : > { %v8903_v60 = vpop.permute.xlu0 %8902 }
 0x89e   : > { %v8905_v35 = vunpack.i.h.bf16 %v8903_v60  ;;  %v8904_v52 = vunpack.i.l.bf16 %v8903_v60 }
 0x8a0   : > { %v2995_v36 = vsel %vm836_vm15, %v8874_v33, %v8904_v52  ;;  %v2996_v61 = vsel %vm836_vm15, %v8875_v11, %v8905_v35  ;;  %v8938_v11 = vpop.permute.xlu1 %8937 }
 0x8a1   : > { %v8908_v43 = vpop.permute.xlu0 %8907  ;;  %v7535_v21 = vpack.c.bf16 %v2996_v61, %v2995_v36  ;;  %v8940_v33 = vunpack.i.h.bf16 %v8938_v11  ;;  %v8939_v60 = vunpack.i.l.bf16 %v8938_v11 }
 0x8a2   : > { %v8910_v12 = vunpack.i.h.bf16 %v8908_v43  ;;  %v8909_v4 = vunpack.i.l.bf16 %v8908_v43 }
 0x8a3   : > { %7536 = vmatprep.subr.bf16.mxu1 %v7535_v21 }
 0x8a4   : > { %7538 = vmatpush3.bf16.msra.mxu1 %v7535_v21  ;;  %v3005_v50 = vsel %vm842_vm2, %v8879_v48, %v8909_v4  ;;  %v3006_v57 = vsel %vm842_vm2, %v8880_v30, %v8910_v12  ;;  %v7563_v12 = vpack.c.bf16 %v12304_v1, %v12302_v24  ;;  %v3058_v4 = vld [vmem:[#allocation8 + $0x8] sm:$0xff] }
 0x8a5   : > { %v8913_v23 = vpop.permute.xlu0 %8912  ;;  %v7539_v0 = vpack.c.bf16 %v3006_v57, %v3005_v50  ;;  %v3061_v50 = vld [vmem:[#allocation8 + $0x20] sm:$0xff]  ;;  %v3062_v57 = vld [vmem:[#allocation8 + $0x28] sm:$0xff] }
 0x8a6   : > { %v8915_v2 = vunpack.i.h.bf16 %v8913_v23  ;;  %v8914_v39 = vunpack.i.l.bf16 %v8913_v23  ;;  %v3063_v23 = vld [vmem:[#allocation8 + $0x30] sm:$0xff] }
 0x8a7   : > { %7540 = vmatprep.subr.bf16.mxu1 %v7539_v0 }
 0x8a8   : > { %7542 = vmatpush3.bf16.msra.mxu1 %v7539_v0  ;;  %v3015_v46 = vsel %vm848_vm1, %v8884_v37, %v8914_v39  ;;  %v3016_v45 = vsel %vm848_vm1, %v8885_v56, %v8915_v2  ;;  %v3059_v56 = vld [vmem:[#allocation8 + $0x10] sm:$0xff]  ;;  %v3060_v37 = vld [vmem:[#allocation8 + $0x18] sm:$0xff]  ;;  %v3065_v2 = vld [vmem:[#allocation8 + $0x40] sm:$0xff] }
 0x8a9   : > { %v8918_v13 = vpop.permute.xlu0 %8917  ;;  %v7543_v32 = vpack.c.bf16 %v3016_v45, %v3015_v46  ;;  %v3064_v0 = vld [vmem:[#allocation8 + $0x38] sm:$0xff]  ;;  %v3066_v39 = vld [vmem:[#allocation8 + $0x48] sm:$0xff]  ;;  %v3071_v45 = vld [vmem:[#allocation8 + $0x70] sm:$0xff] }
 0x8aa   : > { %v8920_v41 = vunpack.i.h.bf16 %v8918_v13  ;;  %v8919_v28 = vunpack.i.l.bf16 %v8918_v13  ;;  %v3070_v46 = vld [vmem:[#allocation8 + $0x68] sm:$0xff]  ;;  %v3072_v13 = vld [vmem:[#allocation8 + $0x78] sm:$0xff] }
 0x8ab   : > { %7544 = vmatprep.subr.bf16.mxu1 %v7543_v32 }
 0x8ac   : > { %7546 = vmatpush3.bf16.msra.mxu1 %v7543_v32  ;;  %v3025_v54 = vsel %vm854_vm14, %v8889_v49, %v8919_v28  ;;  %v3026_v42 = vsel %vm854_vm14, %v8890_v5, %v8920_v41  ;;  %v3068_v5 = vld [vmem:[#allocation8 + $0x58] sm:$0xff]  ;;  %v3069_v49 = vld [vmem:[#allocation8 + $0x60] sm:$0xff]  ;;  %v3097_v32 = vpop.permute.xlu1 %3096 }
 0x8ad   : > { %v8923_v17 = vpop.permute.xlu0 %8922  ;;  %v7547_v19 = vpack.c.bf16 %v3026_v42, %v3025_v54 }
 0x8ae   : > { %v8925_v18 = vunpack.i.h.bf16 %v8923_v17  ;;  %v8924_v3 = vunpack.i.l.bf16 %v8923_v17 }
 0x8af   : > { %7548 = vmatprep.subr.bf16.mxu1 %v7547_v19 }
 0x8b0   : > { %7550 = vmatpush3.bf16.msra.mxu1 %v7547_v19  ;;  %v3035_v34 = vsel %vm860_vm6, %v8894_v47, %v8924_v3  ;;  %v3036_v8 = vsel %vm860_vm6, %v8895_v9, %v8925_v18  ;;  %vm15315_vm6 = vcmp.lt.s32.totalorder %v10725_v10, 1  ;;  %v3107_v28 = vpop.permute.xlu1 %3106 }
 0x8b1   : > { %v8928_v55 = vpop.permute.xlu0 %8927  ;;  %v7551_v20 = vpack.c.bf16 %v3036_v8, %v3035_v34  ;;  %vm15316_vm7 = vmmov %vm15315_vm6 }
 0x8b2   : > { %v8930_v27 = vunpack.i.h.bf16 %v8928_v55  ;;  %v8929_v25 = vunpack.i.l.bf16 %v8928_v55 }
 0x8b3   : > { %7552 = vmatprep.subr.bf16.mxu1 %v7551_v20 }
 0x8b4   : > { %7554 = vmatpush3.bf16.msra.mxu1 %v7551_v20  ;;  %v3045_v35 = vsel %vm866_vm10, %v8899_v7, %v8929_v25  ;;  %v3046_v52 = vsel %vm866_vm10, %v8900_v26, %v8930_v27  ;;  %v3117_v47 = vpop.permute.xlu1 %3116 }
 0x8b5   : > { %v8933_v30 = vpop.permute.xlu0 %8932  ;;  %v7555_v48 = vpack.c.bf16 %v3046_v52, %v3045_v35 }
 0x8b6   : > { %v8935_v36 = vunpack.i.h.bf16 %v8933_v30  ;;  %v8934_v61 = vunpack.i.l.bf16 %v8933_v30 }
 0x8b7   : > { %7556 = vmatprep.subr.bf16.mxu1 %v7555_v48 }
 0x8b8   : > { %7558 = vmatpush3.bf16.msra.mxu1 %v7555_v48  ;;  %v3055_v63 = vsel %vm15315_vm6, %v8939_v60, %v8934_v61  ;;  %v3056_v43 = vsel %vm15316_vm7, %v8940_v33, %v8935_v36  ;;  %v3127_v3 = vpop.permute.xlu1 %3126 }
 0x8b9   : > { %v7559_v21 = vpack.c.bf16 %v3056_v43, %v3055_v63 }
 0x8bb   : > { %7560 = vmatprep.subr.bf16.mxu1 %v7559_v21 }
 0x8bc   : > { %7562 = vmatpush3.bf16.msra.mxu1 %v7559_v21  ;;  %v3137_v63 = vpop.permute.xlu1 %3136 }
 0x8bd   : > { %7565 = vmatprep.subr.msk.bf16.mxu1 %vm7564_vm8, %v7563_v12 }
 0x8c0   : > { %7568 = vmatpush3.bf16.msk.msra.mxu1 %vm7564_vm8, %v7563_v12 }
 0x8c3   : > { %7224 = vmatmul.mubr.f32.vlgmr.msra.gmra.mrb[56].mxu1 %v3058_v4 }
 0x8c4   : > { %7226 = vmatprep.mubr.f32.mxu1 %v3059_v56 }
 0x8c6   : > { %v3092_v41 = vpop.permute.xlu0 %3091 }
 0x8c7   : > { %7227 = vmatmul.mubr.f32.gmra.mrb[58].mxu1 %v3060_v37 }
 0x8c8   : > { %7229 = vmatprep.mubr.f32.mxu1 %v3061_v50 }
 0x8ca   : > { %v3102_v9 = vpop.permute.xlu0 %3101 }
 0x8cb   : > { %7230 = vmatmul.mubr.f32.gmra.mrb[60].mxu1 %v3062_v57 }
 0x8cc   : > { %7232 = vmatprep.mubr.f32.mxu1 %v3063_v23 }
 0x8ce   : > { %v3112_v54 = vpop.permute.xlu0 %3111 }
 0x8cf   : > { %7233 = vmatmul.mubr.f32.gmra.mrb[62].mxu1 %v3064_v0 }
 0x8d0   : > { %7235 = vmatprep.mubr.f32.mxu1 %v3065_v2 }
 0x8d2   : > { %v3122_v34 = vpop.permute.xlu0 %3121 }
 0x8d3   : > { %7236 = vmatmul.mubr.f32.gmra.mrb[64].mxu1 %v3066_v39 }
 0x8d4   : > { %7238 = vmatprep.mubr.f32.mxu1 %v3067_v44 }
 0x8d6   : > { %v3132_v4 = vpop.permute.xlu0 %3131 }
 0x8d7   : > { %7239 = vmatmul.mubr.f32.gmra.mrb[66].mxu1 %v3068_v5 }
 0x8d8   : > { %7241 = vmatprep.mubr.f32.mxu1 %v3069_v49 }
 0x8db   : > { %7242 = vmatmul.mubr.f32.gmra.mrb[68].mxu1 %v3070_v46 }
 0x8dc   : > { %7244 = vmatprep.mubr.f32.mxu1 %v3071_v45 }
 0x8df   : > { %7245 = vmatmul.mubr.f32.gmra.mrb[70].mxu1 %v3072_v13  ;;  %v3147_v13 = vpop.permute.xlu1 %3146 }
 0x996   : > { %v7225_v42 = vpop.f32.mrb[56].mxu1 }
 0x997   : > { %v3241_v31 = vadd.f32 %v7225_v42, %v3097_v32  ;;  %v3235_v17 = vpop.f32.mrb[57].mxu1 }
 0x998   : > { %v3236_v19 = vadd.f32 %v3235_v17, %v3092_v41 }
 0x999   : > { %vm3315_vm10 = vcmp.ge.f32.partialorder %v3241_v31, 0.0  ;;  %v3331_v18 = vmul.f32 0.01, %v3241_v31 }
 0x99a   : > { %vm3314_vm13 = vcmp.ge.f32.partialorder %v3236_v19, 0.0  ;;  %v3330_v26 = vmul.f32 0.01, %v3236_v19  ;;  %v7228_v7 = vpop.f32.mrb[58].mxu1 }
 0x99b   : > { %v3347_v8 = vsel %vm3315_vm10, %v3241_v31, %v3331_v18  ;;  %v3251_v55 = vadd.f32 %v7228_v7, %v3107_v28  ;;  %v3245_v20 = vpop.f32.mrb[59].mxu1  ;;  %v3142_v28 = vpop.permute.xlu0 %3141 }
 0x99c   : > { %v3366_v27 = vsel %vm3362_vm12, %v3347_v8, 0.0  ;;  %v3346_v25 = vsel %vm3314_vm13, %v3236_v19, %v3330_v26  ;;  %v3246_v11 = vadd.f32 %v3245_v20, %v3102_v9  ;;  %v3157_v20 = vpop.permute.xlu1 %3156 }
 0x99d   : > { %v3365_v33 = vsel %vm3362_vm12, %v3346_v25, 0.0  ;;  %vm3317_vm5 = vcmp.ge.f32.partialorder %v3251_v55, 0.0  ;;  %v3333_v60 = vmul.f32 0.01, %v3251_v55 }
 0x99e   : > { %vm3316_vm0 = vcmp.ge.f32.partialorder %v3246_v11, 0.0  ;;  %v3332_v35 = vmul.f32 0.01, %v3246_v11  ;;  %v7231_v52 = vpop.f32.mrb[60].mxu1  ;;  %v8946_v30 = vpack.i.bf16 %v3366_v27, %v3365_v33 }
 0x99f   : > { %v3349_v48 = vsel %vm3317_vm5, %v3251_v55, %v3333_v60  ;;  %v3261_v36 = vadd.f32 %v7231_v52, %v3117_v47  ;;  %v3255_v61 = vpop.f32.mrb[61].mxu1  ;;  %v3152_v33 = vpop.permute.xlu0 %3151 }
 0x9a0   : > { %v3368_v43 = vsel %vm3362_vm12, %v3349_v48, 0.0  ;;  %v3348_v21 = vsel %vm3316_vm0, %v3246_v11, %v3332_v35  ;;  %v3256_v12 = vadd.f32 %v3255_v61, %v3112_v54  ;;  %8947 = vrot.lane.b32.xlu1 %v8946_v30, %s15317_s6  ;;  %8942 = vrot.lane.b32.xlu0 %v8946_v30, %s15318_s0 }
 0x9a1   : > { %v3367_v56 = vsel %vm3362_vm12, %v3348_v21, 0.0  ;;  %vm3319_vm3 = vcmp.ge.f32.partialorder %v3261_v36, 0.0  ;;  %v3335_v37 = vmul.f32 0.01, %v3261_v36 }
 0x9a2   : > { %vm3318_vm11 = vcmp.ge.f32.partialorder %v3256_v12, 0.0  ;;  %v3334_v50 = vmul.f32 0.01, %v3256_v12  ;;  %v7234_v57 = vpop.f32.mrb[62].mxu1  ;;  %v12387_v39 = vpack.i.bf16 %v3368_v43, %v3367_v56 }
 0x9a3   : > { %v3351_v23 = vsel %vm3319_vm3, %v3261_v36, %v3335_v37  ;;  %v3271_v0 = vadd.f32 %v7234_v57, %v3127_v3  ;;  %v3265_v2 = vpop.f32.mrb[63].mxu1  ;;  %v3167_v37 = vpop.permute.xlu1 %3166 }
 0x9a4   : > { %v3370_v44 = vsel %vm3362_vm12, %v3351_v23, 0.0  ;;  %v3350_v5 = vsel %vm3318_vm11, %v3256_v12, %v3334_v50  ;;  %v3266_v49 = vadd.f32 %v3265_v2, %v3122_v34  ;;  %8957 = vrot.lane.b32.xlu1 %v8946_v30, %s15319_s10  ;;  %8952 = vrot.lane.b32.xlu0 %v8946_v30, %s15320_s12  ;;  %v3162_v23 = vpop.permute.xlu0 %3161 }
 0x9a5   : > { %v3369_v46 = vsel %vm3362_vm12, %v3350_v5, 0.0  ;;  %vm3321_vm4 = vcmp.ge.f32.partialorder %v3271_v0, 0.0  ;;  %v3337_v45 = vmul.f32 0.01, %v3271_v0 }
 0x9a6   : > { %vm3320_vm6 = vcmp.ge.f32.partialorder %v3266_v49, 0.0  ;;  %v3336_v32 = vmul.f32 0.01, %v3266_v49  ;;  %v7237_v41 = vpop.f32.mrb[64].mxu1  ;;  %v12399_v19 = vpack.i.bf16 %v3370_v44, %v3369_v46 }
 0x9a7   : > { %v3353_v9 = vsel %vm3321_vm4, %v3271_v0, %v3337_v45  ;;  %v3281_v47 = vadd.f32 %v7237_v41, %v3137_v63  ;;  %v3275_v54 = vpop.f32.mrb[65].mxu1  ;;  %vm15321_vm4 = vcmp.lt.s32.totalorder %v10725_v10, 11 }
 0x9a8   : > { %v3372_v42 = vsel %vm3362_vm12, %v3353_v9, 0.0  ;;  %v3352_v31 = vsel %vm3320_vm6, %v3266_v49, %v3336_v32  ;;  %v3276_v17 = vadd.f32 %v3275_v54, %v3132_v4  ;;  %8967 = vrot.lane.b32.xlu1 %v8946_v30, %s15310_s27  ;;  %8962 = vrot.lane.b32.xlu0 %v8946_v30, %s15312_s30  ;;  %vm15322_vm6 = vmmov %vm15321_vm4 }
 0x9a9   : > { %v3371_v18 = vsel %vm3362_vm12, %v3352_v31, 0.0  ;;  %vm3323_vm7 = vcmp.ge.f32.partialorder %v3281_v47, 0.0  ;;  %v3339_v3 = vmul.f32 0.01, %v3281_v47 }
 0x9aa   : > { %vm3322_vm8 = vcmp.ge.f32.partialorder %v3276_v17, 0.0  ;;  %v3338_v26 = vmul.f32 0.01, %v3276_v17  ;;  %v7240_v7 = vpop.f32.mrb[66].mxu1  ;;  %v9066_v36 = vpack.i.bf16 %v3372_v42, %v3371_v18 }
 0x9ab   : > { %v3355_v34 = vsel %vm3323_vm7, %v3281_v47, %v3339_v3  ;;  %v3291_v8 = vadd.f32 %v7240_v7, %v3147_v13  ;;  %v3285_v55 = vpop.f32.mrb[67].mxu1  ;;  %vm15323_vm7 = vcmp.lt.s32.totalorder %v10725_v10, 10 }
 0x9ac   : > { %v3374_v27 = vsel %vm3362_vm12, %v3355_v34, 0.0  ;;  %v3354_v25 = vsel %vm3322_vm8, %v3276_v17, %v3338_v26  ;;  %v3286_v11 = vadd.f32 %v3285_v55, %v3142_v28  ;;  %8977 = vrot.lane.b32.xlu1 %v8946_v30, %s15236_s28  ;;  %8972 = vrot.lane.b32.xlu0 %v8946_v30, %s15252_s22  ;;  %vm15324_vm8 = vmmov %vm15323_vm7 }
 0x9ad   : > { %v3373_v60 = vsel %vm3362_vm12, %v3354_v25, 0.0  ;;  %vm3325_vm10 = vcmp.ge.f32.partialorder %v3291_v8, 0.0  ;;  %v3341_v35 = vmul.f32 0.01, %v3291_v8 }
 0x9ae   : > { %vm3324_vm13 = vcmp.ge.f32.partialorder %v3286_v11, 0.0  ;;  %v3340_v52 = vmul.f32 0.01, %v3286_v11  ;;  %v7243_v48 = vpop.f32.mrb[68].mxu1  ;;  %v9106_v5 = vpack.i.bf16 %v3374_v27, %v3373_v60 }
 0x9af   : > { %v3357_v61 = vsel %vm3325_vm10, %v3291_v8, %v3341_v35  ;;  %v3301_v63 = vadd.f32 %v7243_v48, %v3157_v20  ;;  %v3295_v43 = vpop.f32.mrb[69].mxu1  ;;  %vm15325_vm10 = vcmp.lt.s32.totalorder %v10725_v10, 9 }
 0x9b0   : > { %v3376_v21 = vsel %vm3362_vm12, %v3357_v61, 0.0  ;;  %v3356_v12 = vsel %vm3324_vm13, %v3286_v11, %v3340_v52  ;;  %v3296_v4 = vadd.f32 %v3295_v43, %v3152_v33  ;;  %8987 = vrot.lane.b32.xlu1 %v12387_v39, %s15317_s6  ;;  %8982 = vrot.lane.b32.xlu0 %v12387_v39, %s15318_s0  ;;  %vm15326_vm13 = vmmov %vm15325_vm10 }
 0x9b1   : > { %v3375_v30 = vsel %vm3362_vm12, %v3356_v12, 0.0  ;;  %vm3327_vm5 = vcmp.ge.f32.partialorder %v3301_v63, 0.0  ;;  %v3343_v56 = vmul.f32 0.01, %v3301_v63 }
 0x9b2   : > { %vm3326_vm0 = vcmp.ge.f32.partialorder %v3296_v4, 0.0  ;;  %v3342_v50 = vmul.f32 0.01, %v3296_v4  ;;  %v7246_v57 = vpop.f32.mrb[70].mxu1  ;;  %v9126_v28 = vpack.i.bf16 %v3376_v21, %v3375_v30 }
 0x9b3   : > { %v3359_v0 = vsel %vm3327_vm5, %v3301_v63, %v3343_v56  ;;  %v3311_v2 = vadd.f32 %v7246_v57, %v3167_v37  ;;  %v3305_v44 = vpop.f32.mrb[71].mxu1  ;;  %v3829_v57 = vld [vmem:[%s15034_s14] sm:$0xff]  ;;  %vm15327_vm5 = vmmov %vm15321_vm4 }
 0x9b4   : > { %v3378_v49 = vsel %vm3362_vm12, %v3359_v0, 0.0  ;;  %v3358_v46 = vsel %vm3326_vm0, %v3296_v4, %v3342_v50  ;;  %v3306_v45 = vadd.f32 %v3305_v44, %v3162_v23  ;;  %8997 = vrot.lane.b32.xlu1 %v12387_v39, %s15319_s10  ;;  %8992 = vrot.lane.b32.xlu0 %v12387_v39, %s15320_s12  ;;  %v3830_v50 = vld [vmem:[%s15034_s14 + $0x8] sm:$0xff]  ;;  %v3831_v44 = vld [vmem:[%s15034_s14 + $0x10] sm:$0xff]  ;;  %vm15328_vm0 = vmmov %vm15321_vm4 }
 0x9b5   : > { %v3377_v13 = vsel %vm3362_vm12, %v3358_v46, 0.0  ;;  %vm3329_vm3 = vcmp.ge.f32.partialorder %v3311_v2, 0.0  ;;  %v3345_v32 = vmul.f32 0.01, %v3311_v2 }
 0x9b6   : > { %vm3328_vm11 = vcmp.ge.f32.partialorder %v3306_v45, 0.0  ;;  %v3344_v41 = vmul.f32 0.01, %v3306_v45  ;;  %v9146_v47 = vpack.i.bf16 %v3378_v49, %v3377_v13 }
 0x9b7   : > { %v3361_v9 = vsel %vm3329_vm3, %v3311_v2, %v3345_v32  ;;  %v3832_v2 = vld [vmem:[%s15034_s14 + $0x18] sm:$0xff]  ;;  %vm15329_vm3 = vmmov %vm15323_vm7 }
 0x9b8   : > { %v3380_v54 = vsel %vm3362_vm12, %v3361_v9, 0.0  ;;  %v3360_v42 = vsel %vm3328_vm11, %v3306_v45, %v3344_v41  ;;  %9007 = vrot.lane.b32.xlu1 %v12387_v39, %s15310_s27  ;;  %9002 = vrot.lane.b32.xlu0 %v12387_v39, %s15312_s30  ;;  %v3834_v9 = vld [vmem:[%s15034_s14 + $0x28] sm:$0xff]  ;;  %vm15330_vm11 = vmmov %vm15329_vm3 }
 0x9b9   : > { %v3379_v31 = vsel %vm3362_vm12, %v3360_v42, 0.0 }
 0x9ba   : > { %v12433_v17 = vpack.i.bf16 %v3380_v54, %v3379_v31 }
 0x9bc   : > { %9017 = vrot.lane.b32.xlu1 %v12387_v39, %s15236_s28  ;;  %9012 = vrot.lane.b32.xlu0 %v12387_v39, %s15252_s22  ;;  %v3766_v39 = vld [vmem:[#allocation10 + $0x8] sm:$0xff] }
 0x9bd   : > { %3941 = vmatprep.mubr.f32.mxu0 %v3766_v39 }
 0x9c0   : > { %9027 = vrot.lane.b32.xlu1 %v12399_v19, %s15317_s6  ;;  %9022 = vrot.lane.b32.xlu0 %v12399_v19, %s15318_s0 }
 0x9c4   : > { %9037 = vrot.lane.b32.xlu1 %v12399_v19, %s15319_s10  ;;  %9032 = vrot.lane.b32.xlu0 %v12399_v19, %s15320_s12 }
 0x9c8   : > { %9047 = vrot.lane.b32.xlu1 %v12399_v19, %s15310_s27  ;;  %9042 = vrot.lane.b32.xlu0 %v12399_v19, %s15312_s30 }
 0x9cc   : > { %9057 = vrot.lane.b32.xlu1 %v12399_v19, %s15236_s28  ;;  %9052 = vrot.lane.b32.xlu0 %v12399_v19, %s15252_s22  ;;  %v3768_v19 = vld [vmem:[#allocation10 + $0x18] sm:$0xff] }
 0x9cd   : > { %4046 = vmatprep.mubr.f32.mxu1 %v3768_v19 }
 0x9d0   : > { %9067 = vrot.lane.b32.xlu1 %v9066_v36, %s15317_s6  ;;  %9062 = vrot.lane.b32.xlu0 %v9066_v36, %s15318_s0 }
 0x9d4   : > { %9077 = vrot.lane.b32.xlu1 %v9066_v36, %s15319_s10  ;;  %9072 = vrot.lane.b32.xlu0 %v9066_v36, %s15320_s12 }
 0x9d8   : > { %9087 = vrot.lane.b32.xlu1 %v9066_v36, %s15310_s27  ;;  %9082 = vrot.lane.b32.xlu0 %v9066_v36, %s15312_s30 }
 0x9dc   : > { %9097 = vrot.lane.b32.xlu1 %v9066_v36, %s15236_s28  ;;  %9092 = vrot.lane.b32.xlu0 %v9066_v36, %s15252_s22 }
 0x9e0   : > { %9107 = vrot.lane.b32.xlu1 %v9106_v5, %s15317_s6  ;;  %9102 = vrot.lane.b32.xlu0 %v9106_v5, %s15318_s0 }
 0x9e4   : > { %9117 = vrot.lane.b32.xlu1 %v9106_v5, %s15319_s10  ;;  %9112 = vrot.lane.b32.xlu0 %v9106_v5, %s15320_s12 }
 0x9e8   : > { %9127 = vrot.lane.b32.xlu1 %v9126_v28, %s15317_s6  ;;  %9122 = vrot.lane.b32.xlu0 %v9126_v28, %s15318_s0 }
 0x9ec   : > { %9137 = vrot.lane.b32.xlu1 %v9126_v28, %s15319_s10  ;;  %9132 = vrot.lane.b32.xlu0 %v9126_v28, %s15320_s12 }
 0x9f0   : > { %9147 = vrot.lane.b32.xlu1 %v9146_v47, %s15317_s6  ;;  %9142 = vrot.lane.b32.xlu0 %v9146_v47, %s15318_s0 }
 0x9f4   : > { %9157 = vrot.lane.b32.xlu1 %v9146_v47, %s15319_s10  ;;  %9152 = vrot.lane.b32.xlu0 %v9146_v47, %s15320_s12 }
 0x9f8   : > { %9167 = vrot.lane.b32.xlu1 %v12433_v17, %s15317_s6  ;;  %9162 = vrot.lane.b32.xlu0 %v12433_v17, %s15318_s0 }
 0x9fc   : > { %9182 = vrot.lane.b32.xlu1 %v12433_v17, %s15319_s10  ;;  %9172 = vrot.lane.b32.xlu0 %v12433_v17, %s15320_s12 }
 0xa00   : > { %9187 = vrot.lane.b32.xlu1 %v9106_v5, %s15310_s27  ;;  %9177 = vrot.lane.b32.xlu0 %v9106_v5, %s15312_s30 }
 0xa04   : > { %9197 = vrot.lane.b32.xlu1 %v9106_v5, %s15236_s28  ;;  %9192 = vrot.lane.b32.xlu0 %v9106_v5, %s15252_s22 }
 0xa08   : > { %9207 = vrot.lane.b32.xlu1 %v9126_v28, %s15310_s27  ;;  %9202 = vrot.lane.b32.xlu0 %v9126_v28, %s15312_s30 }
 0xa0c   : > { %9217 = vrot.lane.b32.xlu1 %v9126_v28, %s15236_s28  ;;  %9212 = vrot.lane.b32.xlu0 %v9126_v28, %s15252_s22 }
 0xa10   : > { %9227 = vrot.lane.b32.xlu1 %v9146_v47, %s15310_s27  ;;  %9222 = vrot.lane.b32.xlu0 %v9146_v47, %s15312_s30 }
 0xa12   : > { %v8948_v18 = vpop.permute.xlu1 %8947  ;;  %v8943_v3 = vpop.permute.xlu0 %8942 }
 0xa13   : > { %v8950_v26 = vunpack.i.h.bf16 %v8948_v18  ;;  %v8949_v7 = vunpack.i.l.bf16 %v8948_v18  ;;  %v8945_v34 = vunpack.i.h.bf16 %v8943_v3  ;;  %v8944_v8 = vunpack.i.l.bf16 %v8943_v3 }
 0xa14   : > { %9237 = vrot.lane.b32.xlu1 %v9146_v47, %s15236_s28  ;;  %9232 = vrot.lane.b32.xlu0 %v9146_v47, %s15252_s22  ;;  %v3833_v47 = vld [vmem:[%s15034_s14 + $0x20] sm:$0xff] }
 0xa15   : > { %v3414_v55 = vsel %vm15321_vm4, %v10790_v58, %v8950_v26  ;;  %v3413_v20 = vsel %vm15322_vm6, %v10790_v58, %v8949_v7  ;;  %v3461_v27 = vsel %vm15323_vm7, %v10804_v6, %v8944_v8  ;;  %v3462_v25 = vsel %vm15324_vm8, %v10804_v6, %v8945_v34  ;;  %vm15331_vm4 = vmmov %vm15325_vm10 }
 0xa16   : > { %v8958_v11 = vpop.permute.xlu1 %8957  ;;  %v8953_v33 = vpop.permute.xlu0 %8952  ;;  %v7569_v60 = vpack.c.bf16 %v3462_v25, %v3461_v27  ;;  %v7571_v35 = vpack.c.bf16 %v3414_v55, %v3413_v20  ;;  %vm15332_vm6 = vmmov %vm15331_vm4  ;;  %v3836_v55 = vld [vmem:[%s15034_s14 + $0x38] sm:$0xff]  ;;  %v3835_v20 = vld [vmem:[%s15034_s14 + $0x30] sm:$0xff] }
 0xa17   : > { %v8960_v52 = vunpack.i.h.bf16 %v8958_v11  ;;  %v8959_v48 = vunpack.i.l.bf16 %v8958_v11  ;;  %v8955_v36 = vunpack.i.h.bf16 %v8953_v33  ;;  %v8954_v61 = vunpack.i.l.bf16 %v8953_v33  ;;  %vm15333_vm7 = vmmov %vm15328_vm0 }
 0xa18   : > { %9247 = vrot.lane.b32.xlu1 %v12433_v17, %s15310_s27  ;;  %9242 = vrot.lane.b32.xlu0 %v12433_v17, %s15312_s30  ;;  %vm15334_vm8 = vmmov %vm15328_vm0  ;;  %s10273_s27 = smov 46   ;;  %s15140_s30 = smov 34  }
 0xa19   : > { %v3510_v63 = vsel %vm15325_vm10, %v10814_v16, %v8960_v52  ;;  %v3509_v43 = vsel %vm15326_vm13, %v10814_v16, %v8959_v48  ;;  %7570 = vmatprep.subr.bf16.mxu0 %v7569_v60  ;;  %v3557_v21 = vsel %vm830_vm9, %v10821_v29, %v8954_v61  ;;  %v3558_v12 = vsel %vm830_vm9, %v10821_v29, %v8955_v36  ;;  %vm15335_vm10 = vmmov %vm15329_vm3 }
 0xa1a   : > { %7572 = vmatpush3.bf16.msra.mxu0 %v7571_v35  ;;  %v12523_v4 = vpop.permute.xlu1 %8967  ;;  %v12525_v30 = vpop.permute.xlu0 %8962  ;;  %v7601_v56 = vpack.c.bf16 %v3558_v12, %v3557_v21  ;;  %v7603_v37 = vpack.c.bf16 %v3510_v63, %v3509_v43  ;;  %vm15336_vm13 = vmmov %vm15329_vm3 }
 0xa1c   : > { %9257 = vrot.lane.b32.xlu1 %v12433_v17, %s15236_s28  ;;  %9252 = vrot.lane.b32.xlu0 %v12433_v17, %s15252_s22  ;;  %s15371_s28 = smov 13   ;;  %s10264_s22 = smov 17  }
 0xa1d   : > { %7602 = vmatprep.subr.bf16.mxu1 %v7601_v56 }
 0xa1e   : > { %7604 = vmatpush3.bf16.msra.mxu1 %v7603_v37  ;;  %v12537_v23 = vpop.permute.xlu1 %8977  ;;  %v12539_v0 = vpop.permute.xlu0 %8972 }
 0xa20   : > { %3844 = vperm.xlu1 %8299, %v3830_v50   ;;  %3839 = vperm.xlu0 %8300, %v3829_v57  }
 0xa22   : > { %v8988_v5 = vpop.permute.xlu1 %8987  ;;  %v8983_v49 = vpop.permute.xlu0 %8982 }
 0xa23   : > { %v8990_v46 = vunpack.i.h.bf16 %v8988_v5  ;;  %v8989_v45 = vunpack.i.l.bf16 %v8988_v5  ;;  %v8985_v13 = vunpack.i.h.bf16 %v8983_v49  ;;  %v8984_v32 = vunpack.i.l.bf16 %v8983_v49 }
 0xa24   : > { %3854 = vperm.xlu1 %8299, %v3832_v2   ;;  %3849 = vperm.xlu0 %8300, %v3831_v44  }
 0xa25   : > { %v3416_v41 = vsel %vm15327_vm5, %v10790_v58, %v8990_v46  ;;  %v3415_v28 = vsel %vm15328_vm0, %v10790_v58, %v8989_v45  ;;  %v3463_v54 = vsel %vm15329_vm3, %v10804_v6, %v8984_v32  ;;  %v3464_v42 = vsel %vm15330_vm11, %v10804_v6, %v8985_v13  ;;  %vm15337_vm5 = vmmov %vm15331_vm4 }
 0xa26   : > { %v8998_v31 = vpop.permute.xlu1 %8997  ;;  %v8993_v17 = vpop.permute.xlu0 %8992  ;;  %v7573_v39 = vpack.c.bf16 %v3464_v42, %v3463_v54  ;;  %v7575_v19 = vpack.c.bf16 %v3416_v41, %v3415_v28  ;;  %vm15338_vm0 = vmmov %vm15331_vm4 }
 0xa27   : > { %v9000_v18 = vunpack.i.h.bf16 %v8998_v31  ;;  %v8999_v3 = vunpack.i.l.bf16 %v8998_v31  ;;  %v8995_v26 = vunpack.i.h.bf16 %v8993_v17  ;;  %v8994_v7 = vunpack.i.l.bf16 %v8993_v17  ;;  %vm15339_vm3 = vmmov %vm15333_vm7 }
 0xa28   : > { %3864 = vperm.xlu1 %8299, %v3834_v9   ;;  %3859 = vperm.xlu0 %8300, %v3833_v47   ;;  %vm15340_vm11 = vmmov %vm15339_vm3 }
 0xa29   : > { %v3512_v34 = vsel %vm15331_vm4, %v10814_v16, %v9000_v18  ;;  %v3511_v8 = vsel %vm15332_vm6, %v10814_v16, %v8999_v3  ;;  %7574 = vmatprep.subr.bf16.mxu0 %v7573_v39  ;;  %v3559_v27 = vsel %vm830_vm9, %v10821_v29, %v8994_v7  ;;  %v3560_v25 = vsel %vm830_vm9, %v10821_v29, %v8995_v26  ;;  %vm15341_vm4 = vmmov %vm15335_vm10 }
 0xa2a   : > { %7576 = vmatpush3.bf16.msra.mxu0 %v7575_v19  ;;  %v12583_v11 = vpop.permute.xlu1 %9007  ;;  %v12585_v33 = vpop.permute.xlu0 %9002  ;;  %v7605_v60 = vpack.c.bf16 %v3560_v25, %v3559_v27  ;;  %v7607_v35 = vpack.c.bf16 %v3512_v34, %v3511_v8  ;;  %vm15342_vm6 = vmmov %vm15341_vm4 }
 0xa2c   : > { %3874 = vperm.xlu1 %8299, %v3836_v55   ;;  %3869 = vperm.xlu0 %8300, %v3835_v20  }
 0xa2d   : > { %7606 = vmatprep.subr.bf16.mxu1 %v7605_v60 }
 0xa2e   : > { %7608 = vmatpush3.bf16.msra.mxu1 %v7607_v35  ;;  %v12587_v52 = vpop.permute.xlu1 %9017  ;;  %v12589_v48 = vpop.permute.xlu0 %9012 }
 0xa32   : > { %v9028_v36 = vpop.permute.xlu1 %9027  ;;  %v9023_v61 = vpop.permute.xlu0 %9022 }
 0xa33   : > { %v9030_v63 = vunpack.i.h.bf16 %v9028_v36  ;;  %v9029_v43 = vunpack.i.l.bf16 %v9028_v36  ;;  %v9025_v21 = vunpack.i.h.bf16 %v9023_v61  ;;  %v9024_v12 = vunpack.i.l.bf16 %v9023_v61 }
 0xa35   : > { %v3418_v56 = vsel %vm15333_vm7, %v10790_v58, %v9030_v63  ;;  %v3417_v37 = vsel %vm15334_vm8, %v10790_v58, %v9029_v43  ;;  %v3465_v50 = vsel %vm15335_vm10, %v10804_v6, %v9024_v12  ;;  %v3466_v57 = vsel %vm15336_vm13, %v10804_v6, %v9025_v21  ;;  %vm15343_vm7 = vmmov %vm15338_vm0 }
 0xa36   : > { %v9038_v2 = vpop.permute.xlu1 %9037  ;;  %v9033_v44 = vpop.permute.xlu0 %9032  ;;  %v7577_v5 = vpack.c.bf16 %v3466_v57, %v3465_v50  ;;  %v7579_v49 = vpack.c.bf16 %v3418_v56, %v3417_v37  ;;  %vm15344_vm8 = vmmov %vm15338_vm0 }
 0xa37   : > { %v9040_v46 = vunpack.i.h.bf16 %v9038_v2  ;;  %v9039_v45 = vunpack.i.l.bf16 %v9038_v2  ;;  %v9035_v13 = vunpack.i.h.bf16 %v9033_v44  ;;  %v9034_v32 = vunpack.i.l.bf16 %v9033_v44  ;;  %vm15345_vm10 = vmmov %vm15339_vm3 }
 0xa38   : > { %7578 = vmatprep.subr.bf16.mxu0 %v7577_v5  ;;  %vm15346_vm13 = vmmov %vm15339_vm3 }
 0xa39   : > { %v3514_v41 = vsel %vm15337_vm5, %v10814_v16, %v9040_v46  ;;  %v3513_v28 = vsel %vm15338_vm0, %v10814_v16, %v9039_v45  ;;  %7580 = vmatpush3.bf16.msra.mxu0 %v7579_v49  ;;  %v3561_v9 = vsel %vm830_vm9, %v10821_v29, %v9034_v32  ;;  %v3562_v47 = vsel %vm830_vm9, %v10821_v29, %v9035_v13  ;;  %vm15347_vm5 = vmmov %vm15341_vm4 }
 0xa3a   : > { %v12615_v54 = vpop.permute.xlu1 %9047  ;;  %v12617_v42 = vpop.permute.xlu0 %9042  ;;  %v7609_v31 = vpack.c.bf16 %v3562_v47, %v3561_v9  ;;  %v7611_v17 = vpack.c.bf16 %v3514_v41, %v3513_v28  ;;  %v8970_v46 = vunpack.i.h.bf16 %v12523_v4  ;;  %v8969_v45 = vunpack.i.l.bf16 %v12523_v4  ;;  %vm15348_vm0 = vmmov %vm15341_vm4 }
 0xa3b   : > { %v8965_v41 = vunpack.i.h.bf16 %v12525_v30  ;;  %v8964_v28 = vunpack.i.l.bf16 %v12525_v30  ;;  %v8979_v30 = vunpack.i.l.bf16 %v12537_v23 }
 0xa3c   : > { %7610 = vmatprep.subr.bf16.mxu1 %v7609_v31  ;;  %v12662_v9 = vsel %vm836_vm15, %v10828_v38, %v8970_v46  ;;  %v12667_v47 = vsel %vm836_vm15, %v10828_v38, %v8969_v45 }
 0xa3d   : > { %7612 = vmatpush3.bf16.msra.mxu1 %v7611_v17 }
 0xa3e   : > { %v12619_v39 = vpop.permute.xlu1 %9057  ;;  %v12621_v19 = vpop.permute.xlu0 %9052 }
 0xa42   : > { %v9068_v18 = vpop.permute.xlu1 %9067  ;;  %v9063_v3 = vpop.permute.xlu0 %9062 }
 0xa43   : > { %v9070_v26 = vunpack.i.h.bf16 %v9068_v18  ;;  %v9069_v7 = vunpack.i.l.bf16 %v9068_v18  ;;  %v9065_v34 = vunpack.i.h.bf16 %v9063_v3  ;;  %v9064_v8 = vunpack.i.l.bf16 %v9063_v3 }
 0xa45   : > { %v3420_v55 = vsel %vm15339_vm3, %v10790_v58, %v9070_v26  ;;  %v3419_v20 = vsel %vm15340_vm11, %v10790_v58, %v9069_v7  ;;  %v3467_v27 = vsel %vm15341_vm4, %v10804_v6, %v9064_v8  ;;  %v3468_v25 = vsel %vm15342_vm6, %v10804_v6, %v9065_v34  ;;  %vm15349_vm3 = vmmov %vm15343_vm7 }
 0xa46   : > { %v9078_v60 = vpop.permute.xlu1 %9077  ;;  %v9073_v35 = vpop.permute.xlu0 %9072  ;;  %v7581_v36 = vpack.c.bf16 %v3468_v25, %v3467_v27  ;;  %v7583_v61 = vpack.c.bf16 %v3420_v55, %v3419_v20  ;;  %v8980_v7 = vunpack.i.h.bf16 %v12537_v23  ;;  %v12674_v34 = vsel %vm842_vm2, %v10835_v53, %v8964_v28  ;;  %vm15350_vm11 = vmmov %vm15349_vm3 }
 0xa47   : > { %v9080_v63 = vunpack.i.h.bf16 %v9078_v60  ;;  %v9079_v43 = vunpack.i.l.bf16 %v9078_v60  ;;  %v9075_v21 = vunpack.i.h.bf16 %v9073_v35  ;;  %v9074_v12 = vunpack.i.l.bf16 %v9073_v35  ;;  %vm15351_vm4 = vmmov %vm15345_vm10 }
 0xa48   : > { %7582 = vmatprep.subr.bf16.mxu0 %v7581_v36  ;;  %v12679_v8 = vsel %vm842_vm2, %v10835_v53, %v8965_v41  ;;  %v8975_v25 = vunpack.i.h.bf16 %v12539_v0  ;;  %v8974_v60 = vunpack.i.l.bf16 %v12539_v0  ;;  %vm15352_vm6 = vmmov %vm15351_vm4 }
 0xa49   : > { %v3516_v56 = vsel %vm15343_vm7, %v10814_v16, %v9080_v63  ;;  %v3515_v37 = vsel %vm15344_vm8, %v10814_v16, %v9079_v43  ;;  %7584 = vmatpush3.bf16.msra.mxu0 %v7583_v61  ;;  %v3563_v50 = vsel %vm830_vm9, %v10821_v29, %v9074_v12  ;;  %v3564_v57 = vsel %vm830_vm9, %v10821_v29, %v9075_v21  ;;  %vm15353_vm7 = vmmov %vm15348_vm0 }
 0xa4a   : > { %v12647_v2 = vpop.permute.xlu1 %9087  ;;  %v12649_v44 = vpop.permute.xlu0 %9082  ;;  %v7613_v5 = vpack.c.bf16 %v3564_v57, %v3563_v50  ;;  %v7615_v49 = vpack.c.bf16 %v3516_v56, %v3515_v37  ;;  %v12698_v37 = vsel %vm848_vm1, %v10842_v62, %v8980_v7  ;;  %v12703_v50 = vsel %vm848_vm1, %v10842_v62, %v8979_v30  ;;  %vm15354_vm8 = vmmov %vm15348_vm0 }
 0xa4b   : > { %v7633_v0 = vpack.c.bf16 %v12679_v8, %v12674_v34  ;;  %v7635_v57 = vpack.c.bf16 %v12662_v9, %v12667_v47  ;;  %v3774_v8 = vld [vmem:[#allocation10 + $0x48] sm:$0xff] }
 0xa4c   : > { %7614 = vmatprep.subr.bf16.mxu1 %v7613_v5 }
 0xa4d   : > { %7616 = vmatpush3.bf16.msra.mxu1 %v7615_v49 }
 0xa4e   : > { %v12653_v13 = vpop.permute.xlu1 %9097  ;;  %v12655_v32 = vpop.permute.xlu0 %9092 }
 0xa4f   : > { %v9094_v34 = vunpack.i.l.bf16 %v12655_v32 }
 0xa52   : > { %v9108_v31 = vpop.permute.xlu1 %9107  ;;  %v9103_v4 = vpop.permute.xlu0 %9102 }
 0xa53   : > { %v9110_v17 = vunpack.i.h.bf16 %v9108_v31  ;;  %v9109_v18 = vunpack.i.l.bf16 %v9108_v31  ;;  %v9105_v3 = vunpack.i.h.bf16 %v9103_v4  ;;  %v9104_v26 = vunpack.i.l.bf16 %v9103_v4 }
 0xa55   : > { %v3422_v55 = vsel %vm15345_vm10, %v10790_v58, %v9110_v17  ;;  %v3421_v20 = vsel %vm15346_vm13, %v10790_v58, %v9109_v18  ;;  %v3469_v23 = vsel %vm15347_vm5, %v10804_v6, %v9104_v26  ;;  %v3470_v27 = vsel %vm15348_vm0, %v10804_v6, %v9105_v3  ;;  %vm15355_vm10 = vmmov %vm15349_vm3 }
 0xa56   : > { %v9118_v35 = vpop.permute.xlu1 %9117  ;;  %v9113_v36 = vpop.permute.xlu0 %9112  ;;  %v7585_v61 = vpack.c.bf16 %v3470_v27, %v3469_v23  ;;  %v7587_v63 = vpack.c.bf16 %v3422_v55, %v3421_v20  ;;  %v12724_v17 = vsel %vm854_vm14, %v10849_v14, %v8974_v60  ;;  %v12729_v18 = vsel %vm854_vm14, %v10849_v14, %v8975_v25  ;;  %vm15356_vm13 = vmmov %vm15349_vm3 }
 0xa57   : > { %v9120_v43 = vunpack.i.h.bf16 %v9118_v35  ;;  %v9119_v21 = vunpack.i.l.bf16 %v9118_v35  ;;  %v9115_v12 = vunpack.i.h.bf16 %v9113_v36  ;;  %v9114_v56 = vunpack.i.l.bf16 %v9113_v36  ;;  %vm15357_vm5 = vmmov %vm15351_vm4 }
 0xa58   : > { %7586 = vmatprep.subr.bf16.mxu0 %v7585_v61  ;;  %v9010_v55 = vunpack.i.h.bf16 %v12583_v11  ;;  %v9009_v20 = vunpack.i.l.bf16 %v12583_v11  ;;  %v9005_v23 = vunpack.i.h.bf16 %v12585_v33  ;;  %v9004_v27 = vunpack.i.l.bf16 %v12585_v33  ;;  %vm15358_vm0 = vmmov %vm15351_vm4 }
 0xa59   : > { %v3518_v5 = vsel %vm15349_vm3, %v10814_v16, %v9120_v43  ;;  %v3517_v49 = vsel %vm15350_vm11, %v10814_v16, %v9119_v21  ;;  %7588 = vmatpush3.bf16.msra.mxu0 %v7587_v63  ;;  %v3565_v46 = vsel %vm830_vm9, %v10821_v29, %v9114_v56  ;;  %v3566_v45 = vsel %vm830_vm9, %v10821_v29, %v9115_v12  ;;  %vm15359_vm3 = vmmov %vm15353_vm7 }
 0xa5a   : > { %v9128_v41 = vpop.permute.xlu1 %9127  ;;  %v9123_v28 = vpop.permute.xlu0 %9122  ;;  %v7617_v31 = vpack.c.bf16 %v3566_v45, %v3565_v46  ;;  %v7619_v4 = vpack.c.bf16 %v3518_v5, %v3517_v49  ;;  %v7665_v43 = vpack.c.bf16 %v12729_v18, %v12724_v17  ;;  %v12754_v46 = vsel %vm836_vm15, %v10828_v38, %v9010_v55  ;;  %vm15360_vm11 = vmmov %vm15359_vm3 }
 0xa5b   : > { %v9130_v3 = vunpack.i.h.bf16 %v9128_v41  ;;  %v9129_v26 = vunpack.i.l.bf16 %v9128_v41  ;;  %v9125_v7 = vunpack.i.h.bf16 %v9123_v28  ;;  %v9124_v30 = vunpack.i.l.bf16 %v9123_v28 }
 0xa5c   : > { %7618 = vmatprep.subr.bf16.mxu1 %v7617_v31  ;;  %v12759_v45 = vsel %vm836_vm15, %v10828_v38, %v9009_v20  ;;  %v12764_v41 = vsel %vm842_vm2, %v10835_v53, %v9004_v27  ;;  %v12769_v28 = vsel %vm842_vm2, %v10835_v53, %v9005_v23 }
 0xa5d   : > { %v3424_v60 = vsel %vm15351_vm4, %v10790_v58, %v9130_v3  ;;  %v3423_v25 = vsel %vm15352_vm6, %v10790_v58, %v9129_v26  ;;  %7620 = vmatpush3.bf16.msra.mxu1 %v7619_v4  ;;  %v3471_v35 = vsel %vm15353_vm7, %v10804_v6, %v9124_v30  ;;  %v3472_v11 = vsel %vm15354_vm8, %v10804_v6, %v9125_v7  ;;  %vm15361_vm4 = vmmov %vm15355_vm10 }
 0xa5e   : > { %v9138_v36 = vpop.permute.xlu1 %9137  ;;  %v9133_v33 = vpop.permute.xlu0 %9132  ;;  %v7589_v61 = vpack.c.bf16 %v3472_v11, %v3471_v35  ;;  %v7591_v63 = vpack.c.bf16 %v3424_v60, %v3423_v25  ;;  %v9020_v7 = vunpack.i.h.bf16 %v12587_v52  ;;  %v9019_v30 = vunpack.i.l.bf16 %v12587_v52  ;;  %vm15362_vm6 = vmmov %vm15361_vm4 }
 0xa5f   : > { %v9140_v12 = vunpack.i.h.bf16 %v9138_v36  ;;  %v9139_v56 = vunpack.i.l.bf16 %v9138_v36  ;;  %v9135_v5 = vunpack.i.h.bf16 %v9133_v33  ;;  %v9134_v49 = vunpack.i.l.bf16 %v9133_v33  ;;  %vm15363_vm7 = vmmov %vm15358_vm0 }
 0xa60   : > { %7590 = vmatprep.subr.bf16.mxu0 %v7589_v61  ;;  %v9015_v36 = vunpack.i.h.bf16 %v12589_v48  ;;  %v9014_v33 = vunpack.i.l.bf16 %v12589_v48  ;;  %v7637_v61 = vpack.c.bf16 %v12769_v28, %v12764_v41  ;;  %vm15364_vm8 = vmmov %vm15358_vm0 }
 0xa61   : > { %v3520_v31 = vsel %vm15355_vm10, %v10814_v16, %v9140_v12  ;;  %v3519_v4 = vsel %vm15356_vm13, %v10814_v16, %v9139_v56  ;;  %7592 = vmatpush3.bf16.msra.mxu0 %v7591_v63  ;;  %v3567_v3 = vsel %vm830_vm9, %v10821_v29, %v9134_v49  ;;  %v3568_v26 = vsel %vm830_vm9, %v10821_v29, %v9135_v5  ;;  %vm15365_vm10 = vmmov %vm15359_vm3 }
 0xa62   : > { %v9148_v55 = vpop.permute.xlu1 %9147  ;;  %v9143_v20 = vpop.permute.xlu0 %9142  ;;  %v7621_v23 = vpack.c.bf16 %v3568_v26, %v3567_v3  ;;  %v7623_v27 = vpack.c.bf16 %v3520_v31, %v3519_v4  ;;  %v12806_v5 = vsel %vm848_vm1, %v10842_v62, %v9020_v7  ;;  %v12811_v49 = vsel %vm848_vm1, %v10842_v62, %v9019_v30  ;;  %vm15366_vm13 = vmmov %vm15359_vm3 }
 0xa63   : > { %v9150_v60 = vunpack.i.h.bf16 %v9148_v55  ;;  %v9149_v25 = vunpack.i.l.bf16 %v9148_v55  ;;  %v9145_v35 = vunpack.i.h.bf16 %v9143_v20  ;;  %v9144_v11 = vunpack.i.l.bf16 %v9143_v20 }
 0xa64   : > { %7622 = vmatprep.subr.bf16.mxu1 %v7621_v23  ;;  %v12818_v7 = vsel %vm854_vm14, %v10849_v14, %v9014_v33  ;;  %v12823_v30 = vsel %vm854_vm14, %v10849_v14, %v9015_v36  ;;  %v9045_v36 = vunpack.i.h.bf16 %v12617_v42  ;;  %v9085_v63 = vunpack.i.h.bf16 %v12649_v44 }
 0xa65   : > { %v3426_v52 = vsel %vm15357_vm5, %v10790_v58, %v9150_v60  ;;  %v3425_v12 = vsel %vm15358_vm0, %v10790_v58, %v9149_v25  ;;  %7624 = vmatpush3.bf16.msra.mxu1 %v7623_v27  ;;  %v3473_v48 = vsel %vm15359_vm3, %v10804_v6, %v9144_v11  ;;  %v3474_v56 = vsel %vm15360_vm11, %v10804_v6, %v9145_v35  ;;  %vm15367_vm5 = vmmov %vm15361_vm4 }
 0xa66   : > { %v9158_v31 = vpop.permute.xlu1 %9157  ;;  %v9153_v4 = vpop.permute.xlu0 %9152  ;;  %v7593_v3 = vpack.c.bf16 %v3474_v56, %v3473_v48  ;;  %v7595_v26 = vpack.c.bf16 %v3426_v52, %v3425_v12  ;;  %v9050_v60 = vunpack.i.h.bf16 %v12615_v54  ;;  %v9049_v25 = vunpack.i.l.bf16 %v12615_v54  ;;  %vm15368_vm0 = vmmov %vm15361_vm4 }
 0xa67   : > { %v9160_v55 = vunpack.i.h.bf16 %v9158_v31  ;;  %v9159_v20 = vunpack.i.l.bf16 %v9158_v31  ;;  %v9155_v23 = vunpack.i.h.bf16 %v9153_v4  ;;  %v9154_v27 = vunpack.i.l.bf16 %v9153_v4 }
 0xa68   : > { %7594 = vmatprep.subr.bf16.mxu0 %v7593_v3  ;;  %v9044_v52 = vunpack.i.l.bf16 %v12617_v42  ;;  %v9060_v42 = vunpack.i.h.bf16 %v12619_v39 }
 0xa69   : > { %v3522_v35 = vsel %vm15361_vm4, %v10814_v16, %v9160_v55  ;;  %v3521_v11 = vsel %vm15362_vm6, %v10814_v16, %v9159_v20  ;;  %7596 = vmatpush3.bf16.msra.mxu0 %v7595_v26  ;;  %v3569_v54 = vsel %vm830_vm9, %v10821_v29, %v9154_v27  ;;  %v3570_v33 = vsel %vm830_vm9, %v10821_v29, %v9155_v23 }
 0xa6a   : > { %v9168_v12 = vpop.permute.xlu1 %9167  ;;  %v9163_v48 = vpop.permute.xlu0 %9162  ;;  %v7625_v56 = vpack.c.bf16 %v3570_v33, %v3569_v54  ;;  %v7627_v31 = vpack.c.bf16 %v3522_v35, %v3521_v11  ;;  %v12842_v20 = vsel %vm836_vm15, %v10828_v38, %v9050_v60  ;;  %v12847_v23 = vsel %vm836_vm15, %v10828_v38, %v9049_v25 }
 0xa6b   : > { %v9170_v4 = vunpack.i.h.bf16 %v9168_v12  ;;  %v9169_v3 = vunpack.i.l.bf16 %v9168_v12  ;;  %v9165_v55 = vunpack.i.h.bf16 %v9163_v48  ;;  %v9164_v26 = vunpack.i.l.bf16 %v9163_v48 }
 0xa6c   : > { %v9059_v27 = vunpack.i.l.bf16 %v12619_v39  ;;  %7626 = vmatprep.subr.bf16.mxu1 %v7625_v56  ;;  %v9055_v39 = vunpack.i.h.bf16 %v12621_v19  ;;  %v9054_v54 = vunpack.i.l.bf16 %v12621_v19  ;;  %v12875_v19 = vsel %vm842_vm2, %v10835_v53, %v9045_v36 }
 0xa6d   : > { %v3428_v35 = vsel %vm15363_vm7, %v10790_v58, %v9170_v4  ;;  %v3427_v11 = vsel %vm15364_vm8, %v10790_v58, %v9169_v3  ;;  %7628 = vmatpush3.bf16.msra.mxu1 %v7627_v31  ;;  %v3475_v60 = vsel %vm15365_vm10, %v10804_v6, %v9164_v26  ;;  %v3476_v25 = vsel %vm15366_vm13, %v10804_v6, %v9165_v55 }
 0xa6e   : > { %v9183_v33 = vpop.permute.xlu1 %9182  ;;  %v9173_v12 = vpop.permute.xlu0 %9172  ;;  %v7597_v48 = vpack.c.bf16 %v3476_v25, %v3475_v60  ;;  %v7599_v56 = vpack.c.bf16 %v3428_v35, %v3427_v11  ;;  %v9084_v26 = vunpack.i.l.bf16 %v12649_v44  ;;  %v12870_v55 = vsel %vm842_vm2, %v10835_v53, %v9044_v52  ;;  %v3765_v44 = vld [vmem:[#allocation10] sm:$0xff] }
 0xa6f   : > { %v9185_v4 = vunpack.i.h.bf16 %v9183_v33  ;;  %v9184_v21 = vunpack.i.l.bf16 %v9183_v33  ;;  %v9175_v3 = vunpack.i.h.bf16 %v9173_v12  ;;  %v9174_v31 = vunpack.i.l.bf16 %v9173_v12 }
 0xa70   : > { %7598 = vmatprep.subr.bf16.mxu0 %v7597_v48  ;;  %v12892_v36 = vsel %vm848_vm1, %v10842_v62, %v9060_v42  ;;  %v12897_v25 = vsel %vm848_vm1, %v10842_v62, %v9059_v27  ;;  %v9089_v42 = vunpack.i.l.bf16 %v12647_v2  ;;  %v12916_v27 = vsel %vm854_vm14, %v10849_v14, %v9055_v39 }
 0xa71   : > { %v3524_v35 = vsel %vm15367_vm5, %v10814_v16, %v9185_v4  ;;  %v3523_v11 = vsel %vm15368_vm0, %v10814_v16, %v9184_v21  ;;  %7600 = vmatpush3.bf16.msra.mxu0 %v7599_v56  ;;  %v3571_v52 = vsel %vm830_vm9, %v10821_v29, %v9174_v31  ;;  %v3572_v60 = vsel %vm830_vm9, %v10821_v29, %v9175_v3  ;;  %v3767_v31 = vld [vmem:[#allocation10 + $0x10] sm:$0xff] }
 0xa72   : > { %v12899_v21 = vpop.permute.xlu1 %9187  ;;  %v12901_v33 = vpop.permute.xlu0 %9177  ;;  %7634 = vmatprep.subr.bf16.mxu0 %v7633_v0  ;;  %v7629_v12 = vpack.c.bf16 %v3572_v60, %v3571_v52  ;;  %v7631_v48 = vpack.c.bf16 %v3524_v35, %v3523_v11  ;;  %v9090_v56 = vunpack.i.h.bf16 %v12647_v2  ;;  %v12911_v4 = vsel %vm854_vm14, %v10849_v14, %v9054_v54  ;;  %v3781_v52 = vld [vmem:[#allocation10 + $0x80] sm:$0xff]  ;;  %v3775_v60 = vld [vmem:[#allocation10 + $0x50] sm:$0xff] }
 0xa73   : > { %v9095_v3 = vunpack.i.h.bf16 %v12655_v32  ;;  %v12923_v2 = vsel %vm842_vm2, %v10835_v53, %v9084_v26  ;;  %v12928_v0 = vsel %vm842_vm2, %v10835_v53, %v9085_v63  ;;  %v9100_v39 = vunpack.i.h.bf16 %v12653_v13  ;;  %v3773_v32 = vld [vmem:[#allocation10 + $0x40] sm:$0xff] }
 0xa74   : > { %3942 = vmatmul.mubr.f32.vlgmr.msra.gmra.mrb[64].mxu0 %v3765_v44  ;;  %7630 = vmatprep.subr.bf16.mxu1 %v7629_v12  ;;  %v9099_v54 = vunpack.i.l.bf16 %v12653_v13  ;;  %v7669_v26 = vpack.c.bf16 %v12823_v30, %v12818_v7  ;;  %v7671_v35 = vpack.c.bf16 %v12806_v5, %v12811_v49  ;;  %v7641_v13 = vpack.c.bf16 %v12875_v19, %v12870_v55  ;;  %v3776_v5 = vld [vmem:[#allocation10 + $0x58] sm:$0xff] }
 0xa75   : > { %7632 = vmatpush3.bf16.msra.mxu1 %v7631_v48  ;;  %7636 = vmatpush3.bf16.msra.mxu0 %v7635_v57  ;;  %v7643_v9 = vpack.c.bf16 %v12842_v20, %v12847_v23  ;;  %v7673_v47 = vpack.c.bf16 %v12916_v27, %v12911_v4  ;;  %v12956_v57 = vsel %vm836_vm15, %v10828_v38, %v9090_v56  ;;  %v9189_v28 = vunpack.i.l.bf16 %v12899_v21 }
 0xa76   : > { %v9198_v11 = vpop.permute.xlu1 %9197  ;;  %v12939_v63 = vpop.permute.xlu0 %9192  ;;  %7638 = vmatprep.subr.bf16.mxu0 %v7637_v61  ;;  %7666 = vmatprep.subr.bf16.mxu1 %v7665_v43  ;;  %v12961_v41 = vsel %vm836_vm15, %v10828_v38, %v9089_v42  ;;  %v7645_v17 = vpack.c.bf16 %v12928_v0, %v12923_v2  ;;  %v7675_v18 = vpack.c.bf16 %v12892_v36, %v12897_v25  ;;  %v9190_v43 = vunpack.i.h.bf16 %v12899_v21  ;;  %v3782_v61 = vld [vmem:[#allocation10 + $0x88] sm:$0xff] }
 0xa77   : > { %3946 = vmatprep.mubr.f32.mxu0 %v3774_v8  ;;  %v12972_v49 = vsel %vm854_vm14, %v10849_v14, %v9094_v34  ;;  %v12977_v7 = vsel %vm854_vm14, %v10849_v14, %v9095_v3  ;;  %v12982_v30 = vsel %vm848_vm1, %v10842_v62, %v9100_v39  ;;  %v12987_v20 = vsel %vm848_vm1, %v10842_v62, %v9099_v54  ;;  %v3790_v3 = vld [vmem:[#allocation10 + $0xc8] sm:$0xff]  ;;  %v3784_v34 = vld [vmem:[#allocation10 + $0x98] sm:$0xff]  ;;  %v3789_v39 = vld [vmem:[#allocation10 + $0xc0] sm:$0xff] }
 0xa78   : > { %3947 = vmatmul.mubr.f32.gmra.mrb[66].mxu0 %v3773_v32  ;;  %4047 = vmatmul.mubr.f32.vlgmr.msra.gmra.mrb[72].mxu1 %v3767_v31  ;;  %v9180_v23 = vunpack.i.h.bf16 %v12901_v33  ;;  %v9179_v55 = vunpack.i.l.bf16 %v12901_v33  ;;  %v15369_v19 = vpack.c.bf16 %v12754_v46, %v12759_v45  ;;  %v15370_v44 = vpack.c.bf16 %v12698_v37, %v12703_v50  ;;  %v3783_v54 = vld [vmem:[#allocation10 + $0x90] sm:$0xff] }
 0xa79   : > { %v9200_v21 = vunpack.i.h.bf16 %v9198_v11  ;;  %v9199_v12 = vunpack.i.l.bf16 %v9198_v11  ;;  %v9194_v48 = vunpack.i.l.bf16 %v12939_v63  ;;  %v7647_v33 = vpack.c.bf16 %v12956_v57, %v12961_v41  ;;  %3951 = vmatprep.mubr.f32.mxu0 %v3782_v61  ;;  %4051 = vmatprep.mubr.f32.mxu1 %v3776_v5  ;;  %v3792_v61 = vld [vmem:[#allocation10 + $0xd8] sm:$0xff] }
 0xa7a   : > { %7640 = vmatpush3.bf16.msra.mxu0 %v15369_v19  ;;  %7668 = vmatpush3.bf16.msra.mxu1 %v15370_v44  ;;  %v9208_v56 = vpop.permute.xlu1 %9207  ;;  %v9203_v42 = vpop.permute.xlu0 %9202  ;;  %v9195_v46 = vunpack.i.h.bf16 %v12939_v63  ;;  %v7677_v37 = vpack.c.bf16 %v12977_v7, %v12972_v49  ;;  %v13006_v50 = vsel %vm836_vm15, %v10828_v38, %v9190_v43  ;;  %v3613_v27 = vsel %vm836_vm15, %v10828_v38, %v9189_v28  ;;  %v3798_v28 = vld [vmem:[#allocation10 + $0x108] sm:$0xff] }
 0xa7b   : > { %7642 = vmatprep.subr.bf16.mxu0 %v7641_v13  ;;  %7670 = vmatprep.subr.bf16.mxu1 %v7669_v26  ;;  %v9210_v45 = vunpack.i.h.bf16 %v9208_v56  ;;  %v9209_v4 = vunpack.i.l.bf16 %v9208_v56  ;;  %v7679_v8 = vpack.c.bf16 %v12982_v30, %v12987_v20  ;;  %v9205_v2 = vunpack.i.h.bf16 %v9203_v42  ;;  %v3797_v30 = vld [vmem:[#allocation10 + $0x100] sm:$0xff]  ;;  %v3791_v20 = vld [vmem:[#allocation10 + $0xd0] sm:$0xff] }
 0xa7c   : > { %3952 = vmatmul.mubr.f32.gmra.mrb[68].mxu0 %v3781_v52  ;;  %4052 = vmatmul.mubr.f32.gmra.mrb[74].mxu1 %v3775_v60  ;;  %v9204_v0 = vunpack.i.l.bf16 %v9203_v42  ;;  %v3661_v32 = vsel %vm842_vm2, %v10835_v53, %v9179_v55  ;;  %v3662_v31 = vsel %vm842_vm2, %v10835_v53, %v9180_v23  ;;  %v13022_v26 = vsel %vm848_vm1, %v10842_v62, %v9200_v21 }
 0xa7d   : > { %v13027_v11 = vsel %vm848_vm1, %v10842_v62, %v9199_v12  ;;  %v3757_v13 = vsel %vm854_vm14, %v10849_v14, %v9194_v48  ;;  %v13040_v57 = vsel %vm836_vm15, %v10828_v38, %v9209_v4  ;;  %3956 = vmatprep.mubr.f32.mxu0 %v3790_v3  ;;  %4056 = vmatprep.mubr.f32.mxu1 %v3784_v34  ;;  %v3799_v4 = vld [vmem:[#allocation10 + $0x110] sm:$0xff]  ;;  %vm4403_vm8 = vcmp.lt.s32.totalorder %v10725_v10, 21 }
 0xa7e   : > { %7644 = vmatpush3.bf16.msra.mxu0 %v7643_v9  ;;  %7672 = vmatpush3.bf16.msra.mxu1 %v7671_v35  ;;  %v9218_v35 = vpop.permute.xlu1 %9217  ;;  %v9213_v63 = vpop.permute.xlu0 %9212  ;;  %v13035_v9 = vsel %vm836_vm15, %v10828_v38, %v9210_v45  ;;  %v7649_v43 = vpack.c.bf16 %v3662_v31, %v3661_v32  ;;  %v7651_v5 = vpack.c.bf16 %v13006_v50, %v3613_v27  ;;  %v3805_v45 = vld [vmem:[#allocation10 + $0x140] sm:$0xff]  ;;  %vm4350_vm10 = vcmp.lt.s32.totalorder %v10725_v10, 23 }
 0xa7f   : > { %7646 = vmatprep.subr.bf16.mxu0 %v7645_v17  ;;  %7674 = vmatprep.subr.bf16.mxu1 %v7673_v47  ;;  %v3758_v47 = vsel %vm854_vm14, %v10849_v14, %v9195_v46  ;;  %v9220_v41 = vunpack.i.h.bf16 %v9218_v35  ;;  %v9219_v17 = vunpack.i.l.bf16 %v9218_v35  ;;  %v9215_v49 = vunpack.i.h.bf16 %v9213_v63  ;;  %v3800_v46 = vld [vmem:[#allocation10 + $0x118] sm:$0xff]  ;;  %v3814_v35 = vld [vmem:[#allocation10 + $0x188] sm:$0xff] }
 0xa80   : > { %3957 = vmatmul.mubr.f32.gmra.mrb[70].mxu0 %v3789_v39  ;;  %4057 = vmatmul.mubr.f32.gmra.mrb[76].mxu1 %v3783_v54  ;;  %v9214_v7 = vunpack.i.l.bf16 %v9213_v63  ;;  %v3663_v23 = vsel %vm842_vm2, %v10835_v53, %v9204_v0  ;;  %v3664_v55 = vsel %vm842_vm2, %v10835_v53, %v9205_v2  ;;  %v7681_v52 = vpack.c.bf16 %v3758_v47, %v3757_v13  ;;  %v3808_v63 = vld [vmem:[#allocation10 + $0x158] sm:$0xff]  ;;  %v3813_v13 = vld [vmem:[#allocation10 + $0x180] sm:$0xff] }
 0xa81   : > { %v7655_v60 = vpack.c.bf16 %v13035_v9, %v13040_v57  ;;  %v7683_v36 = vpack.c.bf16 %v13022_v26, %v13027_v11  ;;  %3961 = vmatprep.mubr.f32.mxu0 %v3798_v28  ;;  %4061 = vmatprep.mubr.f32.mxu1 %v3792_v61  ;;  %v3712_v48 = vsel %vm848_vm1, %v10842_v62, %v9220_v41  ;;  %v3807_v9 = vld [vmem:[#allocation10 + $0x150] sm:$0xff]  ;;  %vm15151_vm13 = vcmp.lt.s32.totalorder %v10725_v10, 17 }
 0xa82   : > { %7648 = vmatpush3.bf16.msra.mxu0 %v7647_v33  ;;  %7676 = vmatpush3.bf16.msra.mxu1 %v7675_v18  ;;  %v9228_v19 = vpop.permute.xlu1 %9227  ;;  %v9223_v44 = vpop.permute.xlu0 %9222  ;;  %v3711_v56 = vsel %vm848_vm1, %v10842_v62, %v9219_v17  ;;  %v7653_v42 = vpack.c.bf16 %v3664_v55, %v3663_v23  ;;  %v3806_v33 = vld [vmem:[#allocation10 + $0x148] sm:$0xff]  ;;  %v3759_v50 = vsel %vm854_vm14, %v10849_v14, %v9214_v7  ;;  %vm15165_vm5 = vcmp.lt.s32.totalorder %v10725_v10, 19 }
 0xa83   : > { %7650 = vmatprep.subr.bf16.mxu0 %v7649_v43  ;;  %7678 = vmatprep.subr.bf16.mxu1 %v7677_v37  ;;  %v9230_v25 = vunpack.i.h.bf16 %v9228_v19  ;;  %v9229_v18 = vunpack.i.l.bf16 %v9228_v19  ;;  %v9225_v21 = vunpack.i.h.bf16 %v9223_v44  ;;  %v9224_v12 = vunpack.i.l.bf16 %v9223_v44  ;;  %v3822_v23 = vld [vmem:[#allocation10 + $0x1c8] sm:$0xff]  ;;  %v3816_v19 = vld [vmem:[#allocation10 + $0x198] sm:$0xff] }
 0xa84   : > { %3962 = vmatmul.mubr.f32.gmra.mrb[72].mxu0 %v3797_v30  ;;  %4062 = vmatmul.mubr.f32.gmra.mrb[78].mxu1 %v3791_v20  ;;  %v3760_v27 = vsel %vm854_vm14, %v10849_v14, %v9215_v49  ;;  %v7687_v47 = vpack.c.bf16 %v3712_v48, %v3711_v56  ;;  %vm15379_vm0 = vcmp.lt.s32.totalorder %v10725_v10, 13 }
 0xa85   : > { %v3665_v37 = vsel %vm842_vm2, %v10835_v53, %v9224_v12  ;;  %v3618_v3 = vsel %vm836_vm15, %v10828_v38, %v9230_v25  ;;  %v3617_v34 = vsel %vm836_vm15, %v10828_v38, %v9229_v18  ;;  %v3666_v0 = vsel %vm842_vm2, %v10835_v53, %v9225_v21  ;;  %3966 = vmatprep.mubr.f32.mxu0 %v3806_v33 }
 0xa86   : > { %7652 = vmatpush3.bf16.msra.mxu0 %v7651_v5  ;;  %7680 = vmatpush3.bf16.msra.mxu1 %v7679_v8  ;;  %v9238_v8 = vpop.permute.xlu1 %9237  ;;  %v9233_v2 = vpop.permute.xlu0 %9232  ;;  %v7657_v26 = vpack.c.bf16 %v3666_v0, %v3665_v37  ;;  %v7685_v11 = vpack.c.bf16 %v3760_v27, %v3759_v50  ;;  %v7659_v57 = vpack.c.bf16 %v3618_v3, %v3617_v34  ;;  %v3823_v27 = vld [vmem:[#allocation10 + $0x1d0] sm:$0xff]  ;;  %v3769_v0 = vld [vmem:[#allocation10 + $0x20] sm:$0xff] }
 0xa87   : > { %7654 = vmatprep.subr.bf16.mxu0 %v7653_v42  ;;  %7682 = vmatprep.subr.bf16.mxu1 %v7681_v52  ;;  %v9240_v39 = vunpack.i.h.bf16 %v9238_v8  ;;  %v9239_v54 = vunpack.i.l.bf16 %v9238_v8  ;;  %v9235_v32 = vunpack.i.h.bf16 %v9233_v2  ;;  %v9234_v31 = vunpack.i.l.bf16 %v9233_v2  ;;  %v3824_v42 = vld [vmem:[#allocation10 + $0x1d8] sm:$0xff] }
 0xa88   : > { %4066 = vmatprep.mubr.f32.mxu1 %v3800_v46  ;;  %3967 = vmatmul.mubr.f32.gmra.mrb[74].mxu0 %v3805_v45  ;;  %v3772_v2 = vld [vmem:[#allocation10 + $0x38] sm:$0xff] }
 0xa89   : > { %4067 = vmatmul.mubr.f32.gmra.mrb[80].mxu1 %v3799_v4  ;;  %v3761_v41 = vsel %vm854_vm14, %v10849_v14, %v9234_v31  ;;  %v3714_v17 = vsel %vm848_vm1, %v10842_v62, %v9240_v39  ;;  %v3713_v43 = vsel %vm848_vm1, %v10842_v62, %v9239_v54  ;;  %v3762_v5 = vsel %vm854_vm14, %v10849_v14, %v9235_v32  ;;  %v3770_v4 = vld [vmem:[#allocation10 + $0x28] sm:$0xff]  ;;  %v3771_v54 = vld [vmem:[#allocation10 + $0x30] sm:$0xff]  ;;  %v3777_v32 = vld [vmem:[#allocation10 + $0x60] sm:$0xff] }
 0xa8a   : > { %7656 = vmatpush3.bf16.msra.mxu0 %v7655_v60  ;;  %7684 = vmatpush3.bf16.msra.mxu1 %v7683_v36  ;;  %v9248_v28 = vpop.permute.xlu1 %9247  ;;  %v9243_v61 = vpop.permute.xlu0 %9242  ;;  %v7689_v55 = vpack.c.bf16 %v3762_v5, %v3761_v41  ;;  %v3821_v60 = vld [vmem:[#allocation10 + $0x1c0] sm:$0xff]  ;;  %v3815_v36 = vld [vmem:[#allocation10 + $0x190] sm:$0xff]  ;;  %v7691_v56 = vpack.c.bf16 %v3714_v17, %v3713_v43  ;;  %v3780_v31 = vld [vmem:[#allocation10 + $0x78] sm:$0xff] }
 0xa8b   : > { %7658 = vmatprep.subr.bf16.mxu0 %v7657_v26  ;;  %7686 = vmatprep.subr.bf16.mxu1 %v7685_v11  ;;  %v9250_v49 = vunpack.i.h.bf16 %v9248_v28  ;;  %v9249_v7 = vunpack.i.l.bf16 %v9248_v28  ;;  %v9245_v30 = vunpack.i.h.bf16 %v9243_v61  ;;  %v9244_v20 = vunpack.i.l.bf16 %v9243_v61  ;;  %v3786_v26 = vld [vmem:[#allocation10 + $0xa8] sm:$0xff]  ;;  %v3785_v11 = vld [vmem:[#allocation10 + $0xa0] sm:$0xff]  ;;  %v3795_v41 = vld [vmem:[#allocation10 + $0xf0] sm:$0xff] }
 0xa8c   : > { %3971 = vmatprep.mubr.f32.mxu0 %v3814_v35  ;;  %4071 = vmatprep.mubr.f32.mxu1 %v3808_v63  ;;  %v3788_v35 = vld [vmem:[#allocation10 + $0xb8] sm:$0xff]  ;;  %v3794_v63 = vld [vmem:[#allocation10 + $0xe8] sm:$0xff]  ;;  %v3801_v17 = vld [vmem:[#allocation10 + $0x120] sm:$0xff] }
 0xa8d   : > { %3972 = vmatmul.mubr.f32.gmra.mrb[76].mxu0 %v3813_v13  ;;  %4072 = vmatmul.mubr.f32.gmra.mrb[82].mxu1 %v3807_v9  ;;  %v3620_v44 = vsel %vm836_vm15, %v10828_v38, %v9250_v49  ;;  %v3619_v52 = vsel %vm836_vm15, %v10828_v38, %v9249_v7  ;;  %v3667_v25 = vsel %vm842_vm2, %v10835_v53, %v9244_v20  ;;  %v3787_v13 = vld [vmem:[#allocation10 + $0xb0] sm:$0xff]  ;;  %v3793_v9 = vld [vmem:[#allocation10 + $0xe0] sm:$0xff]  ;;  %v3804_v43 = vld [vmem:[#allocation10 + $0x138] sm:$0xff] }
 0xa8e   : > { %7660 = vmatpush3.bf16.msra.mxu0 %v7659_v57  ;;  %7688 = vmatpush3.bf16.msra.mxu1 %v7687_v47  ;;  %v9258_v18 = vpop.permute.xlu1 %9257  ;;  %v9253_v21 = vpop.permute.xlu0 %9252  ;;  %v3668_v12 = vsel %vm842_vm2, %v10835_v53, %v9245_v30  ;;  %v7663_v48 = vpack.c.bf16 %v3620_v44, %v3619_v52  ;;  %v3796_v57 = vld [vmem:[#allocation10 + $0xf8] sm:$0xff]  ;;  %v3802_v47 = vld [vmem:[#allocation10 + $0x128] sm:$0xff]  ;;  %v3803_v61 = vld [vmem:[#allocation10 + $0x130] sm:$0xff] }
 0xa8f   : > { %7690 = vmatprep.subr.bf16.mxu1 %v7689_v55  ;;  %3976 = vmatprep.mubr.f32.mxu0 %v3822_v23  ;;  %v9260_v38 = vunpack.i.h.bf16 %v9258_v18  ;;  %v9259_v33 = vunpack.i.l.bf16 %v9258_v18  ;;  %v9255_v46 = vunpack.i.h.bf16 %v9253_v21  ;;  %v9254_v45 = vunpack.i.l.bf16 %v9253_v21  ;;  %v3810_v28 = vld [vmem:[#allocation10 + $0x168] sm:$0xff]  ;;  %v3809_v5 = vld [vmem:[#allocation10 + $0x160] sm:$0xff]  ;;  %v3812_v49 = vld [vmem:[#allocation10 + $0x178] sm:$0xff] }
 0xa90   : > { %4076 = vmatprep.mubr.f32.mxu1 %v3816_v19  ;;  %v7661_v37 = vpack.c.bf16 %v3668_v12, %v3667_v25  ;;  %v3818_v7 = vld [vmem:[#allocation10 + $0x1a8] sm:$0xff]  ;;  %v3811_v30 = vld [vmem:[#allocation10 + $0x170] sm:$0xff]  ;;  %v3817_v20 = vld [vmem:[#allocation10 + $0x1a0] sm:$0xff] }
 0xa91   : > { %3977 = vmatmul.mubr.f32.gmra.mrb[78].mxu0 %v3821_v60  ;;  %4077 = vmatmul.mubr.f32.gmra.mrb[84].mxu1 %v3815_v36  ;;  %v3716_v50 = vsel %vm848_vm1, %v10842_v62, %v9260_v38  ;;  %v3715_v53 = vsel %vm848_vm1, %v10842_v62, %v9259_v33  ;;  %v3763_v3 = vsel %vm854_vm14, %v10849_v14, %v9254_v45  ;;  %v3778_v62 = vld [vmem:[#allocation10 + $0x68] sm:$0xff]  ;;  %v3820_v23 = vld [vmem:[#allocation10 + $0x1b8] sm:$0xff]  ;;  %v3819_v19 = vld [vmem:[#allocation10 + $0x1b0] sm:$0xff] }
 0xa92   : > { %7692 = vmatpush3.bf16.msra.mxu1 %v7691_v56  ;;  %4081 = vmatprep.mubr.f32.mxu1 %v3824_v42  ;;  %v3764_v34 = vsel %vm854_vm14, %v10849_v14, %v9255_v46  ;;  %v7695_v8 = vpack.c.bf16 %v3716_v50, %v3715_v53  ;;  %v3779_v14 = vld [vmem:[#allocation10 + $0x70] sm:$0xff]  ;;  %v3826_v55 = vld [vmem:[#allocation10 + $0x1e8] sm:$0xff]  ;;  %v3825_v44 = vld [vmem:[#allocation10 + $0x1e0] sm:$0xff]  ;;  %vm15153_vm14 = vcmp.lt.s32.totalorder %v10725_v10, 36 }
 0xa93   : > { %7662 = vmatprep.subr.bf16.mxu0 %v7661_v37  ;;  %4151 = vmatprep.mubr.f32.mxu0 %v3770_v4  ;;  %v7693_v39 = vpack.c.bf16 %v3764_v34, %v3763_v3  ;;  %v3828_v52 = vld [vmem:[#allocation10 + $0x1f8] sm:$0xff]  ;;  %v3827_v60 = vld [vmem:[#allocation10 + $0x1f0] sm:$0xff] }
 0xa94   : > { %7664 = vmatpush3.bf16.msra.mxu0 %v7663_v48 }
 0xa95   : > { %4082 = vmatmul.mubr.f32.gmra.mrb[86].mxu1 %v3823_v27  ;;  %7694 = vmatprep.subr.bf16.mxu1 %v7693_v39 }
 0xa96   : > { %4256 = vmatprep.mubr.f32.mxu1 %v3772_v2  ;;  %7696 = vmatpush3.bf16.msra.mxu1 %v7695_v8 }
 0xa97   : > { %4152 = vmatmul.mubr.f32.vlgmr.msra.gmra.mrb[80].mxu0 %v3769_v0 }
 0xa98   : > { %4156 = vmatprep.mubr.f32.mxu0 %v3778_v62 }
 0xa99   : > { %4257 = vmatmul.mubr.f32.vlgmr.msra.gmra.mrb[88].mxu1 %v3771_v54 }
 0xa9a   : > { %4261 = vmatprep.mubr.f32.mxu1 %v3780_v31 }
 0xa9b   : > { %4157 = vmatmul.mubr.f32.gmra.mrb[82].mxu0 %v3777_v32 }
 0xa9c   : > { %4161 = vmatprep.mubr.f32.mxu0 %v3786_v26 }
 0xa9d   : > { %4262 = vmatmul.mubr.f32.gmra.mrb[90].mxu1 %v3779_v14 }
 0xa9e   : > { %4266 = vmatprep.mubr.f32.mxu1 %v3788_v35 }
 0xa9f   : > { %4162 = vmatmul.mubr.f32.gmra.mrb[84].mxu0 %v3785_v11  ;;  %v3840_v21 = vpop.permute.xlu0 %3839  ;;  %v3845_v45 = vpop.permute.xlu1 %3844 }
 0xaa0   : > { %4166 = vmatprep.mubr.f32.mxu0 %v3794_v63 }
 0xaa1   : > { %4267 = vmatmul.mubr.f32.gmra.mrb[92].mxu1 %v3787_v13 }
 0xaa2   : > { %4271 = vmatprep.mubr.f32.mxu1 %v3796_v57 }
 0xaa3   : > { %4167 = vmatmul.mubr.f32.gmra.mrb[86].mxu0 %v3793_v9  ;;  %v3850_v2 = vpop.permute.xlu0 %3849  ;;  %v3855_v11 = vpop.permute.xlu1 %3854 }
 0xaa4   : > { %4171 = vmatprep.mubr.f32.mxu0 %v3802_v47 }
 0xaa5   : > { %4272 = vmatmul.mubr.f32.gmra.mrb[94].mxu1 %v3795_v41 }
 0xaa6   : > { %4276 = vmatprep.mubr.f32.mxu1 %v3804_v43 }
 0xaa7   : > { %4172 = vmatmul.mubr.f32.gmra.mrb[88].mxu0 %v3801_v17  ;;  %v3860_v43 = vpop.permute.xlu0 %3859 }
 0xaa8   : > { %4176 = vmatprep.mubr.f32.mxu0 %v3810_v28 }
 0xaa9   : > { %4277 = vmatmul.mubr.f32.gmra.mrb[96].mxu1 %v3803_v61 }
 0xaaa   : > { %4281 = vmatprep.mubr.f32.mxu1 %v3812_v49 }
 0xaab   : > { %4177 = vmatmul.mubr.f32.gmra.mrb[90].mxu0 %v3809_v5 }
 0xaac   : > { %4181 = vmatprep.mubr.f32.mxu0 %v3818_v7 }
 0xaad   : > { %4282 = vmatmul.mubr.f32.gmra.mrb[98].mxu1 %v3811_v30 }
 0xaae   : > { %4286 = vmatprep.mubr.f32.mxu1 %v3820_v23 }
 0xaaf   : > { %4182 = vmatmul.mubr.f32.gmra.mrb[92].mxu0 %v3817_v20 }
 0xab0   : > { %4186 = vmatprep.mubr.f32.mxu0 %v3826_v55  ;;  %v3865_v55 = vpop.permute.xlu1 %3864 }
 0xab1   : > { %4287 = vmatmul.mubr.f32.gmra.mrb[100].mxu1 %v3819_v19 }
 0xab2   : > { %4291 = vmatprep.mubr.f32.mxu1 %v3828_v52 }
 0xab3   : > { %4187 = vmatmul.mubr.f32.gmra.mrb[94].mxu0 %v3825_v44 }
 0xab5   : > { %4292 = vmatmul.mubr.f32.gmra.mrb[102].mxu1 %v3827_v60 }
 0xb47   : > { %v6683_v36 = vpop.f32.mrb[64].mxu0 }
 0xb48   : > { %v6684_v25 = vpop.f32.mrb[65].mxu0 }
 0xb49   : > { %v6685_v18 = vadd.f32 %v6684_v25, %v6683_v36 }
 0xb4b   : > { %v6686_v12 = vpop.f32.mrb[66].mxu0  ;;  %v6739_v48 = vpop.f32.mrb[72].mxu1  ;;  %v3944_v38 = vadd.f32 %v6685_v18, %v3840_v21 }
 0xb4c   : > { %v6687_v56 = vpop.f32.mrb[67].mxu0  ;;  %v6740_v42 = vpop.f32.mrb[73].mxu1 }
 0xb4d   : > { %v6688_v33 = vadd.f32 %v6687_v56, %v6686_v12  ;;  %v6741_v46 = vadd.f32 %v6740_v42, %v6739_v48  ;;  %v3870_v12 = vpop.permute.xlu0 %3869 }
 0xb4f   : > { %v13119_v4 = vadd.f32 %v6741_v46, %v3944_v38  ;;  %v6689_v37 = vpop.f32.mrb[68].mxu0  ;;  %v6742_v50 = vpop.f32.mrb[74].mxu1  ;;  %v3949_v3 = vadd.f32 %v6688_v33, %v3845_v45 }
 0xb50   : > { %v6690_v53 = vpop.f32.mrb[69].mxu0  ;;  %v6743_v27 = vpop.f32.mrb[75].mxu1 }
 0xb51   : > { %v6691_v34 = vadd.f32 %v6690_v53, %v6689_v37  ;;  %v6744_v8 = vadd.f32 %v6743_v27, %v6742_v50  ;;  %v3875_v27 = vpop.permute.xlu1 %3874 }
 0xb53   : > { %v13121_v0 = vadd.f32 %v6744_v8, %v3949_v3  ;;  %v6692_v39 = vpop.f32.mrb[70].mxu0  ;;  %v6745_v62 = vpop.f32.mrb[76].mxu1  ;;  %v3954_v31 = vadd.f32 %v6691_v34, %v3850_v2 }
 0xb54   : > { %v6693_v54 = vpop.f32.mrb[71].mxu0  ;;  %v6746_v32 = vpop.f32.mrb[77].mxu1 }
 0xb55   : > { %v6694_v26 = vadd.f32 %v6693_v54, %v6692_v39  ;;  %v6747_v14 = vadd.f32 %v6746_v32, %v6745_v62 }
 0xb57   : > { %v13123_v35 = vadd.f32 %v6747_v14, %v3954_v31  ;;  %v6695_v63 = vpop.f32.mrb[72].mxu0  ;;  %v6748_v13 = vpop.f32.mrb[78].mxu1  ;;  %v3959_v47 = vadd.f32 %v6694_v26, %v3855_v11 }
 0xb58   : > { %v6696_v9 = vpop.f32.mrb[73].mxu0  ;;  %v6749_v57 = vpop.f32.mrb[79].mxu1 }
 0xb59   : > { %v6697_v41 = vadd.f32 %v6696_v9, %v6695_v63  ;;  %v6750_v17 = vadd.f32 %v6749_v57, %v6748_v13 }
 0xb5b   : > { %v13125_v28 = vadd.f32 %v6750_v17, %v3959_v47  ;;  %v6698_v61 = vpop.f32.mrb[74].mxu0  ;;  %v3964_v30 = vadd.f32 %v6697_v41, %v3860_v43 }
 0xb5c   : > { %v6751_v5 = vpop.f32.mrb[80].mxu1  ;;  %v6699_v49 = vpop.f32.mrb[75].mxu0 }
 0xb5d   : > { %v6752_v7 = vpop.f32.mrb[81].mxu1  ;;  %v6700_v20 = vadd.f32 %v6699_v49, %v6698_v61 }
 0xb5e   : > { %v6753_v23 = vadd.f32 %v6752_v7, %v6751_v5 }
 0xb5f   : > { %v3969_v25 = vadd.f32 %v6700_v20, %v3865_v55 }
 0xb60   : > { %v13127_v19 = vadd.f32 %v6753_v23, %v3964_v30  ;;  %v6701_v44 = vpop.f32.mrb[76].mxu0  ;;  %v6754_v52 = vpop.f32.mrb[82].mxu1 }
 0xb61   : > { %v6702_v60 = vpop.f32.mrb[77].mxu0  ;;  %v6755_v36 = vpop.f32.mrb[83].mxu1 }
 0xb62   : > { %v6703_v18 = vadd.f32 %v6702_v60, %v6701_v44  ;;  %v6756_v21 = vadd.f32 %v6755_v36, %v6754_v52 }
 0xb64   : > { %v13129_v48 = vadd.f32 %v6756_v21, %v3969_v25  ;;  %v6704_v56 = vpop.f32.mrb[78].mxu0  ;;  %v6757_v42 = vpop.f32.mrb[84].mxu1  ;;  %v3974_v46 = vadd.f32 %v6703_v18, %v3870_v12 }
 0xb65   : > { %v6705_v38 = vpop.f32.mrb[79].mxu0  ;;  %v6758_v33 = vpop.f32.mrb[85].mxu1 }
 0xb66   : > { %v6706_v45 = vadd.f32 %v6705_v38, %v6704_v56  ;;  %v6759_v37 = vadd.f32 %v6758_v33, %v6757_v42 }
 0xb68   : > { %v13131_v50 = vadd.f32 %v6759_v37, %v3974_v46  ;;  %v6760_v53 = vpop.f32.mrb[86].mxu1  ;;  %v3979_v34 = vadd.f32 %v6706_v45, %v3875_v27 }
 0xb69   : > { %v6761_v3 = vpop.f32.mrb[87].mxu1 }
 0xb6a   : > { %v6795_v8 = vpop.f32.mrb[80].mxu0  ;;  %v6762_v2 = vadd.f32 %v6761_v3, %v6760_v53 }
 0xb6b   : > { %v6796_v39 = vpop.f32.mrb[81].mxu0 }
 0xb6c   : > { %v13133_v62 = vadd.f32 %v6762_v2, %v3979_v34  ;;  %v6797_v54 = vadd.f32 %v6796_v39, %v6795_v8  ;;  %v6851_v32 = vpop.f32.mrb[88].mxu1 }
 0xb6d   : > { %v6852_v14 = vpop.f32.mrb[89].mxu1 }
 0xb6e   : > { %v4154_v31 = vadd.f32 %v6797_v54, %v13119_v4  ;;  %v6798_v26 = vpop.f32.mrb[82].mxu0  ;;  %v6853_v63 = vadd.f32 %v6852_v14, %v6851_v32 }
 0xb6f   : > { %v6799_v11 = vpop.f32.mrb[83].mxu0 }
 0xb70   : > { %v6800_v13 = vadd.f32 %v6799_v11, %v6798_v26  ;;  %v4259_v9 = vadd.f32 %v6853_v63, %v4154_v31  ;;  %v6854_v57 = vpop.f32.mrb[90].mxu1 }
 0xb71   : > { %v6855_v17 = vpop.f32.mrb[91].mxu1 }
 0xb72   : > { %v4159_v47 = vadd.f32 %v6800_v13, %v13121_v0  ;;  %v6801_v41 = vpop.f32.mrb[84].mxu0  ;;  %v4305_v43 = vmul.f32 0.01, %v4259_v9  ;;  %v6856_v5 = vadd.f32 %v6855_v17, %v6854_v57  ;;  %vm4297_vm2 = vcmp.ge.f32.partialorder %v4259_v9, 0.0 }
 0xb73   : > { %v6802_v61 = vpop.f32.mrb[85].mxu0 }
 0xb74   : > { %v6803_v49 = vadd.f32 %v6802_v61, %v6801_v41  ;;  %v4264_v7 = vadd.f32 %v6856_v5, %v4159_v47  ;;  %v6857_v30 = vpop.f32.mrb[92].mxu1  ;;  %v4313_v55 = vsel %vm4297_vm2, %v4259_v9, %v4305_v43  ;;  %vm15380_vm2 = vmmov %vm15379_vm0 }
 0xb75   : > { %v6858_v23 = vpop.f32.mrb[93].mxu1  ;;  %v4324_v21 = vsel %vm15153_vm14, %v4313_v55, 0.0 }
 0xb76   : > { %v4164_v4 = vadd.f32 %v6803_v49, %v13123_v35  ;;  %v6804_v20 = vpop.f32.mrb[86].mxu0  ;;  %vm4298_vm15 = vcmp.ge.f32.partialorder %v4264_v7, 0.0  ;;  %v4306_v44 = vmul.f32 0.01, %v4264_v7  ;;  %v6859_v0 = vadd.f32 %v6858_v23, %v6857_v30 }
 0xb77   : > { %v6805_v52 = vpop.f32.mrb[87].mxu0 }
 0xb78   : > { %v6806_v60 = vadd.f32 %v6805_v52, %v6804_v20  ;;  %v4314_v36 = vsel %vm4298_vm15, %v4264_v7, %v4306_v44  ;;  %v4269_v25 = vadd.f32 %v6859_v0, %v4164_v4  ;;  %v6860_v18 = vpop.f32.mrb[94].mxu1  ;;  %vm15150_vm15 = vcmp.lt.s32.totalorder %v10725_v10, 20 }
 0xb79   : > { %v4325_v12 = vsel %vm15153_vm14, %v4314_v36, 0.0  ;;  %v6861_v42 = vpop.f32.mrb[95].mxu1 }
 0xb7a   : > { %v4169_v56 = vadd.f32 %v6806_v60, %v13125_v28  ;;  %v6807_v35 = vpop.f32.mrb[88].mxu0  ;;  %vm4299_vm1 = vcmp.ge.f32.partialorder %v4269_v25, 0.0  ;;  %v4307_v38 = vmul.f32 0.01, %v4269_v25  ;;  %v6862_v46 = vadd.f32 %v6861_v42, %v6860_v18 }
 0xb7b   : > { %v6808_v33 = vpop.f32.mrb[89].mxu0  ;;  %v13144_v45 = vpack.i.bf16 %v4325_v12, %v4324_v21 }
 0xb7c   : > { %v6809_v37 = vadd.f32 %v6808_v33, %v6807_v35  ;;  %v4315_v53 = vsel %vm4299_vm1, %v4269_v25, %v4307_v38  ;;  %v4274_v27 = vadd.f32 %v6862_v46, %v4169_v56  ;;  %v6863_v3 = vpop.f32.mrb[96].mxu1  ;;  %vm15382_vm1 = vcmp.lt.s32.totalorder %v10725_v10, 9 }
 0xb7d   : > { %9297 = vrot.lane.b32.xlu1 %v13144_v45, %s15148_s4  ;;  %v4326_v34 = vsel %vm15153_vm14, %v4315_v53, 0.0  ;;  %9262 = vrot.lane.b32.xlu0 %v13144_v45, %s15137_s11  ;;  %v6864_v2 = vpop.f32.mrb[97].mxu1 }
 0xb7e   : > { %v4174_v28 = vadd.f32 %v6809_v37, %v13127_v19  ;;  %v6810_v8 = vpop.f32.mrb[90].mxu0  ;;  %vm4300_vm3 = vcmp.ge.f32.partialorder %v4274_v27, 0.0  ;;  %v4308_v39 = vmul.f32 0.01, %v4274_v27  ;;  %v6865_v32 = vadd.f32 %v6864_v2, %v6863_v3  ;;  %v4737_v3 = vld [vmem:[#allocation11 + $0x8] sm:$0xff] }
 0xb7f   : > { %v6811_v54 = vpop.f32.mrb[91].mxu0  ;;  %v13156_v63 = vpack.i.bf16 %v4326_v34, %v15311_v59  ;;  %4856 = vmatprep.mubr.f32.mxu0 %v4737_v3 }
 0xb80   : > { %v6812_v31 = vadd.f32 %v6811_v54, %v6810_v8  ;;  %v4316_v26 = vsel %vm4300_vm3, %v4274_v27, %v4308_v39  ;;  %v4279_v14 = vadd.f32 %v6865_v32, %v4174_v28  ;;  %v6866_v11 = vpop.f32.mrb[98].mxu1  ;;  %vm15383_vm3 = vcmp.lt.s32.totalorder %v10725_v10, 16 }
 0xb81   : > { %9302 = vrot.lane.b32.xlu1 %v13144_v45, %s15371_s28  ;;  %v4327_v19 = vsel %vm15153_vm14, %v4316_v26, 0.0  ;;  %9267 = vrot.lane.b32.xlu0 %v13144_v45, %s15139_s5  ;;  %v6867_v57 = vpop.f32.mrb[99].mxu1 }
 0xb82   : > { %v4179_v13 = vadd.f32 %v6812_v31, %v13129_v48  ;;  %v6813_v9 = vpop.f32.mrb[92].mxu0  ;;  %vm4301_vm11 = vcmp.ge.f32.partialorder %v4279_v14, 0.0  ;;  %v4309_v47 = vmul.f32 0.01, %v4279_v14  ;;  %v6868_v17 = vadd.f32 %v6867_v57, %v6866_v11 }
 0xb83   : > { %v6814_v41 = vpop.f32.mrb[93].mxu0  ;;  %v13163_v61 = vpack.i.bf16 %v4327_v19, %v4326_v34  ;;  %v4739_v34 = vld [vmem:[#allocation11 + $0x18] sm:$0xff] }
 0xb84   : > { %v6815_v43 = vadd.f32 %v6814_v41, %v6813_v9  ;;  %v4317_v5 = vsel %vm4301_vm11, %v4279_v14, %v4309_v47  ;;  %v4284_v49 = vadd.f32 %v6868_v17, %v4179_v13  ;;  %v6869_v7 = vpop.f32.mrb[100].mxu1  ;;  %4941 = vmatprep.mubr.f32.mxu1 %v4739_v34  ;;  %vm15384_vm11 = vmmov %vm15383_vm3 }
 0xb85   : > { %9312 = vrot.lane.b32.xlu1 %v13144_v45, %s15319_s10  ;;  %v4328_v48 = vsel %vm15153_vm14, %v4317_v5, 0.0  ;;  %9272 = vrot.lane.b32.xlu0 %v13144_v45, %s10264_s22  ;;  %v6870_v20 = vpop.f32.mrb[101].mxu1 }
 0xb86   : > { %v4184_v30 = vadd.f32 %v6815_v43, %v13131_v50  ;;  %v6816_v4 = vpop.f32.mrb[94].mxu0  ;;  %vm4302_vm4 = vcmp.ge.f32.partialorder %v4284_v49, 0.0  ;;  %v4310_v23 = vmul.f32 0.01, %v4284_v49  ;;  %v6871_v44 = vadd.f32 %v6870_v20, %v6869_v7  ;;  %v4768_v20 = vld [vmem:[%s15035_s15] sm:$0xff] }
 0xb87   : > { %v6817_v55 = vpop.f32.mrb[95].mxu0  ;;  %v9386_v52 = vpack.i.bf16 %v4328_v48, %v4327_v19 }
 0xb88   : > { %v6818_v0 = vadd.f32 %v6817_v55, %v6816_v4  ;;  %v4318_v60 = vsel %vm4302_vm4, %v4284_v49, %v4310_v23  ;;  %v4289_v36 = vadd.f32 %v6871_v44, %v4184_v30  ;;  %v6872_v25 = vpop.f32.mrb[102].mxu1  ;;  %vm15152_vm4 = vcmp.lt.s32.totalorder %v10725_v10, 18 }
 0xb89   : > { %9322 = vrot.lane.b32.xlu1 %v13156_v63, %s15137_s11  ;;  %v4329_v50 = vsel %vm15153_vm14, %v4318_v60, 0.0  ;;  %9277 = vrot.lane.b32.xlu0 %v13144_v45, %s15146_s20  ;;  %v6873_v21 = vpop.f32.mrb[103].mxu1 }
 0xb8a   : > { %v4189_v18 = vadd.f32 %v6818_v0, %v13133_v62  ;;  %vm4303_vm6 = vcmp.ge.f32.partialorder %v4289_v36, 0.0  ;;  %v4311_v12 = vmul.f32 0.01, %v4289_v36  ;;  %v6874_v56 = vadd.f32 %v6873_v21, %v6872_v25 }
 0xb8b   : > { %v13179_v35 = vpack.i.bf16 %v4329_v50, %v4328_v48 }
 0xb8c   : > { %v4319_v42 = vsel %vm4303_vm6, %v4289_v36, %v4311_v12  ;;  %v4294_v38 = vadd.f32 %v6874_v56, %v4189_v18  ;;  %v4769_v56 = vld [vmem:[%s15035_s15 + $0x8] sm:$0xff]  ;;  %vm15385_vm6 = vmmov %vm15382_vm1 }
 0xb8d   : > { %9327 = vrot.lane.b32.xlu1 %v13156_v63, %s15139_s5  ;;  %v4330_v33 = vsel %vm15153_vm14, %v4319_v42, 0.0  ;;  %9282 = vrot.lane.b32.xlu0 %v13144_v45, %s15136_s26 }
 0xb8e   : > { %vm4304_vm7 = vcmp.ge.f32.partialorder %v4294_v38, 0.0  ;;  %v4312_v62 = vmul.f32 0.01, %v4294_v38  ;;  %v9436_v46 = vpack.i.bf16 %v4330_v33, %v4329_v50  ;;  %v4770_v50 = vld [vmem:[%s15035_s15 + $0x10] sm:$0xff] }
 0xb90   : > { %v4320_v37 = vsel %vm4304_vm7, %v4294_v38, %v4312_v62  ;;  %vm15386_vm7 = vcmp.lt.s32.totalorder %v10725_v10, 15 }
 0xb91   : > { %9332 = vrot.lane.b32.xlu1 %v13156_v63, %s10264_s22  ;;  %v4331_v53 = vsel %vm15153_vm14, %v4320_v37, 0.0  ;;  %9287 = vrot.lane.b32.xlu0 %v13144_v45, %s15138_s21  ;;  %vm5311_vm14 = vcmp.lt.s32.totalorder %v10725_v10, 37 }
 0xb92   : > { %v13193_v27 = vpack.i.bf16 %v4331_v53, %v4330_v33  ;;  %v4771_v33 = vld [vmem:[%s15035_s15 + $0x18] sm:$0xff] }
 0xb95   : > { %9337 = vrot.lane.b32.xlu1 %v13156_v63, %s15146_s20  ;;  %9292 = vrot.lane.b32.xlu0 %v13144_v45, %s15372_s1 }
 0xb99   : > { %9342 = vrot.lane.b32.xlu1 %v13156_v63, %s15136_s26  ;;  %9307 = vrot.lane.b32.xlu0 %v13144_v45, %s15373_s24 }
 0xb9d   : > { %9347 = vrot.lane.b32.xlu1 %v13156_v63, %s15138_s21  ;;  %9317 = vrot.lane.b32.xlu0 %v13144_v45, %s15317_s6 }
 0xba1   : > { %9357 = vrot.lane.b32.xlu1 %v13163_v61, %s15372_s1  ;;  %9352 = vrot.lane.b32.xlu0 %v13156_v63, %s15148_s4 }
 0xba5   : > { %9362 = vrot.lane.b32.xlu1 %v13163_v61, %s15371_s28  ;;  %9367 = vrot.lane.b32.xlu0 %v13163_v61, %s15373_s24 }
 0xba9   : > { %9372 = vrot.lane.b32.xlu1 %v13163_v61, %s15319_s10  ;;  %9377 = vrot.lane.b32.xlu0 %v13163_v61, %s15317_s6 }
 0xbad   : > { %9387 = vrot.lane.b32.xlu1 %v9386_v52, %s15139_s5  ;;  %9382 = vrot.lane.b32.xlu0 %v9386_v52, %s15137_s11 }
 0xbb1   : > { %9397 = vrot.lane.b32.xlu1 %v9386_v52, %s15146_s20  ;;  %9392 = vrot.lane.b32.xlu0 %v9386_v52, %s10264_s22 }
 0xbb5   : > { %9402 = vrot.lane.b32.xlu1 %v9386_v52, %s15136_s26  ;;  %9407 = vrot.lane.b32.xlu0 %v9386_v52, %s15138_s21 }
 0xbb9   : > { %9417 = vrot.lane.b32.xlu1 %v13179_v35, %s15372_s1  ;;  %9412 = vrot.lane.b32.xlu0 %v9386_v52, %s15148_s4 }
 0xbbd   : > { %9422 = vrot.lane.b32.xlu1 %v13179_v35, %s15371_s28  ;;  %9427 = vrot.lane.b32.xlu0 %v13179_v35, %s15373_s24 }
 0xbc1   : > { %9432 = vrot.lane.b32.xlu1 %v13179_v35, %s15319_s10  ;;  %9437 = vrot.lane.b32.xlu0 %v9436_v46, %s15137_s11 }
 0xbc5   : > { %9442 = vrot.lane.b32.xlu1 %v9436_v46, %s15139_s5  ;;  %9447 = vrot.lane.b32.xlu0 %v9436_v46, %s10264_s22 }
 0xbc9   : > { %9452 = vrot.lane.b32.xlu1 %v9436_v46, %s15146_s20  ;;  %9462 = vrot.lane.b32.xlu0 %v9436_v46, %s15138_s21 }
 0xbcd   : > { %9457 = vrot.lane.b32.xlu1 %v9436_v46, %s15136_s26  ;;  %9467 = vrot.lane.b32.xlu0 %v9436_v46, %s15148_s4 }
 0xbd1   : > { %4346 = vrot.lane.b32.xlu1 %v4331_v53, %s15139_s5  ;;  %4399 = vrot.lane.b32.xlu0 %v4331_v53, %s15137_s11 }
 0xbd5   : > { %4453 = vrot.lane.b32.xlu1 %v4331_v53, %s15146_s20  ;;  %4507 = vrot.lane.b32.xlu0 %v4331_v53, %s10264_s22 }
 0xbd9   : > { %9477 = vrot.lane.b32.xlu1 %v13144_v45, %s15374_s9  ;;  %9472 = vrot.lane.b32.xlu0 %v13179_v35, %s15317_s6 }
 0xbdd   : > { %9487 = vrot.lane.b32.xlu1 %v13144_v45, %s15320_s12  ;;  %9482 = vrot.lane.b32.xlu0 %v13144_v45, %s15375_s2 }
 0xbe1   : > { %4426 = vrot.lane.b32.xlu1 %v4331_v53, %s15136_s26  ;;  %9492 = vrot.lane.b32.xlu0 %v13144_v45, %s15318_s0 }
 0xbe5   : > { %9497 = vrot.lane.b32.xlu1 %v13193_v27, %s15372_s1  ;;  %4373 = vrot.lane.b32.xlu0 %v4331_v53, %s15138_s21 }
 0xbe9   : > { %9502 = vrot.lane.b32.xlu1 %v13163_v61, %s15374_s9  ;;  %4480 = vrot.lane.b32.xlu0 %v4331_v53, %s15148_s4 }
 0xbed   : > { %9512 = vrot.lane.b32.xlu1 %v13163_v61, %s15320_s12  ;;  %9507 = vrot.lane.b32.xlu0 %v13163_v61, %s15375_s2 }
 0xbef   : > { %v13266_v28 = vpop.permute.xlu1 %9297  ;;  %v9263_v45 = vpop.permute.xlu0 %9262 }
 0xbf0   : > { %v9265_v31 = vunpack.i.h.bf16 %v9263_v45  ;;  %v9264_v26 = vunpack.i.l.bf16 %v9263_v45 }
 0xbf1   : > { %9522 = vrot.lane.b32.xlu1 %v13193_v27, %s15371_s28  ;;  %9517 = vrot.lane.b32.xlu0 %v13163_v61, %s15318_s0  ;;  %s10275_s28 = smov 38  }
 0xbf3   : > { %v13272_v8 = vpop.permute.xlu1 %9302  ;;  %v9268_v2 = vpop.permute.xlu0 %9267 }
 0xbf4   : > { %v9270_v57 = vunpack.i.h.bf16 %v9268_v2  ;;  %v9269_v47 = vunpack.i.l.bf16 %v9268_v2 }
 0xbf5   : > { %9532 = vrot.lane.b32.xlu1 %v13193_v27, %s15319_s10  ;;  %9527 = vrot.lane.b32.xlu0 %v13193_v27, %s15373_s24  ;;  %s10271_s10 = smov 39   ;;  %s15142_s24 = smov 45  }
 0xbf7   : > { %v13278_v39 = vpop.permute.xlu1 %9312  ;;  %v9273_v54 = vpop.permute.xlu0 %9272 }
 0xbf8   : > { %v9275_v7 = vunpack.i.h.bf16 %v9273_v54  ;;  %v9274_v48 = vunpack.i.l.bf16 %v9273_v54 }
 0xbf9   : > { %9537 = vrot.lane.b32.xlu1 %v13179_v35, %s15374_s9  ;;  %9542 = vrot.lane.b32.xlu0 %v13193_v27, %s15317_s6  ;;  %s10270_s6 = smov 35  }
 0xbfb   : > { %v13284_v32 = vpop.permute.xlu1 %9322  ;;  %v9278_v11 = vpop.permute.xlu0 %9277 }
 0xbfc   : > { %v13288_v14 = vunpack.i.l.bf16 %v13284_v32  ;;  %v9280_v0 = vunpack.i.h.bf16 %v9278_v11  ;;  %v9279_v60 = vunpack.i.l.bf16 %v9278_v11  ;;  %v9325_v2 = vunpack.i.h.bf16 %v13284_v32 }
 0xbfd   : > { %9552 = vrot.lane.b32.xlu1 %v13179_v35, %s15320_s12  ;;  %9547 = vrot.lane.b32.xlu0 %v13179_v35, %s15375_s2 }
 0xbfe   : > { %15376 = vst [vmem:[#allocation34_spill] sm:$0xff] %v13288_v14  ;;  %v4404_v63 = vsel %vm4403_vm8, %v13288_v14, %v9264_v26  ;;  %v4405_v19 = vsel %vm4403_vm8, %v13288_v14, %v9265_v31  ;;  %v4406_v32 = vsel %vm4403_vm8, %v13288_v14, %v9325_v2 }
 0xbff   : > { %v9328_v13 = vpop.permute.xlu1 %9327  ;;  %v7697_v9 = vpack.c.bf16 %v4405_v19, %v4404_v63  ;;  %v13303_v17 = vpop.permute.xlu0 %9282 }
 0xc00   : > { %v13301_v41 = vunpack.i.l.bf16 %v9328_v13  ;;  %v9330_v45 = vunpack.i.h.bf16 %v9328_v13 }
 0xc01   : > { %9562 = vrot.lane.b32.xlu1 %v13193_v27, %s15374_s9  ;;  %7698 = vmatprep.subr.bf16.mxu0 %v7697_v9  ;;  %s10268_s9 = smov 43  }
 0xc02   : > { %9557 = vrot.lane.b32.xlu0 %v13179_v35, %s15318_s0  ;;  %v4351_v43 = vsel %vm4350_vm10, %v13301_v41, %v9269_v47  ;;  %v4352_v61 = vsel %vm4350_vm10, %v13301_v41, %v9270_v57  ;;  %v4353_v63 = vsel %vm4350_vm10, %v13301_v41, %v9330_v45 }
 0xc03   : > { %v13315_v5 = vpop.permute.xlu1 %9332  ;;  %v7699_v49 = vpack.c.bf16 %v4352_v61, %v4351_v43  ;;  %v13321_v4 = vpop.permute.xlu0 %9287 }
 0xc04   : > { %v13319_v30 = vunpack.i.l.bf16 %v13315_v5  ;;  %v9335_v57 = vunpack.i.h.bf16 %v13315_v5 }
 0xc05   : > { %9572 = vrot.lane.b32.xlu1 %v13193_v27, %s15320_s12  ;;  %7700 = vmatpush3.bf16.msra.mxu0 %v7699_v49  ;;  %s10272_s12 = smov 42  }
 0xc06   : > { %15377 = vst [vmem:[#allocation35_spill] sm:$0xff] %v13319_v30  ;;  %9567 = vrot.lane.b32.xlu0 %v13193_v27, %s15375_s2  ;;  %v4512_v23 = vsel %vm15151_vm13, %v13319_v30, %v9274_v48  ;;  %v4513_v55 = vsel %vm15151_vm13, %v13319_v30, %v9275_v7  ;;  %s10269_s2 = smov 47  }
 0xc07   : > { %v9338_v44 = vpop.permute.xlu1 %9337  ;;  %v7729_v52 = vpack.c.bf16 %v4513_v55, %v4512_v23  ;;  %v13339_v25 = vpop.permute.xlu0 %9292  ;;  %v4514_v55 = vsel %vm15151_vm13, %v13319_v30, %v9335_v57 }
 0xc08   : > { %v13337_v36 = vunpack.i.l.bf16 %v9338_v44  ;;  %v9340_v19 = vunpack.i.h.bf16 %v9338_v44 }
 0xc09   : > { %4774 = vperm.xlu1 %8299, %v4768_v20   ;;  %7730 = vmatprep.subr.bf16.mxu1 %v7729_v52 }
 0xc0a   : > { %15378 = vst [vmem:[#allocation36_spill] sm:$0xff] %v13337_v36  ;;  %9577 = vrot.lane.b32.xlu0 %v13193_v27, %s15318_s0  ;;  %v4458_v18 = vsel %vm15165_vm5, %v13337_v36, %v9279_v60  ;;  %v4459_v21 = vsel %vm15165_vm5, %v13337_v36, %v9280_v0  ;;  %v4460_v5 = vsel %vm15165_vm5, %v13337_v36, %v9340_v19  ;;  %s15141_s0 = smov 41  }
 0xc0b   : > { %v13352_v12 = vpop.permute.xlu1 %9342  ;;  %v7731_v35 = vpack.c.bf16 %v4459_v21, %v4458_v18  ;;  %v13357_v42 = vpop.permute.xlu0 %9307 }
 0xc0d   : > { %4784 = vperm.xlu1 %8299, %v4770_v50   ;;  %7732 = vmatpush3.bf16.msra.mxu1 %v7731_v35  ;;  %v9305_v35 = vunpack.i.h.bf16 %v13272_v8 }
 0xc0e   : > { %4779 = vperm.xlu0 %8300, %v4769_v56  }
 0xc0f   : > { %v13359_v38 = vpop.permute.xlu1 %9347  ;;  %v13364_v62 = vpop.permute.xlu0 %9317  ;;  %v13434_v19 = vsel %vm15380_vm2, %v10766_v40, %v9305_v35  ;;  %vm15389_vm2 = vcmp.lt.s32.totalorder %v10725_v10, 11 }
 0xc12   : > { %4789 = vperm.xlu0 %8300, %v4771_v33   ;;  %v9304_v33 = vunpack.i.l.bf16 %v13272_v8 }
 0xc13   : > { %v13366_v46 = vpop.permute.xlu1 %9357  ;;  %v13368_v37 = vpop.permute.xlu0 %9352 }
 0xc14   : > { %v9355_v24 = vunpack.i.h.bf16 %v13368_v37 }
 0xc17   : > { %v13370_v53 = vpop.permute.xlu1 %9362  ;;  %v13372_v27 = vpop.permute.xlu0 %9367 }
 0xc1b   : > { %v13374_v3 = vpop.permute.xlu1 %9372  ;;  %v13376_v34 = vpop.permute.xlu0 %9377 }
 0xc1f   : > { %v9388_v54 = vpop.permute.xlu1 %9387  ;;  %v9383_v26 = vpop.permute.xlu0 %9382 }
 0xc20   : > { %v9389_v31 = vunpack.i.l.bf16 %v9388_v54  ;;  %v9384_v11 = vunpack.i.l.bf16 %v9383_v26  ;;  %v9385_v45 = vunpack.i.h.bf16 %v9383_v26  ;;  %v9390_v8 = vunpack.i.h.bf16 %v9388_v54 }
 0xc21   : > { %v9314_v26 = vunpack.i.l.bf16 %v13278_v39 }
 0xc22   : > { %v4354_v9 = vsel %vm4350_vm10, %v13301_v41, %v9389_v31  ;;  %v4407_v13 = vsel %vm4403_vm8, %v13288_v14, %v9384_v11 }
 0xc23   : > { %v13386_v47 = vpop.permute.xlu1 %9397  ;;  %v7703_v43 = vpack.c.bf16 %v4354_v9, %v4353_v63  ;;  %v9393_v49 = vpop.permute.xlu0 %9392  ;;  %v7701_v7 = vpack.c.bf16 %v4407_v13, %v4406_v32  ;;  %v13429_v63 = vsel %vm15379_vm0, %v10766_v40, %v9304_v33  ;;  %v4408_v13 = vsel %vm4403_vm8, %v13288_v14, %v9385_v45  ;;  %vm15387_vm0 = vmmov %vm15386_vm7 }
 0xc24   : > { %v9399_v61 = vunpack.i.l.bf16 %v13386_v47  ;;  %v9394_v48 = vunpack.i.l.bf16 %v9393_v49  ;;  %v9395_v57 = vunpack.i.h.bf16 %v9393_v49  ;;  %v9400_v35 = vunpack.i.h.bf16 %v13386_v47 }
 0xc25   : > { %7702 = vmatprep.subr.bf16.mxu0 %v7701_v7  ;;  %v13478_v47 = vsel %vm15382_vm1, %v10814_v16, %v9314_v26  ;;  %vm15390_vm1 = vmmov %vm15389_vm2 }
 0xc26   : > { %v4461_v20 = vsel %vm15165_vm5, %v13337_v36, %v9399_v61  ;;  %7704 = vmatpush3.bf16.msra.mxu0 %v7703_v43  ;;  %v4515_v44 = vsel %vm15151_vm13, %v13319_v30, %v9394_v48 }
 0xc27   : > { %v13401_v23 = vpop.permute.xlu1 %9402  ;;  %v7735_v52 = vpack.c.bf16 %v4461_v20, %v4460_v5  ;;  %v13409_v0 = vpop.permute.xlu0 %9407  ;;  %v7733_v60 = vpack.c.bf16 %v4515_v44, %v4514_v55  ;;  %v9315_v5 = vunpack.i.h.bf16 %v13278_v39  ;;  %v9295_v20 = vunpack.i.h.bf16 %v13339_v25 }
 0xc28   : > { %v9294_v55 = vunpack.i.l.bf16 %v13339_v25  ;;  %v4516_v25 = vsel %vm15151_vm13, %v13319_v30, %v9395_v57  ;;  %v9345_v57 = vunpack.i.h.bf16 %v13352_v12  ;;  %v9404_v9 = vunpack.i.l.bf16 %v13401_v23 }
 0xc29   : > { %7734 = vmatprep.subr.bf16.mxu1 %v7733_v60  ;;  %v4355_v60 = vsel %vm4350_vm10, %v13301_v41, %v9390_v8  ;;  %v9285_v8 = vunpack.i.h.bf16 %v13303_v17  ;;  %v13495_v26 = vsel %vm15384_vm11, %v10742_v22, %v9295_v20  ;;  %v13509_v20 = vunpack.i.l.bf16 %v13359_v38  ;;  %vm15391_vm11 = vmmov %vm15383_vm3 }
 0xc2a   : > { %7736 = vmatpush3.bf16.msra.mxu1 %v7735_v52  ;;  %v13458_v52 = vunpack.i.l.bf16 %v13352_v12 }
 0xc2b   : > { %v13411_v50 = vpop.permute.xlu1 %9417  ;;  %v13413_v18 = vpop.permute.xlu0 %9412 }
 0xc2c   : > { %15381 = vst [vmem:[#allocation37_spill] sm:$0xff] %v13458_v52 }
 0xc2f   : > { %v13415_v21 = vpop.permute.xlu1 %9422  ;;  %v13417_v56 = vpop.permute.xlu0 %9427 }
 0xc33   : > { %v13421_v2 = vpop.permute.xlu1 %9432  ;;  %v13423_v31 = vpop.permute.xlu0 %9437 }
 0xc34   : > { %v9439_v11 = vunpack.i.l.bf16 %v13423_v31 }
 0xc36   : > { %v4409_v43 = vsel %vm4403_vm8, %v13288_v14, %v9439_v11 }
 0xc37   : > { %v13439_v32 = vpop.permute.xlu1 %9442  ;;  %v13449_v54 = vpop.permute.xlu0 %9447  ;;  %v7705_v48 = vpack.c.bf16 %v4409_v43, %v4408_v13  ;;  %v9284_v13 = vunpack.i.l.bf16 %v13303_v17  ;;  %v9309_v17 = vunpack.i.l.bf16 %v13357_v42 }
 0xc38   : > { %v9444_v7 = vunpack.i.l.bf16 %v13439_v32  ;;  %v9449_v44 = vunpack.i.l.bf16 %v13449_v54 }
 0xc39   : > { %7706 = vmatprep.subr.bf16.mxu0 %v7705_v48 }
 0xc3a   : > { %v4356_v33 = vsel %vm4350_vm10, %v13301_v41, %v9444_v7  ;;  %v4517_v11 = vsel %vm15151_vm13, %v13319_v30, %v9449_v44  ;;  %v13490_v44 = vsel %vm15383_vm3, %v10742_v22, %v9294_v55  ;;  %v4431_v55 = vsel %vm15150_vm15, %v13458_v52, %v9284_v13 }
 0xc3b   : > { %v13467_v39 = vpop.permute.xlu1 %9452  ;;  %v7707_v45 = vpack.c.bf16 %v4356_v33, %v4355_v60  ;;  %v13483_v7 = vpop.permute.xlu0 %9462  ;;  %v7737_v48 = vpack.c.bf16 %v4517_v11, %v4516_v25  ;;  %v9310_v60 = vunpack.i.h.bf16 %v13357_v42  ;;  %v4462_v33 = vsel %vm15165_vm5, %v13337_v36, %v9400_v35 }
 0xc3c   : > { %v9454_v43 = vunpack.i.l.bf16 %v13467_v39  ;;  %v4432_v35 = vsel %vm15150_vm15, %v13458_v52, %v9285_v8  ;;  %v9290_v11 = vunpack.i.h.bf16 %v13321_v4  ;;  %v9445_v13 = vunpack.i.h.bf16 %v13439_v32 }
 0xc3d   : > { %7708 = vmatpush3.bf16.msra.mxu0 %v7707_v45  ;;  %7738 = vmatprep.subr.bf16.mxu1 %v7737_v48  ;;  %v9350_v45 = vunpack.i.h.bf16 %v13359_v38  ;;  %v13525_v38 = vsel %vm15385_vm6, %v10814_v16, %v9315_v5  ;;  %v9440_v8 = vunpack.i.h.bf16 %v13423_v31  ;;  %v13543_v5 = vsel %vm15387_vm0, %v10731_v15, %v9309_v17  ;;  %vm15397_vm0 = vmmov %vm15383_vm3 }
 0xc3e   : > { %v4463_v12 = vsel %vm15165_vm5, %v13337_v36, %v9454_v43  ;;  %v9289_v43 = vunpack.i.l.bf16 %v13321_v4  ;;  %v13536_v4 = vsel %vm15150_vm15, %v13458_v52, %v9345_v57  ;;  %v7713_v49 = vpack.c.bf16 %v4432_v35, %v4431_v55 }
 0xc3f   : > { %v13512_v42 = vpop.permute.xlu1 %9457  ;;  %v7739_v25 = vpack.c.bf16 %v4463_v12, %v4462_v33  ;;  %v13520_v48 = vpop.permute.xlu0 %9467  ;;  %v13530_v33 = vsel %vm15386_vm7, %v10731_v15, %v9310_v60  ;;  %v9320_v12 = vunpack.i.h.bf16 %v13364_v62  ;;  %v9319_v60 = vunpack.i.l.bf16 %v13364_v62  ;;  %vm15396_vm7 = vmmov %vm15383_vm3 }
 0xc40   : > { %v13550_v31 = vsel %vm3362_vm12, %v13509_v20, %v9350_v45  ;;  %v9360_v57 = vunpack.i.h.bf16 %v13366_v46  ;;  %v4377_v17 = vsel %vm3362_vm12, %v13509_v20, %v9289_v43  ;;  %v9455_v61 = vunpack.i.h.bf16 %v13467_v39 }
 0xc41   : > { %7740 = vmatpush3.bf16.msra.mxu1 %v7739_v25  ;;  %v9359_v25 = vunpack.i.l.bf16 %v13366_v46  ;;  %v4357_v62 = vsel %vm4350_vm10, %v13301_v41, %v9445_v13  ;;  %v9450_v46 = vunpack.i.h.bf16 %v13449_v54  ;;  %v4410_v43 = vsel %vm4403_vm8, %v13288_v14, %v9440_v8 }
 0xc42   : > { %v13574_v13 = vunpack.i.l.bf16 %v13368_v37  ;;  %v13582_v54 = vsel %vm15389_vm2, %v10790_v58, %v9320_v12  ;;  %v13587_v8 = vsel %vm15390_vm1, %v10790_v58, %v9319_v60  ;;  %v4464_v12 = vsel %vm15165_vm5, %v13337_v36, %v9455_v61 }
 0xc43   : > { %v4347_v32 = vpop.permute.xlu1 %4346  ;;  %v4400_v45 = vpop.permute.xlu0 %4399  ;;  %v4538_v37 = vsel %vm15383_vm3, %v10742_v22, %v9359_v25  ;;  %v4434_v25 = vsel %vm15150_vm15, %v13458_v52, %v9404_v9  ;;  %vm15395_vm6 = vcmp.lt.s32.totalorder %v10725_v10, 13  ;;  %vm15399_vm1 = vcmp.lt.s32.totalorder %v10725_v10, 15 }
 0xc44   : > { %v4358_v55 = vsel %vm4350_vm10, %v13301_v41, %v4347_v32  ;;  %v4411_v39 = vsel %vm4403_vm8, %v13288_v14, %v4400_v45  ;;  %15388 = vst [vmem:[#allocation38_spill] sm:$0xff] %v13574_v13  ;;  %v4378_v32 = vsel %vm3362_vm12, %v13509_v20, %v9290_v11  ;;  %v9409_v11 = vunpack.i.l.bf16 %v13409_v0  ;;  %vm15398_vm2 = vmmov %vm15395_vm6 }
 0xc45   : > { %v7711_v35 = vpack.c.bf16 %v4358_v55, %v4357_v62  ;;  %v7709_v1 = vpack.c.bf16 %v4411_v39, %v4410_v43  ;;  %v4539_v55 = vsel %vm15391_vm11, %v10742_v22, %v9360_v57  ;;  %v9459_v43 = vunpack.i.l.bf16 %v13512_v42  ;;  %vm15400_vm3 = vmmov %vm15399_vm1 }
 0xc46   : > { %v4518_v57 = vsel %vm15151_vm13, %v13319_v30, %v9450_v46  ;;  %v7715_v9 = vpack.c.bf16 %v4378_v32, %v4377_v17  ;;  %v9364_v46 = vunpack.i.l.bf16 %v13370_v53  ;;  %v4380_v17 = vsel %vm3362_vm12, %v13509_v20, %v9409_v11 }
 0xc47   : > { %v4454_v62 = vpop.permute.xlu1 %4453  ;;  %v4508_v45 = vpop.permute.xlu0 %4507  ;;  %7710 = vmatprep.subr.bf16.mxu0 %v7709_v1  ;;  %v13615_v1 = vsel %vm15152_vm4, %v13574_v13, %v9355_v24  ;;  %v15393_v24 = vunpack.i.h.bf16 %v13266_v28  ;;  %v4436_v11 = vsel %vm15150_vm15, %v13458_v52, %v9459_v43  ;;  %v9369_v14 = vunpack.i.l.bf16 %v13372_v27 }
 0xc48   : > { %v4465_v60 = vsel %vm15165_vm5, %v13337_v36, %v4454_v62  ;;  %v4519_v61 = vsel %vm15151_vm13, %v13319_v30, %v4508_v45  ;;  %7712 = vmatpush3.bf16.msra.mxu0 %v7711_v35  ;;  %v15392_v36 = vunpack.i.l.bf16 %v13266_v28  ;;  %v9414_v35 = vunpack.i.l.bf16 %v13413_v18 }
 0xc49   : > { %v7743_v39 = vpack.c.bf16 %v4465_v60, %v4464_v12  ;;  %v7741_v62 = vpack.c.bf16 %v4519_v61, %v4518_v57  ;;  %7714 = vmatprep.subr.bf16.mxu0 %v7713_v49  ;;  %v9405_v60 = vunpack.i.h.bf16 %v13401_v23  ;;  %v4486_v49 = vsel %vm15152_vm4, %v13574_v13, %v15393_v24 }
 0xc4a   : > { %v4485_v12 = vsel %vm15152_vm4, %v13574_v13, %v15392_v36  ;;  %v9464_v36 = vunpack.i.l.bf16 %v13483_v7  ;;  %v7717_v23 = vpack.c.bf16 %v4434_v25, %v13536_v4  ;;  %v7749_v57 = vpack.c.bf16 %v4539_v55, %v4538_v37 }
 0xc4b   : > { %v13625_v45 = vpop.permute.xlu1 %9477  ;;  %v13636_v32 = vpop.permute.xlu0 %9472  ;;  %7742 = vmatprep.subr.bf16.mxu1 %v7741_v62  ;;  %v9365_v61 = vunpack.i.h.bf16 %v13370_v53  ;;  %v9420_v28 = vunpack.i.h.bf16 %v13411_v50  ;;  %v9419_v30 = vunpack.i.l.bf16 %v13411_v50  ;;  %v9370_v24 = vunpack.i.h.bf16 %v13372_v27 }
 0xc4c   : > { %7716 = vmatpush3.bf16.msra.mxu0 %v7715_v9  ;;  %7744 = vmatpush3.bf16.msra.mxu1 %v7743_v39  ;;  %v9410_v62 = vunpack.i.h.bf16 %v13409_v0  ;;  %v15394_v53 = vpack.c.bf16 %v13495_v26, %v13490_v44  ;;  %v7747_v4 = vpack.c.bf16 %v4486_v49, %v4485_v12  ;;  %v4488_v50 = vsel %vm15152_vm4, %v13574_v13, %v9414_v35 }
 0xc4d   : > { %7718 = vmatprep.subr.bf16.mxu0 %v7717_v23  ;;  %v7719_v55 = vpack.c.bf16 %v4380_v17, %v13550_v31  ;;  %v4435_v27 = vsel %vm15150_vm15, %v13458_v52, %v9405_v60  ;;  %v13663_v0 = vsel %vm15395_vm6, %v10766_v40, %v9364_v46  ;;  %v4382_v44 = vsel %vm3362_vm12, %v13509_v20, %v9464_v36 }
 0xc4e   : > { %7746 = vmatprep.subr.bf16.mxu1 %v15394_v53  ;;  %v9460_v26 = vunpack.i.h.bf16 %v13512_v42  ;;  %v9469_v25 = vunpack.i.l.bf16 %v13520_v48  ;;  %v7721_v31 = vpack.c.bf16 %v4436_v11, %v4435_v27  ;;  %v4540_v39 = vsel %vm15396_vm7, %v10742_v22, %v9419_v30 }
 0xc4f   : > { %v13654_v37 = vpop.permute.xlu1 %9487  ;;  %v13670_v43 = vpop.permute.xlu0 %9482  ;;  %v4541_v9 = vsel %vm15397_vm0, %v10742_v22, %v9420_v28  ;;  %v13681_v12 = vsel %vm15398_vm2, %v10766_v40, %v9365_v61  ;;  %v13686_v42 = vsel %vm15399_vm1, %v10731_v15, %v9370_v24  ;;  %v13691_v46 = vsel %vm15400_vm3, %v10731_v15, %v9369_v14  ;;  %vm15404_vm2 = vmmov %vm15397_vm0 }
 0xc50   : > { %7720 = vmatpush3.bf16.msra.mxu0 %v7719_v55  ;;  %7748 = vmatpush3.bf16.msra.mxu1 %v7747_v4  ;;  %v4381_v30 = vsel %vm3362_vm12, %v13509_v20, %v9410_v62  ;;  %v9415_v60 = vunpack.i.h.bf16 %v13413_v18  ;;  %v9375_v35 = vunpack.i.h.bf16 %v13374_v3  ;;  %v9374_v49 = vunpack.i.l.bf16 %v13374_v3 }
 0xc51   : > { %7722 = vmatprep.subr.bf16.mxu0 %v7721_v31  ;;  %7750 = vmatprep.subr.bf16.mxu1 %v7749_v57  ;;  %v7723_v36 = vpack.c.bf16 %v4382_v44, %v4381_v30  ;;  %v7751_v23 = vpack.c.bf16 %v4488_v50, %v13615_v1  ;;  %v4490_v14 = vsel %vm15152_vm4, %v13574_v13, %v9469_v25  ;;  %v9380_v3 = vunpack.i.h.bf16 %v13376_v34 }
 0xc52   : > { %v4437_v61 = vsel %vm15150_vm15, %v13458_v52, %v9460_v26  ;;  %v7753_v28 = vpack.c.bf16 %v4541_v9, %v4540_v39  ;;  %v9465_v11 = vunpack.i.h.bf16 %v13483_v7  ;;  %v7793_v24 = vpack.c.bf16 %v13525_v38, %v13478_v47 }
 0xc53   : > { %v4427_v17 = vpop.permute.xlu1 %4426  ;;  %v13709_v57 = vpop.permute.xlu0 %9492  ;;  %v4489_v62 = vsel %vm15152_vm4, %v13574_v13, %v9415_v60  ;;  %v7763_v53 = vpack.c.bf16 %v13530_v33, %v13543_v5  ;;  %v7765_v4 = vpack.c.bf16 %v13681_v12, %v13663_v0  ;;  %v7795_v7 = vpack.c.bf16 %v13582_v54, %v13587_v8  ;;  %v4761_v8 = vld [vmem:[#allocation11 + $0xc8] sm:$0xff] }
 0xc54   : > { %v4438_v18 = vsel %vm15150_vm15, %v13458_v52, %v4427_v17  ;;  %7724 = vmatpush3.bf16.msra.mxu0 %v7723_v36  ;;  %7752 = vmatpush3.bf16.msra.mxu1 %v7751_v23  ;;  %v9379_v50 = vunpack.i.l.bf16 %v13376_v34  ;;  %v7755_v27 = vpack.c.bf16 %v4490_v14, %v4489_v62  ;;  %v7767_v44 = vpack.c.bf16 %v13686_v42, %v13691_v46 }
 0xc55   : > { %v7725_v1 = vpack.c.bf16 %v4438_v18, %v4437_v61  ;;  %7754 = vmatprep.subr.bf16.mxu1 %v7753_v28  ;;  %vm15401_vm11 = vcmp.lt.s32.totalorder %v10725_v10, 9  ;;  %v9424_v33 = vunpack.i.l.bf16 %v13415_v21  ;;  %vm15403_vm7 = vcmp.lt.s32.totalorder %v10725_v10, 11  ;;  %v4736_v28 = vld [vmem:[#allocation11] sm:$0xff] }
 0xc56   : > { %v13730_v26 = vsel %vm15401_vm11, %v10814_v16, %v9374_v49  ;;  %vm15402_vm6 = vmmov %vm15401_vm11  ;;  %v13741_v31 = vsel %vm15403_vm7, %v10790_v58, %v9380_v3  ;;  %v9470_v39 = vunpack.i.h.bf16 %v13520_v48  ;;  %v4383_v9 = vsel %vm3362_vm12, %v13509_v20, %v9465_v11 }
 0xc57   : > { %v9498_v55 = vpop.permute.xlu1 %9497  ;;  %7726 = vmatprep.subr.bf16.mxu0 %v7725_v1  ;;  %v4374_v25 = vpop.permute.xlu0 %4373  ;;  %v13736_v34 = vsel %vm15402_vm6, %v10814_v16, %v9375_v35  ;;  %v9425_v30 = vunpack.i.h.bf16 %v13415_v21  ;;  %vm15405_vm1 = vmmov %vm15403_vm7  ;;  %v9430_v17 = vunpack.i.h.bf16 %v13417_v56  ;;  %v9429_v36 = vunpack.i.l.bf16 %v13417_v56 }
 0xc58   : > { %v9500_v5 = vunpack.i.h.bf16 %v9498_v55  ;;  %v9499_v0 = vunpack.i.l.bf16 %v9498_v55  ;;  %v4384_v12 = vsel %vm3362_vm12, %v13509_v20, %v4374_v25  ;;  %7756 = vmatpush3.bf16.msra.mxu1 %v7755_v27  ;;  %v13760_v49 = vsel %vm15405_vm1, %v10790_v58, %v9379_v50 }
 0xc59   : > { %v7727_v60 = vpack.c.bf16 %v4384_v12, %v4383_v9  ;;  %v9435_v14 = vunpack.i.h.bf16 %v13421_v2  ;;  %v9434_v61 = vunpack.i.l.bf16 %v13421_v2  ;;  %vm15406_vm3 = vcmp.lt.s32.totalorder %v10725_v10, 13 }
 0xc5a   : > { %v4542_v35 = vsel %vm15397_vm0, %v10742_v22, %v9499_v0  ;;  %v4543_v48 = vsel %vm15404_vm2, %v10742_v22, %v9500_v5  ;;  %v4612_v3 = vsel %vm15406_vm3, %v10766_v40, %v9424_v33  ;;  %v7797_v11 = vpack.c.bf16 %v13736_v34, %v13730_v26  ;;  %vm15408_vm11 = vmmov %vm15406_vm3  ;;  %v4745_v0 = vld [vmem:[#allocation11 + $0x48] sm:$0xff]  ;;  %v4744_v34 = vld [vmem:[#allocation11 + $0x40] sm:$0xff] }
 0xc5b   : > { %v13764_v23 = vpop.permute.xlu1 %9502  ;;  %v7757_v21 = vpack.c.bf16 %v4543_v48, %v4542_v35  ;;  %v4481_v18 = vpop.permute.xlu0 %4480  ;;  %7728 = vmatpush3.bf16.msra.mxu0 %v7727_v60  ;;  %v9480_v1 = vunpack.i.h.bf16 %v13625_v45  ;;  %v9479_v56 = vunpack.i.l.bf16 %v13625_v45  ;;  %v4491_v62 = vsel %vm15152_vm4, %v13574_v13, %v9470_v39  ;;  %v4738_v39 = vld [vmem:[#allocation11 + $0x10] sm:$0xff] }
 0xc5c   : > { %v4492_v2 = vsel %vm15152_vm4, %v13574_v13, %v4481_v18  ;;  %v15407_v50 = vpack.c.bf16 %v13434_v19, %v13429_v63  ;;  %v9475_v55 = vunpack.i.h.bf16 %v13636_v32  ;;  %v9474_v27 = vunpack.i.l.bf16 %v13636_v32 }
 0xc5d   : > { %7758 = vmatprep.subr.bf16.mxu1 %v7757_v21  ;;  %v7759_v26 = vpack.c.bf16 %v4492_v2, %v4491_v62  ;;  %v4613_v45 = vsel %vm15408_vm11, %v10766_v40, %v9425_v30  ;;  %vm15409_vm6 = vcmp.lt.s32.totalorder %v10725_v10, 15  ;;  %v9485_v19 = vunpack.i.h.bf16 %v13670_v43  ;;  %v4753_v21 = vld [vmem:[#allocation11 + $0x88] sm:$0xff] }
 0xc5e   : > { %7762 = vmatprep.subr.bf16.mxu0 %v15407_v50  ;;  %v13792_v33 = vsel %vm15409_vm6, %v10731_v15, %v9430_v17  ;;  %vm15410_vm7 = vmmov %vm15409_vm6  ;;  %v9484_v5 = vunpack.i.l.bf16 %v13670_v43  ;;  %4857 = vmatmul.mubr.f32.vlgmr.msra.gmra.mrb[96].mxu0 %v4736_v28  ;;  %v7799_v9 = vpack.c.bf16 %v13741_v31, %v13760_v49  ;;  %vm15411_vm0 = vcmp.lt.s32.totalorder %v10725_v10, 9 }
 0xc5f   : > { %v13797_v63 = vsel %vm15410_vm7, %v10731_v15, %v9429_v36  ;;  %v13801_v32 = vpop.permute.xlu1 %9512  ;;  %v13803_v25 = vpop.permute.xlu0 %9507  ;;  %7760 = vmatpush3.bf16.msra.mxu1 %v7759_v26  ;;  %7764 = vmatpush3.bf16.msra.mxu0 %v7763_v53  ;;  %v4708_v12 = vsel %vm15411_vm0, %v10814_v16, %v9434_v61  ;;  %vm15412_vm2 = vmmov %vm15411_vm0  ;;  %v9490_v30 = vunpack.i.h.bf16 %v13654_v37  ;;  %v9489_v60 = vunpack.i.l.bf16 %v13654_v37 }
 0xc60   : > { %v4709_v43 = vsel %vm15412_vm2, %v10814_v16, %v9435_v14  ;;  %7766 = vmatprep.subr.bf16.mxu0 %v7765_v4  ;;  %7794 = vmatprep.subr.bf16.mxu1 %v7793_v24  ;;  %vm15413_vm1 = vcmp.lt.s32.totalorder %v10725_v10, 12  ;;  %vm15415_vm11 = vcmp.lt.s32.totalorder %v10725_v10, 11  ;;  %v7769_v38 = vpack.c.bf16 %v4613_v45, %v4612_v3  ;;  %v15417_v24 = vld [vmem:[#allocation31_spill] sm:$0xff] }
 0xc61   : > { %v13821_v53 = vsel %vm15413_vm1, %v10780_v51, %v9479_v56  ;;  %vm15414_vm3 = vmmov %vm15413_vm1  ;;  %v13831_v35 = vsel %vm15415_vm11, %v10790_v58, %v9475_v55  ;;  %4861 = vmatprep.mubr.f32.mxu0 %v4745_v0  ;;  %v7771_v37 = vpack.c.bf16 %v13792_v33, %v13797_v63  ;;  %vm15418_vm7 = vcmp.lt.s32.totalorder %v10725_v10, 14  ;;  %v4747_v14 = vld [vmem:[#allocation11 + $0x58] sm:$0xff]  ;;  %v4752_v3 = vld [vmem:[#allocation11 + $0x80] sm:$0xff] }
 0xc62   : > { %v13826_v31 = vsel %vm15414_vm3, %v10780_v51, %v9480_v1  ;;  %vm15416_vm6 = vmmov %vm15415_vm11  ;;  %v13843_v4 = vsel %vm15418_vm7, %v15417_v24, %v9485_v19  ;;  %v9495_v49 = vunpack.i.h.bf16 %v13709_v57  ;;  %v9494_v17 = vunpack.i.l.bf16 %v13709_v57  ;;  %4862 = vmatmul.mubr.f32.gmra.mrb[98].mxu0 %v4744_v34  ;;  %4942 = vmatmul.mubr.f32.vlgmr.msra.gmra.mrb[104].mxu1 %v4738_v39  ;;  %v4746_v1 = vld [vmem:[#allocation11 + $0x50] sm:$0xff]  ;;  %v4755_v55 = vld [vmem:[#allocation11 + $0x98] sm:$0xff] }
 0xc63   : > { %v13836_v47 = vsel %vm15416_vm6, %v10790_v58, %v9474_v27  ;;  %vm15419_vm0 = vmmov %vm15418_vm7  ;;  %v9523_v36 = vpop.permute.xlu1 %9522  ;;  %v13852_v28 = vpop.permute.xlu0 %9517  ;;  %7768 = vmatpush3.bf16.msra.mxu0 %v7767_v44  ;;  %7796 = vmatpush3.bf16.msra.mxu1 %v7795_v7  ;;  %v7801_v57 = vpack.c.bf16 %v4709_v43, %v4708_v12  ;;  %v7777_v56 = vpack.c.bf16 %v13826_v31, %v13821_v53  ;;  %vm15420_vm2 = vcmp.lt.s32.totalorder %v10725_v10, 13  ;;  %v4760_v19 = vld [vmem:[#allocation11 + $0xc0] sm:$0xff]  ;;  %v4763_v43 = vld [vmem:[#allocation11 + $0xd8] sm:$0xff] }
 0xc64   : > { %v13848_v48 = vsel %vm15419_vm0, %v15417_v24, %v9484_v5  ;;  %v9525_v61 = vunpack.i.h.bf16 %v9523_v36  ;;  %v9524_v18 = vunpack.i.l.bf16 %v9523_v36  ;;  %7770 = vmatprep.subr.bf16.mxu0 %v7769_v38  ;;  %7798 = vmatprep.subr.bf16.mxu1 %v7797_v11  ;;  %v7803_v62 = vpack.c.bf16 %v13831_v35, %v13836_v47  ;;  %vm15421_vm1 = vmmov %vm15420_vm2  ;;  %v4754_v5 = vld [vmem:[#allocation11 + $0x90] sm:$0xff] }
 0xc65   : > { %v13867_v42 = vsel %vm830_vm9, %v10821_v29, %v9489_v60  ;;  %v13872_v54 = vsel %vm830_vm9, %v10821_v29, %v9490_v30  ;;  %4866 = vmatprep.mubr.f32.mxu0 %v4753_v21  ;;  %4946 = vmatprep.mubr.f32.mxu1 %v4747_v14  ;;  %v7779_v44 = vpack.c.bf16 %v13843_v4, %v13848_v48  ;;  %vm15422_vm3 = vcmp.lt.s32.totalorder %v10725_v10, 10 }
 0xc66   : > { %v4614_v46 = vsel %vm15420_vm2, %v10766_v40, %v9524_v18  ;;  %v4615_v7 = vsel %vm15421_vm1, %v10766_v40, %v9525_v61  ;;  %v13885_v11 = vsel %vm15422_vm3, %v10804_v6, %v9495_v49  ;;  %vm15423_vm11 = vmmov %vm15422_vm3  ;;  %4867 = vmatmul.mubr.f32.gmra.mrb[100].mxu0 %v4752_v3  ;;  %4947 = vmatmul.mubr.f32.gmra.mrb[106].mxu1 %v4746_v1  ;;  %v9505_v40 = vunpack.i.h.bf16 %v13764_v23  ;;  %v4743_v3 = vld [vmem:[#allocation11 + $0x38] sm:$0xff] }
 0xc67   : > { %v13890_v2 = vsel %vm15423_vm11, %v10804_v6, %v9494_v17  ;;  %v9533_v50 = vpop.permute.xlu1 %9532  ;;  %v7773_v27 = vpack.c.bf16 %v4615_v7, %v4614_v46  ;;  %v9504_v26 = vunpack.i.l.bf16 %v13764_v23  ;;  %v9528_v63 = vpop.permute.xlu0 %9527  ;;  %7772 = vmatpush3.bf16.msra.mxu0 %v7771_v37  ;;  %7800 = vmatpush3.bf16.msra.mxu1 %v7799_v9  ;;  %v9515_v0 = vunpack.i.h.bf16 %v13801_v32 }
 0xc68   : > { %v9535_v45 = vunpack.i.h.bf16 %v9533_v50  ;;  %v9534_v33 = vunpack.i.l.bf16 %v9533_v50  ;;  %v9514_v34 = vunpack.i.l.bf16 %v13801_v32  ;;  %v9530_v39 = vunpack.i.h.bf16 %v9528_v63  ;;  %7802 = vmatprep.subr.bf16.mxu1 %v7801_v57  ;;  %4871 = vmatprep.mubr.f32.mxu0 %v4761_v8  ;;  %v4741_v32 = vld [vmem:[#allocation11 + $0x28] sm:$0xff] }
 0xc69   : > { %v9529_v12 = vunpack.i.l.bf16 %v9528_v63  ;;  %v9510_v30 = vunpack.i.h.bf16 %v13803_v25  ;;  %v9509_v23 = vunpack.i.l.bf16 %v13803_v25  ;;  %4951 = vmatprep.mubr.f32.mxu1 %v4755_v55  ;;  %7774 = vmatprep.subr.bf16.mxu0 %v7773_v27  ;;  %vm15424_vm6 = vcmp.lt.s32.totalorder %v10725_v10, 9 }
 0xc6a   : > { %v4710_v9 = vsel %vm15424_vm6, %v10814_v16, %v9534_v33  ;;  %vm15425_vm7 = vmmov %vm15424_vm6  ;;  %vm15426_vm0 = vcmp.lt.s32.totalorder %v10725_v10, 15  ;;  %4872 = vmatmul.mubr.f32.gmra.mrb[102].mxu0 %v4760_v19  ;;  %4952 = vmatmul.mubr.f32.gmra.mrb[108].mxu1 %v4754_v5  ;;  %vm15428_vm1 = vcmp.lt.s32.totalorder %v10725_v10, 12  ;;  %v4730_v18 = vsel %vm830_vm9, %v10821_v29, %v9514_v34 }
 0xc6b   : > { %v4711_v60 = vsel %vm15425_vm7, %v10814_v16, %v9535_v45  ;;  %v4567_v35 = vsel %vm15426_vm0, %v10731_v15, %v9530_v39  ;;  %vm15427_vm2 = vmmov %vm15426_vm0  ;;  %v9538_v25 = vpop.permute.xlu1 %9537  ;;  %v9543_v17 = vpop.permute.xlu0 %9542  ;;  %7804 = vmatpush3.bf16.msra.mxu1 %v7803_v62  ;;  %4956 = vmatprep.mubr.f32.mxu1 %v4763_v43  ;;  %v4762_v16 = vld [vmem:[#allocation11 + $0xd0] sm:$0xff]  ;;  %v4634_v21 = vsel %vm15428_vm1, %v10780_v51, %v9504_v26  ;;  %vm15430_vm11 = vcmp.lt.s32.totalorder %v10725_v10, 14 }
 0xc6c   : > { %v4566_v47 = vsel %vm15427_vm2, %v10731_v15, %v9529_v12  ;;  %v7805_v38 = vpack.c.bf16 %v4711_v60, %v4710_v9  ;;  %v9540_v37 = vunpack.i.h.bf16 %v9538_v25  ;;  %v9539_v49 = vunpack.i.l.bf16 %v9538_v25  ;;  %vm15429_vm3 = vmmov %vm15428_vm1  ;;  %5026 = vmatprep.mubr.f32.mxu0 %v4741_v32 }
 0xc6d   : > { %v7775_v36 = vpack.c.bf16 %v4567_v35, %v4566_v47  ;;  %v9545_v14 = vunpack.i.h.bf16 %v9543_v17  ;;  %v9544_v61 = vunpack.i.l.bf16 %v9543_v17  ;;  %v4635_v15 = vsel %vm15429_vm3, %v10780_v51, %v9505_v40  ;;  %vm15431_vm6 = vmmov %vm15430_vm11 }
 0xc6e   : > { %7806 = vmatprep.subr.bf16.mxu1 %v7805_v38  ;;  %v4587_v1 = vsel %vm15430_vm11, %v15417_v24, %v9510_v30  ;;  %v4586_v57 = vsel %vm15431_vm6, %v15417_v24, %v9509_v23  ;;  %v9520_v62 = vunpack.i.h.bf16 %v13852_v28  ;;  %v4731_v8 = vsel %vm830_vm9, %v10821_v29, %v9515_v0  ;;  %4957 = vmatmul.mubr.f32.gmra.mrb[110].mxu1 %v4762_v16  ;;  %vm15434_vm2 = vmmov %vm15428_vm1 }
 0xc6f   : > { %7776 = vmatpush3.bf16.msra.mxu0 %v7775_v36  ;;  %v9519_v46 = vunpack.i.l.bf16 %v13852_v28  ;;  %vm15432_vm7 = vcmp.lt.s32.totalorder %v10725_v10, 11  ;;  %v9553_v55 = vpop.permute.xlu1 %9552  ;;  %v4636_v27 = vsel %vm15434_vm2, %v10780_v51, %v9539_v49  ;;  %v9548_v26 = vpop.permute.xlu0 %9547  ;;  %v4637_v33 = vsel %vm15428_vm1, %v10780_v51, %v9540_v37  ;;  %5111 = vmatprep.mubr.f32.mxu1 %v4743_v3 }
 0xc70   : > { %v4663_v7 = vsel %vm15432_vm7, %v10790_v58, %v9545_v14  ;;  %vm15433_vm0 = vmmov %vm15432_vm7  ;;  %7778 = vmatprep.subr.bf16.mxu0 %v7777_v56  ;;  %v9555_v40 = vunpack.i.h.bf16 %v9553_v55  ;;  %v9554_v28 = vunpack.i.l.bf16 %v9553_v55  ;;  %v9549_v63 = vunpack.i.l.bf16 %v9548_v26  ;;  %v4748_v55 = vld [vmem:[#allocation11 + $0x60] sm:$0xff] }
 0xc71   : > { %v4662_v50 = vsel %vm15433_vm0, %v10790_v58, %v9544_v61  ;;  %v9550_v58 = vunpack.i.h.bf16 %v9548_v26  ;;  %v7781_v19 = vpack.c.bf16 %v4635_v15, %v4634_v21  ;;  %v7809_v53 = vpack.c.bf16 %v13872_v54, %v13867_v42  ;;  %vm15437_vm7 = vmmov %vm15431_vm6  ;;  %v4756_v26 = vld [vmem:[#allocation11 + $0xa0] sm:$0xff] }
 0xc72   : > { %v7807_v45 = vpack.c.bf16 %v4663_v7, %v4662_v50  ;;  %v7783_v31 = vpack.c.bf16 %v4587_v1, %v4586_v57  ;;  %v7811_v56 = vpack.c.bf16 %v13885_v11, %v13890_v2  ;;  %v7813_v5 = vpack.c.bf16 %v4731_v8, %v4730_v18  ;;  %vm15438_vm0 = vmmov %vm15428_vm1 }
 0xc73   : > { %7780 = vmatpush3.bf16.msra.mxu0 %v7779_v44  ;;  %vm15435_vm3 = vcmp.lt.s32.totalorder %v10725_v10, 10  ;;  %v9563_v42 = vpop.permute.xlu1 %9562  ;;  %v7785_v54 = vpack.c.bf16 %v4637_v33, %v4636_v27  ;;  %v4732_v11 = vsel %vm830_vm9, %v10821_v29, %v9554_v28  ;;  %v4733_v2 = vsel %vm830_vm9, %v10821_v29, %v9555_v40  ;;  %vm15439_vm2 = vmmov %vm15438_vm0  ;;  %v4742_v27 = vld [vmem:[#allocation11 + $0x30] sm:$0xff]  ;;  %v4757_v40 = vld [vmem:[#allocation11 + $0xa8] sm:$0xff] }
 0xc74   : > { %7808 = vmatpush3.bf16.msra.mxu1 %v7807_v45  ;;  %v4683_v0 = vsel %vm15435_vm3, %v10804_v6, %v9520_v62  ;;  %vm15436_vm11 = vmmov %vm15435_vm3  ;;  %7782 = vmatprep.subr.bf16.mxu0 %v7781_v19  ;;  %v9565_v4 = vunpack.i.h.bf16 %v9563_v42  ;;  %v9564_v48 = vunpack.i.l.bf16 %v9563_v42  ;;  %v9558_v44 = vpop.permute.xlu0 %9557  ;;  %v4589_v39 = vsel %vm15431_vm6, %v15417_v24, %v9550_v58  ;;  %v4751_v28 = vld [vmem:[#allocation11 + $0x78] sm:$0xff]  ;;  %v4750_v45 = vld [vmem:[#allocation11 + $0x70] sm:$0xff] }
 0xc75   : > { %v4682_v34 = vsel %vm15436_vm11, %v10804_v6, %v9519_v46  ;;  %7810 = vmatprep.subr.bf16.mxu1 %v7809_v53  ;;  %v4588_v12 = vsel %vm15437_vm7, %v15417_v24, %v9549_v63  ;;  %v9560_v43 = vunpack.i.h.bf16 %v9558_v44  ;;  %v9559_v30 = vunpack.i.l.bf16 %v9558_v44  ;;  %vm15440_vm1 = vmmov %vm15435_vm3  ;;  %v4740_v46 = vld [vmem:[#allocation11 + $0x20] sm:$0xff]  ;;  %v4765_v33 = vld [vmem:[#allocation11 + $0xe8] sm:$0xff] }
 0xc76   : > { %v4638_v23 = vsel %vm15438_vm0, %v10780_v51, %v9564_v48  ;;  %v4639_v9 = vsel %vm15439_vm2, %v10780_v51, %v9565_v4  ;;  %v7815_v32 = vpack.c.bf16 %v4683_v0, %v4682_v34  ;;  %v7787_v37 = vpack.c.bf16 %v4589_v39, %v4588_v12  ;;  %vm15441_vm3 = vmmov %vm15440_vm1  ;;  %v4759_v58 = vld [vmem:[#allocation11 + $0xb8] sm:$0xff]  ;;  %v4758_v63 = vld [vmem:[#allocation11 + $0xb0] sm:$0xff] }
 0xc77   : > { %7784 = vmatpush3.bf16.msra.mxu0 %v7783_v31  ;;  %v9573_v60 = vpop.permute.xlu1 %9572  ;;  %v7789_v35 = vpack.c.bf16 %v4639_v9, %v4638_v23  ;;  %v7817_v49 = vpack.c.bf16 %v4733_v2, %v4732_v11  ;;  %v4685_v17 = vsel %vm15440_vm1, %v10804_v6, %v9560_v43  ;;  %v4684_v36 = vsel %vm15441_vm3, %v10804_v6, %v9559_v30  ;;  %vm15442_vm11 = vmmov %vm15431_vm6  ;;  %v4767_v19 = vld [vmem:[#allocation11 + $0xf8] sm:$0xff]  ;;  %v4766_v53 = vld [vmem:[#allocation11 + $0xf0] sm:$0xff] }
 0xc78   : > { %7812 = vmatpush3.bf16.msra.mxu1 %v7811_v56  ;;  %7786 = vmatprep.subr.bf16.mxu0 %v7785_v54  ;;  %v9575_v47 = vunpack.i.h.bf16 %v9573_v60  ;;  %v9574_v25 = vunpack.i.l.bf16 %v9573_v60  ;;  %v9568_v38 = vpop.permute.xlu0 %9567  ;;  %v7819_v57 = vpack.c.bf16 %v4685_v17, %v4684_v36  ;;  %vm15444_vm7 = vmmov %vm15440_vm1  ;;  %vm5144_vm2 = vcmp.lt.s32.totalorder %v10725_v10, 66 }
 0xc79   : > { %7814 = vmatprep.subr.bf16.mxu1 %v7813_v5  ;;  %v9570_v16 = vunpack.i.h.bf16 %v9568_v38  ;;  %v9569_v51 = vunpack.i.l.bf16 %v9568_v38  ;;  %vm5251_vm15 = vcmp.lt.s32.totalorder %v10725_v10, 41  ;;  %vm5191_vm13 = vcmp.lt.s32.totalorder %v10725_v10, 45 }
 0xc7a   : > { %v4734_v21 = vsel %vm830_vm9, %v10821_v29, %v9574_v25  ;;  %v4735_v14 = vsel %vm830_vm9, %v10821_v29, %v9575_v47  ;;  %vm15443_vm9 = vmmov %vm15440_vm1  ;;  %vm5370_vm4 = vcmp.lt.s32.totalorder %v10725_v10, 33  ;;  %vm15183_vm5 = vcmask 7168  }
 0xc7b   : > { %7788 = vmatpush3.bf16.msra.mxu0 %v7787_v37  ;;  %v4591_v61 = vsel %vm15442_vm11, %v15417_v24, %v9570_v16  ;;  %v4590_v15 = vsel %vm15431_vm6, %v15417_v24, %v9569_v51  ;;  %v7821_v18 = vpack.c.bf16 %v4735_v14, %v4734_v21  ;;  %v4749_v24 = vld [vmem:[#allocation11 + $0x68] sm:$0xff]  ;;  %vm5221_vm6 = vcmp.lt.s32.totalorder %v10725_v10, 43 }
 0xc7c   : > { %7816 = vmatpush3.bf16.msra.mxu1 %v7815_v32  ;;  %7790 = vmatprep.subr.bf16.mxu0 %v7789_v35  ;;  %v7791_v3 = vpack.c.bf16 %v4591_v61, %v4590_v15  ;;  %v9578_v1 = vpop.permute.xlu0 %9577 }
 0xc7d   : > { %7818 = vmatprep.subr.bf16.mxu1 %v7817_v49  ;;  %v9580_v62 = vunpack.i.h.bf16 %v9578_v1  ;;  %v9579_v8 = vunpack.i.l.bf16 %v9578_v1 }
 0xc7f   : > { %7792 = vmatpush3.bf16.msra.mxu0 %v7791_v3  ;;  %v4687_v29 = vsel %vm15443_vm9, %v10804_v6, %v9580_v62  ;;  %v4686_v7 = vsel %vm15444_vm7, %v10804_v6, %v9579_v8  ;;  %v4764_v6 = vld [vmem:[#allocation11 + $0xe0] sm:$0xff]  ;;  %vm5161_vm9 = vcmp.lt.s32.totalorder %v10725_v10, 47  ;;  %vm5340_vm7 = vcmp.lt.s32.totalorder %v10725_v10, 35 }
 0xc80   : > { %7820 = vmatpush3.bf16.msra.mxu1 %v7819_v57  ;;  %v7823_v50 = vpack.c.bf16 %v4687_v29, %v4686_v7 }
 0xc81   : > { %7822 = vmatprep.subr.bf16.mxu1 %v7821_v18 }
 0xc82   : > { %5027 = vmatmul.mubr.f32.vlgmr.msra.gmra.mrb[104].mxu0 %v4740_v46 }
 0xc83   : > { %5031 = vmatprep.mubr.f32.mxu0 %v4749_v24 }
 0xc84   : > { %7824 = vmatpush3.bf16.msra.mxu1 %v7823_v50 }
 0xc86   : > { %5032 = vmatmul.mubr.f32.gmra.mrb[106].mxu0 %v4748_v55 }
 0xc87   : > { %5112 = vmatmul.mubr.f32.vlgmr.msra.gmra.mrb[112].mxu1 %v4742_v27  ;;  %5036 = vmatprep.mubr.f32.mxu0 %v4757_v40 }
 0xc88   : > { %5116 = vmatprep.mubr.f32.mxu1 %v4751_v28  ;;  %v4775_v0 = vpop.permute.xlu1 %4774 }
 0xc8a   : > { %5037 = vmatmul.mubr.f32.gmra.mrb[108].mxu0 %v4756_v26 }
 0xc8b   : > { %5117 = vmatmul.mubr.f32.gmra.mrb[114].mxu1 %v4750_v45  ;;  %5041 = vmatprep.mubr.f32.mxu0 %v4765_v33 }
 0xc8c   : > { %5121 = vmatprep.mubr.f32.mxu1 %v4759_v58  ;;  %v4785_v35 = vpop.permute.xlu1 %4784 }
 0xc8d   : > { %v4780_v2 = vpop.permute.xlu0 %4779 }
 0xc8e   : > { %5042 = vmatmul.mubr.f32.gmra.mrb[110].mxu0 %v4764_v6 }
 0xc8f   : > { %5122 = vmatmul.mubr.f32.gmra.mrb[116].mxu1 %v4758_v63 }
 0xc90   : > { %5126 = vmatprep.mubr.f32.mxu1 %v4767_v19 }
 0xc91   : > { %v4790_v14 = vpop.permute.xlu0 %4789 }
 0xc93   : > { %5127 = vmatmul.mubr.f32.gmra.mrb[118].mxu1 %v4766_v53 }
 0xd31   : > { %v6907_v31 = vpop.f32.mrb[96].mxu0 }
 0xd32   : > { %v6908_v56 = vpop.f32.mrb[97].mxu0 }
 0xd33   : > { %v6909_v5 = vadd.f32 %v6908_v56, %v6907_v31 }
 0xd35   : > { %v6910_v34 = vpop.f32.mrb[98].mxu0  ;;  %v6951_v42 = vpop.f32.mrb[104].mxu1  ;;  %v4859_v48 = vadd.f32 %v6909_v5, %v4775_v0 }
 0xd36   : > { %v6911_v54 = vpop.f32.mrb[99].mxu0  ;;  %v6952_v4 = vpop.f32.mrb[105].mxu1 }
 0xd37   : > { %v6912_v44 = vadd.f32 %v6911_v54, %v6910_v34  ;;  %v6953_v11 = vadd.f32 %v6952_v4, %v6951_v42 }
 0xd39   : > { %v4944_v39 = vadd.f32 %v6953_v11, %v4859_v48  ;;  %v6913_v12 = vpop.f32.mrb[100].mxu0  ;;  %v6954_v43 = vpop.f32.mrb[106].mxu1  ;;  %v4864_v9 = vadd.f32 %v6912_v44, %v4780_v2 }
 0xd3a   : > { %v6914_v30 = vpop.f32.mrb[101].mxu0  ;;  %v6955_v23 = vpop.f32.mrb[107].mxu1 }
 0xd3b   : > { %v6915_v60 = vadd.f32 %v6914_v30, %v6913_v12  ;;  %v6956_v32 = vadd.f32 %v6955_v23, %v6954_v43 }
 0xd3d   : > { %v4949_v47 = vadd.f32 %v6956_v32, %v4864_v9  ;;  %v6916_v25 = vpop.f32.mrb[102].mxu0  ;;  %v6957_v38 = vpop.f32.mrb[108].mxu1  ;;  %v4869_v17 = vadd.f32 %v6915_v60, %v4785_v35 }
 0xd3e   : > { %v6917_v37 = vpop.f32.mrb[103].mxu0  ;;  %v6958_v49 = vpop.f32.mrb[109].mxu1 }
 0xd3f   : > { %v6918_v36 = vadd.f32 %v6917_v37, %v6916_v25  ;;  %v6959_v16 = vadd.f32 %v6958_v49, %v6957_v38 }
 0xd41   : > { %v4954_v51 = vadd.f32 %v6959_v16, %v4869_v17  ;;  %v6960_v21 = vpop.f32.mrb[110].mxu1  ;;  %v4874_v15 = vadd.f32 %v6918_v36, %v4790_v14 }
 0xd42   : > { %v6961_v61 = vpop.f32.mrb[111].mxu1 }
 0xd43   : > { %v6962_v18 = vadd.f32 %v6961_v61, %v6960_v21 }
 0xd45   : > { %v4959_v3 = vadd.f32 %v6962_v18, %v4874_v15  ;;  %v5607_v15 = vld [vmem:[#allocation13 + $0x8] sm:$0xff] }
 0xd46   : > { %5684 = vmatprep.mubr.f32.mxu0 %v5607_v15 }
 0xd55   : > { %v6995_v1 = vpop.f32.mrb[104].mxu0 }
 0xd56   : > { %v6996_v57 = vpop.f32.mrb[105].mxu0 }
 0xd57   : > { %v6997_v62 = vadd.f32 %v6996_v57, %v6995_v1 }
 0xd59   : > { %v5029_v8 = vadd.f32 %v6997_v62, %v4944_v39  ;;  %v6998_v46 = vpop.f32.mrb[106].mxu0 }
 0xd5a   : > { %v7039_v29 = vpop.f32.mrb[112].mxu1  ;;  %v6999_v7 = vpop.f32.mrb[107].mxu0 }
 0xd5b   : > { %v7040_v24 = vpop.f32.mrb[113].mxu1  ;;  %v7000_v50 = vadd.f32 %v6999_v7, %v6998_v46 }
 0xd5c   : > { %v7041_v55 = vadd.f32 %v7040_v24, %v7039_v29  ;;  %v5609_v29 = vld [vmem:[#allocation13 + $0x18] sm:$0xff] }
 0xd5d   : > { %v5034_v27 = vadd.f32 %v7000_v50, %v4949_v47  ;;  %v7001_v28 = vpop.f32.mrb[108].mxu0  ;;  %5754 = vmatprep.mubr.f32.mxu1 %v5609_v29 }
 0xd5e   : > { %v5114_v40 = vadd.f32 %v7041_v55, %v5029_v8  ;;  %v7042_v26 = vpop.f32.mrb[114].mxu1  ;;  %v7002_v45 = vpop.f32.mrb[109].mxu0 }
 0xd5f   : > { %v7043_v33 = vpop.f32.mrb[115].mxu1  ;;  %v7003_v6 = vadd.f32 %v7002_v45, %v7001_v28 }
 0xd60   : > { %vm5132_vm0 = vcmp.ge.f32.partialorder %v5114_v40, 0.0  ;;  %v5136_v58 = vmul.f32 0.01, %v5114_v40  ;;  %v7044_v63 = vadd.f32 %v7043_v33, %v7042_v26 }
 0xd61   : > { %v5039_v19 = vadd.f32 %v7003_v6, %v4954_v51  ;;  %v7004_v31 = vpop.f32.mrb[110].mxu0 }
 0xd62   : > { %v5119_v53 = vadd.f32 %v7044_v63, %v5034_v27  ;;  %v7045_v56 = vpop.f32.mrb[116].mxu1  ;;  %v5140_v5 = vsel %vm5132_vm0, %v5114_v40, %v5136_v58  ;;  %v7005_v0 = vpop.f32.mrb[111].mxu0  ;;  %vm5281_vm0 = vcmp.lt.s32.totalorder %v10725_v10, 39 }
 0xd63   : > { %v7046_v34 = vpop.f32.mrb[117].mxu1  ;;  %v7006_v54 = vadd.f32 %v7005_v0, %v7004_v31  ;;  %v5147_v39 = vsel %vm5144_vm2, %v5140_v5, 0.0 }
 0xd64   : > { %vm5133_vm1 = vcmp.ge.f32.partialorder %v5119_v53, 0.0  ;;  %v5137_v42 = vmul.f32 0.01, %v5119_v53  ;;  %v7047_v4 = vadd.f32 %v7046_v34, %v7045_v56 }
 0xd65   : > { %v5044_v44 = vadd.f32 %v7006_v54, %v4959_v3 }
 0xd66   : > { %v5141_v48 = vsel %vm5133_vm1, %v5119_v53, %v5137_v42  ;;  %v5124_v11 = vadd.f32 %v7047_v4, %v5039_v19  ;;  %v7048_v2 = vpop.f32.mrb[118].mxu1  ;;  %vm5176_vm1 = vcmp.lt.s32.totalorder %v10725_v10, 46 }
 0xd67   : > { %v5148_v12 = vsel %vm5144_vm2, %v5141_v48, 0.0  ;;  %v7049_v43 = vpop.f32.mrb[119].mxu1 }
 0xd68   : > { %v7050_v30 = vadd.f32 %v7049_v43, %v7048_v2  ;;  %v14005_v23 = vpack.i.bf16 %v5148_v12, %v5147_v39  ;;  %v5138_v32 = vmul.f32 0.01, %v5124_v11  ;;  %vm5134_vm11 = vcmp.ge.f32.partialorder %v5124_v11, 0.0 }
 0xd6a   : > { %v5129_v9 = vadd.f32 %v7050_v30, %v5044_v44  ;;  %9677 = vrot.lane.b32.xlu0 %v14005_v23, %s15139_s5  ;;  %9582 = vrot.lane.b32.xlu1 %v14005_v23, %s10268_s9  ;;  %v5142_v25 = vsel %vm5134_vm11, %v5124_v11, %v5138_v32  ;;  %s15145_s5 = smov 44   ;;  %vm5296_vm11 = vcmp.lt.s32.totalorder %v10725_v10, 38 }
 0xd6b   : > { %v5149_v38 = vsel %vm5144_vm2, %v5142_v25, 0.0 }
 0xd6c   : > { %vm5135_vm3 = vcmp.ge.f32.partialorder %v5129_v9, 0.0  ;;  %v5139_v60 = vmul.f32 0.01, %v5129_v9  ;;  %v14030_v37 = vpack.i.bf16 %v5149_v38, %v15311_v59 }
 0xd6e   : > { %v5143_v35 = vsel %vm5135_vm3, %v5129_v9, %v5139_v60  ;;  %9697 = vrot.lane.b32.xlu0 %v14005_v23, %s15138_s21  ;;  %9587 = vrot.lane.b32.xlu1 %v14005_v23, %s10269_s2  ;;  %s15144_s21 = smov 40   ;;  %vm5355_vm3 = vcmp.lt.s32.totalorder %v10725_v10, 34 }
 0xd6f   : > { %v14015_v47 = vsel %vm5144_vm2, %v5143_v35, 0.0  ;;  %vm5236_vm2 = vcmp.lt.s32.totalorder %v10725_v10, 42 }
 0xd70   : > { %v14033_v49 = vpack.i.bf16 %v14015_v47, %v5149_v38 }
 0xd72   : > { %9717 = vrot.lane.b32.xlu0 %v14005_v23, %s15137_s11  ;;  %9592 = vrot.lane.b32.xlu1 %v14005_v23, %s10270_s6  ;;  %s10279_s11 = smov 37  }
 0xd76   : > { %9737 = vrot.lane.b32.xlu0 %v14005_v23, %s15136_s26  ;;  %9597 = vrot.lane.b32.xlu1 %v14005_v23, %s10271_s10  ;;  %s15143_s26 = smov 33  }
 0xd7a   : > { %9742 = vrot.lane.b32.xlu0 %v14030_v37, %s10268_s9  ;;  %9602 = vrot.lane.b32.xlu1 %v14005_v23, %s10272_s12 }
 0xd7e   : > { %9747 = vrot.lane.b32.xlu0 %v14030_v37, %s10269_s2  ;;  %9607 = vrot.lane.b32.xlu1 %v14005_v23, %s10273_s27 }
 0xd82   : > { %9752 = vrot.lane.b32.xlu0 %v14030_v37, %s10270_s6  ;;  %9612 = vrot.lane.b32.xlu1 %v14005_v23, %s15140_s30 }
 0xd86   : > { %9757 = vrot.lane.b32.xlu0 %v14030_v37, %s10271_s10  ;;  %9617 = vrot.lane.b32.xlu1 %v14005_v23, %s10275_s28 }
 0xd8a   : > { %9762 = vrot.lane.b32.xlu0 %v14030_v37, %s10272_s12  ;;  %9622 = vrot.lane.b32.xlu1 %v14005_v23, %s15141_s0 }
 0xd8e   : > { %9767 = vrot.lane.b32.xlu0 %v14030_v37, %s10273_s27  ;;  %9627 = vrot.lane.b32.xlu1 %v14005_v23, %s15142_s24 }
 0xd92   : > { %9772 = vrot.lane.b32.xlu0 %v14030_v37, %s15140_s30  ;;  %9632 = vrot.lane.b32.xlu1 %v14005_v23, %s15143_s26  ;;  %s10282_s30 = smov 32  }
 0xd96   : > { %9777 = vrot.lane.b32.xlu0 %v14030_v37, %s10275_s28  ;;  %9637 = vrot.lane.b32.xlu1 %v14005_v23, %s10279_s11 }
 0xd9a   : > { %9782 = vrot.lane.b32.xlu0 %v14030_v37, %s15141_s0  ;;  %9642 = vrot.lane.b32.xlu1 %v14005_v23, %s15144_s21  ;;  %s10283_s0 = smov 36  }
 0xd9e   : > { %9787 = vrot.lane.b32.xlu0 %v14030_v37, %s15142_s24  ;;  %9647 = vrot.lane.b32.xlu1 %v14005_v23, %s15145_s5  ;;  %s15147_s24 = smov 27  }
 0xda2   : > { %9792 = vrot.lane.b32.xlu0 %v14030_v37, %s15143_s26  ;;  %9652 = vrot.lane.b32.xlu1 %v14005_v23, %s10282_s30  ;;  %s10285_s26 = smov 31  }
 0xda6   : > { %9797 = vrot.lane.b32.xlu0 %v14030_v37, %s10279_s11  ;;  %9657 = vrot.lane.b32.xlu1 %v14005_v23, %s10283_s0 }
 0xdaa   : > { %9802 = vrot.lane.b32.xlu0 %v14030_v37, %s15144_s21  ;;  %9662 = vrot.lane.b32.xlu1 %v14005_v23, %s15147_s24  ;;  %s15149_s21 = smov 26  }
 0xdae   : > { %9807 = vrot.lane.b32.xlu0 %v14030_v37, %s15145_s5  ;;  %9667 = vrot.lane.b32.xlu1 %v14005_v23, %s10285_s26  ;;  %s10287_s5 = smov 30  }
 0xdb2   : > { %9812 = vrot.lane.b32.xlu0 %v14030_v37, %s10282_s30  ;;  %9672 = vrot.lane.b32.xlu1 %v14005_v23, %s15146_s20  ;;  %s10288_s20 = smov 25  }
 0xdb6   : > { %9817 = vrot.lane.b32.xlu0 %v14030_v37, %s10283_s0  ;;  %9682 = vrot.lane.b32.xlu1 %v14005_v23, %s15149_s21 }
 0xdba   : > { %9822 = vrot.lane.b32.xlu0 %v14030_v37, %s15147_s24  ;;  %9687 = vrot.lane.b32.xlu1 %v14005_v23, %s10287_s5  ;;  %s10289_s24 = smov 29  }
 0xdbe   : > { %9827 = vrot.lane.b32.xlu0 %v14030_v37, %s10285_s26  ;;  %9692 = vrot.lane.b32.xlu1 %v14005_v23, %s15148_s4  ;;  %s10290_s4 = smov 24  }
 0xdc2   : > { %9832 = vrot.lane.b32.xlu0 %v14030_v37, %s15149_s21  ;;  %9702 = vrot.lane.b32.xlu1 %v14005_v23, %s10288_s20  ;;  %s10291_s21 = smov 28  }
 0xdc6   : > { %9837 = vrot.lane.b32.xlu0 %v14030_v37, %s10287_s5  ;;  %9707 = vrot.lane.b32.xlu1 %v14005_v23, %s10289_s24 }
 0xdca   : > { %9842 = vrot.lane.b32.xlu0 %v14030_v37, %s10288_s20  ;;  %9712 = vrot.lane.b32.xlu1 %v14005_v23, %s10264_s22 }
 0xdce   : > { %9847 = vrot.lane.b32.xlu0 %v14030_v37, %s10289_s24  ;;  %9722 = vrot.lane.b32.xlu1 %v14005_v23, %s10290_s4 }
 0xdd2   : > { %9852 = vrot.lane.b32.xlu0 %v14030_v37, %s10290_s4  ;;  %9727 = vrot.lane.b32.xlu1 %v14005_v23, %s10291_s21 }
 0xdd6   : > { %9857 = vrot.lane.b32.xlu0 %v14030_v37, %s10291_s21  ;;  %9732 = vrot.lane.b32.xlu1 %v14005_v23, %s15372_s1 }
 0xdda   : > { %5157 = vrot.lane.b32.xlu0 %v14015_v47, %s10269_s2  ;;  %5217 = vrot.lane.b32.xlu1 %v14015_v47, %s10268_s9  ;;  %s15445_s9 = smov 34   ;;  %s15447_s2 = smov 45  }
 0xddc   : > { %v14135_v59 = vpop.permute.xlu0 %9677  ;;  %v9583_v17 = vpop.permute.xlu1 %9582 }
 0xddd   : > { %v9585_v3 = vunpack.i.h.bf16 %v9583_v17  ;;  %v9584_v1 = vunpack.i.l.bf16 %v9583_v17 }
 0xdde   : > { %5277 = vrot.lane.b32.xlu0 %v14015_v47, %s10271_s10  ;;  %5336 = vrot.lane.b32.xlu1 %v14015_v47, %s10270_s6  ;;  %s15448_s6 = smov 41   ;;  %s15449_s10 = smov 33  }
 0xde0   : > { %v14141_v36 = vpop.permute.xlu0 %9697  ;;  %v9588_v16 = vpop.permute.xlu1 %9587 }
 0xde1   : > { %v9590_v50 = vunpack.i.h.bf16 %v9588_v16  ;;  %v9589_v55 = vunpack.i.l.bf16 %v9588_v16 }
 0xde2   : > { %5172 = vrot.lane.b32.xlu0 %v14015_v47, %s10273_s27  ;;  %5232 = vrot.lane.b32.xlu1 %v14015_v47, %s10272_s12  ;;  %s15451_s12 = smov 40   ;;  %s15452_s27 = smov 27  }
 0xde4   : > { %v14147_v51 = vpop.permute.xlu0 %9717  ;;  %v9593_v21 = vpop.permute.xlu1 %9592 }
 0xde5   : > { %v9595_v58 = vunpack.i.h.bf16 %v9593_v21  ;;  %v9594_v6 = vunpack.i.l.bf16 %v9593_v21 }
 0xde6   : > { %5292 = vrot.lane.b32.xlu0 %v14015_v47, %s10275_s28  ;;  %5351 = vrot.lane.b32.xlu1 %v14015_v47, %s15445_s9  ;;  %s15455_s28 = smov 26  }
 0xde8   : > { %v14153_v14 = vpop.permute.xlu0 %9737  ;;  %v9598_v61 = vpop.permute.xlu1 %9597 }
 0xde9   : > { %15446 = vst [vmem:[#allocation31_spill] sm:$0xff] %v14153_v14  ;;  %v9600_v0 = vunpack.i.h.bf16 %v9598_v61  ;;  %v9599_v34 = vunpack.i.l.bf16 %v9598_v61  ;;  %v15471_v14 = vld [vmem:[#allocation33_spill] sm:$0xff] }
 0xdea   : > { %5187 = vrot.lane.b32.xlu0 %v14015_v47, %s15447_s2  ;;  %5247 = vrot.lane.b32.xlu1 %v14015_v47, %s15448_s6  ;;  %v2928_v13 = vmul.f32 %v15471_v14, %v15471_v14  ;;  %s6150_s2 = sshll.u32 %s10647_s23, 4  ;;  %s14931_s23 = sand.u32 1, %s10203_s25  }
 0xdeb   : > { %s764_s6 = scalar_lea.vmem [#allocation15], %s14931_s23 }
 0xdec   : > { %v14159_v18 = vpop.permute.xlu0 %9742  ;;  %v9603_v62 = vpop.permute.xlu1 %9602 }
 0xded   : > { %v14163_v57 = vunpack.i.l.bf16 %v14159_v18  ;;  %v9605_v2 = vunpack.i.h.bf16 %v9603_v62  ;;  %v9604_v39 = vunpack.i.l.bf16 %v9603_v62 }
 0xdee   : > { %5307 = vrot.lane.b32.xlu0 %v14015_v47, %s10279_s11  ;;  %5366 = vrot.lane.b32.xlu1 %v14015_v47, %s15449_s10  ;;  %s15450_s11 = smov 44   ;;  %s5940_s10 = sshll.u32 %s764_s6, 4  ;;  %s14954_s10 = int_to_ptr.vmem [resolvable:$true] %s5940_s10 }
 0xdef   : > { %v5222_v8 = vsel %vm5221_vm6, %v14163_v57, %v9584_v1  ;;  %v5223_v46 = vsel %vm5221_vm6, %v14163_v57, %v9585_v3 }
 0xdf0   : > { %v14175_v7 = vpop.permute.xlu0 %9747  ;;  %v7825_v24 = vpack.c.bf16 %v5223_v46, %v5222_v8  ;;  %v9608_v40 = vpop.permute.xlu1 %9607 }
 0xdf1   : > { %v14179_v27 = vunpack.i.l.bf16 %v14175_v7  ;;  %v9610_v32 = vunpack.i.h.bf16 %v9608_v40  ;;  %v9609_v35 = vunpack.i.l.bf16 %v9608_v40 }
 0xdf2   : > { %5202 = vrot.lane.b32.xlu0 %v14015_v47, %s15450_s11  ;;  %7826 = vmatprep.subr.bf16.mxu0 %v7825_v24  ;;  %s773_s11 = scalar_lea.vmem %s15039_s19, %s6150_s2  ;;  %s6147_s2 = sshll.u32 %s10425_s3, 4 }
 0xdf3   : > { %5262 = vrot.lane.b32.xlu1 %v14015_v47, %s15451_s12  ;;  %v5162_v28 = vsel %vm5161_vm9, %v14179_v27, %v9589_v55  ;;  %v5163_v26 = vsel %vm5161_vm9, %v14179_v27, %v9590_v50 }
 0xdf4   : > { %v14191_v45 = vpop.permute.xlu0 %9752  ;;  %v7827_v33 = vpack.c.bf16 %v5163_v26, %v5162_v28  ;;  %v9613_v19 = vpop.permute.xlu1 %9612 }
 0xdf5   : > { %v14195_v63 = vunpack.i.l.bf16 %v14191_v45  ;;  %v9615_v61 = vunpack.i.h.bf16 %v9613_v19  ;;  %v9614_v15 = vunpack.i.l.bf16 %v9613_v19 }
 0xdf6   : > { %5322 = vrot.lane.b32.xlu0 %v14015_v47, %s10283_s0  ;;  %7828 = vmatpush3.bf16.msra.mxu0 %v7827_v33  ;;  %s15457_s0 = smov 18  }
 0xdf7   : > { %5381 = vrot.lane.b32.xlu1 %v14015_v47, %s10282_s30  ;;  %v5341_v53 = vsel %vm5340_vm7, %v14195_v63, %v9594_v6  ;;  %v5342_v31 = vsel %vm5340_vm7, %v14195_v63, %v9595_v58  ;;  %s15454_s30 = smov 19  }
 0xdf8   : > { %v14207_v56 = vpop.permute.xlu0 %9757  ;;  %v7857_v5 = vpack.c.bf16 %v5342_v31, %v5341_v53  ;;  %v9618_v54 = vpop.permute.xlu1 %9617 }
 0xdf9   : > { %v14211_v42 = vunpack.i.l.bf16 %v14207_v56  ;;  %v9620_v24 = vunpack.i.h.bf16 %v9618_v54  ;;  %v9619_v50 = vunpack.i.l.bf16 %v9618_v54 }
 0xdfa   : > { %5396 = vrot.lane.b32.xlu0 %v14015_v47, %s10285_s26  ;;  %7858 = vmatprep.subr.bf16.mxu1 %v7857_v5  ;;  %s15453_s26 = smov 23  }
 0xdfb   : > { %5456 = vrot.lane.b32.xlu1 %v14015_v47, %s15452_s27  ;;  %v5282_v4 = vsel %vm5281_vm0, %v14211_v42, %v9599_v34  ;;  %v5283_v48 = vsel %vm5281_vm0, %v14211_v42, %v9600_v0  ;;  %s15550_s27 = sld [smem:[#allocation73_spill]] }
 0xdfc   : > { %v14223_v44 = vpop.permute.xlu0 %9762  ;;  %v7859_v11 = vpack.c.bf16 %v5283_v48, %v5282_v4  ;;  %v9623_v43 = vpop.permute.xlu1 %9622 }
 0xdfd   : > { %v14227_v12 = vunpack.i.l.bf16 %v14223_v44  ;;  %v9625_v6 = vunpack.i.h.bf16 %v9623_v43  ;;  %v9624_v19 = vunpack.i.l.bf16 %v9623_v43 }
 0xdfe   : > { %9867 = vrot.lane.b32.xlu0 %v14033_v49, %s15453_s26  ;;  %7860 = vmatpush3.bf16.msra.mxu1 %v7859_v11  ;;  %s15542_s26 = sld [smem:[#allocation71_spill]] }
 0xdff   : > { %9862 = vrot.lane.b32.xlu1 %v14033_v49, %s15454_s30  ;;  %v14236_v30 = vsel %vm5236_vm2, %v14227_v12, %v9604_v39  ;;  %v14241_v23 = vsel %vm5236_vm2, %v14227_v12, %v9605_v2 }
 0xe00   : > { %v14243_v9 = vpop.permute.xlu0 %9767  ;;  %v9628_v38 = vpop.permute.xlu1 %9627 }
 0xe01   : > { %v14249_v25 = vunpack.i.l.bf16 %v14243_v9  ;;  %v9630_v4 = vunpack.i.h.bf16 %v9628_v38  ;;  %v9629_v48 = vunpack.i.l.bf16 %v9628_v38 }
 0xe02   : > { %5411 = vrot.lane.b32.xlu0 %v14015_v47, %s10287_s5  ;;  %s15456_s5 = smov 22  }
 0xe03   : > { %5471 = vrot.lane.b32.xlu1 %v14015_v47, %s15455_s28  ;;  %v14258_v37 = vsel %vm5176_vm1, %v14249_v25, %v9609_v35  ;;  %v14263_v17 = vsel %vm5176_vm1, %v14249_v25, %v9610_v32  ;;  %s15551_s28 = smov %s15550_s27 }
 0xe04   : > { %v14265_v16 = vpop.permute.xlu0 %9772  ;;  %v9633_v1 = vpop.permute.xlu1 %9632  ;;  %s15543_s30 = smov %s15542_s26 }
 0xe05   : > { %v14271_v3 = vunpack.i.l.bf16 %v14265_v16  ;;  %v9635_v38 = vunpack.i.h.bf16 %v9633_v1 }
 0xe06   : > { %9877 = vrot.lane.b32.xlu0 %v14033_v49, %s15456_s5 }
 0xe07   : > { %9872 = vrot.lane.b32.xlu1 %v14033_v49, %s15457_s0  ;;  %v14280_v62 = vsel %vm5355_vm3, %v14271_v3, %v9614_v15  ;;  %v14285_v8 = vsel %vm5355_vm3, %v14271_v3, %v9615_v61  ;;  %v9634_v61 = vunpack.i.l.bf16 %v9633_v1  ;;  %s6139_s0 = sshll.u32 %s14931_s23, 3 }
 0xe08   : > { %v14287_v46 = vpop.permute.xlu0 %9777  ;;  %v9638_v40 = vpop.permute.xlu1 %9637 }
 0xe09   : > { %v14293_v55 = vunpack.i.l.bf16 %v14287_v46 }
 0xe0a   : > { %5426 = vrot.lane.b32.xlu0 %v14015_v47, %s10289_s24 }
 0xe0b   : > { %5486 = vrot.lane.b32.xlu1 %v14015_v47, %s10288_s20  ;;  %v14302_v28 = vsel %vm5296_vm11, %v14293_v55, %v9619_v50  ;;  %v14307_v26 = vsel %vm5296_vm11, %v14293_v55, %v9620_v24  ;;  %s15458_s20 = smov 21   ;;  %v5614_v24 = vld [vmem:[%s15036_s16] sm:$0xff] }
 0xe0c   : > { %v14309_v33 = vpop.permute.xlu0 %9782  ;;  %v14317_v31 = vpop.permute.xlu1 %9642 }
 0xe0d   : > { %v14315_v53 = vunpack.i.l.bf16 %v14309_v33 }
 0xe0e   : > { %9887 = vrot.lane.b32.xlu0 %v14033_v49, %s15458_s20  ;;  %s6146_s20 = sshll.u32 %s10425_s3, 7 }
 0xe0f   : > { %9882 = vrot.lane.b32.xlu1 %v14033_v49, %s10264_s22  ;;  %v14326_v5 = vsel %vm5251_vm15, %v14315_v53, %v9624_v19  ;;  %v14331_v0 = vsel %vm5251_vm15, %v14315_v53, %v9625_v6 }
 0xe10   : > { %v14333_v34 = vpop.permute.xlu0 %9787  ;;  %v14341_v2 = vpop.permute.xlu1 %9647 }
 0xe11   : > { %v14339_v11 = vunpack.i.l.bf16 %v14333_v34 }
 0xe12   : > { %5441 = vrot.lane.b32.xlu0 %v14015_v47, %s10291_s21 }
 0xe13   : > { %5501 = vrot.lane.b32.xlu1 %v14015_v47, %s10290_s4  ;;  %v14350_v39 = vsel %vm5191_vm13, %v14339_v11, %v9629_v48  ;;  %v14355_v43 = vsel %vm5191_vm13, %v14339_v11, %v9630_v4  ;;  %s15459_s4 = smov 20   ;;  %v9639_v4 = vunpack.i.l.bf16 %v9638_v40 }
 0xe14   : > { %v14357_v32 = vpop.permute.xlu0 %9792  ;;  %v14365_v15 = vpop.permute.xlu1 %9652 }
 0xe15   : > { %v14363_v47 = vunpack.i.l.bf16 %v14357_v32 }
 0xe16   : > { %9897 = vrot.lane.b32.xlu0 %v14033_v49, %s15459_s4  ;;  %s758_s4 = scalar_lea.vmem [#allocation14], %s6139_s0  ;;  %s15552_s0 = sld [smem:[#allocation74_spill]] }
 0xe17   : > { %9892 = vrot.lane.b32.xlu1 %v14033_v49, %s15372_s1  ;;  %v14377_v50 = vsel %vm5370_vm4, %v14363_v47, %v9634_v61  ;;  %v14382_v1 = vsel %vm5370_vm4, %v14363_v47, %v9635_v38  ;;  %v9640_v49 = vunpack.i.h.bf16 %v9638_v40  ;;  %s5927_s22 = sshll.u32 %s758_s4, 4  ;;  %s14947_s22 = int_to_ptr.vmem [resolvable:$true] %s5927_s22 }
 0xe18   : > { %15460 = vst [vmem:[#allocation39_spill] sm:$0xff] %v14377_v50  ;;  %15461 = vst [vmem:[#allocation40_spill] sm:$0xff] %v14382_v1  ;;  %v14384_v6 = vpop.permute.xlu0 %9797  ;;  %v14392_v35 = vpop.permute.xlu1 %9657 }
 0xe19   : > { %v14390_v48 = vunpack.i.l.bf16 %v14384_v6 }
 0xe1a   : > { %5617 = vperm.xlu0 %8300, %v5614_v24  }
 0xe1b   : > { %v14397_v38 = vsel %vm5311_vm14, %v14390_v48, %v9639_v4  ;;  %v14402_v61 = vsel %vm5311_vm14, %v14390_v48, %v9640_v49 }
 0xe1c   : > { %15462 = vst [vmem:[#allocation41_spill] sm:$0xff] %v14397_v38  ;;  %15463 = vst [vmem:[#allocation42_spill] sm:$0xff] %v14402_v61  ;;  %v14404_v19 = vpop.permute.xlu0 %9802  ;;  %v14408_v54 = vpop.permute.xlu1 %9662  ;;  %v15473_v61 = vld [vmem:[#allocation32_spill] sm:$0xff]  ;;  %s14952_s21 = scalar_lea.hbm %s15552_s0, %s6147_s2 }
 0xe20   : > { %v14410_v58 = vpop.permute.xlu0 %9807  ;;  %v14412_v24 = vpop.permute.xlu1 %9667 }
 0xe21   : > { %15464 = vst [vmem:[#allocation43_spill] sm:$0xff] %v14412_v24  ;;  %v2927_v24 = vmul.f32 %v15473_v61, %v15473_v61 }
 0xe24   : > { %v14414_v29 = vpop.permute.xlu0 %9812  ;;  %v14416_v4 = vpop.permute.xlu1 %9672 }
 0xe28   : > { %v14418_v21 = vpop.permute.xlu0 %9817  ;;  %v14420_v60 = vpop.permute.xlu1 %9682 }
 0xe29   : > { %15465 = vst [vmem:[#allocation44_spill] sm:$0xff] %v14418_v21  ;;  %15466 = vst [vmem:[#allocation45_spill] sm:$0xff] %v14420_v60  ;;  %v2931_v60 = vsel %vm15183_vm5, %v2928_v13, 0.0 }
 0xe2c   : > { %v14422_v49 = vpop.permute.xlu0 %9822  ;;  %v14424_v52 = vpop.permute.xlu1 %9687 }
 0xe2d   : > { %15467 = vst [vmem:[#allocation46_spill] sm:$0xff] %v14422_v49  ;;  %15468 = vst [vmem:[#allocation47_spill] sm:$0xff] %v14424_v52  ;;  %v2930_v52 = vsel %vm15183_vm5, %v2927_v24, 0.0  ;;  %v9750_v24 = vunpack.i.h.bf16 %v14175_v7  ;;  %vm5266_vm5 = vcmp.lt.s32.totalorder %v10725_v10, 40 }
 0xe30   : > { %v14426_v22 = vpop.permute.xlu0 %9827  ;;  %v14428_v40 = vpop.permute.xlu1 %9692 }
 0xe31   : > { %15469 = vst [vmem:[#allocation48_spill] sm:$0xff] %v14426_v22  ;;  %15470 = vst [vmem:[#allocation49_spill] sm:$0xff] %v14428_v40  ;;  %v2932_v40 = vadd.f32 %v2931_v60, %v2930_v52  ;;  %v9745_v52 = vunpack.i.h.bf16 %v14159_v18  ;;  %v9680_v60 = vunpack.i.h.bf16 %v14135_v59 }
 0xe34   : > { %v14432_v38 = vpop.permute.xlu0 %9832  ;;  %v14436_v50 = vpop.permute.xlu1 %9702 }
 0xe35   : > { %15472 = vst [vmem:[#allocation50_spill] sm:$0xff] %v14432_v38  ;;  %15474 = vst [vmem:[#allocation51_spill] sm:$0xff] %v14436_v50 }
 0xe38   : > { %v14439_v49 = vpop.permute.xlu0 %9837  ;;  %v14442_v22 = vpop.permute.xlu1 %9707 }
 0xe39   : > { %15475 = vst [vmem:[#allocation52_spill] sm:$0xff] %v14439_v49  ;;  %15476 = vst [vmem:[#allocation53_spill] sm:$0xff] %v14442_v22  ;;  %v9700_v22 = vunpack.i.h.bf16 %v14141_v36 }
 0xe3b   : > { %2933 = vadd.xlane.f32.xlu1 %v2932_v40  ;;  %v9679_v40 = vunpack.i.l.bf16 %v14135_v59  ;;  %v5224_v59 = vsel %vm5221_vm6, %v14163_v57, %v9745_v52  ;;  %v9765_v52 = vunpack.i.h.bf16 %v14223_v44 }
 0xe3c   : > { %v14444_v21 = vpop.permute.xlu0 %9842  ;;  %v14446_v14 = vpop.permute.xlu1 %9712 }
 0xe40   : > { %v14448_v38 = vpop.permute.xlu0 %9847  ;;  %v14450_v61 = vpop.permute.xlu1 %9722 }
 0xe41   : > { %15477 = vst [vmem:[#allocation54_spill] sm:$0xff] %v14448_v38  ;;  %15478 = vst [vmem:[#allocation55_spill] sm:$0xff] %v14450_v61  ;;  %v9699_v61 = vunpack.i.l.bf16 %v14141_v36 }
 0xe44   : > { %v14452_v50 = vpop.permute.xlu0 %9852  ;;  %v14454_v1 = vpop.permute.xlu1 %9727 }
 0xe45   : > { %15479 = vst [vmem:[#allocation56_spill] sm:$0xff] %v14452_v50  ;;  %15480 = vst [vmem:[#allocation57_spill] sm:$0xff] %v14454_v1  ;;  %v9760_v50 = vunpack.i.h.bf16 %v14207_v56  ;;  %v5164_v1 = vsel %vm5161_vm9, %v14179_v27, %v9750_v24  ;;  %v14484_v56 = vsel %vm4350_vm10, %v13301_v41, %v9680_v60  ;;  %v9719_v24 = vunpack.i.l.bf16 %v14147_v51 }
 0xe48   : > { %v14456_v13 = vpop.permute.xlu0 %9857  ;;  %v14459_v49 = vpop.permute.xlu1 %9732 }
 0xe49   : > { %15481 = vst [vmem:[#allocation58_spill] sm:$0xff] %v14456_v13  ;;  %15482 = vst [vmem:[#allocation59_spill] sm:$0xff] %v14459_v49  ;;  %v9755_v49 = vunpack.i.h.bf16 %v14191_v45  ;;  %v14494_v45 = vsel %vm3362_vm12, %v13509_v20, %v9700_v22  ;;  %v5284_v22 = vsel %vm5281_vm0, %v14211_v42, %v9760_v50  ;;  %v9785_v50 = vunpack.i.h.bf16 %v14309_v33 }
 0xe4b   : > { %v5343_v44 = vsel %vm5340_vm7, %v14195_v63, %v9755_v49  ;;  %v15484_v49 = vld [vmem:[#allocation34_spill] sm:$0xff] }
 0xe4c   : > { %v5158_v38 = vpop.permute.xlu0 %5157  ;;  %v5218_v18 = vpop.permute.xlu1 %5217 }
 0xe4d   : > { %v5165_v7 = vsel %vm5161_vm9, %v14179_v27, %v5158_v38  ;;  %v5225_v36 = vsel %vm5221_vm6, %v14163_v57, %v5218_v18  ;;  %v14489_v27 = vsel %vm4350_vm10, %v13301_v41, %v9679_v40  ;;  %v14499_v57 = vsel %vm3362_vm12, %v13509_v20, %v9699_v61 }
 0xe4e   : > { %v7831_v13 = vpack.c.bf16 %v5165_v7, %v5164_v1  ;;  %v7829_v1 = vpack.c.bf16 %v5225_v36, %v5224_v59  ;;  %v9720_v38 = vunpack.i.h.bf16 %v14147_v51  ;;  %v9770_v40 = vunpack.i.h.bf16 %v14243_v9 }
 0xe4f   : > { %v9775_v7 = vunpack.i.h.bf16 %v14265_v16  ;;  %v9780_v59 = vunpack.i.h.bf16 %v14287_v46  ;;  %v7923_v16 = vpack.c.bf16 %v14484_v56, %v14489_v27  ;;  %v15483_v46 = vpack.c.bf16 %v14241_v23, %v14236_v30 }
 0xe50   : > { %v5278_v60 = vpop.permute.xlu0 %5277  ;;  %v5337_v18 = vpop.permute.xlu1 %5336  ;;  %7830 = vmatprep.subr.bf16.mxu0 %v7829_v1  ;;  %vm5206_vm6 = vcmp.lt.s32.totalorder %v10725_v10, 44  ;;  %v9790_v1 = vunpack.i.h.bf16 %v14333_v34  ;;  %v5239_v30 = vsel %vm5236_vm2, %v14227_v12, %v9765_v52  ;;  %v14543_v23 = vunpack.i.l.bf16 %v14404_v19 }
 0xe51   : > { %v5285_v61 = vsel %vm5281_vm0, %v14211_v42, %v5278_v60  ;;  %v5344_v9 = vsel %vm5340_vm7, %v14195_v63, %v5337_v18  ;;  %7832 = vmatpush3.bf16.msra.mxu0 %v7831_v13  ;;  %v7931_v42 = vpack.c.bf16 %v14494_v45, %v14499_v57  ;;  %v14531_v63 = vsel %vm4403_vm8, %v15484_v49, %v9720_v38 }
 0xe52   : > { %v7863_v51 = vpack.c.bf16 %v5285_v61, %v5284_v22  ;;  %v7861_v36 = vpack.c.bf16 %v5344_v9, %v5343_v44  ;;  %7834 = vmatprep.subr.bf16.mxu0 %v15483_v46  ;;  %v14536_v13 = vsel %vm4403_vm8, %v15484_v49, %v9719_v24  ;;  %v5179_v38 = vsel %vm5176_vm1, %v14249_v25, %v9770_v40 }
 0xe53   : > { %v5358_v34 = vsel %vm5355_vm3, %v14271_v3, %v9775_v7  ;;  %v9645_v22 = vunpack.i.h.bf16 %v14317_v31  ;;  %v15485_v40 = vpack.c.bf16 %v14263_v17, %v14258_v37  ;;  %vm5385_vm9 = vcmp.lt.s32.totalorder %v10725_v10, 32 }
 0xe54   : > { %v5173_v33 = vpop.permute.xlu0 %5172  ;;  %v5233_v24 = vpop.permute.xlu1 %5232  ;;  %7862 = vmatprep.subr.bf16.mxu1 %v7861_v36  ;;  %v9644_v7 = vunpack.i.l.bf16 %v14317_v31  ;;  %v9795_v18 = vunpack.i.h.bf16 %v14357_v32  ;;  %v15486_v9 = vpack.c.bf16 %v14285_v8, %v14280_v62  ;;  %v9650_v37 = vunpack.i.h.bf16 %v14341_v2 }
 0xe55   : > { %v5180_v60 = vsel %vm5176_vm1, %v14249_v25, %v5173_v33  ;;  %v5240_v61 = vsel %vm5236_vm2, %v14227_v12, %v5233_v24  ;;  %7836 = vmatpush3.bf16.msra.mxu0 %v15485_v40  ;;  %7864 = vmatpush3.bf16.msra.mxu1 %v7863_v51  ;;  %v5299_v25 = vsel %vm5296_vm11, %v14293_v55, %v9780_v59  ;;  %v9649_v17 = vunpack.i.l.bf16 %v14341_v2 }
 0xe56   : > { %v7839_v52 = vpack.c.bf16 %v5180_v60, %v5179_v38  ;;  %v7837_v44 = vpack.c.bf16 %v5240_v61, %v5239_v30  ;;  %7866 = vmatprep.subr.bf16.mxu1 %v15486_v9  ;;  %v5254_v12 = vsel %vm5251_vm15, %v14315_v53, %v9785_v50  ;;  %v9800_v59 = vunpack.i.h.bf16 %v14384_v6 }
 0xe57   : > { %v5194_v31 = vsel %vm5191_vm13, %v14339_v11, %v9790_v1  ;;  %v9655_v32 = vunpack.i.h.bf16 %v14365_v15  ;;  %v9805_v62 = vunpack.i.h.bf16 %v14404_v19  ;;  %v5267_v2 = vsel %vm5266_vm5, %v14543_v23, %v9644_v7 }
 0xe58   : > { %v5293_v51 = vpop.permute.xlu0 %5292  ;;  %v5352_v50 = vpop.permute.xlu1 %5351  ;;  %7838 = vmatprep.subr.bf16.mxu0 %v7837_v44  ;;  %v14588_v6 = vunpack.i.l.bf16 %v14410_v58  ;;  %v15487_v19 = vpack.c.bf16 %v14307_v26, %v14302_v28  ;;  %vm5460_vm7 = vcmp.lt.s32.totalorder %v10725_v10, 27  ;;  %v9654_v1 = vunpack.i.l.bf16 %v14365_v15  ;;  %v15491_v44 = vld [vmem:[#allocation39_spill] sm:$0xff] }
 0xe59   : > { %v5300_v8 = vsel %vm5296_vm11, %v14293_v55, %v5293_v51  ;;  %v5359_v46 = vsel %vm5355_vm3, %v14271_v3, %v5352_v50  ;;  %7840 = vmatpush3.bf16.msra.mxu0 %v7839_v52  ;;  %v5268_v55 = vsel %vm5266_vm5, %v14543_v23, %v9645_v22  ;;  %v9660_v33 = vunpack.i.h.bf16 %v14392_v35 }
 0xe5a   : > { %v7871_v36 = vpack.c.bf16 %v5300_v8, %v5299_v25  ;;  %7868 = vmatpush3.bf16.msra.mxu1 %v15487_v19  ;;  %v7869_v30 = vpack.c.bf16 %v5359_v46, %v5358_v34  ;;  %v15488_v38 = vpack.c.bf16 %v14331_v0, %v14326_v5  ;;  %v5373_v3 = vsel %vm5370_vm4, %v14363_v47, %v9795_v18  ;;  %v15490_v18 = vld [vmem:[#allocation40_spill] sm:$0xff]  ;;  %v15496_v19 = vld [vmem:[#allocation42_spill] sm:$0xff] }
 0xe5b   : > { %v9659_v28 = vunpack.i.l.bf16 %v14392_v35  ;;  %v9665_v26 = vunpack.i.h.bf16 %v14408_v54  ;;  %v9810_v60 = vunpack.i.h.bf16 %v14410_v58  ;;  %v5314_v15 = vsel %vm5311_vm14, %v14390_v48, %v9800_v59 }
 0xe5c   : > { %7842 = vmatprep.subr.bf16.mxu0 %v15488_v38  ;;  %v5188_v24 = vpop.permute.xlu0 %5187  ;;  %v14615_v34 = vunpack.i.l.bf16 %v14414_v29  ;;  %v5248_v0 = vpop.permute.xlu1 %5247  ;;  %7870 = vmatprep.subr.bf16.mxu1 %v7869_v30  ;;  %v7849_v22 = vpack.c.bf16 %v5268_v55, %v5267_v2  ;;  %v14623_v35 = vsel %vm5266_vm5, %v14543_v23, %v9805_v62  ;;  %v9664_v58 = vunpack.i.l.bf16 %v14408_v54 }
 0xe5d   : > { %v5195_v5 = vsel %vm5191_vm13, %v14339_v11, %v5188_v24  ;;  %v5255_v61 = vsel %vm5251_vm15, %v14315_v53, %v5248_v0  ;;  %v15489_v40 = vpack.c.bf16 %v14355_v43, %v14350_v39  ;;  %v5207_v11 = vsel %vm5206_vm6, %v14588_v6, %v9649_v17  ;;  %v15493_v39 = vld [vmem:[#allocation43_spill] sm:$0xff]  ;;  %v15494_v17 = vld [vmem:[#allocation44_spill] sm:$0xff] }
 0xe5e   : > { %v7847_v52 = vpack.c.bf16 %v5195_v5, %v5194_v31  ;;  %7872 = vmatpush3.bf16.msra.mxu1 %v7871_v36  ;;  %vm5400_vm13 = vcmp.lt.s32.totalorder %v10725_v10, 31  ;;  %v9675_v25 = vunpack.i.h.bf16 %v14416_v4  ;;  %v9674_v54 = vunpack.i.l.bf16 %v14416_v4 }
 0xe5f   : > { %7844 = vmatpush3.bf16.msra.mxu0 %v15489_v40  ;;  %v7845_v7 = vpack.c.bf16 %v5255_v61, %v5254_v12  ;;  %v15492_v9 = vpack.c.bf16 %v15490_v18, %v15491_v44  ;;  %v5208_v53 = vsel %vm5206_vm6, %v14588_v6, %v9650_v37  ;;  %v9670_v43 = vunpack.i.h.bf16 %v15493_v39  ;;  %v15495_v12 = vld [vmem:[#allocation46_spill] sm:$0xff] }
 0xe60   : > { %v9815_v59 = vunpack.i.h.bf16 %v14414_v29  ;;  %v9819_v51 = vunpack.i.l.bf16 %v15494_v17  ;;  %v5308_v31 = vpop.permute.xlu0 %5307  ;;  %v5209_v4 = vsel %vm5206_vm6, %v14588_v6, %v9810_v60  ;;  %v14651_v62 = vunpack.i.l.bf16 %v15495_v12  ;;  %v5367_v50 = vpop.permute.xlu1 %5366 }
 0xe61   : > { %7874 = vmatprep.subr.bf16.mxu1 %v15492_v9  ;;  %v5315_v8 = vsel %vm5311_vm14, %v14390_v48, %v5308_v31  ;;  %7846 = vmatprep.subr.bf16.mxu0 %v7845_v7  ;;  %v5386_v29 = vsel %vm5385_vm9, %v14615_v34, %v9654_v1  ;;  %v5387_v37 = vsel %vm5385_vm9, %v14615_v34, %v9655_v32  ;;  %v9669_v2 = vunpack.i.l.bf16 %v15493_v39  ;;  %v15497_v48 = vld [vmem:[#allocation41_spill] sm:$0xff]  ;;  %v15499_v32 = vld [vmem:[#allocation36_spill] sm:$0xff]  ;;  %v15508_v31 = vld [vmem:[#allocation50_spill] sm:$0xff] }
 0xe62   : > { %v7879_v36 = vpack.c.bf16 %v5315_v8, %v5314_v15  ;;  %v5374_v46 = vsel %vm5370_vm4, %v14363_v47, %v5367_v50  ;;  %v15498_v55 = vpack.c.bf16 %v15496_v19, %v15497_v48  ;;  %v7851_v30 = vpack.c.bf16 %v5208_v53, %v5207_v11  ;;  %v15507_v53 = vld [vmem:[#allocation49_spill] sm:$0xff] }
 0xe63   : > { %7848 = vmatpush3.bf16.msra.mxu0 %v7847_v52  ;;  %vm5475_vm14 = vcmp.lt.s32.totalorder %v10725_v10, 26  ;;  %v9820_v1 = vunpack.i.h.bf16 %v15494_v17  ;;  %v7877_v38 = vpack.c.bf16 %v5374_v46, %v5373_v3  ;;  %vm15500_vm15 = vcmp.lt.s32.totalorder %v10725_v10, 19 }
 0xe64   : > { %7876 = vmatpush3.bf16.msra.mxu1 %v15498_v55  ;;  %7850 = vmatprep.subr.bf16.mxu0 %v7849_v22  ;;  %v14674_v60 = vsel %vm15500_vm15, %v15499_v32, %v9674_v54  ;;  %vm15501_vm4 = vmmov %vm15500_vm15  ;;  %v5203_v24 = vpop.permute.xlu0 %5202  ;;  %v7881_v15 = vpack.c.bf16 %v5387_v37, %v5386_v29  ;;  %v5388_v5 = vsel %vm5385_vm9, %v14615_v34, %v9815_v59  ;;  %vm15502_vm0 = vcmp.lt.s32.totalorder %v10725_v10, 36  ;;  %v15504_v22 = vld [vmem:[#allocation48_spill] sm:$0xff]  ;;  %v15510_v29 = vld [vmem:[#allocation47_spill] sm:$0xff] }
 0xe65   : > { %v14679_v47 = vsel %vm15501_vm4, %v15499_v32, %v9675_v25  ;;  %v5326_v3 = vsel %vm15502_vm0, %v9819_v51, %v9659_v28  ;;  %vm15503_vm2 = vmmov %vm15502_vm0  ;;  %vm5415_vm1 = vcmp.lt.s32.totalorder %v10725_v10, 30  ;;  %v9829_v52 = vunpack.i.l.bf16 %v15504_v22  ;;  %v5263_v40 = vpop.permute.xlu1 %5262  ;;  %7878 = vmatprep.subr.bf16.mxu1 %v7877_v38  ;;  %v15505_v25 = vld [vmem:[#allocation45_spill] sm:$0xff]  ;;  %v15511_v55 = vld [vmem:[#allocation52_spill] sm:$0xff] }
 0xe66   : > { %v5327_v0 = vsel %vm15503_vm2, %v9819_v51, %v9660_v33  ;;  %v5210_v61 = vsel %vm5206_vm6, %v14588_v6, %v5203_v24  ;;  %v5461_v11 = vsel %vm5460_vm7, %v14651_v62, %v9664_v58  ;;  %v5462_v28 = vsel %vm5460_vm7, %v14651_v62, %v9665_v26  ;;  %vm15506_vm3 = vmmov %vm15502_vm0 }
 0xe67   : > { %v9685_v33 = vunpack.i.h.bf16 %v15505_v25  ;;  %v7855_v54 = vpack.c.bf16 %v5210_v61, %v5209_v4  ;;  %v5270_v7 = vsel %vm5266_vm5, %v14543_v23, %v5263_v40  ;;  %7852 = vmatpush3.bf16.msra.mxu0 %v7851_v30  ;;  %v7921_v6 = vpack.c.bf16 %v14679_v47, %v14674_v60  ;;  %vm15509_vm5 = vmmov %vm15502_vm0  ;;  %v15512_v47 = vld [vmem:[#allocation38_spill] sm:$0xff] }
 0xe68   : > { %7880 = vmatpush3.bf16.msra.mxu1 %v7879_v36  ;;  %v9684_v18 = vunpack.i.l.bf16 %v15505_v25  ;;  %v9825_v58 = vunpack.i.h.bf16 %v15495_v12  ;;  %v7853_v44 = vpack.c.bf16 %v5270_v7, %v14623_v35  ;;  %v5328_v26 = vsel %vm15506_vm3, %v9819_v51, %v9820_v1  ;;  %v5323_v23 = vpop.permute.xlu0 %5322  ;;  %vm15517_vm15 = vmmov %vm15501_vm4 }
 0xe69   : > { %7882 = vmatprep.subr.bf16.mxu1 %v7881_v15  ;;  %v9830_v9 = vunpack.i.h.bf16 %v15504_v22  ;;  %v9694_v39 = vunpack.i.l.bf16 %v15507_v53  ;;  %v7883_v59 = vpack.c.bf16 %v5327_v0, %v5326_v3  ;;  %v7889_v17 = vpack.c.bf16 %v5462_v28, %v5461_v11  ;;  %v5382_v12 = vpop.permute.xlu1 %5381  ;;  %v5611_v15 = vld [vmem:[#allocation13 + $0x28] sm:$0xff]  ;;  %v5608_v28 = vld [vmem:[#allocation13 + $0x10] sm:$0xff] }
 0xe6a   : > { %v14713_v4 = vunpack.i.l.bf16 %v15508_v31  ;;  %v5329_v8 = vsel %vm15509_vm5, %v9819_v51, %v5323_v23  ;;  %7854 = vmatprep.subr.bf16.mxu0 %v7853_v44  ;;  %v5401_v35 = vsel %vm5400_vm13, %v9829_v52, %v9669_v2  ;;  %v5402_v50 = vsel %vm5400_vm13, %v9829_v52, %v9670_v43  ;;  %v5606_v51 = vld [vmem:[#allocation13] sm:$0xff] }
 0xe6b   : > { %v9690_v37 = vunpack.i.h.bf16 %v15510_v29  ;;  %v9695_v36 = vunpack.i.h.bf16 %v15507_v53  ;;  %v7887_v46 = vpack.c.bf16 %v5329_v8, %v5328_v26  ;;  %v5389_v19 = vsel %vm5385_vm9, %v14615_v34, %v5382_v12  ;;  %7856 = vmatpush3.bf16.msra.mxu0 %v7855_v54 }
 0xe6c   : > { %7884 = vmatpush3.bf16.msra.mxu1 %v7883_v59  ;;  %v9689_v48 = vunpack.i.l.bf16 %v15510_v29  ;;  %v9839_v30 = vunpack.i.l.bf16 %v15511_v55  ;;  %v7885_v2 = vpack.c.bf16 %v5389_v19, %v5388_v5  ;;  %7890 = vmatprep.subr.bf16.mxu0 %v7889_v17  ;;  %v5463_v43 = vsel %vm5460_vm7, %v14651_v62, %v9825_v58  ;;  %v5397_v38 = vpop.permute.xlu0 %5396 }
 0xe6d   : > { %v9835_v1 = vunpack.i.h.bf16 %v15508_v31  ;;  %v5403_v60 = vsel %vm5400_vm13, %v9829_v52, %v9830_v9  ;;  %v7891_v34 = vpack.c.bf16 %v5402_v50, %v5401_v35  ;;  %vm15513_vm11 = vcmp.lt.s32.totalorder %v10725_v10, 18  ;;  %v5457_v0 = vpop.permute.xlu1 %5456 }
 0xe6e   : > { %v14737_v24 = vsel %vm15513_vm11, %v15512_v47, %v9694_v39  ;;  %v9840_v5 = vunpack.i.h.bf16 %v15511_v55  ;;  %v5404_v3 = vsel %vm5400_vm13, %v9829_v52, %v5397_v38  ;;  %5685 = vmatmul.mubr.f32.vlgmr.msra.gmra.mrb[112].mxu0 %v5606_v51  ;;  %7886 = vmatprep.subr.bf16.mxu1 %v7885_v2  ;;  %v5476_v22 = vsel %vm5475_vm14, %v14713_v4, %v9684_v18  ;;  %vm15514_vm6 = vmmov %vm15513_vm11  ;;  %v15518_v55 = vld [vmem:[#allocation53_spill] sm:$0xff] }
 0xe6f   : > { %v5477_v61 = vsel %vm5475_vm14, %v14713_v4, %v9685_v33  ;;  %v7895_v40 = vpack.c.bf16 %v5404_v3, %v5403_v60  ;;  %v5464_v11 = vsel %vm5460_vm7, %v14651_v62, %v5457_v0  ;;  %7892 = vmatpush3.bf16.msra.mxu0 %v7891_v34  ;;  %v14754_v52 = vsel %vm15514_vm6, %v15512_v47, %v9695_v36  ;;  %v15515_v62 = vld [vmem:[#allocation51_spill] sm:$0xff]  ;;  %vm15525_vm2 = vmmov %vm15514_vm6 }
 0xe70   : > { %7888 = vmatpush3.bf16.msra.mxu1 %v7887_v46  ;;  %vm5490_vm9 = vcmp.lt.s32.totalorder %v10725_v10, 25  ;;  %v7893_v25 = vpack.c.bf16 %v5464_v11, %v5463_v43  ;;  %v5416_v33 = vsel %vm5415_vm1, %v9839_v30, %v9689_v48  ;;  %v5417_v54 = vsel %vm5415_vm1, %v9839_v30, %v9690_v37  ;;  %5824 = vmatprep.mubr.f32.mxu0 %v5611_v15  ;;  %v9868_v58 = vpop.permute.xlu0 %9867  ;;  %v15516_v37 = vld [vmem:[#allocation54_spill] sm:$0xff]  ;;  %v15519_v0 = vld [vmem:[#allocation35_spill] sm:$0xff] }
 0xe71   : > { %7922 = vmatprep.subr.bf16.mxu1 %v7921_v6  ;;  %vm5430_vm7 = vcmp.lt.s32.totalorder %v10725_v10, 29  ;;  %v9705_v7 = vunpack.i.h.bf16 %v15515_v62  ;;  %v9704_v18 = vunpack.i.l.bf16 %v15515_v62  ;;  %v7897_v44 = vpack.c.bf16 %v5477_v61, %v5476_v22  ;;  %v5613_v6 = vld [vmem:[#allocation13 + $0x38] sm:$0xff]  ;;  %v9863_v23 = vpop.permute.xlu1 %9862 }
 0xe72   : > { %v5478_v26 = vsel %vm5475_vm14, %v14713_v4, %v9835_v1  ;;  %v14768_v9 = vunpack.i.l.bf16 %v14444_v21  ;;  %v9870_v53 = vunpack.i.h.bf16 %v9868_v58  ;;  %v9869_v39 = vunpack.i.l.bf16 %v9868_v58  ;;  %7894 = vmatprep.subr.bf16.mxu0 %v7893_v25  ;;  %v15521_v61 = vld [vmem:[#allocation55_spill] sm:$0xff] }
 0xe73   : > { %5755 = vmatmul.mubr.f32.vlgmr.msra.gmra.mrb[120].mxu1 %v5608_v28  ;;  %v5418_v59 = vsel %vm5415_vm1, %v9839_v30, %v9840_v5  ;;  %v9845_v17 = vunpack.i.h.bf16 %v14444_v21  ;;  %v9865_v31 = vunpack.i.h.bf16 %v9863_v23  ;;  %v9864_v8 = vunpack.i.l.bf16 %v9863_v23  ;;  %7896 = vmatpush3.bf16.msra.mxu0 %v7895_v40 }
 0xe74   : > { %7924 = vmatpush3.bf16.msra.mxu1 %v7923_v16  ;;  %v7899_v12 = vpack.c.bf16 %v5417_v54, %v5416_v33  ;;  %v9715_v35 = vunpack.i.h.bf16 %v14446_v14  ;;  %v9714_v50 = vunpack.i.l.bf16 %v14446_v14  ;;  %v5521_v29 = vsel %vm4350_vm10, %v13301_v41, %v9870_v53  ;;  %7898 = vmatprep.subr.bf16.mxu0 %v7897_v44  ;;  %v5412_v16 = vpop.permute.xlu0 %5411  ;;  %v15523_v33 = vld [vmem:[#allocation56_spill] sm:$0xff] }
 0xe75   : > { %v5520_v21 = vsel %vm4350_vm10, %v13301_v41, %v9869_v39  ;;  %vm5505_vm13 = vcmp.lt.s32.totalorder %v10725_v10, 24  ;;  %5894 = vmatprep.mubr.f32.mxu1 %v5613_v6  ;;  %v9849_v56 = vunpack.i.l.bf16 %v15516_v37  ;;  %v5568_v14 = vsel %vm15517_vm15, %v15499_v32, %v9864_v8  ;;  %v5472_v41 = vpop.permute.xlu1 %5471  ;;  %v15524_v6 = vld [vmem:[#allocation58_spill] sm:$0xff] }
 0xe76   : > { %v7927_v27 = vpack.c.bf16 %v5521_v29, %v5520_v21  ;;  %v5569_v36 = vsel %vm15501_vm4, %v15499_v32, %v9865_v31  ;;  %v5419_v46 = vsel %vm5415_vm1, %v9839_v30, %v5412_v16  ;;  %v5491_v51 = vsel %vm5490_vm9, %v14768_v9, %v9704_v18  ;;  %v15528_v21 = vld [vmem:[#allocation59_spill] sm:$0xff] }
 0xe77   : > { %v7925_v19 = vpack.c.bf16 %v5569_v36, %v5568_v14  ;;  %v5492_v48 = vsel %vm5490_vm9, %v14768_v9, %v9705_v7  ;;  %vm5445_vm10 = vcmp.lt.s32.totalorder %v10725_v10, 28  ;;  %v9710_v2 = vunpack.i.h.bf16 %v15518_v55  ;;  %7900 = vmatpush3.bf16.msra.mxu0 %v7899_v12  ;;  %v15529_v16 = vld [vmem:[#allocation31_spill] sm:$0xff] }
 0xe78   : > { %v9709_v43 = vunpack.i.l.bf16 %v15518_v55  ;;  %v7903_v32 = vpack.c.bf16 %v5419_v46, %v5418_v59  ;;  %v5479_v30 = vsel %vm5475_vm14, %v14713_v4, %v5472_v41  ;;  %v9850_v1 = vunpack.i.h.bf16 %v15516_v37  ;;  %v9878_v15 = vpop.permute.xlu0 %9877 }
 0xe79   : > { %v7901_v38 = vpack.c.bf16 %v5479_v30, %v5478_v26  ;;  %7926 = vmatprep.subr.bf16.mxu1 %v7925_v19  ;;  %v7929_v60 = vpack.c.bf16 %v14754_v52, %v14737_v24  ;;  %v5493_v34 = vsel %vm5490_vm9, %v14768_v9, %v9845_v17  ;;  %v7905_v5 = vpack.c.bf16 %v5492_v48, %v5491_v51  ;;  %v9873_v28 = vpop.permute.xlu1 %9872  ;;  %v15527_v17 = vld [vmem:[#allocation57_spill] sm:$0xff] }
 0xe7a   : > { %7928 = vmatpush3.bf16.msra.mxu1 %v7927_v27  ;;  %v5431_v3 = vsel %vm5430_vm7, %v9849_v56, %v9709_v43  ;;  %v5432_v4 = vsel %vm5430_vm7, %v9849_v56, %v9710_v2  ;;  %vm15520_vm14 = vcmp.lt.s32.totalorder %v10725_v10, 17  ;;  %v9725_v40 = vunpack.i.h.bf16 %v15521_v61 }
 0xe7b   : > { %v5590_v22 = vsel %vm15520_vm14, %v15519_v0, %v9714_v50  ;;  %v9880_v24 = vunpack.i.h.bf16 %v9878_v15  ;;  %v9879_v11 = vunpack.i.l.bf16 %v9878_v15  ;;  %7902 = vmatprep.subr.bf16.mxu0 %v7901_v38  ;;  %7930 = vmatprep.subr.bf16.mxu1 %v7929_v60  ;;  %vm15522_vm0 = vmmov %vm15520_vm14  ;;  %v9724_v25 = vunpack.i.l.bf16 %v15521_v61  ;;  %v15530_v60 = vld [vmem:[#allocation30_spill] sm:$0xff] }
 0xe7c   : > { %v5591_v52 = vsel %vm15522_vm0, %v15519_v0, %v9715_v35  ;;  %v14825_v54 = vunpack.i.l.bf16 %v15523_v33  ;;  %v9875_v62 = vunpack.i.h.bf16 %v9873_v28  ;;  %v9874_v7 = vunpack.i.l.bf16 %v9873_v28  ;;  %7904 = vmatpush3.bf16.msra.mxu0 %v7903_v32  ;;  %v5427_v23 = vpop.permute.xlu0 %5426  ;;  %vm15532_vm3 = vmmov %vm15522_vm0 }
 0xe7d   : > { %v5533_v18 = vsel %vm3362_vm12, %v13509_v20, %v9880_v24  ;;  %v5532_v58 = vsel %vm3362_vm12, %v13509_v20, %v9879_v11  ;;  %7906 = vmatprep.subr.bf16.mxu0 %v7905_v5  ;;  %v5433_v44 = vsel %vm5430_vm7, %v9849_v56, %v9850_v1  ;;  %v7907_v26 = vpack.c.bf16 %v5432_v4, %v5431_v3  ;;  %vm15526_vm12 = vmmov %vm15525_vm2  ;;  %v5487_v35 = vpop.permute.xlu1 %5486 }
 0xe7e   : > { %v9859_v53 = vunpack.i.l.bf16 %v15524_v6  ;;  %v7935_v39 = vpack.c.bf16 %v5533_v18, %v5532_v58  ;;  %7932 = vmatpush3.bf16.msra.mxu1 %v7931_v42  ;;  %v5580_v59 = vsel %vm15525_vm2, %v15512_v47, %v9874_v7  ;;  %v5581_v20 = vsel %vm15526_vm12, %v15512_v47, %v9875_v62  ;;  %vm15533_vm5 = vmmov %vm15522_vm0 }
 0xe7f   : > { %v9730_v31 = vunpack.i.h.bf16 %v15527_v17  ;;  %v9729_v8 = vunpack.i.l.bf16 %v15527_v17  ;;  %v5434_v12 = vsel %vm5430_vm7, %v9849_v56, %v5427_v23  ;;  %v7933_v50 = vpack.c.bf16 %v5581_v20, %v5580_v59 }
 0xe80   : > { %v7911_v45 = vpack.c.bf16 %v5434_v12, %v5433_v44  ;;  %v5494_v57 = vsel %vm5490_vm9, %v14768_v9, %v5487_v35  ;;  %7908 = vmatpush3.bf16.msra.mxu0 %v7907_v26  ;;  %v5506_v42 = vsel %vm5505_vm13, %v14825_v54, %v9724_v25  ;;  %v5507_v47 = vsel %vm5505_vm13, %v14825_v54, %v9725_v40  ;;  %v9888_v36 = vpop.permute.xlu0 %9887  ;;  %v5612_v12 = vld [vmem:[#allocation13 + $0x30] sm:$0xff] }
 0xe81   : > { %v7939_v29 = vpack.c.bf16 %v14531_v63, %v14536_v13  ;;  %v9734_v37 = vunpack.i.l.bf16 %v15528_v21  ;;  %v7909_v56 = vpack.c.bf16 %v5494_v57, %v5493_v34  ;;  %7934 = vmatprep.subr.bf16.mxu1 %v7933_v50  ;;  %v7937_v27 = vpack.c.bf16 %v5591_v52, %v5590_v22  ;;  %v9883_v51 = vpop.permute.xlu1 %9882  ;;  %v15535_v52 = vld [vmem:[#allocation37_spill] sm:$0xff] }
 0xe82   : > { %v9740_v14 = vunpack.i.h.bf16 %v15529_v16  ;;  %v9735_v9 = vunpack.i.h.bf16 %v15528_v21  ;;  %7936 = vmatpush3.bf16.msra.mxu1 %v7935_v39  ;;  %v5446_v46 = vsel %vm5445_vm10, %v9859_v53, %v9729_v8  ;;  %v5447_v41 = vsel %vm5445_vm10, %v9859_v53, %v9730_v31  ;;  %v5610_v39 = vld [vmem:[#allocation13 + $0x20] sm:$0xff] }
 0xe83   : > { %v9860_v19 = vunpack.i.h.bf16 %v15524_v6  ;;  %v9890_v63 = vunpack.i.h.bf16 %v9888_v36  ;;  %v9889_v13 = vunpack.i.l.bf16 %v9888_v36  ;;  %7910 = vmatprep.subr.bf16.mxu0 %v7909_v56  ;;  %7938 = vmatprep.subr.bf16.mxu1 %v7937_v27  ;;  %v7913_v48 = vpack.c.bf16 %v5507_v47, %v5506_v42 }
 0xe84   : > { %v9739_v55 = vunpack.i.l.bf16 %v15529_v16  ;;  %v9855_v2 = vunpack.i.h.bf16 %v15523_v33  ;;  %v9885_v43 = vunpack.i.h.bf16 %v9883_v51  ;;  %v9884_v32 = vunpack.i.l.bf16 %v9883_v51  ;;  %7912 = vmatpush3.bf16.msra.mxu0 %v7911_v45  ;;  %v5442_v5 = vpop.permute.xlu0 %5441 }
 0xe85   : > { %v5545_v30 = vsel %vm4403_vm8, %v15484_v49, %v9890_v63  ;;  %v5544_v1 = vsel %vm4403_vm8, %v15484_v49, %v9889_v13  ;;  %7914 = vmatprep.subr.bf16.mxu0 %v7913_v48  ;;  %v7915_v38 = vpack.c.bf16 %v5447_v41, %v5446_v46  ;;  %vm15531_vm1 = vcmp.lt.s32.totalorder %v10725_v10, 16  ;;  %v5502_v40 = vpop.permute.xlu1 %5501 }
 0xe86   : > { %v5602_v34 = vsel %vm15531_vm1, %v15530_v60, %v9734_v37  ;;  %v7943_v15 = vpack.c.bf16 %v5545_v30, %v5544_v1  ;;  %7940 = vmatpush3.bf16.msra.mxu1 %v7939_v29  ;;  %v5592_v3 = vsel %vm15532_vm3, %v15519_v0, %v9884_v32  ;;  %v5593_v4 = vsel %vm15533_vm5, %v15519_v0, %v9885_v43  ;;  %vm15534_vm8 = vmmov %vm15531_vm1  ;;  %v2959_v43 = vld [vmem:[%s15543_s30 + $0x8] sm:$0xff] }
 0xe87   : > { %v5603_v49 = vsel %vm15534_vm8, %v15530_v60, %v9735_v9  ;;  %v5448_v22 = vsel %vm5445_vm10, %v9859_v53, %v9860_v19  ;;  %v5449_v61 = vsel %vm5445_vm10, %v9859_v53, %v5442_v5  ;;  %v7941_v24 = vpack.c.bf16 %v5593_v4, %v5592_v3  ;;  %vm15541_vm15 = vmmov %vm15531_vm1  ;;  %v15544_v32 = vld [vmem:[#allocation32_spill] sm:$0xff]  ;;  %v15545_v1 = vld [vmem:[#allocation33_spill] sm:$0xff] }
 0xe88   : > { %v7919_v11 = vpack.c.bf16 %v5449_v61, %v5448_v22  ;;  %v5508_v28 = vsel %vm5505_vm13, %v14825_v54, %v9855_v2  ;;  %v5509_v0 = vsel %vm5505_vm13, %v14825_v54, %v5502_v40  ;;  %7916 = vmatpush3.bf16.msra.mxu0 %v7915_v38  ;;  %vm15536_vm11 = vcmp.lt.s32.totalorder %v10725_v10, 20  ;;  %v9898_v18 = vpop.permute.xlu0 %9897  ;;  %vm15540_vm13 = vmmov %vm15531_vm1  ;;  %v2958_v2 = vld [vmem:[%s15542_s26] sm:$0xff]  ;;  %s14945_s26 = scalar_lea.hbm %s15550_s27, %s6146_s20  ;;  %s10292_s20 = smov [#allocation14]  }
 0xe89   : > { %v5555_v25 = vsel %vm15536_vm11, %v15535_v52, %v9740_v14  ;;  %vm15537_vm6 = vmmov %vm15536_vm11  ;;  %v7917_v62 = vpack.c.bf16 %v5509_v0, %v5508_v28  ;;  %7942 = vmatprep.subr.bf16.mxu1 %v7941_v24  ;;  %v7945_v7 = vpack.c.bf16 %v5603_v49, %v5602_v34  ;;  %v9900_v58 = vunpack.i.h.bf16 %v9898_v18  ;;  %v9893_v26 = vpop.permute.xlu1 %9892 }
 0xe8a   : > { %v5554_v33 = vsel %vm15537_vm6, %v15535_v52, %v9739_v55  ;;  %7944 = vmatpush3.bf16.msra.mxu1 %v7943_v15  ;;  %v9899_v44 = vunpack.i.l.bf16 %v9898_v18  ;;  %v9895_v6 = vunpack.i.h.bf16 %v9893_v26  ;;  %v9894_v53 = vunpack.i.l.bf16 %v9893_v26  ;;  %vm15538_vm9 = vmmov %vm15537_vm6 }
 0xe8b   : > { %7918 = vmatprep.subr.bf16.mxu0 %v7917_v62  ;;  %7946 = vmatprep.subr.bf16.mxu1 %v7945_v7  ;;  %v7947_v54 = vpack.c.bf16 %v5555_v25, %v5554_v33  ;;  %v5557_v23 = vsel %vm15538_vm9, %v15535_v52, %v9900_v58  ;;  %vm15539_vm7 = vmmov %vm15537_vm6  ;;  %vm2962_vm14 = vcmask 31744   ;;  %vm15546_vm0 = vcmask 7168  }
 0xe8c   : > { %7920 = vmatpush3.bf16.msra.mxu0 %v7919_v11  ;;  %v5556_v59 = vsel %vm15539_vm7, %v15535_v52, %v9899_v44  ;;  %v5604_v17 = vsel %vm15540_vm13, %v15530_v60, %v9894_v53  ;;  %v5605_v31 = vsel %vm15541_vm15, %v15530_v60, %v9895_v6  ;;  %vm15547_vm2 = vmmov %vm15546_vm0  ;;  %vm2975_vm12 = vcmask 24576  }
 0xe8d   : > { %v7951_v20 = vpack.c.bf16 %v5557_v23, %v5556_v59  ;;  %v7949_v8 = vpack.c.bf16 %v5605_v31, %v5604_v17 }
 0xe8e   : > { %7948 = vmatpush3.bf16.msra.mxu1 %v7947_v54 }
 0xe8f   : > { %5825 = vmatmul.mubr.f32.vlgmr.msra.gmra.mrb[114].mxu0 %v5610_v39  ;;  %7950 = vmatprep.subr.bf16.mxu1 %v7949_v8 }
 0xe92   : > { %7952 = vmatpush3.bf16.msra.mxu1 %v7951_v20 }
 0xe95   : > { %5895 = vmatmul.mubr.f32.vlgmr.msra.gmra.mrb[122].mxu1 %v5612_v12 }
 0xe99   : > { %v5618_v41 = vpop.permute.xlu0 %5617 }
 0xec8   : > { %v2934_v35 = vpop.xlane.xlu1 %2933 }
 0xec9   : > { %v2935_v50 = vrot.slane %v2934_v35, 4 }
 0xecb   : > { %v2936_v45 = vadd.f32 %v2935_v50, %v2934_v35 }
 0xecd   : > { %v2937_v57 = vrot.slane %v2936_v45, 2 }
 0xecf   : > { %v2938_v42 = vadd.f32 %v2937_v57, %v2936_v45 }
 0xed1   : > { %v2939_v47 = vrot.slane %v2938_v42, 1 }
 0xed3   : > { %v2940_v29 = vadd.f32 %v2939_v47, %v2938_v42 }
 0xed5   : > { %7953 = vpush %v2940_v29 }
 0xf06   : > { %s7954_s1 = spop %7953 }
 0xf07   : > { %v2942_v21 = vstv %s7954_s1  ;;  %s5907_s1 = scalar_lea.sflag [#allocation4], %s14931_s23 }
 0xf08   : > { %9901 = vrsqrt.f32 %v2942_v21  ;;  %vm2945_vm4 = vcmp.eq.f32.partialorder %v2942_v21, inf  ;;  %v2948_v56 = vand.u32 2147483648, %v2942_v21  ;;  %vm2947_vm10 = vcmp.eq.f32.partialorder %v2942_v21, 0.0 }
 0xf12   : > { %v9902_v37 = vpop.eup %9901 }
 0xf13   : > { %v2944_v10 = vmul.f32 %v9902_v37, %v2942_v21 }
 0xf15   : > { %v2946_v27 = vsel %vm2945_vm4, %v2942_v21, %v2944_v10 }
 0xf16   : > { %v2949_v16 = vsel %vm2947_vm10, %v2948_v56, %v2946_v27 }
 0xf17   : > { %7955 = vpush %v2949_v16 }
 0xf41   : > { %v7083_v14 = vpop.f32.mrb[112].mxu0 }
 0xf42   : > { %v7084_v9 = vpop.f32.mrb[113].mxu0 }
 0xf43   : > { %v7085_v36 = vadd.f32 %v7084_v9, %v7083_v14 }
 0xf45   : > { %v5687_v63 = vadd.f32 %v7085_v36, %v5618_v41 }
 0xf46   : > { %v7118_v46 = vpop.f32.mrb[120].mxu1 }
 0xf47   : > { %v7119_v19 = vpop.f32.mrb[121].mxu1 }
 0xf48   : > { %v7120_v13 = vadd.f32 %v7119_v19, %v7118_v46  ;;  %s7956_s24 = spop %7955 }
 0xf49   : > { %s2951_s9 = sadd.f32 1e-05, %s7956_s24  ;;  %s15548_s24 = sld [smem:[#allocation72_spill]] }
 0xf4a   : > { %v5757_v51 = vadd.f32 %v7120_v13, %v5687_v63 }
 0xf4b   : > { %v2952_v48 = vstv %s2951_s9  ;;  %s15549_s9 = sld [smem:[#allocation28_spill]] }
 0xf4c   : > { %9903 = vrcp.f32 %v2952_v48 }
 0xf4f   : > { %v2972_v33 = vld [vmem:[%s15548_s24] sm:$0x1]  ;;  %s10101_s24 = scalar_lea.vmem %s14947_s22, 128 }
 0xf50   : > { %p10102_p4 = scmp.ne.s32.totalorder %s14947_s22, %s10101_s24 }
 0xf51   : > { %p15553_p7 = scmp.ne.s32.totalorder %s15549_s9, 0 }
 0xf53   : > { %p10103_p8 = pnand %p10102_p4, %p15553_p7 }
 0xf55   : > { %p10104_p11 = pneg %p10103_p8 }
 0xf56   : > { %v9904_v55 = vpop.eup %9903 }
 0xf57   : > { %v2954_v30 = vmul.f32 %v9904_v55, %v15544_v32  ;;  %v2955_v38 = vmul.f32 %v9904_v55, %v15545_v1 }
 0xf59   : > { %2956 = vst.msk [vmem:[%s773_s11] sm:$0xff] %vm15546_vm0, %v2954_v30  ;;  %v2960_v60 = vmul.f32 %v2958_v2, %v2954_v30  ;;  %v2961_v34 = vmul.f32 %v2959_v43, %v2955_v38 }
 0xf5a   : > { %2957 = vst.msk [vmem:[%s773_s11 + $0x8] sm:$0xff] %vm15547_vm2, %v2955_v38  ;;  %s10105_s11 = sshll.u32 %s10292_s20, 4  ;;  %s10106_s11 = int_to_ptr.vmem [resolvable:$false] %s10105_s11 }
 0xf5b   : > { %v2963_v15 = vsel %vm2962_vm14, %v2960_v60, 0.0  ;;  %v2964_v5 = vsel %vm2962_vm14, %v2961_v34, 0.0  ;;  %s10107_s12 = scalar_lea.vmem %s10106_s11, 256  ;;  %p10108_p13 = scmp.lt.s32.totalorder %s14947_s22, %s10106_s11 }
 0xf5c   : > { %v2965_v3 = vadd.f32 %v2964_v5, %v2963_v15  ;;  %p10109_p5 = scmp.lt.s32.totalorder %s10107_s12, %s10101_s24 }
 0xf5e   : > { %v2966_v4 = vrot.slane %v2965_v3, 4  ;;  %p10110_p0 = por %p10109_p5, %p10108_p13 }
 0xf60   : > { %v2967_v49 = vadd.f32 %v2966_v4, %v2965_v3  ;;  %p10111_p6 = pnand %p10110_p0, %p10104_p11 }
 0xf62   : > { %v7153_v22 = vpop.f32.mrb[114].mxu0  ;;  %v2968_v24 = vrot.slane %v2967_v49, 2 }
 0xf63   : > { %v7154_v61 = vpop.f32.mrb[115].mxu0 }
 0xf64   : > { %v7155_v40 = vadd.f32 %v7154_v61, %v7153_v22  ;;  %v2969_v28 = vadd.f32 %v2968_v24, %v2967_v49 }
 0xf66   : > { %v5827_v11 = vadd.f32 %v7155_v40, %v5757_v51  ;;  %v2970_v52 = vrot.slane %v2969_v28, 1 }
 0xf68   : > { %v7188_v0 = vpop.f32.mrb[122].mxu1  ;;  %v2971_v7 = vadd.f32 %v2970_v52, %v2969_v28 }
 0xf69   : > { %v7189_v25 = vpop.f32.mrb[123].mxu1 }
 0xf6a   : > { %v7190_v62 = vadd.f32 %v7189_v25, %v7188_v0  ;;  %v2973_v58 = vadd.f32 %v2972_v33, %v2971_v7 }
 0xf6c   : > { %v5897_v18 = vadd.f32 %v7190_v62, %v5827_v11  ;;  %v2974_v44 = vmax.f32 %v2973_v58, 0.0 }
 0xf6e   : > { %5900 = vst [vmem:[%s758_s4] sm:$0xff] %v5897_v18 }
 0xf6f   : > { %10114 = shalt.err (!%p10111_p6)
}
 0xf70   : > { %s10115_s4 = scalar_lea.hbm %s14945_s26, 128  ;;  %s10119_s5 = scalar_lea.hbm %s15551_s28, 256 }
 0xf71   : > { %p10116_p9 = scmp.ne.s32.totalorder %s14945_s26, %s10115_s4  ;;  %p10120_p1 = scmp.lt.u32.totalorder %s14945_s26, %s15551_s28 }
 0xf72   : > { %p10121_p2 = scmp.lt.u32.totalorder %s10119_s5, %s10115_s4  ;;  %p10123_p4 = scmp.lt.u32.totalorder %s10115_s4, %s14945_s26 }
 0xf73   : > { %p10117_p10 = pnand %p10116_p9, %p15553_p7 }
 0xf74   : > { %p10122_p3 = por %p10121_p2, %p10120_p1 }
 0xf75   : > { %p10118_p12 = pneg %p10117_p10 }
 0xf76   : > { %p10124_p8 = por %p10123_p4, %p10122_p3 }
 0xf78   : > { %p10125_p11 = pnand %p10124_p8, %p10118_p12 }
 0xf7a   : > { %10128 = shalt.err (!%p10125_p11)
}
 0xf7b   : > { %7985 = dma.vmem_to_hbm [thread:$0]  (%p15553_p7), %s14947_s22, 128, %s14945_s26, %s5907_s1   ;;  %2976 = vst.msk [vmem:[%s764_s6] sm:$0x1] %vm2975_vm12, %v2974_v44 }
 0xf7c   : > { %s5912_s24 = scalar_lea.sflag [#allocation16], %s14931_s23  ;;  %s10129_s11 = scalar_lea.vmem %s14954_s10, 16 }
 0xf7d   : > { %p10130_p13 = scmp.ne.s32.totalorder %s14954_s10, %s10129_s11  ;;  %s10293_s12 = smov [#allocation15]  }
 0xf7e   : > { %s10133_s4 = sshll.u32 %s10293_s12, 4  ;;  %s10134_s4 = int_to_ptr.vmem [resolvable:$false] %s10133_s4 }
 0xf7f   : > { %p10131_p5 = pnand %p10130_p13, %p15553_p7  ;;  %s10135_s2 = scalar_lea.vmem %s10134_s4, 32 }
 0xf80   : > { %p10136_p6 = scmp.lt.s32.totalorder %s14954_s10, %s10134_s4  ;;  %p10137_p9 = scmp.lt.s32.totalorder %s10135_s2, %s10129_s11 }
 0xf81   : > { %p10132_p0 = pneg %p10131_p5 }
 0xf82   : > { %p10138_p10 = por %p10137_p9, %p10136_p6 }
 0xf84   : > { %p10139_p12 = pnand %p10138_p10, %p10132_p0 }
 0xf86   : > { %10142 = shalt.err (!%p10139_p12)
}
 0xf87   : > { %s10143_s23 = scalar_lea.hbm %s14952_s21, 16  ;;  %s10147_s26 = scalar_lea.hbm %s15552_s0, 32 }
 0xf88   : > { %p10144_p1 = scmp.ne.s32.totalorder %s14952_s21, %s10143_s23  ;;  %p10148_p4 = scmp.lt.u32.totalorder %s14952_s21, %s15552_s0 }
 0xf89   : > { %p10149_p8 = scmp.lt.u32.totalorder %s10147_s26, %s10143_s23  ;;  %p10151_p13 = scmp.lt.u32.totalorder %s10143_s23, %s14952_s21 }
 0xf8a   : > { %p10145_p2 = pnand %p10144_p1, %p15553_p7 }
 0xf8b   : > { %p10150_p11 = por %p10149_p8, %p10148_p4 }
 0xf8c   : > { %p10146_p3 = pneg %p10145_p2 }
 0xf8d   : > { %p10152_p5 = por %p10151_p13, %p10150_p11 }
 0xf8f   : > { %p10153_p0 = pnand %p10152_p5, %p10146_p3 }
 0xf91   : > { %10156 = shalt.err (!%p10153_p0)
}
 0xf92   : > { %7986 = dma.vmem_to_hbm [thread:$0]  (%p15553_p7), %s14954_s10, 16, %s14952_s21, %s5912_s24  }
 0xf93 PF: > { %s15554_s5 = sld [smem:[#allocation25_spill]]  ;;  %s15555_s3 = sld [smem:[#allocation23_spill]] }
 0xf94   : > { %s15556_s20 = sld [smem:[#allocation29_spill]] }
 0xf99   : > { %p8032_p6 = scmp.ge.s32.totalorder %s15554_s5, 2  ;;  %s5960_s11 = sand.u32 1, %s15555_s3  }
 0xf9a   : > { %p15557_p9 = scmp.ne.s32.totalorder %s15556_s20, 0  ;;  %s5961_s12 = scalar_lea.sflag [#allocation4], %s5960_s11 }
 0xf9c   : > { %p8012_p10 = pnand %p8032_p6, %p15557_p9 }
 0xf9e   : > { %10190 = dma.done.wait (!%p8012_p10), %s5961_s12, 128  }
 0xf9f   : > { %10192 = vsyncadd (!%p8012_p10), %s5961_s12, 4294967168  ;;  %s5970_s4 = scalar_lea.sflag [#allocation16], %s5960_s11 }
 0xfa0   : > { %10194 = dma.done.wait (!%p8012_p10), %s5970_s4, 16  }
 0xfa1   : > { %10196 = vsyncadd (!%p8012_p10), %s5970_s4, 4294967280  ;;  %s15558_s27 = sld [smem:[#allocation26_spill]]  ;;  %s15559_s9 = sld [smem:[#allocation24_spill]] }
 0xfa2   : > { %s15560_s26 = sld [smem:[#allocation27_spill]]  ;;  %s15561_s2 = smov %s10203_s25 }
 0xfa7   : > { %p39_p7 = scmp.ge.s32.totalorder %s15558_s27, 4   ;;  %s15562_s25 = smov %s15559_s9 }
 0xfa9   :  { %41 = sbr.rel (!%p39_p7) target bundleno = 25 (0x19), region = 189 }
 0xfb0   :  { %5974 = vsyncpa [#allocation3], 1 }
 0xfb1   :  { %5976 = vsyncpa [#allocation3 + $0x1], 1 }
 0xfb2   :  { %5977 = vsyncpa [#allocation6], 1 }
 0xfb3   :  { %5978 = vsyncpa [#allocation9], 1 }
 0xfb4   :  { %5979 = vsyncpa [#allocation12], 1 }
 0xfb5   :  { %5980 = vsyncpa [#allocation4], 1 }
 0xfb6   :  { %5982 = vsyncpa [#allocation4 + $0x1], 1 }
 0xfb7   :  { %5983 = vsyncpa [#allocation16], 1 }
 0xfb8   :  { %5985 = vsyncpa [#allocation16 + $0x1], 1 }

</bundles_post_ra>
